<compile_context>
chip_gen: v7x
topology: tpu7x:2x2x1
jax: 0.10.0
libtpu: 0.0.40
codegen_flags: <defaults>
</compile_context>

<pallas_src>
import functools

import jax
import jax.numpy as jnp
from jax.experimental import pallas as pl
from jax.experimental.pallas import tpu as pltpu


# ----------------------------- helpers -----------------------------

def _full_specs(args):
    """Whole-array VMEM blocks for a grid=(1,) pallas_call."""
    specs = []
    for a in args:
        nd = a.ndim
        specs.append(pl.BlockSpec(a.shape, lambda i, _nd=nd: (0,) * _nd))
    return specs


# ------------------- kernel 1: fused TransformAttention -------------------

def _ta_kernel(x_ref, stp_ref, stq_ref,
               wqt_ref, wqx_ref, bq_ref,
               wkvt_ref, wkvx_ref, bkv_ref,
               w0_ref, w1_ref, bst_ref,
               msum_ref, msumt_ref,
               o_ref, *, B, T, N, H):
    f32 = jnp.float32
    # shared projections of the time embeddings (done once per kernel)
    q_ste = jnp.dot(stq_ref[...], wqt_ref[...], preferred_element_type=f32)    # (B*T, H)
    kv_ste = jnp.dot(stp_ref[...], wkvt_ref[...], preferred_element_type=f32)  # (B, 2H)
    msum = msum_ref[...]            # (H, d)  head-sum matrix
    msumt = msumt_ref[...]          # (d, H)  head-expand matrix
    w1 = w1_ref[...]
    bq = bq_ref[...]
    bkv = bkv_ref[...]
    bst = bst_ref[...]

    for b in range(B):
        xb = x_ref[b]                                                      # (N, H)
        q_xb = jnp.dot(xb, wqx_ref[...], preferred_element_type=f32)       # (N, H)
        # key / value share one fused matmul (Wk || Wv)
        kv_b = jnp.maximum(
            jnp.dot(xb, wkvx_ref[...], preferred_element_type=f32)
            + kv_ste[b:b + 1, :] + bkv, 0.0)                               # (N, 2H)
        key_b = kv_b[:, :H]
        val_b = kv_b[:, H:]
        xw0_b = jnp.dot(xb, w0_ref[...], preferred_element_type=f32)       # (N, H)

        # per-head scores for every horizon step (key length is 1)
        scores = []
        for t in range(T):
            r = b * T + t
            q_bt = jnp.maximum(q_xb + q_ste[r:r + 1, :] + bq, 0.0)         # (N, H)
            scores.append(jnp.dot(q_bt * key_b, msum,
                                  preferred_element_type=f32))             # (N, d)

        # softmax over the horizon axis (torch softmax(dim=-2))
        m = scores[0]
        for t in range(1, T):
            m = jnp.maximum(m, scores[t])
        exps = [jnp.exp(s - m) for s in scores]
        tot = exps[0]
        for t in range(1, T):
            tot = tot + exps[t]
        inv = 1.0 / tot

        for t in range(T):
            p = exps[t] * inv                                              # (N, d)
            att = jnp.dot(p, msumt, preferred_element_type=f32) * val_b    # (N, H)
            # stack projection: X @ W0 + att @ W1 + b
            out_bt = xw0_b + jnp.dot(att, w1, preferred_element_type=f32) + bst
            r0 = (b * T + t) * N
            o_ref[r0:r0 + N, :] = out_bt.astype(o_ref.dtype)


def transform_attention_fused(X, STE_P, STE_Q_flat, p, T):
    """Fused TransformAttentionModel.forward.
    X:(B,N,H)  STE_P:(B,td)  STE_Q_flat:(B*T,td)  -> (B*T*N, H), rows = (b,t,n)."""
    B, N, H = X.shape
    td = STE_P.shape[1]
    d = 8                                   # fixed in the torch module
    assert H % d == 0
    hd = H // d
    f32 = jnp.float32

    Wq = p["Wq"].astype(f32)                                       # (td+H, H)
    Wkv = jnp.concatenate([p["Wk"], p["Wv"]], axis=1).astype(f32)  # (td+H, 2H)
    bkv = jnp.concatenate([p["bk"], p["bv"]], axis=0).reshape(1, 2 * H).astype(f32)
    head = jnp.arange(H, dtype=jnp.int32) // hd
    msum = (head[:, None] == jnp.arange(d, dtype=jnp.int32)[None, :]).astype(f32)

    args = (X.astype(f32), STE_P.astype(f32), STE_Q_flat.astype(f32),
            Wq[:td], Wq[td:], p["bq"].reshape(1, H).astype(f32),
            Wkv[:td], Wkv[td:], bkv,
            p["W_stack"][0].astype(f32), p["W_stack"][1].astype(f32),
            p["b_stack"].reshape(1, H).astype(f32),
            msum, msum.T)

    flops = 2 * (B * T * td * H + B * N * H * (2 * td + 5 * H)
                 + B * T * N * (2 * H * d + H * H))
    bytes_accessed = sum(int(a.size) * 4 for a in args) + B * T * N * H * 4

    return pl.pallas_call(
        functools.partial(_ta_kernel, B=B, T=T, N=N, H=H),
        out_shape=jax.ShapeDtypeStruct((B * T * N, H), f32),
        grid=(1,),
        in_specs=_full_specs(args),
        out_specs=pl.BlockSpec((B * T * N, H), lambda i: (0, 0)),
        compiler_params=pltpu.CompilerParams(dimension_semantics=("arbitrary",)),
        cost_estimate=pl.CostEstimate(flops=int(flops),
                                      transcendentals=int(B * T * N * d),
                                      bytes_accessed=int(bytes_accessed)),
    )(*args)


# ---------------- kernel 2: fused PM_Cell (GRU + PGCN) + projection ----------------

def _cell_proj_kernel(state_ref, s_ref, eexp_ref, texp_ref,
                      wg_ref, wu_ref, wp_ref, bp_ref,
                      o_ref, *, Bp, N, H, K, ed, td, T):
    f32 = jnp.float32
    state = state_ref[...]              # (Bp*N, H)   rows = (b, t, n)
    eexp = eexp_ref[...]                # (Bp*N, ed)
    texp = texp_ref[...]                # (Bp*N, td)

    def pgcn(inp, w_ref):
        # Chebyshev graph mixing: one tiny (N,N)@(N,H) matmul per (row-block, k)
        blocks = []
        for b in range(Bp):
            xb = inp[b * N:(b + 1) * N, :]                               # (N, H)
            parts = [jnp.dot(s_ref[k], xb, preferred_element_type=f32)
                     for k in range(K)]
            blocks.append(jnp.concatenate(parts, axis=-1))               # (N, K*H)
        xg = jnp.concatenate(blocks, axis=0)                             # (Bp*N, K*H)
        # fold node-embedding / time-embedding adaptive weights + both biases
        # into a single wide contraction:  cols = [E_e*xg | T_t*xg | E | T]
        cols = [eexp[:, e:e + 1] * xg for e in range(ed)]
        cols += [texp[:, t:t + 1] * xg for t in range(td)]
        cols.append(eexp)
        cols.append(texp)
        xcat = jnp.concatenate(cols, axis=-1)                            # (Bp*N, Dg)
        return jnp.dot(xcat, w_ref[...], preferred_element_type=f32)

    # GRU gate + candidate + output (sigmoid / tanh / select fused as epilogue)
    zr = jax.nn.sigmoid(pgcn(state, wg_ref))                             # (Bp*N, 2H)
    z = zr[:, :H]
    r = zr[:, H:]
    hc = jnp.tanh(pgcn(z * state, wu_ref))                               # (Bp*N, H)
    h = r * state + (1.0 - r) * hc

    # per-horizon output projection: out[b,t,n,:] = h[b,t,n,:] @ Wp[t] + bp[t]
    for bt in range(Bp):
        t = bt % T
        rows = h[bt * N:(bt + 1) * N, :]                                 # (N, H)
        o = (jnp.dot(rows, wp_ref[t], preferred_element_type=f32)
             + bp_ref[t:t + 1, :])
        o_ref[bt * N:(bt + 1) * N, :] = o.astype(o_ref.dtype)


def decoder_cell_proj_fused(state_flat, S, Eexp, Texp, Wg, Wu, Wp, bp,
                            *, Bp, N, H, K, T, Co):
    args = (state_flat, S, Eexp, Texp, Wg, Wu, Wp, bp)
    ed = Eexp.shape[1]
    td = Texp.shape[1]
    Dg = Wg.shape[0]
    flops = 2 * (Bp * N * Dg * 3 * H + 2 * Bp * K * N * N * H + Bp * N * H * Co)
    bytes_accessed = sum(int(a.size) * 4 for a in args) + Bp * N * Co * 4
    return pl.pallas_call(
        functools.partial(_cell_proj_kernel, Bp=Bp, N=N, H=H, K=K,
                          ed=ed, td=td, T=T),
        out_shape=jax.ShapeDtypeStruct((Bp * N, Co), jnp.float32),
        grid=(1,),
        in_specs=_full_specs(args),
        out_specs=pl.BlockSpec((Bp * N, Co), lambda i: (0, 0)),
        compiler_params=pltpu.CompilerParams(dimension_semantics=("arbitrary",)),
        cost_estimate=pl.CostEstimate(flops=int(flops),
                                      transcendentals=int(Bp * N * 3 * H),
                                      bytes_accessed=int(bytes_accessed)),
    )(*args)


# ----------------------------- parameter repacking -----------------------------

def _fused_pgcn_weight(p, ci):
    """Stack [node-pool | time-pool | node-bias | time-bias] rows so the whole
    adaptive PGCN contraction is a single (rows, Dg) @ (Dg, O) matmul.  The first
    `ci` input channels are dropped: the decoder GO token is identically zero."""
    wp = p["w_pool"][:, :, ci:, :]           # (ed, K, H, O)
    tw = p["tw_pool"][:, :, ci:, :]          # (td, K, H, O)
    ed, K, Hs, O = wp.shape
    td = tw.shape[0]
    return jnp.concatenate([
        wp.reshape(ed * K * Hs, O),
        tw.reshape(td * K * Hs, O),
        p["b_pool"],                         # (ed, O)
        p["tb_pool"],                        # (td, O)
    ], axis=0).astype(jnp.float32)


# ----------------------------- forward -----------------------------

def parallel_decoder_forward(params, cfg, source, traget, h_n, node_embedding1,
                             node_embedding2, node_embeddings, batches_seen=0):
    del traget, batches_seen                       # unused in the reference forward
    B = source.shape[0]
    N, H, Ci, Co, T = (cfg["num_nodes"], cfg["rnn_units"], cfg["input_dim"],
                       cfg["output_dim"], cfg["horizon"])
    K = cfg["cheb_k"]
    # PM_Decoder asserts go.shape[2]==input_dim while go carries output_dim chans
    assert Co == Ci
    # TODO(synk): only the num_layers==1 path of PM_Decoder is exercised by the
    # reference Parallel_decoder (it passes a single-element init_state list).
    assert cfg["num_layers"] == 1

    X = h_n[0].astype(jnp.float32)                 # (B, N, H)
    ste_p = node_embedding1[:, -1, :]              # (B, td)
    ste_q = node_embedding2.reshape(B * T, -1)     # (B*T, td) == flattened t_emb

    # --- fused TransformAttention: de_input rows ordered (b, t, n) ---
    de_state = transform_attention_fused(X, ste_p, ste_q, params["ta"], T)

    # --- tiny XLA glue: Chebyshev supports + embedding row-broadcasts ---
    E = node_embeddings.astype(jnp.float32)        # (N, ed)
    ed = E.shape[1]
    td = ste_q.shape[1]
    adj = jax.nn.softmax(jnp.maximum(E @ E.T, 0.0), axis=1)
    supports = [jnp.eye(N, dtype=jnp.float32), adj]
    for _ in range(2, K):
        supports.append(2.0 * adj @ supports[-1] - supports[-2])
    S = jnp.stack(supports[:K], axis=0)            # (K, N, N)

    Bp = B * T
    Eexp = jnp.broadcast_to(E[None], (Bp, N, ed)).reshape(Bp * N, ed)
    Texp = jnp.broadcast_to(ste_q.astype(jnp.float32)[:, None, :],
                            (Bp, N, td)).reshape(Bp * N, td)

    cell = params["cells"][0]
    Wg = _fused_pgcn_weight(cell["gate"], Ci)      # (Dg, 2H)
    Wu = _fused_pgcn_weight(cell["update"], Ci)    # (Dg, H)
    Wp = params["proj_w"].astype(jnp.float32)      # (T, H, Co)
    bp = params["proj_b"].astype(jnp.float32)      # (T, Co)

    out_flat = decoder_cell_proj_fused(de_state, S, Eexp, Texp, Wg, Wu, Wp, bp,
                                       Bp=Bp, N=N, H=H, K=K, T=T, Co=Co)
    return out_flat.reshape(B, T, N, Co)


# ----------------------------- parameters -----------------------------

def init_params(key, cfg):
    H, td, ed = cfg["rnn_units"], cfg["time_dim"], cfg["embed_dim"]
    K, Ci, Co, T = cfg["cheb_k"], cfg["input_dim"], cfg["output_dim"], cfg["horizon"]
    scale = 0.1
    keys = iter(jax.random.split(key, 64))

    def rnd(shape):
        return scale * jax.random.normal(next(keys), shape, jnp.float32)

    # NOTE: weights_pool/bias_pool/fc24/fc25/layer_norm of TransformAttentionModel
    # are never used in its forward(), so they are not created here.
    ta = dict(Wq=rnd((td + H, H)), bq=rnd((H,)),
              Wk=rnd((td + H, H)), bk=rnd((H,)),
              Wv=rnd((td + H, H)), bv=rnd((H,)),
              W_stack=rnd((2, H, H)), b_stack=rnd((H,)))

    def pgcn_params(dim_in, dim_out):
        return dict(w_pool=rnd((ed, K, dim_in, dim_out)),
                    b_pool=rnd((ed, dim_out)),
                    tw_pool=rnd((td, K, dim_in, dim_out)),
                    tb_pool=rnd((td, dim_out)))

    cells = [dict(gate=pgcn_params(Ci + H, 2 * H),
                  update=pgcn_params(Ci + H, H))
             for _ in range(cfg["num_layers"])]

    return dict(ta=ta, cells=cells, proj_w=rnd((T, H, Co)), proj_b=rnd((T, Co)))


# ----------------------------- main -----------------------------

if __name__ == "__main__":
    cfg = dict(num_nodes=8, input_dim=1, output_dim=1, rnn_units=32, time_dim=16,
               embed_dim=8, cheb_k=2, horizon=4, num_layers=1)

    key = jax.random.PRNGKey(0)
    kp, k1, k2, k3, k4, k5 = jax.random.split(key, 6)
    params = init_params(kp, cfg)

    B, T_in = 2, 4
    N, H, td, ed = cfg["num_nodes"], cfg["rnn_units"], cfg["time_dim"], cfg["embed_dim"]
    T, Ci, Co, L = cfg["horizon"], cfg["input_dim"], cfg["output_dim"], cfg["num_layers"]

    source = jax.random.normal(k1, (B, T_in, N, Ci), jnp.float32)
    traget = jnp.zeros((B, T, N, Co), jnp.float32)          # unused by forward
    h_n = jax.random.normal(k2, (L, B, N, H), jnp.float32)  # encoder hidden states
    node_embedding1 = jax.random.normal(k3, (B, T_in, td), jnp.float32)
    node_embedding2 = jax.random.normal(k4, (B, T, td), jnp.float32)
    node_embeddings = jax.random.normal(k5, (N, ed), jnp.float32)

    fwd = jax.jit(lambda src, tgt, hn, ne1, ne2, ne: parallel_decoder_forward(
        params, cfg, src, tgt, hn, ne1, ne2, ne, batches_seen=0))
    out = fwd(source, traget, h_n, node_embedding1, node_embedding2, node_embeddings)
    out = jax.block_until_ready(out)
    assert out.shape == (B, T, N, Co), out.shape
    assert bool(jnp.all(jnp.isfinite(out)))
    print("KERNEL_OK")
</pallas_src>

<mosaic_0001>
module attributes {stable_mosaic.version = 11 : i64} {
  func.func @_ta_kernel(%arg0: i32, %arg1: memref<2x8x32xf32, #tpu.memory_space<vmem>>, %arg2: memref<2x16xf32, #tpu.memory_space<vmem>>, %arg3: memref<8x16xf32, #tpu.memory_space<vmem>>, %arg4: memref<16x32xf32, #tpu.memory_space<vmem>>, %arg5: memref<32x32xf32, #tpu.memory_space<vmem>>, %arg6: memref<1x32xf32, #tpu.memory_space<vmem>>, %arg7: memref<16x64xf32, #tpu.memory_space<vmem>>, %arg8: memref<32x64xf32, #tpu.memory_space<vmem>>, %arg9: memref<1x64xf32, #tpu.memory_space<vmem>>, %arg10: memref<32x32xf32, #tpu.memory_space<vmem>>, %arg11: memref<32x32xf32, #tpu.memory_space<vmem>>, %arg12: memref<1x32xf32, #tpu.memory_space<vmem>>, %arg13: memref<32x8xf32, #tpu.memory_space<vmem>>, %arg14: memref<8x32xf32, #tpu.memory_space<vmem>>, %arg15: memref<64x32xf32, #tpu.memory_space<vmem>>) attributes {dimension_semantics = [#tpu.dimension_semantics<arbitrary>], iteration_bounds = array<i64: 1>, scalar_prefetch = 0 : i64, scratch_operands = 0 : i64, tpu.core_type = #tpu.core_type<tc>, window_params = [{pipeline_mode = #tpu.pipeline_mode<synchronous>, transform_indices = @transform_0, window_bounds = array<i64: 2, 8, 32>}, {pipeline_mode = #tpu.pipeline_mode<synchronous>, transform_indices = @transform_1, window_bounds = array<i64: 2, 16>}, {pipeline_mode = #tpu.pipeline_mode<synchronous>, transform_indices = @transform_2, window_bounds = array<i64: 8, 16>}, {pipeline_mode = #tpu.pipeline_mode<synchronous>, transform_indices = @transform_3, window_bounds = array<i64: 16, 32>}, {pipeline_mode = #tpu.pipeline_mode<synchronous>, transform_indices = @transform_4, window_bounds = array<i64: 32, 32>}, {pipeline_mode = #tpu.pipeline_mode<synchronous>, transform_indices = @transform_5, window_bounds = array<i64: 1, 32>}, {pipeline_mode = #tpu.pipeline_mode<synchronous>, transform_indices = @transform_6, window_bounds = array<i64: 16, 64>}, {pipeline_mode = #tpu.pipeline_mode<synchronous>, transform_indices = @transform_7, window_bounds = array<i64: 32, 64>}, {pipeline_mode = #tpu.pipeline_mode<synchronous>, transform_indices = @transform_8, window_bounds = array<i64: 1, 64>}, {pipeline_mode = #tpu.pipeline_mode<synchronous>, transform_indices = @transform_9, window_bounds = array<i64: 32, 32>}, {pipeline_mode = #tpu.pipeline_mode<synchronous>, transform_indices = @transform_10, window_bounds = array<i64: 32, 32>}, {pipeline_mode = #tpu.pipeline_mode<synchronous>, transform_indices = @transform_11, window_bounds = array<i64: 1, 32>}, {pipeline_mode = #tpu.pipeline_mode<synchronous>, transform_indices = @transform_12, window_bounds = array<i64: 32, 8>}, {pipeline_mode = #tpu.pipeline_mode<synchronous>, transform_indices = @transform_13, window_bounds = array<i64: 8, 32>}, {pipeline_mode = #tpu.pipeline_mode<synchronous>, transform_indices = @transform_14, window_bounds = array<i64: 64, 32>}]} {
    %c0 = arith.constant 0 : index
    %c0_0 = arith.constant 0 : index
    %0 = vector.load %arg3[%c0, %c0_0] : memref<8x16xf32, #tpu.memory_space<vmem>>, vector<8x16xf32>
    %c0_1 = arith.constant 0 : index
    %c0_2 = arith.constant 0 : index
    %1 = vector.load %arg4[%c0_1, %c0_2] : memref<16x32xf32, #tpu.memory_space<vmem>>, vector<16x32xf32>
    %cst = arith.constant dense<0.000000e+00> : vector<8x32xf32>
    %2 = tpu.matmul %0, %1, %cst {dimension_numbers = #tpu.dot_dimension_numbers<[1], [0], [0], [1], [0, 0, 1, 1], [], []>} : vector<8x16xf32>, vector<16x32xf32>, vector<8x32xf32> -> vector<8x32xf32>
    %c0_3 = arith.constant 0 : index
    %c0_4 = arith.constant 0 : index
    %3 = vector.load %arg2[%c0_3, %c0_4] : memref<2x16xf32, #tpu.memory_space<vmem>>, vector<2x16xf32>
    %c0_5 = arith.constant 0 : index
    %c0_6 = arith.constant 0 : index
    %4 = vector.load %arg7[%c0_5, %c0_6] : memref<16x64xf32, #tpu.memory_space<vmem>>, vector<16x64xf32>
    %cst_7 = arith.constant dense<0.000000e+00> : vector<2x64xf32>
    %5 = tpu.matmul %3, %4, %cst_7 {dimension_numbers = #tpu.dot_dimension_numbers<[1], [0], [0], [1], [0, 0, 1, 1], [], []>} : vector<2x16xf32>, vector<16x64xf32>, vector<2x64xf32> -> vector<2x64xf32>
    %c0_8 = arith.constant 0 : index
    %c0_9 = arith.constant 0 : index
    %6 = vector.load %arg13[%c0_8, %c0_9] : memref<32x8xf32, #tpu.memory_space<vmem>>, vector<32x8xf32>
    %c0_10 = arith.constant 0 : index
    %c0_11 = arith.constant 0 : index
    %7 = vector.load %arg14[%c0_10, %c0_11] : memref<8x32xf32, #tpu.memory_space<vmem>>, vector<8x32xf32>
    %c0_12 = arith.constant 0 : index
    %c0_13 = arith.constant 0 : index
    %8 = vector.load %arg11[%c0_12, %c0_13] : memref<32x32xf32, #tpu.memory_space<vmem>>, vector<32x32xf32>
    %c0_14 = arith.constant 0 : index
    %c0_15 = arith.constant 0 : index
    %9 = vector.load %arg6[%c0_14, %c0_15] : memref<1x32xf32, #tpu.memory_space<vmem>>, vector<1x32xf32>
    %c0_16 = arith.constant 0 : index
    %c0_17 = arith.constant 0 : index
    %10 = vector.load %arg9[%c0_16, %c0_17] : memref<1x64xf32, #tpu.memory_space<vmem>>, vector<1x64xf32>
    %c0_18 = arith.constant 0 : index
    %c0_19 = arith.constant 0 : index
    %11 = vector.load %arg12[%c0_18, %c0_19] : memref<1x32xf32, #tpu.memory_space<vmem>>, vector<1x32xf32>
    %c0_20 = arith.constant 0 : index
    %c0_21 = arith.constant 0 : index
    %c0_22 = arith.constant 0 : index
    %12 = vector.load %arg1[%c0_20, %c0_21, %c0_22] : memref<2x8x32xf32, #tpu.memory_space<vmem>>, vector<1x8x32xf32>
    %13 = vector.shape_cast %12 : vector<1x8x32xf32> to vector<8x32xf32>
    %c0_23 = arith.constant 0 : index
    %c0_24 = arith.constant 0 : index
    %14 = vector.load %arg5[%c0_23, %c0_24] : memref<32x32xf32, #tpu.memory_space<vmem>>, vector<32x32xf32>
    %cst_25 = arith.constant dense<0.000000e+00> : vector<8x32xf32>
    %15 = tpu.matmul %13, %14, %cst_25 {dimension_numbers = #tpu.dot_dimension_numbers<[1], [0], [0], [1], [0, 0, 1, 1], [], []>} : vector<8x32xf32>, vector<32x32xf32>, vector<8x32xf32> -> vector<8x32xf32>
    %c0_26 = arith.constant 0 : index
    %c0_27 = arith.constant 0 : index
    %16 = vector.load %arg8[%c0_26, %c0_27] : memref<32x64xf32, #tpu.memory_space<vmem>>, vector<32x64xf32>
    %cst_28 = arith.constant dense<0.000000e+00> : vector<8x64xf32>
    %17 = tpu.matmul %13, %16, %cst_28 {dimension_numbers = #tpu.dot_dimension_numbers<[1], [0], [0], [1], [0, 0, 1, 1], [], []>} : vector<8x32xf32>, vector<32x64xf32>, vector<8x64xf32> -> vector<8x64xf32>
    %18 = vector.extract_strided_slice %5 {offsets = [0, 0], sizes = [1, 64], strides = [1, 1]} : vector<2x64xf32> to vector<1x64xf32>
    %19 = vector.broadcast %18 : vector<1x64xf32> to vector<8x64xf32>
    %20 = arith.addf %17, %19 : vector<8x64xf32>
    %21 = vector.broadcast %10 : vector<1x64xf32> to vector<8x64xf32>
    %22 = arith.addf %20, %21 : vector<8x64xf32>
    %cst_29 = arith.constant 0.000000e+00 : f32
    %23 = vector.broadcast %cst_29 : f32 to vector<8x64xf32>
    %24 = arith.maximumf %22, %23 : vector<8x64xf32>
    %25 = vector.extract_strided_slice %24 {offsets = [0, 0], sizes = [8, 32], strides = [1, 1]} : vector<8x64xf32> to vector<8x32xf32>
    %26 = vector.extract_strided_slice %24 {offsets = [0, 32], sizes = [8, 32], strides = [1, 1]} : vector<8x64xf32> to vector<8x32xf32>
    %c0_30 = arith.constant 0 : index
    %c0_31 = arith.constant 0 : index
    %27 = vector.load %arg10[%c0_30, %c0_31] : memref<32x32xf32, #tpu.memory_space<vmem>>, vector<32x32xf32>
    %cst_32 = arith.constant dense<0.000000e+00> : vector<8x32xf32>
    %28 = tpu.matmul %13, %27, %cst_32 {dimension_numbers = #tpu.dot_dimension_numbers<[1], [0], [0], [1], [0, 0, 1, 1], [], []>} : vector<8x32xf32>, vector<32x32xf32>, vector<8x32xf32> -> vector<8x32xf32>
    %29 = vector.extract_strided_slice %2 {offsets = [0, 0], sizes = [1, 32], strides = [1, 1]} : vector<8x32xf32> to vector<1x32xf32>
    %30 = vector.broadcast %29 : vector<1x32xf32> to vector<8x32xf32>
    %31 = arith.addf %15, %30 : vector<8x32xf32>
    %32 = vector.broadcast %9 : vector<1x32xf32> to vector<8x32xf32>
    %33 = arith.addf %31, %32 : vector<8x32xf32>
    %cst_33 = arith.constant 0.000000e+00 : f32
    %34 = vector.broadcast %cst_33 : f32 to vector<8x32xf32>
    %35 = arith.maximumf %33, %34 : vector<8x32xf32>
    %36 = arith.mulf %35, %25 : vector<8x32xf32>
    %cst_34 = arith.constant dense<0.000000e+00> : vector<8x8xf32>
    %37 = tpu.matmul %36, %6, %cst_34 {dimension_numbers = #tpu.dot_dimension_numbers<[1], [0], [0], [1], [0, 0, 1, 1], [], []>} : vector<8x32xf32>, vector<32x8xf32>, vector<8x8xf32> -> vector<8x8xf32>
    %38 = vector.extract_strided_slice %2 {offsets = [1, 0], sizes = [1, 32], strides = [1, 1]} : vector<8x32xf32> to vector<1x32xf32>
    %39 = vector.broadcast %38 : vector<1x32xf32> to vector<8x32xf32>
    %40 = arith.addf %15, %39 : vector<8x32xf32>
    %41 = vector.broadcast %9 : vector<1x32xf32> to vector<8x32xf32>
    %42 = arith.addf %40, %41 : vector<8x32xf32>
    %cst_35 = arith.constant 0.000000e+00 : f32
    %43 = vector.broadcast %cst_35 : f32 to vector<8x32xf32>
    %44 = arith.maximumf %42, %43 : vector<8x32xf32>
    %45 = arith.mulf %44, %25 : vector<8x32xf32>
    %cst_36 = arith.constant dense<0.000000e+00> : vector<8x8xf32>
    %46 = tpu.matmul %45, %6, %cst_36 {dimension_numbers = #tpu.dot_dimension_numbers<[1], [0], [0], [1], [0, 0, 1, 1], [], []>} : vector<8x32xf32>, vector<32x8xf32>, vector<8x8xf32> -> vector<8x8xf32>
    %47 = vector.extract_strided_slice %2 {offsets = [2, 0], sizes = [1, 32], strides = [1, 1]} : vector<8x32xf32> to vector<1x32xf32>
    %48 = vector.broadcast %47 : vector<1x32xf32> to vector<8x32xf32>
    %49 = arith.addf %15, %48 : vector<8x32xf32>
    %50 = vector.broadcast %9 : vector<1x32xf32> to vector<8x32xf32>
    %51 = arith.addf %49, %50 : vector<8x32xf32>
    %cst_37 = arith.constant 0.000000e+00 : f32
    %52 = vector.broadcast %cst_37 : f32 to vector<8x32xf32>
    %53 = arith.maximumf %51, %52 : vector<8x32xf32>
    %54 = arith.mulf %53, %25 : vector<8x32xf32>
    %cst_38 = arith.constant dense<0.000000e+00> : vector<8x8xf32>
    %55 = tpu.matmul %54, %6, %cst_38 {dimension_numbers = #tpu.dot_dimension_numbers<[1], [0], [0], [1], [0, 0, 1, 1], [], []>} : vector<8x32xf32>, vector<32x8xf32>, vector<8x8xf32> -> vector<8x8xf32>
    %56 = vector.extract_strided_slice %2 {offsets = [3, 0], sizes = [1, 32], strides = [1, 1]} : vector<8x32xf32> to vector<1x32xf32>
    %57 = vector.broadcast %56 : vector<1x32xf32> to vector<8x32xf32>
    %58 = arith.addf %15, %57 : vector<8x32xf32>
    %59 = vector.broadcast %9 : vector<1x32xf32> to vector<8x32xf32>
    %60 = arith.addf %58, %59 : vector<8x32xf32>
    %cst_39 = arith.constant 0.000000e+00 : f32
    %61 = vector.broadcast %cst_39 : f32 to vector<8x32xf32>
    %62 = arith.maximumf %60, %61 : vector<8x32xf32>
    %63 = arith.mulf %62, %25 : vector<8x32xf32>
    %cst_40 = arith.constant dense<0.000000e+00> : vector<8x8xf32>
    %64 = tpu.matmul %63, %6, %cst_40 {dimension_numbers = #tpu.dot_dimension_numbers<[1], [0], [0], [1], [0, 0, 1, 1], [], []>} : vector<8x32xf32>, vector<32x8xf32>, vector<8x8xf32> -> vector<8x8xf32>
    %65 = arith.maximumf %37, %46 : vector<8x8xf32>
    %66 = arith.maximumf %65, %55 : vector<8x8xf32>
    %67 = arith.maximumf %66, %64 : vector<8x8xf32>
    %68 = arith.subf %37, %67 : vector<8x8xf32>
    %69 = math.exp %68 : vector<8x8xf32>
    %70 = arith.subf %46, %67 : vector<8x8xf32>
    %71 = math.exp %70 : vector<8x8xf32>
    %72 = arith.subf %55, %67 : vector<8x8xf32>
    %73 = math.exp %72 : vector<8x8xf32>
    %74 = arith.subf %64, %67 : vector<8x8xf32>
    %75 = math.exp %74 : vector<8x8xf32>
    %76 = arith.addf %69, %71 : vector<8x8xf32>
    %77 = arith.addf %76, %73 : vector<8x8xf32>
    %78 = arith.addf %77, %75 : vector<8x8xf32>
    %cst_41 = arith.constant 1.000000e+00 : f32
    %79 = vector.broadcast %cst_41 : f32 to vector<8x8xf32>
    %80 = arith.divf %79, %78 : vector<8x8xf32>
    %81 = arith.mulf %69, %80 : vector<8x8xf32>
    %cst_42 = arith.constant dense<0.000000e+00> : vector<8x32xf32>
    %82 = tpu.matmul %81, %7, %cst_42 {dimension_numbers = #tpu.dot_dimension_numbers<[1], [0], [0], [1], [0, 0, 1, 1], [], []>} : vector<8x8xf32>, vector<8x32xf32>, vector<8x32xf32> -> vector<8x32xf32>
    %83 = arith.mulf %82, %26 : vector<8x32xf32>
    %cst_43 = arith.constant dense<0.000000e+00> : vector<8x32xf32>
    %84 = tpu.matmul %83, %8, %cst_43 {dimension_numbers = #tpu.dot_dimension_numbers<[1], [0], [0], [1], [0, 0, 1, 1], [], []>} : vector<8x32xf32>, vector<32x32xf32>, vector<8x32xf32> -> vector<8x32xf32>
    %85 = arith.addf %28, %84 : vector<8x32xf32>
    %86 = vector.broadcast %11 : vector<1x32xf32> to vector<8x32xf32>
    %87 = arith.addf %85, %86 : vector<8x32xf32>
    %c0_44 = arith.constant 0 : index
    %c0_45 = arith.constant 0 : index
    %88 = vector.load %arg15[%c0_44, %c0_45] : memref<64x32xf32, #tpu.memory_space<vmem>>, vector<8x32xf32>
    tpu.vector_store %arg15[%c0_44, %c0_45], %87 {strides = array<i32>} : memref<64x32xf32, #tpu.memory_space<vmem>>, vector<8x32xf32>,
    %89 = arith.mulf %71, %80 : vector<8x8xf32>
    %cst_46 = arith.constant dense<0.000000e+00> : vector<8x32xf32>
    %90 = tpu.matmul %89, %7, %cst_46 {dimension_numbers = #tpu.dot_dimension_numbers<[1], [0], [0], [1], [0, 0, 1, 1], [], []>} : vector<8x8xf32>, vector<8x32xf32>, vector<8x32xf32> -> vector<8x32xf32>
    %91 = arith.mulf %90, %26 : vector<8x32xf32>
    %cst_47 = arith.constant dense<0.000000e+00> : vector<8x32xf32>
    %92 = tpu.matmul %91, %8, %cst_47 {dimension_numbers = #tpu.dot_dimension_numbers<[1], [0], [0], [1], [0, 0, 1, 1], [], []>} : vector<8x32xf32>, vector<32x32xf32>, vector<8x32xf32> -> vector<8x32xf32>
    %93 = arith.addf %28, %92 : vector<8x32xf32>
    %94 = vector.broadcast %11 : vector<1x32xf32> to vector<8x32xf32>
    %95 = arith.addf %93, %94 : vector<8x32xf32>
    %c8 = arith.constant 8 : index
    %c0_48 = arith.constant 0 : index
    %96 = vector.load %arg15[%c8, %c0_48] : memref<64x32xf32, #tpu.memory_space<vmem>>, vector<8x32xf32>
    tpu.vector_store %arg15[%c8, %c0_48], %95 {strides = array<i32>} : memref<64x32xf32, #tpu.memory_space<vmem>>, vector<8x32xf32>,
    %97 = arith.mulf %73, %80 : vector<8x8xf32>
    %cst_49 = arith.constant dense<0.000000e+00> : vector<8x32xf32>
    %98 = tpu.matmul %97, %7, %cst_49 {dimension_numbers = #tpu.dot_dimension_numbers<[1], [0], [0], [1], [0, 0, 1, 1], [], []>} : vector<8x8xf32>, vector<8x32xf32>, vector<8x32xf32> -> vector<8x32xf32>
    %99 = arith.mulf %98, %26 : vector<8x32xf32>
    %cst_50 = arith.constant dense<0.000000e+00> : vector<8x32xf32>
    %100 = tpu.matmul %99, %8, %cst_50 {dimension_numbers = #tpu.dot_dimension_numbers<[1], [0], [0], [1], [0, 0, 1, 1], [], []>} : vector<8x32xf32>, vector<32x32xf32>, vector<8x32xf32> -> vector<8x32xf32>
    %101 = arith.addf %28, %100 : vector<8x32xf32>
    %102 = vector.broadcast %11 : vector<1x32xf32> to vector<8x32xf32>
    %103 = arith.addf %101, %102 : vector<8x32xf32>
    %c16 = arith.constant 16 : index
    %c0_51 = arith.constant 0 : index
    %104 = vector.load %arg15[%c16, %c0_51] : memref<64x32xf32, #tpu.memory_space<vmem>>, vector<8x32xf32>
    tpu.vector_store %arg15[%c16, %c0_51], %103 {strides = array<i32>} : memref<64x32xf32, #tpu.memory_space<vmem>>, vector<8x32xf32>,
    %105 = arith.mulf %75, %80 : vector<8x8xf32>
    %cst_52 = arith.constant dense<0.000000e+00> : vector<8x32xf32>
    %106 = tpu.matmul %105, %7, %cst_52 {dimension_numbers = #tpu.dot_dimension_numbers<[1], [0], [0], [1], [0, 0, 1, 1], [], []>} : vector<8x8xf32>, vector<8x32xf32>, vector<8x32xf32> -> vector<8x32xf32>
    %107 = arith.mulf %106, %26 : vector<8x32xf32>
    %cst_53 = arith.constant dense<0.000000e+00> : vector<8x32xf32>
    %108 = tpu.matmul %107, %8, %cst_53 {dimension_numbers = #tpu.dot_dimension_numbers<[1], [0], [0], [1], [0, 0, 1, 1], [], []>} : vector<8x32xf32>, vector<32x32xf32>, vector<8x32xf32> -> vector<8x32xf32>
    %109 = arith.addf %28, %108 : vector<8x32xf32>
    %110 = vector.broadcast %11 : vector<1x32xf32> to vector<8x32xf32>
    %111 = arith.addf %109, %110 : vector<8x32xf32>
    %c24 = arith.constant 24 : index
    %c0_54 = arith.constant 0 : index
    %112 = vector.load %arg15[%c24, %c0_54] : memref<64x32xf32, #tpu.memory_space<vmem>>, vector<8x32xf32>
    tpu.vector_store %arg15[%c24, %c0_54], %111 {strides = array<i32>} : memref<64x32xf32, #tpu.memory_space<vmem>>, vector<8x32xf32>,
    %c1 = arith.constant 1 : index
    %c0_55 = arith.constant 0 : index
    %c0_56 = arith.constant 0 : index
    %113 = vector.load %arg1[%c1, %c0_55, %c0_56] : memref<2x8x32xf32, #tpu.memory_space<vmem>>, vector<1x8x32xf32>
    %114 = vector.shape_cast %113 : vector<1x8x32xf32> to vector<8x32xf32>
    %c0_57 = arith.constant 0 : index
    %c0_58 = arith.constant 0 : index
    %115 = vector.load %arg5[%c0_57, %c0_58] : memref<32x32xf32, #tpu.memory_space<vmem>>, vector<32x32xf32>
    %cst_59 = arith.constant dense<0.000000e+00> : vector<8x32xf32>
    %116 = tpu.matmul %114, %115, %cst_59 {dimension_numbers = #tpu.dot_dimension_numbers<[1], [0], [0], [1], [0, 0, 1, 1], [], []>} : vector<8x32xf32>, vector<32x32xf32>, vector<8x32xf32> -> vector<8x32xf32>
    %c0_60 = arith.constant 0 : index
    %c0_61 = arith.constant 0 : index
    %117 = vector.load %arg8[%c0_60, %c0_61] : memref<32x64xf32, #tpu.memory_space<vmem>>, vector<32x64xf32>
    %cst_62 = arith.constant dense<0.000000e+00> : vector<8x64xf32>
    %118 = tpu.matmul %114, %117, %cst_62 {dimension_numbers = #tpu.dot_dimension_numbers<[1], [0], [0], [1], [0, 0, 1, 1], [], []>} : vector<8x32xf32>, vector<32x64xf32>, vector<8x64xf32> -> vector<8x64xf32>
    %119 = vector.extract_strided_slice %5 {offsets = [1, 0], sizes = [1, 64], strides = [1, 1]} : vector<2x64xf32> to vector<1x64xf32>
    %120 = vector.broadcast %119 : vector<1x64xf32> to vector<8x64xf32>
    %121 = arith.addf %118, %120 : vector<8x64xf32>
    %122 = vector.broadcast %10 : vector<1x64xf32> to vector<8x64xf32>
    %123 = arith.addf %121, %122 : vector<8x64xf32>
    %cst_63 = arith.constant 0.000000e+00 : f32
    %124 = vector.broadcast %cst_63 : f32 to vector<8x64xf32>
    %125 = arith.maximumf %123, %124 : vector<8x64xf32>
    %126 = vector.extract_strided_slice %125 {offsets = [0, 0], sizes = [8, 32], strides = [1, 1]} : vector<8x64xf32> to vector<8x32xf32>
    %127 = vector.extract_strided_slice %125 {offsets = [0, 32], sizes = [8, 32], strides = [1, 1]} : vector<8x64xf32> to vector<8x32xf32>
    %c0_64 = arith.constant 0 : index
    %c0_65 = arith.constant 0 : index
    %128 = vector.load %arg10[%c0_64, %c0_65] : memref<32x32xf32, #tpu.memory_space<vmem>>, vector<32x32xf32>
    %cst_66 = arith.constant dense<0.000000e+00> : vector<8x32xf32>
    %129 = tpu.matmul %114, %128, %cst_66 {dimension_numbers = #tpu.dot_dimension_numbers<[1], [0], [0], [1], [0, 0, 1, 1], [], []>} : vector<8x32xf32>, vector<32x32xf32>, vector<8x32xf32> -> vector<8x32xf32>
    %130 = vector.extract_strided_slice %2 {offsets = [4, 0], sizes = [1, 32], strides = [1, 1]} : vector<8x32xf32> to vector<1x32xf32>
    %131 = vector.broadcast %130 : vector<1x32xf32> to vector<8x32xf32>
    %132 = arith.addf %116, %131 : vector<8x32xf32>
    %133 = vector.broadcast %9 : vector<1x32xf32> to vector<8x32xf32>
    %134 = arith.addf %132, %133 : vector<8x32xf32>
    %cst_67 = arith.constant 0.000000e+00 : f32
    %135 = vector.broadcast %cst_67 : f32 to vector<8x32xf32>
    %136 = arith.maximumf %134, %135 : vector<8x32xf32>
    %137 = arith.mulf %136, %126 : vector<8x32xf32>
    %cst_68 = arith.constant dense<0.000000e+00> : vector<8x8xf32>
    %138 = tpu.matmul %137, %6, %cst_68 {dimension_numbers = #tpu.dot_dimension_numbers<[1], [0], [0], [1], [0, 0, 1, 1], [], []>} : vector<8x32xf32>, vector<32x8xf32>, vector<8x8xf32> -> vector<8x8xf32>
    %139 = vector.extract_strided_slice %2 {offsets = [5, 0], sizes = [1, 32], strides = [1, 1]} : vector<8x32xf32> to vector<1x32xf32>
    %140 = vector.broadcast %139 : vector<1x32xf32> to vector<8x32xf32>
    %141 = arith.addf %116, %140 : vector<8x32xf32>
    %142 = vector.broadcast %9 : vector<1x32xf32> to vector<8x32xf32>
    %143 = arith.addf %141, %142 : vector<8x32xf32>
    %cst_69 = arith.constant 0.000000e+00 : f32
    %144 = vector.broadcast %cst_69 : f32 to vector<8x32xf32>
    %145 = arith.maximumf %143, %144 : vector<8x32xf32>
    %146 = arith.mulf %145, %126 : vector<8x32xf32>
    %cst_70 = arith.constant dense<0.000000e+00> : vector<8x8xf32>
    %147 = tpu.matmul %146, %6, %cst_70 {dimension_numbers = #tpu.dot_dimension_numbers<[1], [0], [0], [1], [0, 0, 1, 1], [], []>} : vector<8x32xf32>, vector<32x8xf32>, vector<8x8xf32> -> vector<8x8xf32>
    %148 = vector.extract_strided_slice %2 {offsets = [6, 0], sizes = [1, 32], strides = [1, 1]} : vector<8x32xf32> to vector<1x32xf32>
    %149 = vector.broadcast %148 : vector<1x32xf32> to vector<8x32xf32>
    %150 = arith.addf %116, %149 : vector<8x32xf32>
    %151 = vector.broadcast %9 : vector<1x32xf32> to vector<8x32xf32>
    %152 = arith.addf %150, %151 : vector<8x32xf32>
    %cst_71 = arith.constant 0.000000e+00 : f32
    %153 = vector.broadcast %cst_71 : f32 to vector<8x32xf32>
    %154 = arith.maximumf %152, %153 : vector<8x32xf32>
    %155 = arith.mulf %154, %126 : vector<8x32xf32>
    %cst_72 = arith.constant dense<0.000000e+00> : vector<8x8xf32>
    %156 = tpu.matmul %155, %6, %cst_72 {dimension_numbers = #tpu.dot_dimension_numbers<[1], [0], [0], [1], [0, 0, 1, 1], [], []>} : vector<8x32xf32>, vector<32x8xf32>, vector<8x8xf32> -> vector<8x8xf32>
    %157 = vector.extract_strided_slice %2 {offsets = [7, 0], sizes = [1, 32], strides = [1, 1]} : vector<8x32xf32> to vector<1x32xf32>
    %158 = vector.broadcast %157 : vector<1x32xf32> to vector<8x32xf32>
    %159 = arith.addf %116, %158 : vector<8x32xf32>
    %160 = vector.broadcast %9 : vector<1x32xf32> to vector<8x32xf32>
    %161 = arith.addf %159, %160 : vector<8x32xf32>
    %cst_73 = arith.constant 0.000000e+00 : f32
    %162 = vector.broadcast %cst_73 : f32 to vector<8x32xf32>
    %163 = arith.maximumf %161, %162 : vector<8x32xf32>
    %164 = arith.mulf %163, %126 : vector<8x32xf32>
    %cst_74 = arith.constant dense<0.000000e+00> : vector<8x8xf32>
    %165 = tpu.matmul %164, %6, %cst_74 {dimension_numbers = #tpu.dot_dimension_numbers<[1], [0], [0], [1], [0, 0, 1, 1], [], []>} : vector<8x32xf32>, vector<32x8xf32>, vector<8x8xf32> -> vector<8x8xf32>
    %166 = arith.maximumf %138, %147 : vector<8x8xf32>
    %167 = arith.maximumf %166, %156 : vector<8x8xf32>
    %168 = arith.maximumf %167, %165 : vector<8x8xf32>
    %169 = arith.subf %138, %168 : vector<8x8xf32>
    %170 = math.exp %169 : vector<8x8xf32>
    %171 = arith.subf %147, %168 : vector<8x8xf32>
    %172 = math.exp %171 : vector<8x8xf32>
    %173 = arith.subf %156, %168 : vector<8x8xf32>
    %174 = math.exp %173 : vector<8x8xf32>
    %175 = arith.subf %165, %168 : vector<8x8xf32>
    %176 = math.exp %175 : vector<8x8xf32>
    %177 = arith.addf %170, %172 : vector<8x8xf32>
    %178 = arith.addf %177, %174 : vector<8x8xf32>
    %179 = arith.addf %178, %176 : vector<8x8xf32>
    %cst_75 = arith.constant 1.000000e+00 : f32
    %180 = vector.broadcast %cst_75 : f32 to vector<8x8xf32>
    %181 = arith.divf %180, %179 : vector<8x8xf32>
    %182 = arith.mulf %170, %181 : vector<8x8xf32>
    %cst_76 = arith.constant dense<0.000000e+00> : vector<8x32xf32>
    %183 = tpu.matmul %182, %7, %cst_76 {dimension_numbers = #tpu.dot_dimension_numbers<[1], [0], [0], [1], [0, 0, 1, 1], [], []>} : vector<8x8xf32>, vector<8x32xf32>, vector<8x32xf32> -> vector<8x32xf32>
    %184 = arith.mulf %183, %127 : vector<8x32xf32>
    %cst_77 = arith.constant dense<0.000000e+00> : vector<8x32xf32>
    %185 = tpu.matmul %184, %8, %cst_77 {dimension_numbers = #tpu.dot_dimension_numbers<[1], [0], [0], [1], [0, 0, 1, 1], [], []>} : vector<8x32xf32>, vector<32x32xf32>, vector<8x32xf32> -> vector<8x32xf32>
    %186 = arith.addf %129, %185 : vector<8x32xf32>
    %187 = vector.broadcast %11 : vector<1x32xf32> to vector<8x32xf32>
    %188 = arith.addf %186, %187 : vector<8x32xf32>
    %c32 = arith.constant 32 : index
    %c0_78 = arith.constant 0 : index
    %189 = vector.load %arg15[%c32, %c0_78] : memref<64x32xf32, #tpu.memory_space<vmem>>, vector<8x32xf32>
    tpu.vector_store %arg15[%c32, %c0_78], %188 {strides = array<i32>} : memref<64x32xf32, #tpu.memory_space<vmem>>, vector<8x32xf32>,
    %190 = arith.mulf %172, %181 : vector<8x8xf32>
    %cst_79 = arith.constant dense<0.000000e+00> : vector<8x32xf32>
    %191 = tpu.matmul %190, %7, %cst_79 {dimension_numbers = #tpu.dot_dimension_numbers<[1], [0], [0], [1], [0, 0, 1, 1], [], []>} : vector<8x8xf32>, vector<8x32xf32>, vector<8x32xf32> -> vector<8x32xf32>
    %192 = arith.mulf %191, %127 : vector<8x32xf32>
    %cst_80 = arith.constant dense<0.000000e+00> : vector<8x32xf32>
    %193 = tpu.matmul %192, %8, %cst_80 {dimension_numbers = #tpu.dot_dimension_numbers<[1], [0], [0], [1], [0, 0, 1, 1], [], []>} : vector<8x32xf32>, vector<32x32xf32>, vector<8x32xf32> -> vector<8x32xf32>
    %194 = arith.addf %129, %193 : vector<8x32xf32>
    %195 = vector.broadcast %11 : vector<1x32xf32> to vector<8x32xf32>
    %196 = arith.addf %194, %195 : vector<8x32xf32>
    %c40 = arith.constant 40 : index
    %c0_81 = arith.constant 0 : index
    %197 = vector.load %arg15[%c40, %c0_81] : memref<64x32xf32, #tpu.memory_space<vmem>>, vector<8x32xf32>
    tpu.vector_store %arg15[%c40, %c0_81], %196 {strides = array<i32>} : memref<64x32xf32, #tpu.memory_space<vmem>>, vector<8x32xf32>,
    %198 = arith.mulf %174, %181 : vector<8x8xf32>
    %cst_82 = arith.constant dense<0.000000e+00> : vector<8x32xf32>
    %199 = tpu.matmul %198, %7, %cst_82 {dimension_numbers = #tpu.dot_dimension_numbers<[1], [0], [0], [1], [0, 0, 1, 1], [], []>} : vector<8x8xf32>, vector<8x32xf32>, vector<8x32xf32> -> vector<8x32xf32>
    %200 = arith.mulf %199, %127 : vector<8x32xf32>
    %cst_83 = arith.constant dense<0.000000e+00> : vector<8x32xf32>
    %201 = tpu.matmul %200, %8, %cst_83 {dimension_numbers = #tpu.dot_dimension_numbers<[1], [0], [0], [1], [0, 0, 1, 1], [], []>} : vector<8x32xf32>, vector<32x32xf32>, vector<8x32xf32> -> vector<8x32xf32>
    %202 = arith.addf %129, %201 : vector<8x32xf32>
    %203 = vector.broadcast %11 : vector<1x32xf32> to vector<8x32xf32>
    %204 = arith.addf %202, %203 : vector<8x32xf32>
    %c48 = arith.constant 48 : index
    %c0_84 = arith.constant 0 : index
    %205 = vector.load %arg15[%c48, %c0_84] : memref<64x32xf32, #tpu.memory_space<vmem>>, vector<8x32xf32>
    tpu.vector_store %arg15[%c48, %c0_84], %204 {strides = array<i32>} : memref<64x32xf32, #tpu.memory_space<vmem>>, vector<8x32xf32>,
    %206 = arith.mulf %176, %181 : vector<8x8xf32>
    %cst_85 = arith.constant dense<0.000000e+00> : vector<8x32xf32>
    %207 = tpu.matmul %206, %7, %cst_85 {dimension_numbers = #tpu.dot_dimension_numbers<[1], [0], [0], [1], [0, 0, 1, 1], [], []>} : vector<8x8xf32>, vector<8x32xf32>, vector<8x32xf32> -> vector<8x32xf32>
    %208 = arith.mulf %207, %127 : vector<8x32xf32>
    %cst_86 = arith.constant dense<0.000000e+00> : vector<8x32xf32>
    %209 = tpu.matmul %208, %8, %cst_86 {dimension_numbers = #tpu.dot_dimension_numbers<[1], [0], [0], [1], [0, 0, 1, 1], [], []>} : vector<8x32xf32>, vector<32x32xf32>, vector<8x32xf32> -> vector<8x32xf32>
    %210 = arith.addf %129, %209 : vector<8x32xf32>
    %211 = vector.broadcast %11 : vector<1x32xf32> to vector<8x32xf32>
    %212 = arith.addf %210, %211 : vector<8x32xf32>
    %c56 = arith.constant 56 : index
    %c0_87 = arith.constant 0 : index
    %213 = vector.load %arg15[%c56, %c0_87] : memref<64x32xf32, #tpu.memory_space<vmem>>, vector<8x32xf32>
    tpu.vector_store %arg15[%c56, %c0_87], %212 {strides = array<i32>} : memref<64x32xf32, #tpu.memory_space<vmem>>, vector<8x32xf32>,
    return
  }
  func.func @transform_0(%arg0: i32) -> (i32, i32, i32) {
    %c0_i32 = arith.constant 0 : i32
    %c0_i32_0 = arith.constant 0 : i32
    %c0_i32_1 = arith.constant 0 : i32
    %c0_i32_2 = arith.constant 0 : i32
    return %c0_i32, %c0_i32_0, %c0_i32_1 : i32, i32, i32
  }
  func.func @transform_1(%arg0: i32) -> (i32, i32) {
    %c0_i32 = arith.constant 0 : i32
    %c0_i32_0 = arith.constant 0 : i32
    %c0_i32_1 = arith.constant 0 : i32
    return %c0_i32, %c0_i32_0 : i32, i32
  }
  func.func @transform_2(%arg0: i32) -> (i32, i32) {
    %c0_i32 = arith.constant 0 : i32
    %c0_i32_0 = arith.constant 0 : i32
    %c0_i32_1 = arith.constant 0 : i32
    return %c0_i32, %c0_i32_0 : i32, i32
  }
  func.func @transform_3(%arg0: i32) -> (i32, i32) {
    %c0_i32 = arith.constant 0 : i32
    %c0_i32_0 = arith.constant 0 : i32
    %c0_i32_1 = arith.constant 0 : i32
    return %c0_i32, %c0_i32_0 : i32, i32
  }
  func.func @transform_4(%arg0: i32) -> (i32, i32) {
    %c0_i32 = arith.constant 0 : i32
    %c0_i32_0 = arith.constant 0 : i32
    %c0_i32_1 = arith.constant 0 : i32
    return %c0_i32, %c0_i32_0 : i32, i32
  }
  func.func @transform_5(%arg0: i32) -> (i32, i32) {
    %c0_i32 = arith.constant 0 : i32
    %c0_i32_0 = arith.constant 0 : i32
    %c0_i32_1 = arith.constant 0 : i32
    return %c0_i32, %c0_i32_0 : i32, i32
  }
  func.func @transform_6(%arg0: i32) -> (i32, i32) {
    %c0_i32 = arith.constant 0 : i32
    %c0_i32_0 = arith.constant 0 : i32
    %c0_i32_1 = arith.constant 0 : i32
    return %c0_i32, %c0_i32_0 : i32, i32
  }
  func.func @transform_7(%arg0: i32) -> (i32, i32) {
    %c0_i32 = arith.constant 0 : i32
    %c0_i32_0 = arith.constant 0 : i32
    %c0_i32_1 = arith.constant 0 : i32
    return %c0_i32, %c0_i32_0 : i32, i32
  }
  func.func @transform_8(%arg0: i32) -> (i32, i32) {
    %c0_i32 = arith.constant 0 : i32
    %c0_i32_0 = arith.constant 0 : i32
    %c0_i32_1 = arith.constant 0 : i32
    return %c0_i32, %c0_i32_0 : i32, i32
  }
  func.func @transform_9(%arg0: i32) -> (i32, i32) {
    %c0_i32 = arith.constant 0 : i32
    %c0_i32_0 = arith.constant 0 : i32
    %c0_i32_1 = arith.constant 0 : i32
    return %c0_i32, %c0_i32_0 : i32, i32
  }
  func.func @transform_10(%arg0: i32) -> (i32, i32) {
    %c0_i32 = arith.constant 0 : i32
    %c0_i32_0 = arith.constant 0 : i32
    %c0_i32_1 = arith.constant 0 : i32
    return %c0_i32, %c0_i32_0 : i32, i32
  }
  func.func @transform_11(%arg0: i32) -> (i32, i32) {
    %c0_i32 = arith.constant 0 : i32
    %c0_i32_0 = arith.constant 0 : i32
    %c0_i32_1 = arith.constant 0 : i32
    return %c0_i32, %c0_i32_0 : i32, i32
  }
  func.func @transform_12(%arg0: i32) -> (i32, i32) {
    %c0_i32 = arith.constant 0 : i32
    %c0_i32_0 = arith.constant 0 : i32
    %c0_i32_1 = arith.constant 0 : i32
    return %c0_i32, %c0_i32_0 : i32, i32
  }
  func.func @transform_13(%arg0: i32) -> (i32, i32) {
    %c0_i32 = arith.constant 0 : i32
    %c0_i32_0 = arith.constant 0 : i32
    %c0_i32_1 = arith.constant 0 : i32
    return %c0_i32, %c0_i32_0 : i32, i32
  }
  func.func @transform_14(%arg0: i32) -> (i32, i32) {
    %c0_i32 = arith.constant 0 : i32
    %c0_i32_0 = arith.constant 0 : i32
    %c0_i32_1 = arith.constant 0 : i32
    return %c0_i32, %c0_i32_0 : i32, i32
  }
}

module attributes {stable_mosaic.version = 11 : i64} {
  func.func @_cell_proj_kernel(%arg0: i32, %arg1: memref<64x32xf32, #tpu.memory_space<vmem>>, %arg2: memref<2x8x8xf32, #tpu.memory_space<vmem>>, %arg3: memref<64x8xf32, #tpu.memory_space<vmem>>, %arg4: memref<64x16xf32, #tpu.memory_space<vmem>>, %arg5: memref<1560x64xf32, #tpu.memory_space<vmem>>, %arg6: memref<1560x32xf32, #tpu.memory_space<vmem>>, %arg7: memref<4x32x1xf32, #tpu.memory_space<vmem>>, %arg8: memref<4x1xf32, #tpu.memory_space<vmem>>, %arg9: memref<64x1xf32, #tpu.memory_space<vmem>>) attributes {dimension_semantics = [#tpu.dimension_semantics<arbitrary>], iteration_bounds = array<i64: 1>, scalar_prefetch = 0 : i64, scratch_operands = 0 : i64, tpu.core_type = #tpu.core_type<tc>, window_params = [{pipeline_mode = #tpu.pipeline_mode<synchronous>, transform_indices = @transform_0, window_bounds = array<i64: 64, 32>}, {pipeline_mode = #tpu.pipeline_mode<synchronous>, transform_indices = @transform_1, window_bounds = array<i64: 2, 8, 8>}, {pipeline_mode = #tpu.pipeline_mode<synchronous>, transform_indices = @transform_2, window_bounds = array<i64: 64, 8>}, {pipeline_mode = #tpu.pipeline_mode<synchronous>, transform_indices = @transform_3, window_bounds = array<i64: 64, 16>}, {pipeline_mode = #tpu.pipeline_mode<synchronous>, transform_indices = @transform_4, window_bounds = array<i64: 1560, 64>}, {pipeline_mode = #tpu.pipeline_mode<synchronous>, transform_indices = @transform_5, window_bounds = array<i64: 1560, 32>}, {pipeline_mode = #tpu.pipeline_mode<synchronous>, transform_indices = @transform_6, window_bounds = array<i64: 4, 32, 1>}, {pipeline_mode = #tpu.pipeline_mode<synchronous>, transform_indices = @transform_7, window_bounds = array<i64: 4, 1>}, {pipeline_mode = #tpu.pipeline_mode<synchronous>, transform_indices = @transform_8, window_bounds = array<i64: 64, 1>}]} {
    %c0 = arith.constant 0 : index
    %c0_0 = arith.constant 0 : index
    %0 = vector.load %arg1[%c0, %c0_0] : memref<64x32xf32, #tpu.memory_space<vmem>>, vector<64x32xf32>
    %c0_1 = arith.constant 0 : index
    %c0_2 = arith.constant 0 : index
    %1 = vector.load %arg3[%c0_1, %c0_2] : memref<64x8xf32, #tpu.memory_space<vmem>>, vector<64x8xf32>
    %c0_3 = arith.constant 0 : index
    %c0_4 = arith.constant 0 : index
    %2 = vector.load %arg4[%c0_3, %c0_4] : memref<64x16xf32, #tpu.memory_space<vmem>>, vector<64x16xf32>
    %3 = vector.extract_strided_slice %0 {offsets = [0, 0], sizes = [8, 32], strides = [1, 1]} : vector<64x32xf32> to vector<8x32xf32>
    %c0_5 = arith.constant 0 : index
    %c0_6 = arith.constant 0 : index
    %c0_7 = arith.constant 0 : index
    %4 = vector.load %arg2[%c0_5, %c0_6, %c0_7] : memref<2x8x8xf32, #tpu.memory_space<vmem>>, vector<1x8x8xf32>
    %5 = vector.shape_cast %4 : vector<1x8x8xf32> to vector<8x8xf32>
    %cst = arith.constant dense<0.000000e+00> : vector<8x32xf32>
    %6 = tpu.matmul %5, %3, %cst {dimension_numbers = #tpu.dot_dimension_numbers<[1], [0], [0], [1], [0, 0, 1, 1], [], []>} : vector<8x8xf32>, vector<8x32xf32>, vector<8x32xf32> -> vector<8x32xf32>
    %c1 = arith.constant 1 : index
    %c0_8 = arith.constant 0 : index
    %c0_9 = arith.constant 0 : index
    %7 = vector.load %arg2[%c1, %c0_8, %c0_9] : memref<2x8x8xf32, #tpu.memory_space<vmem>>, vector<1x8x8xf32>
    %8 = vector.shape_cast %7 : vector<1x8x8xf32> to vector<8x8xf32>
    %cst_10 = arith.constant dense<0.000000e+00> : vector<8x32xf32>
    %9 = tpu.matmul %8, %3, %cst_10 {dimension_numbers = #tpu.dot_dimension_numbers<[1], [0], [0], [1], [0, 0, 1, 1], [], []>} : vector<8x8xf32>, vector<8x32xf32>, vector<8x32xf32> -> vector<8x32xf32>
    %10 = tpu.concatenate %6, %9 in 1 : vector<8x32xf32>, vector<8x32xf32> -> vector<8x64xf32>
    %11 = vector.extract_strided_slice %0 {offsets = [8, 0], sizes = [8, 32], strides = [1, 1]} : vector<64x32xf32> to vector<8x32xf32>
    %c0_11 = arith.constant 0 : index
    %c0_12 = arith.constant 0 : index
    %c0_13 = arith.constant 0 : index
    %12 = vector.load %arg2[%c0_11, %c0_12, %c0_13] : memref<2x8x8xf32, #tpu.memory_space<vmem>>, vector<1x8x8xf32>
    %13 = vector.shape_cast %12 : vector<1x8x8xf32> to vector<8x8xf32>
    %cst_14 = arith.constant dense<0.000000e+00> : vector<8x32xf32>
    %14 = tpu.matmul %13, %11, %cst_14 {dimension_numbers = #tpu.dot_dimension_numbers<[1], [0], [0], [1], [0, 0, 1, 1], [], []>} : vector<8x8xf32>, vector<8x32xf32>, vector<8x32xf32> -> vector<8x32xf32>
    %c1_15 = arith.constant 1 : index
    %c0_16 = arith.constant 0 : index
    %c0_17 = arith.constant 0 : index
    %15 = vector.load %arg2[%c1_15, %c0_16, %c0_17] : memref<2x8x8xf32, #tpu.memory_space<vmem>>, vector<1x8x8xf32>
    %16 = vector.shape_cast %15 : vector<1x8x8xf32> to vector<8x8xf32>
    %cst_18 = arith.constant dense<0.000000e+00> : vector<8x32xf32>
    %17 = tpu.matmul %16, %11, %cst_18 {dimension_numbers = #tpu.dot_dimension_numbers<[1], [0], [0], [1], [0, 0, 1, 1], [], []>} : vector<8x8xf32>, vector<8x32xf32>, vector<8x32xf32> -> vector<8x32xf32>
    %18 = tpu.concatenate %14, %17 in 1 : vector<8x32xf32>, vector<8x32xf32> -> vector<8x64xf32>
    %19 = vector.extract_strided_slice %0 {offsets = [16, 0], sizes = [8, 32], strides = [1, 1]} : vector<64x32xf32> to vector<8x32xf32>
    %c0_19 = arith.constant 0 : index
    %c0_20 = arith.constant 0 : index
    %c0_21 = arith.constant 0 : index
    %20 = vector.load %arg2[%c0_19, %c0_20, %c0_21] : memref<2x8x8xf32, #tpu.memory_space<vmem>>, vector<1x8x8xf32>
    %21 = vector.shape_cast %20 : vector<1x8x8xf32> to vector<8x8xf32>
    %cst_22 = arith.constant dense<0.000000e+00> : vector<8x32xf32>
    %22 = tpu.matmul %21, %19, %cst_22 {dimension_numbers = #tpu.dot_dimension_numbers<[1], [0], [0], [1], [0, 0, 1, 1], [], []>} : vector<8x8xf32>, vector<8x32xf32>, vector<8x32xf32> -> vector<8x32xf32>
    %c1_23 = arith.constant 1 : index
    %c0_24 = arith.constant 0 : index
    %c0_25 = arith.constant 0 : index
    %23 = vector.load %arg2[%c1_23, %c0_24, %c0_25] : memref<2x8x8xf32, #tpu.memory_space<vmem>>, vector<1x8x8xf32>
    %24 = vector.shape_cast %23 : vector<1x8x8xf32> to vector<8x8xf32>
    %cst_26 = arith.constant dense<0.000000e+00> : vector<8x32xf32>
    %25 = tpu.matmul %24, %19, %cst_26 {dimension_numbers = #tpu.dot_dimension_numbers<[1], [0], [0], [1], [0, 0, 1, 1], [], []>} : vector<8x8xf32>, vector<8x32xf32>, vector<8x32xf32> -> vector<8x32xf32>
    %26 = tpu.concatenate %22, %25 in 1 : vector<8x32xf32>, vector<8x32xf32> -> vector<8x64xf32>
    %27 = vector.extract_strided_slice %0 {offsets = [24, 0], sizes = [8, 32], strides = [1, 1]} : vector<64x32xf32> to vector<8x32xf32>
    %c0_27 = arith.constant 0 : index
    %c0_28 = arith.constant 0 : index
    %c0_29 = arith.constant 0 : index
    %28 = vector.load %arg2[%c0_27, %c0_28, %c0_29] : memref<2x8x8xf32, #tpu.memory_space<vmem>>, vector<1x8x8xf32>
    %29 = vector.shape_cast %28 : vector<1x8x8xf32> to vector<8x8xf32>
    %cst_30 = arith.constant dense<0.000000e+00> : vector<8x32xf32>
    %30 = tpu.matmul %29, %27, %cst_30 {dimension_numbers = #tpu.dot_dimension_numbers<[1], [0], [0], [1], [0, 0, 1, 1], [], []>} : vector<8x8xf32>, vector<8x32xf32>, vector<8x32xf32> -> vector<8x32xf32>
    %c1_31 = arith.constant 1 : index
    %c0_32 = arith.constant 0 : index
    %c0_33 = arith.constant 0 : index
    %31 = vector.load %arg2[%c1_31, %c0_32, %c0_33] : memref<2x8x8xf32, #tpu.memory_space<vmem>>, vector<1x8x8xf32>
    %32 = vector.shape_cast %31 : vector<1x8x8xf32> to vector<8x8xf32>
    %cst_34 = arith.constant dense<0.000000e+00> : vector<8x32xf32>
    %33 = tpu.matmul %32, %27, %cst_34 {dimension_numbers = #tpu.dot_dimension_numbers<[1], [0], [0], [1], [0, 0, 1, 1], [], []>} : vector<8x8xf32>, vector<8x32xf32>, vector<8x32xf32> -> vector<8x32xf32>
    %34 = tpu.concatenate %30, %33 in 1 : vector<8x32xf32>, vector<8x32xf32> -> vector<8x64xf32>
    %35 = vector.extract_strided_slice %0 {offsets = [32, 0], sizes = [8, 32], strides = [1, 1]} : vector<64x32xf32> to vector<8x32xf32>
    %c0_35 = arith.constant 0 : index
    %c0_36 = arith.constant 0 : index
    %c0_37 = arith.constant 0 : index
    %36 = vector.load %arg2[%c0_35, %c0_36, %c0_37] : memref<2x8x8xf32, #tpu.memory_space<vmem>>, vector<1x8x8xf32>
    %37 = vector.shape_cast %36 : vector<1x8x8xf32> to vector<8x8xf32>
    %cst_38 = arith.constant dense<0.000000e+00> : vector<8x32xf32>
    %38 = tpu.matmul %37, %35, %cst_38 {dimension_numbers = #tpu.dot_dimension_numbers<[1], [0], [0], [1], [0, 0, 1, 1], [], []>} : vector<8x8xf32>, vector<8x32xf32>, vector<8x32xf32> -> vector<8x32xf32>
    %c1_39 = arith.constant 1 : index
    %c0_40 = arith.constant 0 : index
    %c0_41 = arith.constant 0 : index
    %39 = vector.load %arg2[%c1_39, %c0_40, %c0_41] : memref<2x8x8xf32, #tpu.memory_space<vmem>>, vector<1x8x8xf32>
    %40 = vector.shape_cast %39 : vector<1x8x8xf32> to vector<8x8xf32>
    %cst_42 = arith.constant dense<0.000000e+00> : vector<8x32xf32>
    %41 = tpu.matmul %40, %35, %cst_42 {dimension_numbers = #tpu.dot_dimension_numbers<[1], [0], [0], [1], [0, 0, 1, 1], [], []>} : vector<8x8xf32>, vector<8x32xf32>, vector<8x32xf32> -> vector<8x32xf32>
    %42 = tpu.concatenate %38, %41 in 1 : vector<8x32xf32>, vector<8x32xf32> -> vector<8x64xf32>
    %43 = vector.extract_strided_slice %0 {offsets = [40, 0], sizes = [8, 32], strides = [1, 1]} : vector<64x32xf32> to vector<8x32xf32>
    %c0_43 = arith.constant 0 : index
    %c0_44 = arith.constant 0 : index
    %c0_45 = arith.constant 0 : index
    %44 = vector.load %arg2[%c0_43, %c0_44, %c0_45] : memref<2x8x8xf32, #tpu.memory_space<vmem>>, vector<1x8x8xf32>
    %45 = vector.shape_cast %44 : vector<1x8x8xf32> to vector<8x8xf32>
    %cst_46 = arith.constant dense<0.000000e+00> : vector<8x32xf32>
    %46 = tpu.matmul %45, %43, %cst_46 {dimension_numbers = #tpu.dot_dimension_numbers<[1], [0], [0], [1], [0, 0, 1, 1], [], []>} : vector<8x8xf32>, vector<8x32xf32>, vector<8x32xf32> -> vector<8x32xf32>
    %c1_47 = arith.constant 1 : index
    %c0_48 = arith.constant 0 : index
    %c0_49 = arith.constant 0 : index
    %47 = vector.load %arg2[%c1_47, %c0_48, %c0_49] : memref<2x8x8xf32, #tpu.memory_space<vmem>>, vector<1x8x8xf32>
    %48 = vector.shape_cast %47 : vector<1x8x8xf32> to vector<8x8xf32>
    %cst_50 = arith.constant dense<0.000000e+00> : vector<8x32xf32>
    %49 = tpu.matmul %48, %43, %cst_50 {dimension_numbers = #tpu.dot_dimension_numbers<[1], [0], [0], [1], [0, 0, 1, 1], [], []>} : vector<8x8xf32>, vector<8x32xf32>, vector<8x32xf32> -> vector<8x32xf32>
    %50 = tpu.concatenate %46, %49 in 1 : vector<8x32xf32>, vector<8x32xf32> -> vector<8x64xf32>
    %51 = vector.extract_strided_slice %0 {offsets = [48, 0], sizes = [8, 32], strides = [1, 1]} : vector<64x32xf32> to vector<8x32xf32>
    %c0_51 = arith.constant 0 : index
    %c0_52 = arith.constant 0 : index
    %c0_53 = arith.constant 0 : index
    %52 = vector.load %arg2[%c0_51, %c0_52, %c0_53] : memref<2x8x8xf32, #tpu.memory_space<vmem>>, vector<1x8x8xf32>
    %53 = vector.shape_cast %52 : vector<1x8x8xf32> to vector<8x8xf32>
    %cst_54 = arith.constant dense<0.000000e+00> : vector<8x32xf32>
    %54 = tpu.matmul %53, %51, %cst_54 {dimension_numbers = #tpu.dot_dimension_numbers<[1], [0], [0], [1], [0, 0, 1, 1], [], []>} : vector<8x8xf32>, vector<8x32xf32>, vector<8x32xf32> -> vector<8x32xf32>
    %c1_55 = arith.constant 1 : index
    %c0_56 = arith.constant 0 : index
    %c0_57 = arith.constant 0 : index
    %55 = vector.load %arg2[%c1_55, %c0_56, %c0_57] : memref<2x8x8xf32, #tpu.memory_space<vmem>>, vector<1x8x8xf32>
    %56 = vector.shape_cast %55 : vector<1x8x8xf32> to vector<8x8xf32>
    %cst_58 = arith.constant dense<0.000000e+00> : vector<8x32xf32>
    %57 = tpu.matmul %56, %51, %cst_58 {dimension_numbers = #tpu.dot_dimension_numbers<[1], [0], [0], [1], [0, 0, 1, 1], [], []>} : vector<8x8xf32>, vector<8x32xf32>, vector<8x32xf32> -> vector<8x32xf32>
    %58 = tpu.concatenate %54, %57 in 1 : vector<8x32xf32>, vector<8x32xf32> -> vector<8x64xf32>
    %59 = vector.extract_strided_slice %0 {offsets = [56, 0], sizes = [8, 32], strides = [1, 1]} : vector<64x32xf32> to vector<8x32xf32>
    %c0_59 = arith.constant 0 : index
    %c0_60 = arith.constant 0 : index
    %c0_61 = arith.constant 0 : index
    %60 = vector.load %arg2[%c0_59, %c0_60, %c0_61] : memref<2x8x8xf32, #tpu.memory_space<vmem>>, vector<1x8x8xf32>
    %61 = vector.shape_cast %60 : vector<1x8x8xf32> to vector<8x8xf32>
    %cst_62 = arith.constant dense<0.000000e+00> : vector<8x32xf32>
    %62 = tpu.matmul %61, %59, %cst_62 {dimension_numbers = #tpu.dot_dimension_numbers<[1], [0], [0], [1], [0, 0, 1, 1], [], []>} : vector<8x8xf32>, vector<8x32xf32>, vector<8x32xf32> -> vector<8x32xf32>
    %c1_63 = arith.constant 1 : index
    %c0_64 = arith.constant 0 : index
    %c0_65 = arith.constant 0 : index
    %63 = vector.load %arg2[%c1_63, %c0_64, %c0_65] : memref<2x8x8xf32, #tpu.memory_space<vmem>>, vector<1x8x8xf32>
    %64 = vector.shape_cast %63 : vector<1x8x8xf32> to vector<8x8xf32>
    %cst_66 = arith.constant dense<0.000000e+00> : vector<8x32xf32>
    %65 = tpu.matmul %64, %59, %cst_66 {dimension_numbers = #tpu.dot_dimension_numbers<[1], [0], [0], [1], [0, 0, 1, 1], [], []>} : vector<8x8xf32>, vector<8x32xf32>, vector<8x32xf32> -> vector<8x32xf32>
    %66 = tpu.concatenate %62, %65 in 1 : vector<8x32xf32>, vector<8x32xf32> -> vector<8x64xf32>
    %67 = tpu.concatenate %10, %18, %26, %34, %42, %50, %58, %66 in 0 : vector<8x64xf32>, vector<8x64xf32>, vector<8x64xf32>, vector<8x64xf32>, vector<8x64xf32>, vector<8x64xf32>, vector<8x64xf32>, vector<8x64xf32> -> vector<64x64xf32>
    %68 = vector.extract_strided_slice %1 {offsets = [0, 0], sizes = [64, 1], strides = [1, 1]} : vector<64x8xf32> to vector<64x1xf32>
    %69 = vector.broadcast %68 : vector<64x1xf32> to vector<64x64xf32>
    %70 = arith.mulf %69, %67 : vector<64x64xf32>
    %71 = vector.extract_strided_slice %1 {offsets = [0, 1], sizes = [64, 1], strides = [1, 1]} : vector<64x8xf32> to vector<64x1xf32>
    %72 = vector.broadcast %71 : vector<64x1xf32> to vector<64x64xf32>
    %73 = arith.mulf %72, %67 : vector<64x64xf32>
    %74 = vector.extract_strided_slice %1 {offsets = [0, 2], sizes = [64, 1], strides = [1, 1]} : vector<64x8xf32> to vector<64x1xf32>
    %75 = vector.broadcast %74 : vector<64x1xf32> to vector<64x64xf32>
    %76 = arith.mulf %75, %67 : vector<64x64xf32>
    %77 = vector.extract_strided_slice %1 {offsets = [0, 3], sizes = [64, 1], strides = [1, 1]} : vector<64x8xf32> to vector<64x1xf32>
    %78 = vector.broadcast %77 : vector<64x1xf32> to vector<64x64xf32>
    %79 = arith.mulf %78, %67 : vector<64x64xf32>
    %80 = vector.extract_strided_slice %1 {offsets = [0, 4], sizes = [64, 1], strides = [1, 1]} : vector<64x8xf32> to vector<64x1xf32>
    %81 = vector.broadcast %80 : vector<64x1xf32> to vector<64x64xf32>
    %82 = arith.mulf %81, %67 : vector<64x64xf32>
    %83 = vector.extract_strided_slice %1 {offsets = [0, 5], sizes = [64, 1], strides = [1, 1]} : vector<64x8xf32> to vector<64x1xf32>
    %84 = vector.broadcast %83 : vector<64x1xf32> to vector<64x64xf32>
    %85 = arith.mulf %84, %67 : vector<64x64xf32>
    %86 = vector.extract_strided_slice %1 {offsets = [0, 6], sizes = [64, 1], strides = [1, 1]} : vector<64x8xf32> to vector<64x1xf32>
    %87 = vector.broadcast %86 : vector<64x1xf32> to vector<64x64xf32>
    %88 = arith.mulf %87, %67 : vector<64x64xf32>
    %89 = vector.extract_strided_slice %1 {offsets = [0, 7], sizes = [64, 1], strides = [1, 1]} : vector<64x8xf32> to vector<64x1xf32>
    %90 = vector.broadcast %89 : vector<64x1xf32> to vector<64x64xf32>
    %91 = arith.mulf %90, %67 : vector<64x64xf32>
    %92 = vector.extract_strided_slice %2 {offsets = [0, 0], sizes = [64, 1], strides = [1, 1]} : vector<64x16xf32> to vector<64x1xf32>
    %93 = vector.broadcast %92 : vector<64x1xf32> to vector<64x64xf32>
    %94 = arith.mulf %93, %67 : vector<64x64xf32>
    %95 = vector.extract_strided_slice %2 {offsets = [0, 1], sizes = [64, 1], strides = [1, 1]} : vector<64x16xf32> to vector<64x1xf32>
    %96 = vector.broadcast %95 : vector<64x1xf32> to vector<64x64xf32>
    %97 = arith.mulf %96, %67 : vector<64x64xf32>
    %98 = vector.extract_strided_slice %2 {offsets = [0, 2], sizes = [64, 1], strides = [1, 1]} : vector<64x16xf32> to vector<64x1xf32>
    %99 = vector.broadcast %98 : vector<64x1xf32> to vector<64x64xf32>
    %100 = arith.mulf %99, %67 : vector<64x64xf32>
    %101 = vector.extract_strided_slice %2 {offsets = [0, 3], sizes = [64, 1], strides = [1, 1]} : vector<64x16xf32> to vector<64x1xf32>
    %102 = vector.broadcast %101 : vector<64x1xf32> to vector<64x64xf32>
    %103 = arith.mulf %102, %67 : vector<64x64xf32>
    %104 = vector.extract_strided_slice %2 {offsets = [0, 4], sizes = [64, 1], strides = [1, 1]} : vector<64x16xf32> to vector<64x1xf32>
    %105 = vector.broadcast %104 : vector<64x1xf32> to vector<64x64xf32>
    %106 = arith.mulf %105, %67 : vector<64x64xf32>
    %107 = vector.extract_strided_slice %2 {offsets = [0, 5], sizes = [64, 1], strides = [1, 1]} : vector<64x16xf32> to vector<64x1xf32>
    %108 = vector.broadcast %107 : vector<64x1xf32> to vector<64x64xf32>
    %109 = arith.mulf %108, %67 : vector<64x64xf32>
    %110 = vector.extract_strided_slice %2 {offsets = [0, 6], sizes = [64, 1], strides = [1, 1]} : vector<64x16xf32> to vector<64x1xf32>
    %111 = vector.broadcast %110 : vector<64x1xf32> to vector<64x64xf32>
    %112 = arith.mulf %111, %67 : vector<64x64xf32>
    %113 = vector.extract_strided_slice %2 {offsets = [0, 7], sizes = [64, 1], strides = [1, 1]} : vector<64x16xf32> to vector<64x1xf32>
    %114 = vector.broadcast %113 : vector<64x1xf32> to vector<64x64xf32>
    %115 = arith.mulf %114, %67 : vector<64x64xf32>
    %116 = vector.extract_strided_slice %2 {offsets = [0, 8], sizes = [64, 1], strides = [1, 1]} : vector<64x16xf32> to vector<64x1xf32>
    %117 = vector.broadcast %116 : vector<64x1xf32> to vector<64x64xf32>
    %118 = arith.mulf %117, %67 : vector<64x64xf32>
    %119 = vector.extract_strided_slice %2 {offsets = [0, 9], sizes = [64, 1], strides = [1, 1]} : vector<64x16xf32> to vector<64x1xf32>
    %120 = vector.broadcast %119 : vector<64x1xf32> to vector<64x64xf32>
    %121 = arith.mulf %120, %67 : vector<64x64xf32>
    %122 = vector.extract_strided_slice %2 {offsets = [0, 10], sizes = [64, 1], strides = [1, 1]} : vector<64x16xf32> to vector<64x1xf32>
    %123 = vector.broadcast %122 : vector<64x1xf32> to vector<64x64xf32>
    %124 = arith.mulf %123, %67 : vector<64x64xf32>
    %125 = vector.extract_strided_slice %2 {offsets = [0, 11], sizes = [64, 1], strides = [1, 1]} : vector<64x16xf32> to vector<64x1xf32>
    %126 = vector.broadcast %125 : vector<64x1xf32> to vector<64x64xf32>
    %127 = arith.mulf %126, %67 : vector<64x64xf32>
    %128 = vector.extract_strided_slice %2 {offsets = [0, 12], sizes = [64, 1], strides = [1, 1]} : vector<64x16xf32> to vector<64x1xf32>
    %129 = vector.broadcast %128 : vector<64x1xf32> to vector<64x64xf32>
    %130 = arith.mulf %129, %67 : vector<64x64xf32>
    %131 = vector.extract_strided_slice %2 {offsets = [0, 13], sizes = [64, 1], strides = [1, 1]} : vector<64x16xf32> to vector<64x1xf32>
    %132 = vector.broadcast %131 : vector<64x1xf32> to vector<64x64xf32>
    %133 = arith.mulf %132, %67 : vector<64x64xf32>
    %134 = vector.extract_strided_slice %2 {offsets = [0, 14], sizes = [64, 1], strides = [1, 1]} : vector<64x16xf32> to vector<64x1xf32>
    %135 = vector.broadcast %134 : vector<64x1xf32> to vector<64x64xf32>
    %136 = arith.mulf %135, %67 : vector<64x64xf32>
    %137 = vector.extract_strided_slice %2 {offsets = [0, 15], sizes = [64, 1], strides = [1, 1]} : vector<64x16xf32> to vector<64x1xf32>
    %138 = vector.broadcast %137 : vector<64x1xf32> to vector<64x64xf32>
    %139 = arith.mulf %138, %67 : vector<64x64xf32>
    %140 = tpu.concatenate %70, %73, %76, %79, %82, %85, %88, %91, %94, %97, %100, %103, %106, %109, %112, %115 in 1 : vector<64x64xf32>, vector<64x64xf32>, vector<64x64xf32>, vector<64x64xf32>, vector<64x64xf32>, vector<64x64xf32>, vector<64x64xf32>, vector<64x64xf32>, vector<64x64xf32>, vector<64x64xf32>, vector<64x64xf32>, vector<64x64xf32>, vector<64x64xf32>, vector<64x64xf32>, vector<64x64xf32>, vector<64x64xf32> -> vector<64x1024xf32>
    %141 = tpu.concatenate %118, %121, %124, %127, %130, %133, %136, %139, %1, %2 in 1 : vector<64x64xf32>, vector<64x64xf32>, vector<64x64xf32>, vector<64x64xf32>, vector<64x64xf32>, vector<64x64xf32>, vector<64x64xf32>, vector<64x64xf32>, vector<64x8xf32>, vector<64x16xf32> -> vector<64x536xf32>
    %142 = tpu.concatenate %140, %141 in 1 : vector<64x1024xf32>, vector<64x536xf32> -> vector<64x1560xf32>
    %c0_67 = arith.constant 0 : index
    %c0_68 = arith.constant 0 : index
    %143 = vector.load %arg5[%c0_67, %c0_68] : memref<1560x64xf32, #tpu.memory_space<vmem>>, vector<1560x64xf32>
    %cst_69 = arith.constant dense<0.000000e+00> : vector<64x64xf32>
    %144 = tpu.matmul %142, %143, %cst_69 {dimension_numbers = #tpu.dot_dimension_numbers<[1], [0], [0], [1], [0, 0, 1, 1], [], []>} : vector<64x1560xf32>, vector<1560x64xf32>, vector<64x64xf32> -> vector<64x64xf32>
    %145 = arith.negf %144 : vector<64x64xf32>
    %146 = math.exp %145 : vector<64x64xf32>
    %cst_70 = arith.constant 1.000000e+00 : f32
    %147 = vector.broadcast %cst_70 : f32 to vector<64x64xf32>
    %148 = arith.addf %147, %146 : vector<64x64xf32>
    %149 = arith.divf %147, %148 : vector<64x64xf32>
    %150 = vector.extract_strided_slice %149 {offsets = [0, 0], sizes = [64, 32], strides = [1, 1]} : vector<64x64xf32> to vector<64x32xf32>
    %151 = vector.extract_strided_slice %149 {offsets = [0, 32], sizes = [64, 32], strides = [1, 1]} : vector<64x64xf32> to vector<64x32xf32>
    %152 = arith.mulf %150, %0 : vector<64x32xf32>
    %153 = vector.extract_strided_slice %152 {offsets = [0, 0], sizes = [8, 32], strides = [1, 1]} : vector<64x32xf32> to vector<8x32xf32>
    %c0_71 = arith.constant 0 : index
    %c0_72 = arith.constant 0 : index
    %c0_73 = arith.constant 0 : index
    %154 = vector.load %arg2[%c0_71, %c0_72, %c0_73] : memref<2x8x8xf32, #tpu.memory_space<vmem>>, vector<1x8x8xf32>
    %155 = vector.shape_cast %154 : vector<1x8x8xf32> to vector<8x8xf32>
    %cst_74 = arith.constant dense<0.000000e+00> : vector<8x32xf32>
    %156 = tpu.matmul %155, %153, %cst_74 {dimension_numbers = #tpu.dot_dimension_numbers<[1], [0], [0], [1], [0, 0, 1, 1], [], []>} : vector<8x8xf32>, vector<8x32xf32>, vector<8x32xf32> -> vector<8x32xf32>
    %c1_75 = arith.constant 1 : index
    %c0_76 = arith.constant 0 : index
    %c0_77 = arith.constant 0 : index
    %157 = vector.load %arg2[%c1_75, %c0_76, %c0_77] : memref<2x8x8xf32, #tpu.memory_space<vmem>>, vector<1x8x8xf32>
    %158 = vector.shape_cast %157 : vector<1x8x8xf32> to vector<8x8xf32>
    %cst_78 = arith.constant dense<0.000000e+00> : vector<8x32xf32>
    %159 = tpu.matmul %158, %153, %cst_78 {dimension_numbers = #tpu.dot_dimension_numbers<[1], [0], [0], [1], [0, 0, 1, 1], [], []>} : vector<8x8xf32>, vector<8x32xf32>, vector<8x32xf32> -> vector<8x32xf32>
    %160 = tpu.concatenate %156, %159 in 1 : vector<8x32xf32>, vector<8x32xf32> -> vector<8x64xf32>
    %161 = vector.extract_strided_slice %152 {offsets = [8, 0], sizes = [8, 32], strides = [1, 1]} : vector<64x32xf32> to vector<8x32xf32>
    %c0_79 = arith.constant 0 : index
    %c0_80 = arith.constant 0 : index
    %c0_81 = arith.constant 0 : index
    %162 = vector.load %arg2[%c0_79, %c0_80, %c0_81] : memref<2x8x8xf32, #tpu.memory_space<vmem>>, vector<1x8x8xf32>
    %163 = vector.shape_cast %162 : vector<1x8x8xf32> to vector<8x8xf32>
    %cst_82 = arith.constant dense<0.000000e+00> : vector<8x32xf32>
    %164 = tpu.matmul %163, %161, %cst_82 {dimension_numbers = #tpu.dot_dimension_numbers<[1], [0], [0], [1], [0, 0, 1, 1], [], []>} : vector<8x8xf32>, vector<8x32xf32>, vector<8x32xf32> -> vector<8x32xf32>
    %c1_83 = arith.constant 1 : index
    %c0_84 = arith.constant 0 : index
    %c0_85 = arith.constant 0 : index
    %165 = vector.load %arg2[%c1_83, %c0_84, %c0_85] : memref<2x8x8xf32, #tpu.memory_space<vmem>>, vector<1x8x8xf32>
    %166 = vector.shape_cast %165 : vector<1x8x8xf32> to vector<8x8xf32>
    %cst_86 = arith.constant dense<0.000000e+00> : vector<8x32xf32>
    %167 = tpu.matmul %166, %161, %cst_86 {dimension_numbers = #tpu.dot_dimension_numbers<[1], [0], [0], [1], [0, 0, 1, 1], [], []>} : vector<8x8xf32>, vector<8x32xf32>, vector<8x32xf32> -> vector<8x32xf32>
    %168 = tpu.concatenate %164, %167 in 1 : vector<8x32xf32>, vector<8x32xf32> -> vector<8x64xf32>
    %169 = vector.extract_strided_slice %152 {offsets = [16, 0], sizes = [8, 32], strides = [1, 1]} : vector<64x32xf32> to vector<8x32xf32>
    %c0_87 = arith.constant 0 : index
    %c0_88 = arith.constant 0 : index
    %c0_89 = arith.constant 0 : index
    %170 = vector.load %arg2[%c0_87, %c0_88, %c0_89] : memref<2x8x8xf32, #tpu.memory_space<vmem>>, vector<1x8x8xf32>
    %171 = vector.shape_cast %170 : vector<1x8x8xf32> to vector<8x8xf32>
    %cst_90 = arith.constant dense<0.000000e+00> : vector<8x32xf32>
    %172 = tpu.matmul %171, %169, %cst_90 {dimension_numbers = #tpu.dot_dimension_numbers<[1], [0], [0], [1], [0, 0, 1, 1], [], []>} : vector<8x8xf32>, vector<8x32xf32>, vector<8x32xf32> -> vector<8x32xf32>
    %c1_91 = arith.constant 1 : index
    %c0_92 = arith.constant 0 : index
    %c0_93 = arith.constant 0 : index
    %173 = vector.load %arg2[%c1_91, %c0_92, %c0_93] : memref<2x8x8xf32, #tpu.memory_space<vmem>>, vector<1x8x8xf32>
    %174 = vector.shape_cast %173 : vector<1x8x8xf32> to vector<8x8xf32>
    %cst_94 = arith.constant dense<0.000000e+00> : vector<8x32xf32>
    %175 = tpu.matmul %174, %169, %cst_94 {dimension_numbers = #tpu.dot_dimension_numbers<[1], [0], [0], [1], [0, 0, 1, 1], [], []>} : vector<8x8xf32>, vector<8x32xf32>, vector<8x32xf32> -> vector<8x32xf32>
    %176 = tpu.concatenate %172, %175 in 1 : vector<8x32xf32>, vector<8x32xf32> -> vector<8x64xf32>
    %177 = vector.extract_strided_slice %152 {offsets = [24, 0], sizes = [8, 32], strides = [1, 1]} : vector<64x32xf32> to vector<8x32xf32>
    %c0_95 = arith.constant 0 : index
    %c0_96 = arith.constant 0 : index
    %c0_97 = arith.constant 0 : index
    %178 = vector.load %arg2[%c0_95, %c0_96, %c0_97] : memref<2x8x8xf32, #tpu.memory_space<vmem>>, vector<1x8x8xf32>
    %179 = vector.shape_cast %178 : vector<1x8x8xf32> to vector<8x8xf32>
    %cst_98 = arith.constant dense<0.000000e+00> : vector<8x32xf32>
    %180 = tpu.matmul %179, %177, %cst_98 {dimension_numbers = #tpu.dot_dimension_numbers<[1], [0], [0], [1], [0, 0, 1, 1], [], []>} : vector<8x8xf32>, vector<8x32xf32>, vector<8x32xf32> -> vector<8x32xf32>
    %c1_99 = arith.constant 1 : index
    %c0_100 = arith.constant 0 : index
    %c0_101 = arith.constant 0 : index
    %181 = vector.load %arg2[%c1_99, %c0_100, %c0_101] : memref<2x8x8xf32, #tpu.memory_space<vmem>>, vector<1x8x8xf32>
    %182 = vector.shape_cast %181 : vector<1x8x8xf32> to vector<8x8xf32>
    %cst_102 = arith.constant dense<0.000000e+00> : vector<8x32xf32>
    %183 = tpu.matmul %182, %177, %cst_102 {dimension_numbers = #tpu.dot_dimension_numbers<[1], [0], [0], [1], [0, 0, 1, 1], [], []>} : vector<8x8xf32>, vector<8x32xf32>, vector<8x32xf32> -> vector<8x32xf32>
    %184 = tpu.concatenate %180, %183 in 1 : vector<8x32xf32>, vector<8x32xf32> -> vector<8x64xf32>
    %185 = vector.extract_strided_slice %152 {offsets = [32, 0], sizes = [8, 32], strides = [1, 1]} : vector<64x32xf32> to vector<8x32xf32>
    %c0_103 = arith.constant 0 : index
    %c0_104 = arith.constant 0 : index
    %c0_105 = arith.constant 0 : index
    %186 = vector.load %arg2[%c0_103, %c0_104, %c0_105] : memref<2x8x8xf32, #tpu.memory_space<vmem>>, vector<1x8x8xf32>
    %187 = vector.shape_cast %186 : vector<1x8x8xf32> to vector<8x8xf32>
    %cst_106 = arith.constant dense<0.000000e+00> : vector<8x32xf32>
    %188 = tpu.matmul %187, %185, %cst_106 {dimension_numbers = #tpu.dot_dimension_numbers<[1], [0], [0], [1], [0, 0, 1, 1], [], []>} : vector<8x8xf32>, vector<8x32xf32>, vector<8x32xf32> -> vector<8x32xf32>
    %c1_107 = arith.constant 1 : index
    %c0_108 = arith.constant 0 : index
    %c0_109 = arith.constant 0 : index
    %189 = vector.load %arg2[%c1_107, %c0_108, %c0_109] : memref<2x8x8xf32, #tpu.memory_space<vmem>>, vector<1x8x8xf32>
    %190 = vector.shape_cast %189 : vector<1x8x8xf32> to vector<8x8xf32>
    %cst_110 = arith.constant dense<0.000000e+00> : vector<8x32xf32>
    %191 = tpu.matmul %190, %185, %cst_110 {dimension_numbers = #tpu.dot_dimension_numbers<[1], [0], [0], [1], [0, 0, 1, 1], [], []>} : vector<8x8xf32>, vector<8x32xf32>, vector<8x32xf32> -> vector<8x32xf32>
    %192 = tpu.concatenate %188, %191 in 1 : vector<8x32xf32>, vector<8x32xf32> -> vector<8x64xf32>
    %193 = vector.extract_strided_slice %152 {offsets = [40, 0], sizes = [8, 32], strides = [1, 1]} : vector<64x32xf32> to vector<8x32xf32>
    %c0_111 = arith.constant 0 : index
    %c0_112 = arith.constant 0 : index
    %c0_113 = arith.constant 0 : index
    %194 = vector.load %arg2[%c0_111, %c0_112, %c0_113] : memref<2x8x8xf32, #tpu.memory_space<vmem>>, vector<1x8x8xf32>
    %195 = vector.shape_cast %194 : vector<1x8x8xf32> to vector<8x8xf32>
    %cst_114 = arith.constant dense<0.000000e+00> : vector<8x32xf32>
    %196 = tpu.matmul %195, %193, %cst_114 {dimension_numbers = #tpu.dot_dimension_numbers<[1], [0], [0], [1], [0, 0, 1, 1], [], []>} : vector<8x8xf32>, vector<8x32xf32>, vector<8x32xf32> -> vector<8x32xf32>
    %c1_115 = arith.constant 1 : index
    %c0_116 = arith.constant 0 : index
    %c0_117 = arith.constant 0 : index
    %197 = vector.load %arg2[%c1_115, %c0_116, %c0_117] : memref<2x8x8xf32, #tpu.memory_space<vmem>>, vector<1x8x8xf32>
    %198 = vector.shape_cast %197 : vector<1x8x8xf32> to vector<8x8xf32>
    %cst_118 = arith.constant dense<0.000000e+00> : vector<8x32xf32>
    %199 = tpu.matmul %198, %193, %cst_118 {dimension_numbers = #tpu.dot_dimension_numbers<[1], [0], [0], [1], [0, 0, 1, 1], [], []>} : vector<8x8xf32>, vector<8x32xf32>, vector<8x32xf32> -> vector<8x32xf32>
    %200 = tpu.concatenate %196, %199 in 1 : vector<8x32xf32>, vector<8x32xf32> -> vector<8x64xf32>
    %201 = vector.extract_strided_slice %152 {offsets = [48, 0], sizes = [8, 32], strides = [1, 1]} : vector<64x32xf32> to vector<8x32xf32>
    %c0_119 = arith.constant 0 : index
    %c0_120 = arith.constant 0 : index
    %c0_121 = arith.constant 0 : index
    %202 = vector.load %arg2[%c0_119, %c0_120, %c0_121] : memref<2x8x8xf32, #tpu.memory_space<vmem>>, vector<1x8x8xf32>
    %203 = vector.shape_cast %202 : vector<1x8x8xf32> to vector<8x8xf32>
    %cst_122 = arith.constant dense<0.000000e+00> : vector<8x32xf32>
    %204 = tpu.matmul %203, %201, %cst_122 {dimension_numbers = #tpu.dot_dimension_numbers<[1], [0], [0], [1], [0, 0, 1, 1], [], []>} : vector<8x8xf32>, vector<8x32xf32>, vector<8x32xf32> -> vector<8x32xf32>
    %c1_123 = arith.constant 1 : index
    %c0_124 = arith.constant 0 : index
    %c0_125 = arith.constant 0 : index
    %205 = vector.load %arg2[%c1_123, %c0_124, %c0_125] : memref<2x8x8xf32, #tpu.memory_space<vmem>>, vector<1x8x8xf32>
    %206 = vector.shape_cast %205 : vector<1x8x8xf32> to vector<8x8xf32>
    %cst_126 = arith.constant dense<0.000000e+00> : vector<8x32xf32>
    %207 = tpu.matmul %206, %201, %cst_126 {dimension_numbers = #tpu.dot_dimension_numbers<[1], [0], [0], [1], [0, 0, 1, 1], [], []>} : vector<8x8xf32>, vector<8x32xf32>, vector<8x32xf32> -> vector<8x32xf32>
    %208 = tpu.concatenate %204, %207 in 1 : vector<8x32xf32>, vector<8x32xf32> -> vector<8x64xf32>
    %209 = vector.extract_strided_slice %152 {offsets = [56, 0], sizes = [8, 32], strides = [1, 1]} : vector<64x32xf32> to vector<8x32xf32>
    %c0_127 = arith.constant 0 : index
    %c0_128 = arith.constant 0 : index
    %c0_129 = arith.constant 0 : index
    %210 = vector.load %arg2[%c0_127, %c0_128, %c0_129] : memref<2x8x8xf32, #tpu.memory_space<vmem>>, vector<1x8x8xf32>
    %211 = vector.shape_cast %210 : vector<1x8x8xf32> to vector<8x8xf32>
    %cst_130 = arith.constant dense<0.000000e+00> : vector<8x32xf32>
    %212 = tpu.matmul %211, %209, %cst_130 {dimension_numbers = #tpu.dot_dimension_numbers<[1], [0], [0], [1], [0, 0, 1, 1], [], []>} : vector<8x8xf32>, vector<8x32xf32>, vector<8x32xf32> -> vector<8x32xf32>
    %c1_131 = arith.constant 1 : index
    %c0_132 = arith.constant 0 : index
    %c0_133 = arith.constant 0 : index
    %213 = vector.load %arg2[%c1_131, %c0_132, %c0_133] : memref<2x8x8xf32, #tpu.memory_space<vmem>>, vector<1x8x8xf32>
    %214 = vector.shape_cast %213 : vector<1x8x8xf32> to vector<8x8xf32>
    %cst_134 = arith.constant dense<0.000000e+00> : vector<8x32xf32>
    %215 = tpu.matmul %214, %209, %cst_134 {dimension_numbers = #tpu.dot_dimension_numbers<[1], [0], [0], [1], [0, 0, 1, 1], [], []>} : vector<8x8xf32>, vector<8x32xf32>, vector<8x32xf32> -> vector<8x32xf32>
    %216 = tpu.concatenate %212, %215 in 1 : vector<8x32xf32>, vector<8x32xf32> -> vector<8x64xf32>
    %217 = tpu.concatenate %160, %168, %176, %184, %192, %200, %208, %216 in 0 : vector<8x64xf32>, vector<8x64xf32>, vector<8x64xf32>, vector<8x64xf32>, vector<8x64xf32>, vector<8x64xf32>, vector<8x64xf32>, vector<8x64xf32> -> vector<64x64xf32>
    %218 = vector.extract_strided_slice %1 {offsets = [0, 0], sizes = [64, 1], strides = [1, 1]} : vector<64x8xf32> to vector<64x1xf32>
    %219 = vector.broadcast %218 : vector<64x1xf32> to vector<64x64xf32>
    %220 = arith.mulf %219, %217 : vector<64x64xf32>
    %221 = vector.extract_strided_slice %1 {offsets = [0, 1], sizes = [64, 1], strides = [1, 1]} : vector<64x8xf32> to vector<64x1xf32>
    %222 = vector.broadcast %221 : vector<64x1xf32> to vector<64x64xf32>
    %223 = arith.mulf %222, %217 : vector<64x64xf32>
    %224 = vector.extract_strided_slice %1 {offsets = [0, 2], sizes = [64, 1], strides = [1, 1]} : vector<64x8xf32> to vector<64x1xf32>
    %225 = vector.broadcast %224 : vector<64x1xf32> to vector<64x64xf32>
    %226 = arith.mulf %225, %217 : vector<64x64xf32>
    %227 = vector.extract_strided_slice %1 {offsets = [0, 3], sizes = [64, 1], strides = [1, 1]} : vector<64x8xf32> to vector<64x1xf32>
    %228 = vector.broadcast %227 : vector<64x1xf32> to vector<64x64xf32>
    %229 = arith.mulf %228, %217 : vector<64x64xf32>
    %230 = vector.extract_strided_slice %1 {offsets = [0, 4], sizes = [64, 1], strides = [1, 1]} : vector<64x8xf32> to vector<64x1xf32>
    %231 = vector.broadcast %230 : vector<64x1xf32> to vector<64x64xf32>
    %232 = arith.mulf %231, %217 : vector<64x64xf32>
    %233 = vector.extract_strided_slice %1 {offsets = [0, 5], sizes = [64, 1], strides = [1, 1]} : vector<64x8xf32> to vector<64x1xf32>
    %234 = vector.broadcast %233 : vector<64x1xf32> to vector<64x64xf32>
    %235 = arith.mulf %234, %217 : vector<64x64xf32>
    %236 = vector.extract_strided_slice %1 {offsets = [0, 6], sizes = [64, 1], strides = [1, 1]} : vector<64x8xf32> to vector<64x1xf32>
    %237 = vector.broadcast %236 : vector<64x1xf32> to vector<64x64xf32>
    %238 = arith.mulf %237, %217 : vector<64x64xf32>
    %239 = vector.extract_strided_slice %1 {offsets = [0, 7], sizes = [64, 1], strides = [1, 1]} : vector<64x8xf32> to vector<64x1xf32>
    %240 = vector.broadcast %239 : vector<64x1xf32> to vector<64x64xf32>
    %241 = arith.mulf %240, %217 : vector<64x64xf32>
    %242 = vector.extract_strided_slice %2 {offsets = [0, 0], sizes = [64, 1], strides = [1, 1]} : vector<64x16xf32> to vector<64x1xf32>
    %243 = vector.broadcast %242 : vector<64x1xf32> to vector<64x64xf32>
    %244 = arith.mulf %243, %217 : vector<64x64xf32>
    %245 = vector.extract_strided_slice %2 {offsets = [0, 1], sizes = [64, 1], strides = [1, 1]} : vector<64x16xf32> to vector<64x1xf32>
    %246 = vector.broadcast %245 : vector<64x1xf32> to vector<64x64xf32>
    %247 = arith.mulf %246, %217 : vector<64x64xf32>
    %248 = vector.extract_strided_slice %2 {offsets = [0, 2], sizes = [64, 1], strides = [1, 1]} : vector<64x16xf32> to vector<64x1xf32>
    %249 = vector.broadcast %248 : vector<64x1xf32> to vector<64x64xf32>
    %250 = arith.mulf %249, %217 : vector<64x64xf32>
    %251 = vector.extract_strided_slice %2 {offsets = [0, 3], sizes = [64, 1], strides = [1, 1]} : vector<64x16xf32> to vector<64x1xf32>
    %252 = vector.broadcast %251 : vector<64x1xf32> to vector<64x64xf32>
    %253 = arith.mulf %252, %217 : vector<64x64xf32>
    %254 = vector.extract_strided_slice %2 {offsets = [0, 4], sizes = [64, 1], strides = [1, 1]} : vector<64x16xf32> to vector<64x1xf32>
    %255 = vector.broadcast %254 : vector<64x1xf32> to vector<64x64xf32>
    %256 = arith.mulf %255, %217 : vector<64x64xf32>
    %257 = vector.extract_strided_slice %2 {offsets = [0, 5], sizes = [64, 1], strides = [1, 1]} : vector<64x16xf32> to vector<64x1xf32>
    %258 = vector.broadcast %257 : vector<64x1xf32> to vector<64x64xf32>
    %259 = arith.mulf %258, %217 : vector<64x64xf32>
    %260 = vector.extract_strided_slice %2 {offsets = [0, 6], sizes = [64, 1], strides = [1, 1]} : vector<64x16xf32> to vector<64x1xf32>
    %261 = vector.broadcast %260 : vector<64x1xf32> to vector<64x64xf32>
    %262 = arith.mulf %261, %217 : vector<64x64xf32>
    %263 = vector.extract_strided_slice %2 {offsets = [0, 7], sizes = [64, 1], strides = [1, 1]} : vector<64x16xf32> to vector<64x1xf32>
    %264 = vector.broadcast %263 : vector<64x1xf32> to vector<64x64xf32>
    %265 = arith.mulf %264, %217 : vector<64x64xf32>
    %266 = vector.extract_strided_slice %2 {offsets = [0, 8], sizes = [64, 1], strides = [1, 1]} : vector<64x16xf32> to vector<64x1xf32>
    %267 = vector.broadcast %266 : vector<64x1xf32> to vector<64x64xf32>
    %268 = arith.mulf %267, %217 : vector<64x64xf32>
    %269 = vector.extract_strided_slice %2 {offsets = [0, 9], sizes = [64, 1], strides = [1, 1]} : vector<64x16xf32> to vector<64x1xf32>
    %270 = vector.broadcast %269 : vector<64x1xf32> to vector<64x64xf32>
    %271 = arith.mulf %270, %217 : vector<64x64xf32>
    %272 = vector.extract_strided_slice %2 {offsets = [0, 10], sizes = [64, 1], strides = [1, 1]} : vector<64x16xf32> to vector<64x1xf32>
    %273 = vector.broadcast %272 : vector<64x1xf32> to vector<64x64xf32>
    %274 = arith.mulf %273, %217 : vector<64x64xf32>
    %275 = vector.extract_strided_slice %2 {offsets = [0, 11], sizes = [64, 1], strides = [1, 1]} : vector<64x16xf32> to vector<64x1xf32>
    %276 = vector.broadcast %275 : vector<64x1xf32> to vector<64x64xf32>
    %277 = arith.mulf %276, %217 : vector<64x64xf32>
    %278 = vector.extract_strided_slice %2 {offsets = [0, 12], sizes = [64, 1], strides = [1, 1]} : vector<64x16xf32> to vector<64x1xf32>
    %279 = vector.broadcast %278 : vector<64x1xf32> to vector<64x64xf32>
    %280 = arith.mulf %279, %217 : vector<64x64xf32>
    %281 = vector.extract_strided_slice %2 {offsets = [0, 13], sizes = [64, 1], strides = [1, 1]} : vector<64x16xf32> to vector<64x1xf32>
    %282 = vector.broadcast %281 : vector<64x1xf32> to vector<64x64xf32>
    %283 = arith.mulf %282, %217 : vector<64x64xf32>
    %284 = vector.extract_strided_slice %2 {offsets = [0, 14], sizes = [64, 1], strides = [1, 1]} : vector<64x16xf32> to vector<64x1xf32>
    %285 = vector.broadcast %284 : vector<64x1xf32> to vector<64x64xf32>
    %286 = arith.mulf %285, %217 : vector<64x64xf32>
    %287 = vector.extract_strided_slice %2 {offsets = [0, 15], sizes = [64, 1], strides = [1, 1]} : vector<64x16xf32> to vector<64x1xf32>
    %288 = vector.broadcast %287 : vector<64x1xf32> to vector<64x64xf32>
    %289 = arith.mulf %288, %217 : vector<64x64xf32>
    %290 = tpu.concatenate %220, %223, %226, %229, %232, %235, %238, %241, %244, %247, %250, %253, %256, %259, %262, %265 in 1 : vector<64x64xf32>, vector<64x64xf32>, vector<64x64xf32>, vector<64x64xf32>, vector<64x64xf32>, vector<64x64xf32>, vector<64x64xf32>, vector<64x64xf32>, vector<64x64xf32>, vector<64x64xf32>, vector<64x64xf32>, vector<64x64xf32>, vector<64x64xf32>, vector<64x64xf32>, vector<64x64xf32>, vector<64x64xf32> -> vector<64x1024xf32>
    %291 = tpu.concatenate %268, %271, %274, %277, %280, %283, %286, %289, %1, %2 in 1 : vector<64x64xf32>, vector<64x64xf32>, vector<64x64xf32>, vector<64x64xf32>, vector<64x64xf32>, vector<64x64xf32>, vector<64x64xf32>, vector<64x64xf32>, vector<64x8xf32>, vector<64x16xf32> -> vector<64x536xf32>
    %292 = tpu.concatenate %290, %291 in 1 : vector<64x1024xf32>, vector<64x536xf32> -> vector<64x1560xf32>
    %c0_135 = arith.constant 0 : index
    %c0_136 = arith.constant 0 : index
    %293 = vector.load %arg6[%c0_135, %c0_136] : memref<1560x32xf32, #tpu.memory_space<vmem>>, vector<1560x32xf32>
    %cst_137 = arith.constant dense<0.000000e+00> : vector<64x32xf32>
    %294 = tpu.matmul %292, %293, %cst_137 {dimension_numbers = #tpu.dot_dimension_numbers<[1], [0], [0], [1], [0, 0, 1, 1], [], []>} : vector<64x1560xf32>, vector<1560x32xf32>, vector<64x32xf32> -> vector<64x32xf32>
    %295 = math.tanh %294 : vector<64x32xf32>
    %296 = arith.mulf %151, %0 : vector<64x32xf32>
    %cst_138 = arith.constant 1.000000e+00 : f32
    %297 = vector.broadcast %cst_138 : f32 to vector<64x32xf32>
    %298 = arith.subf %297, %151 : vector<64x32xf32>
    %299 = arith.mulf %298, %295 : vector<64x32xf32>
    %300 = arith.addf %296, %299 : vector<64x32xf32>
    %301 = vector.extract_strided_slice %300 {offsets = [0, 0], sizes = [8, 32], strides = [1, 1]} : vector<64x32xf32> to vector<8x32xf32>
    %c0_139 = arith.constant 0 : index
    %c0_140 = arith.constant 0 : index
    %c0_141 = arith.constant 0 : index
    %302 = vector.load %arg7[%c0_139, %c0_140, %c0_141] : memref<4x32x1xf32, #tpu.memory_space<vmem>>, vector<1x32x1xf32>
    %303 = vector.shape_cast %302 : vector<1x32x1xf32> to vector<32x1xf32>
    %cst_142 = arith.constant dense<0.000000e+00> : vector<8x1xf32>
    %304 = tpu.matmul %301, %303, %cst_142 {dimension_numbers = #tpu.dot_dimension_numbers<[1], [0], [0], [1], [0, 0, 1, 1], [], []>} : vector<8x32xf32>, vector<32x1xf32>, vector<8x1xf32> -> vector<8x1xf32>
    %c0_143 = arith.constant 0 : index
    %c0_144 = arith.constant 0 : index
    %305 = vector.load %arg8[%c0_143, %c0_144] : memref<4x1xf32, #tpu.memory_space<vmem>>, vector<1x1xf32>
    %306 = vector.broadcast %305 : vector<1x1xf32> to vector<8x1xf32>
    %307 = arith.addf %304, %306 : vector<8x1xf32>
    %c0_145 = arith.constant 0 : index
    %c0_146 = arith.constant 0 : index
    %308 = vector.load %arg9[%c0_145, %c0_146] : memref<64x1xf32, #tpu.memory_space<vmem>>, vector<8x1xf32>
    tpu.vector_store %arg9[%c0_145, %c0_146], %307 {strides = array<i32>} : memref<64x1xf32, #tpu.memory_space<vmem>>, vector<8x1xf32>,
    %309 = vector.extract_strided_slice %300 {offsets = [8, 0], sizes = [8, 32], strides = [1, 1]} : vector<64x32xf32> to vector<8x32xf32>
    %c1_147 = arith.constant 1 : index
    %c0_148 = arith.constant 0 : index
    %c0_149 = arith.constant 0 : index
    %310 = vector.load %arg7[%c1_147, %c0_148, %c0_149] : memref<4x32x1xf32, #tpu.memory_space<vmem>>, vector<1x32x1xf32>
    %311 = vector.shape_cast %310 : vector<1x32x1xf32> to vector<32x1xf32>
    %cst_150 = arith.constant dense<0.000000e+00> : vector<8x1xf32>
    %312 = tpu.matmul %309, %311, %cst_150 {dimension_numbers = #tpu.dot_dimension_numbers<[1], [0], [0], [1], [0, 0, 1, 1], [], []>} : vector<8x32xf32>, vector<32x1xf32>, vector<8x1xf32> -> vector<8x1xf32>
    %c1_151 = arith.constant 1 : index
    %c0_152 = arith.constant 0 : index
    %313 = vector.load %arg8[%c1_151, %c0_152] : memref<4x1xf32, #tpu.memory_space<vmem>>, vector<1x1xf32>
    %314 = vector.broadcast %313 : vector<1x1xf32> to vector<8x1xf32>
    %315 = arith.addf %312, %314 : vector<8x1xf32>
    %c8 = arith.constant 8 : index
    %c0_153 = arith.constant 0 : index
    %316 = vector.load %arg9[%c8, %c0_153] : memref<64x1xf32, #tpu.memory_space<vmem>>, vector<8x1xf32>
    tpu.vector_store %arg9[%c8, %c0_153], %315 {strides = array<i32>} : memref<64x1xf32, #tpu.memory_space<vmem>>, vector<8x1xf32>,
    %317 = vector.extract_strided_slice %300 {offsets = [16, 0], sizes = [8, 32], strides = [1, 1]} : vector<64x32xf32> to vector<8x32xf32>
    %c2 = arith.constant 2 : index
    %c0_154 = arith.constant 0 : index
    %c0_155 = arith.constant 0 : index
    %318 = vector.load %arg7[%c2, %c0_154, %c0_155] : memref<4x32x1xf32, #tpu.memory_space<vmem>>, vector<1x32x1xf32>
    %319 = vector.shape_cast %318 : vector<1x32x1xf32> to vector<32x1xf32>
    %cst_156 = arith.constant dense<0.000000e+00> : vector<8x1xf32>
    %320 = tpu.matmul %317, %319, %cst_156 {dimension_numbers = #tpu.dot_dimension_numbers<[1], [0], [0], [1], [0, 0, 1, 1], [], []>} : vector<8x32xf32>, vector<32x1xf32>, vector<8x1xf32> -> vector<8x1xf32>
    %c2_157 = arith.constant 2 : index
    %c0_158 = arith.constant 0 : index
    %321 = vector.load %arg8[%c2_157, %c0_158] : memref<4x1xf32, #tpu.memory_space<vmem>>, vector<1x1xf32>
    %322 = vector.broadcast %321 : vector<1x1xf32> to vector<8x1xf32>
    %323 = arith.addf %320, %322 : vector<8x1xf32>
    %c16 = arith.constant 16 : index
    %c0_159 = arith.constant 0 : index
    %324 = vector.load %arg9[%c16, %c0_159] : memref<64x1xf32, #tpu.memory_space<vmem>>, vector<8x1xf32>
    tpu.vector_store %arg9[%c16, %c0_159], %323 {strides = array<i32>} : memref<64x1xf32, #tpu.memory_space<vmem>>, vector<8x1xf32>,
    %325 = vector.extract_strided_slice %300 {offsets = [24, 0], sizes = [8, 32], strides = [1, 1]} : vector<64x32xf32> to vector<8x32xf32>
    %c3 = arith.constant 3 : index
    %c0_160 = arith.constant 0 : index
    %c0_161 = arith.constant 0 : index
    %326 = vector.load %arg7[%c3, %c0_160, %c0_161] : memref<4x32x1xf32, #tpu.memory_space<vmem>>, vector<1x32x1xf32>
    %327 = vector.shape_cast %326 : vector<1x32x1xf32> to vector<32x1xf32>
    %cst_162 = arith.constant dense<0.000000e+00> : vector<8x1xf32>
    %328 = tpu.matmul %325, %327, %cst_162 {dimension_numbers = #tpu.dot_dimension_numbers<[1], [0], [0], [1], [0, 0, 1, 1], [], []>} : vector<8x32xf32>, vector<32x1xf32>, vector<8x1xf32> -> vector<8x1xf32>
    %c3_163 = arith.constant 3 : index
    %c0_164 = arith.constant 0 : index
    %329 = vector.load %arg8[%c3_163, %c0_164] : memref<4x1xf32, #tpu.memory_space<vmem>>, vector<1x1xf32>
    %330 = vector.broadcast %329 : vector<1x1xf32> to vector<8x1xf32>
    %331 = arith.addf %328, %330 : vector<8x1xf32>
    %c24 = arith.constant 24 : index
    %c0_165 = arith.constant 0 : index
    %332 = vector.load %arg9[%c24, %c0_165] : memref<64x1xf32, #tpu.memory_space<vmem>>, vector<8x1xf32>
    tpu.vector_store %arg9[%c24, %c0_165], %331 {strides = array<i32>} : memref<64x1xf32, #tpu.memory_space<vmem>>, vector<8x1xf32>,
    %333 = vector.extract_strided_slice %300 {offsets = [32, 0], sizes = [8, 32], strides = [1, 1]} : vector<64x32xf32> to vector<8x32xf32>
    %c0_166 = arith.constant 0 : index
    %c0_167 = arith.constant 0 : index
    %c0_168 = arith.constant 0 : index
    %334 = vector.load %arg7[%c0_166, %c0_167, %c0_168] : memref<4x32x1xf32, #tpu.memory_space<vmem>>, vector<1x32x1xf32>
    %335 = vector.shape_cast %334 : vector<1x32x1xf32> to vector<32x1xf32>
    %cst_169 = arith.constant dense<0.000000e+00> : vector<8x1xf32>
    %336 = tpu.matmul %333, %335, %cst_169 {dimension_numbers = #tpu.dot_dimension_numbers<[1], [0], [0], [1], [0, 0, 1, 1], [], []>} : vector<8x32xf32>, vector<32x1xf32>, vector<8x1xf32> -> vector<8x1xf32>
    %c0_170 = arith.constant 0 : index
    %c0_171 = arith.constant 0 : index
    %337 = vector.load %arg8[%c0_170, %c0_171] : memref<4x1xf32, #tpu.memory_space<vmem>>, vector<1x1xf32>
    %338 = vector.broadcast %337 : vector<1x1xf32> to vector<8x1xf32>
    %339 = arith.addf %336, %338 : vector<8x1xf32>
    %c32 = arith.constant 32 : index
    %c0_172 = arith.constant 0 : index
    %340 = vector.load %arg9[%c32, %c0_172] : memref<64x1xf32, #tpu.memory_space<vmem>>, vector<8x1xf32>
    tpu.vector_store %arg9[%c32, %c0_172], %339 {strides = array<i32>} : memref<64x1xf32, #tpu.memory_space<vmem>>, vector<8x1xf32>,
    %341 = vector.extract_strided_slice %300 {offsets = [40, 0], sizes = [8, 32], strides = [1, 1]} : vector<64x32xf32> to vector<8x32xf32>
    %c1_173 = arith.constant 1 : index
    %c0_174 = arith.constant 0 : index
    %c0_175 = arith.constant 0 : index
    %342 = vector.load %arg7[%c1_173, %c0_174, %c0_175] : memref<4x32x1xf32, #tpu.memory_space<vmem>>, vector<1x32x1xf32>
    %343 = vector.shape_cast %342 : vector<1x32x1xf32> to vector<32x1xf32>
    %cst_176 = arith.constant dense<0.000000e+00> : vector<8x1xf32>
    %344 = tpu.matmul %341, %343, %cst_176 {dimension_numbers = #tpu.dot_dimension_numbers<[1], [0], [0], [1], [0, 0, 1, 1], [], []>} : vector<8x32xf32>, vector<32x1xf32>, vector<8x1xf32> -> vector<8x1xf32>
    %c1_177 = arith.constant 1 : index
    %c0_178 = arith.constant 0 : index
    %345 = vector.load %arg8[%c1_177, %c0_178] : memref<4x1xf32, #tpu.memory_space<vmem>>, vector<1x1xf32>
    %346 = vector.broadcast %345 : vector<1x1xf32> to vector<8x1xf32>
    %347 = arith.addf %344, %346 : vector<8x1xf32>
    %c40 = arith.constant 40 : index
    %c0_179 = arith.constant 0 : index
    %348 = vector.load %arg9[%c40, %c0_179] : memref<64x1xf32, #tpu.memory_space<vmem>>, vector<8x1xf32>
    tpu.vector_store %arg9[%c40, %c0_179], %347 {strides = array<i32>} : memref<64x1xf32, #tpu.memory_space<vmem>>, vector<8x1xf32>,
    %349 = vector.extract_strided_slice %300 {offsets = [48, 0], sizes = [8, 32], strides = [1, 1]} : vector<64x32xf32> to vector<8x32xf32>
    %c2_180 = arith.constant 2 : index
    %c0_181 = arith.constant 0 : index
    %c0_182 = arith.constant 0 : index
    %350 = vector.load %arg7[%c2_180, %c0_181, %c0_182] : memref<4x32x1xf32, #tpu.memory_space<vmem>>, vector<1x32x1xf32>
    %351 = vector.shape_cast %350 : vector<1x32x1xf32> to vector<32x1xf32>
    %cst_183 = arith.constant dense<0.000000e+00> : vector<8x1xf32>
    %352 = tpu.matmul %349, %351, %cst_183 {dimension_numbers = #tpu.dot_dimension_numbers<[1], [0], [0], [1], [0, 0, 1, 1], [], []>} : vector<8x32xf32>, vector<32x1xf32>, vector<8x1xf32> -> vector<8x1xf32>
    %c2_184 = arith.constant 2 : index
    %c0_185 = arith.constant 0 : index
    %353 = vector.load %arg8[%c2_184, %c0_185] : memref<4x1xf32, #tpu.memory_space<vmem>>, vector<1x1xf32>
    %354 = vector.broadcast %353 : vector<1x1xf32> to vector<8x1xf32>
    %355 = arith.addf %352, %354 : vector<8x1xf32>
    %c48 = arith.constant 48 : index
    %c0_186 = arith.constant 0 : index
    %356 = vector.load %arg9[%c48, %c0_186] : memref<64x1xf32, #tpu.memory_space<vmem>>, vector<8x1xf32>
    tpu.vector_store %arg9[%c48, %c0_186], %355 {strides = array<i32>} : memref<64x1xf32, #tpu.memory_space<vmem>>, vector<8x1xf32>,
    %357 = vector.extract_strided_slice %300 {offsets = [56, 0], sizes = [8, 32], strides = [1, 1]} : vector<64x32xf32> to vector<8x32xf32>
    %c3_187 = arith.constant 3 : index
    %c0_188 = arith.constant 0 : index
    %c0_189 = arith.constant 0 : index
    %358 = vector.load %arg7[%c3_187, %c0_188, %c0_189] : memref<4x32x1xf32, #tpu.memory_space<vmem>>, vector<1x32x1xf32>
    %359 = vector.shape_cast %358 : vector<1x32x1xf32> to vector<32x1xf32>
    %cst_190 = arith.constant dense<0.000000e+00> : vector<8x1xf32>
    %360 = tpu.matmul %357, %359, %cst_190 {dimension_numbers = #tpu.dot_dimension_numbers<[1], [0], [0], [1], [0, 0, 1, 1], [], []>} : vector<8x32xf32>, vector<32x1xf32>, vector<8x1xf32> -> vector<8x1xf32>
    %c3_191 = arith.constant 3 : index
    %c0_192 = arith.constant 0 : index
    %361 = vector.load %arg8[%c3_191, %c0_192] : memref<4x1xf32, #tpu.memory_space<vmem>>, vector<1x1xf32>
    %362 = vector.broadcast %361 : vector<1x1xf32> to vector<8x1xf32>
    %363 = arith.addf %360, %362 : vector<8x1xf32>
    %c56 = arith.constant 56 : index
    %c0_193 = arith.constant 0 : index
    %364 = vector.load %arg9[%c56, %c0_193] : memref<64x1xf32, #tpu.memory_space<vmem>>, vector<8x1xf32>
    tpu.vector_store %arg9[%c56, %c0_193], %363 {strides = array<i32>} : memref<64x1xf32, #tpu.memory_space<vmem>>, vector<8x1xf32>,
    return
  }
  func.func @transform_0(%arg0: i32) -> (i32, i32) {
    %c0_i32 = arith.constant 0 : i32
    %c0_i32_0 = arith.constant 0 : i32
    %c0_i32_1 = arith.constant 0 : i32
    return %c0_i32, %c0_i32_0 : i32, i32
  }
  func.func @transform_1(%arg0: i32) -> (i32, i32, i32) {
    %c0_i32 = arith.constant 0 : i32
    %c0_i32_0 = arith.constant 0 : i32
    %c0_i32_1 = arith.constant 0 : i32
    %c0_i32_2 = arith.constant 0 : i32
    return %c0_i32, %c0_i32_0, %c0_i32_1 : i32, i32, i32
  }
  func.func @transform_2(%arg0: i32) -> (i32, i32) {
    %c0_i32 = arith.constant 0 : i32
    %c0_i32_0 = arith.constant 0 : i32
    %c0_i32_1 = arith.constant 0 : i32
    return %c0_i32, %c0_i32_0 : i32, i32
  }
  func.func @transform_3(%arg0: i32) -> (i32, i32) {
    %c0_i32 = arith.constant 0 : i32
    %c0_i32_0 = arith.constant 0 : i32
    %c0_i32_1 = arith.constant 0 : i32
    return %c0_i32, %c0_i32_0 : i32, i32
  }
  func.func @transform_4(%arg0: i32) -> (i32, i32) {
    %c0_i32 = arith.constant 0 : i32
    %c0_i32_0 = arith.constant 0 : i32
    %c0_i32_1 = arith.constant 0 : i32
    return %c0_i32, %c0_i32_0 : i32, i32
  }
  func.func @transform_5(%arg0: i32) -> (i32, i32) {
    %c0_i32 = arith.constant 0 : i32
    %c0_i32_0 = arith.constant 0 : i32
    %c0_i32_1 = arith.constant 0 : i32
    return %c0_i32, %c0_i32_0 : i32, i32
  }
  func.func @transform_6(%arg0: i32) -> (i32, i32, i32) {
    %c0_i32 = arith.constant 0 : i32
    %c0_i32_0 = arith.constant 0 : i32
    %c0_i32_1 = arith.constant 0 : i32
    %c0_i32_2 = arith.constant 0 : i32
    return %c0_i32, %c0_i32_0, %c0_i32_1 : i32, i32, i32
  }
  func.func @transform_7(%arg0: i32) -> (i32, i32) {
    %c0_i32 = arith.constant 0 : i32
    %c0_i32_0 = arith.constant 0 : i32
    %c0_i32_1 = arith.constant 0 : i32
    return %c0_i32, %c0_i32_0 : i32, i32
  }
  func.func @transform_8(%arg0: i32) -> (i32, i32) {
    %c0_i32 = arith.constant 0 : i32
    %c0_i32_0 = arith.constant 0 : i32
    %c0_i32_1 = arith.constant 0 : i32
    return %c0_i32, %c0_i32_0 : i32, i32
  }
}

</mosaic_0001>

<bundles_post_ra>
// kernel: _lambda_.2
= control target key start
LH: loop header
LB: loop body
LE: loop exit
PB: predicated region body
PF: predicated region fallthrough
CT: control target
= control target key end

     0   :  { %v3231_v0 = vmov 0.0|0.0   ;;  %vm3232_vm0 = vmmov 0   ;;  %v3233_v6 = vmov 0.0   ;;  %vm50_vm1 = vcmask 130048   ;;  %s3715_s3 = inlined_call_operand.vmem [shape: f32[16,32], index: 3, kind: input, shape index: {}]   ;;  %s3716_s4 = inlined_call_operand.vmem [shape: f32[32,32], index: 4, kind: input, shape index: {}]   ;;  %s3717_s6 = inlined_call_operand.vmem [shape: f32[16,64], index: 6, kind: input, shape index: {}]   ;;  %s3718_s2 = inlined_call_operand.vmem [shape: f32[8,16], index: 2, kind: input, shape index: {}]   ;;  %s3719_s7 = inlined_call_operand.vmem [shape: f32[32,64], index: 7, kind: input, shape index: {}]   ;;  %s3720_s1 = inlined_call_operand.vmem [shape: f32[2,16], index: 1, kind: input, shape index: {}]   ;;  %s3721_s0 = inlined_call_operand.vmem [shape: f32[2,8,32], index: 0, kind: input, shape index: {}]   ;;  %s3722_s9 = inlined_call_operand.vmem [shape: f32[32,32], index: 9, kind: input, shape index: {}]   ;;  %s3723_s12 = inlined_call_operand.vmem [shape: f32[32,8], index: 12, kind: input, shape index: {}]   ;;  %s3724_s5 = inlined_call_operand.vmem [shape: f32[1,32], index: 5, kind: input, shape index: {}]   ;;  %s3725_s8 = inlined_call_operand.vmem [shape: f32[1,64], index: 8, kind: input, shape index: {}]   ;;  %s3726_s13 = inlined_call_operand.vmem [shape: f32[8,32], index: 13, kind: input, shape index: {}]   ;;  %s3727_s10 = inlined_call_operand.vmem [shape: f32[32,32], index: 10, kind: input, shape index: {}]   ;;  %s3728_s11 = inlined_call_operand.vmem [shape: f32[1,32], index: 11, kind: input, shape index: {}]   ;;  %s3729_s14 = inlined_call_operand.vmem [shape: f32[64,32], index: 14, kind: output, shape index: {}]  }
   0x1   :  { %3069 = vmatprep.subr.bf16.mxu1 %v3231_v0  ;;  %3075 = vmatprep.subr.bf16.mxu0 %v3231_v0  ;;  %v48_v1 = vld [vmem:[%s3715_s3] sm:$0xff]  ;;  %v49_v2 = vld [vmem:[%s3715_s3 + $0x8] sm:$0xff]  ;;  %v215_v10 = vld [vmem:[%s3716_s4 + $0x10] sm:$0xff]  ;;  %vm217_vm2 = vcmask 261120   ;;  %v295_v35 = vlaneseq  ;;  %vm802_vm3 = vcmask 64512  }
   0x2   :  { %v213_v3 = vld [vmem:[%s3716_s4] sm:$0xff]  ;;  %v3070_v4 = vpack.c.bf16 %v49_v2, %v48_v1  ;;  %v214_v5 = vld [vmem:[%s3716_s4 + $0x8] sm:$0xff]  ;;  %2777 = vmatprep.mubr.msk.f32.mxu1 %vm3232_vm0, %v3233_v6  ;;  %2795 = vmatprep.mubr.msk.f32.mxu0 %vm3232_vm0, %v3233_v6  ;;  %v216_v11 = vld [vmem:[%s3716_s4 + $0x18] sm:$0xff] }
   0x3   :  { %v125_v7 = vld [vmem:[%s3717_s6] sm:$0xff]  ;;  %v3331_v8 = vpack.c.bf16 %v214_v5, %v213_v3  ;;  %v126_v9 = vld [vmem:[%s3717_s6 + $0x8] sm:$0xff]  ;;  %v3347_v14 = vpack.c.bf16 %v216_v11, %v215_v10  ;;  %v293_v20 = vld [vmem:[%s3719_s7 + $0x10] sm:$0xff]  ;;  %v296_v36 = vshrl.u32 %v295_v35, 7 }
   0x4   :  { %3071 = vmatpush3.bf16.msra.mxu1 %v3070_v4  ;;  %v47_v12 = vld [vmem:[%s3718_s2] sm:$0xff]  ;;  %v3073_v13 = vpack.c.bf16 %v126_v9, %v125_v7  ;;  %v292_v16 = vld [vmem:[%s3719_s7 + $0x8] sm:$0xff]  ;;  %v294_v21 = vld [vmem:[%s3719_s7 + $0x18] sm:$0xff] }
   0x5   :  { %3077 = vmatpush3.bf16.msra.mxu0 %v3331_v8  ;;  %3072 = vmatprep.subr.bf16.mxu1 %v3231_v0  ;;  %v291_v15 = vld [vmem:[%s3719_s7] sm:$0xff]  ;;  %v3379_v22 = vpack.c.bf16 %v294_v21, %v293_v20  ;;  %v378_v24 = vld [vmem:[%s3722_s9 + $0x8] sm:$0xff]  ;;  %v379_v26 = vld [vmem:[%s3722_s9 + $0x10] sm:$0xff]  ;;  %v297_v37 = vsub.s32 0, %v296_v36  ;;  %v540_v38 = vsub.s32 1, %v296_v36  ;;  %v621_v39 = vsub.s32 2, %v296_v36 }
   0x6   :  { %3078 = vmatprep.subr.bf16.mxu0 %v3231_v0  ;;  %v124_v17 = vld [vmem:[%s3720_s1] sm:$0x3]  ;;  %v3362_v18 = vpack.c.bf16 %v292_v16, %v291_v15  ;;  %v380_v27 = vld [vmem:[%s3722_s9 + $0x18] sm:$0xff]  ;;  %v201_v30 = vld [vmem:[%s3723_s12 + $0x8] sm:$0xff]  ;;  %v702_v40 = vsub.s32 3, %v296_v36  ;;  %v1651_v41 = vsub.s32 4, %v296_v36 }
   0x7   :  { %2778 = vmatmul.mubr.msk.f32.vlgmr.msra.gmra.mrb[0].mxu1 %vm50_vm1, %v47_v12  ;;  %v212_v19 = vld [vmem:[%s3721_s0] sm:$0xff]  ;;  %v3407_v28 = vpack.c.bf16 %v380_v27, %v379_v26  ;;  %v202_v32 = vld [vmem:[%s3723_s12 + $0x10] sm:$0xff]  ;;  %v203_v33 = vld [vmem:[%s3723_s12 + $0x18] sm:$0xff]  ;;  %v1732_v42 = vsub.s32 5, %v296_v36  ;;  %v1813_v43 = vsub.s32 6, %v296_v36  ;;  %v1894_v44 = vsub.s32 7, %v296_v36 }
   0x8   :  { %3074 = vmatpush3.bf16.msra.mxu1 %v3073_v13  ;;  %2784 = vmatprep.mubr.msk.f32.mxu1 %vm3232_vm0, %v3233_v6  ;;  %v377_v23 = vld [vmem:[%s3722_s9] sm:$0xff]  ;;  %v3430_v34 = vpack.c.bf16 %v203_v33, %v202_v32 }
   0x9   :  { %3080 = vmatpush3.bf16.msra.mxu0 %v3347_v14  ;;  %3081 = vmatprep.subr.bf16.mxu1 %v3231_v0  ;;  %v3397_v25 = vpack.c.bf16 %v378_v24, %v377_v23  ;;  %v200_v29 = vld [vmem:[%s3723_s12] sm:$0xff] }
   0xa   :  { %3087 = vmatprep.subr.bf16.mxu0 %v3231_v0  ;;  %v3417_v31 = vpack.c.bf16 %v201_v30, %v200_v29  ;;  %v3451_v1 = vld [vmem:[%s3724_s5] ss:$0 sm:$0xff]  ;;  %s3234_s5 = smov 96  }
   0xb   :  { %2785 = vmatmul.mubr.msk.f32.vlgmr.msra.gmra.mrb[2].mxu1 %vm50_vm1, %v124_v17  ;;  %v3457_v4 = vld [vmem:[%s3725_s8] ss:$0 sm:$0xff] }
   0xc   :  { %2796 = vmatmul.mubr.msk.f32.vlgmr.msra.gmra.mrb[0].mxu0 %vm217_vm2, %v212_v19  ;;  %3083 = vmatpush3.bf16.msra.mxu1 %v3362_v18  ;;  %v3489_v30 = vld [vmem:[%s3726_s13] sm:$0xff] }
   0xd   :  { %3084 = vmatprep.subr.bf16.mxu1 %v3231_v0  ;;  %2806 = vmatprep.mubr.msk.f32.mxu1 %vm3232_vm0, %v3233_v6 }
   0xe   :  { %2817 = vmatprep.mubr.msk.f32.mxu0 %vm3232_vm0, %v3233_v6  ;;  %3089 = vmatpush3.bf16.msra.mxu0 %v3397_v25 }
   0xf   :  { %3090 = vmatprep.subr.bf16.mxu0 %v3231_v0 }
  0x10   :  { %3086 = vmatpush3.bf16.msra.mxu1 %v3379_v22 }
  0x11   :  { %3093 = vmatprep.subr.bf16.mxu1 %v3231_v0 }
  0x12   :  { %3092 = vmatpush3.bf16.msra.mxu0 %v3407_v28 }
  0x13   :  { %2807 = vmatmul.mubr.msk.f32.vlgmr.msra.gmra.mrb[4].mxu1 %vm217_vm2, %v212_v19  ;;  %3099 = vmatprep.subr.bf16.mxu0 %v3231_v0 }
  0x14   :  { %2828 = vmatprep.mubr.msk.f32.mxu1 %vm3232_vm0, %v3233_v6  ;;  %3095 = vmatpush3.bf16.msra.mxu1 %v3417_v31 }
  0x15   :  { %2818 = vmatmul.mubr.msk.f32.vlgmr.msra.gmra.mrb[2].mxu0 %vm217_vm2, %v212_v19  ;;  %3096 = vmatprep.subr.bf16.mxu1 %v3231_v0 }
  0x16   :  { %3101 = vmatpush3.bf16.msra.mxu0 %v3417_v31  ;;  %2839 = vmatprep.mubr.msk.f32.mxu0 %vm3232_vm0, %v3233_v6 }
  0x17   :  { %3102 = vmatprep.subr.bf16.mxu0 %v3231_v0 }
  0x18   :  { %3098 = vmatpush3.bf16.msra.mxu1 %v3430_v34 }
  0x19   :  { %3105 = vmatprep.subr.bf16.mxu1 %v3231_v0 }
  0x1a   :  { %3104 = vmatpush3.bf16.msra.mxu0 %v3430_v34 }
  0x1b   :  { %3111 = vmatprep.subr.bf16.mxu0 %v3231_v0 }
  0xda   :  { %v120_v45 = vpop.f32.mrb[0].mxu1 }
  0xdb   :  { %v2779_v46 = vpop.f32.mrb[1].mxu1  ;;  %v454_v47 = vrot.slane %v120_v45, %v297_v37  ;;  %v541_v48 = vrot.slane %v120_v45, %v540_v38  ;;  %v622_v49 = vrot.slane %v120_v45, %v621_v39  ;;  %v703_v50 = vrot.slane %v120_v45, %v702_v40 }
  0xdc   :  { %v3438_v51 = vrot.slane %v120_v45, %v1651_v41  ;;  %v3440_v52 = vrot.slane %v120_v45, %v1732_v42  ;;  %v3442_v53 = vrot.slane %v120_v45, %v1813_v43  ;;  %v3444_v54 = vrot.slane %v120_v45, %v1894_v44 }
  0xde   :  { %v196_v55 = vpop.f32.mrb[2].mxu1 }
  0xdf   :  { %v3446_v56 = vrot.slane %v196_v55, %v540_v38  ;;  %v287_v57 = vpop.f32.mrb[0].mxu0  ;;  %v2786_v58 = vpop.f32.mrb[3].mxu1  ;;  %v298_v2 = vrot.slane %v196_v55, %v297_v37 }
  0xe0   :  { %v455_v59 = vadd.f32 %v454_v47, %v287_v57  ;;  %v542_v60 = vadd.f32 %v541_v48, %v287_v57  ;;  %v623_v61 = vadd.f32 %v622_v49, %v287_v57  ;;  %v704_v62 = vadd.f32 %v703_v50, %v287_v57  ;;  %v2797_v63 = vpop.f32.mrb[1].mxu0 }
  0xe2   :  { %v462_v3 = vadd.f32 %v3451_v1, %v455_v59  ;;  %v543_v7 = vadd.f32 %v3451_v1, %v542_v60  ;;  %v624_v9 = vadd.f32 %v3451_v1, %v623_v61  ;;  %v705_v10 = vadd.f32 %v3451_v1, %v704_v62 }
  0xe4   :  { %v463_v15 = vmax.f32 %v462_v3, 0.0  ;;  %v544_v16 = vmax.f32 %v543_v7, 0.0  ;;  %v625_v17 = vmax.f32 %v624_v9, 0.0  ;;  %v706_v19 = vmax.f32 %v705_v10, 0.0  ;;  %v206_v3 = vld [vmem:[%s3727_s10 + $0x8] sm:$0xff] }
  0xe6   :  { %v365_v5 = vpop.f32.mrb[4].mxu1 }
  0xe7   :  { %v366_v11 = vadd.f32 %v365_v5, %v298_v2  ;;  %v2808_v12 = vpop.f32.mrb[5].mxu1  ;;  %v205_v2 = vld [vmem:[%s3727_s10] sm:$0xff] }
  0xe8   :  { %v3484_v27 = vpop.f32.mrb[2].mxu0  ;;  %v3501_v7 = vpack.c.bf16 %v206_v3, %v205_v2  ;;  %v208_v12 = vld [vmem:[%s3727_s10 + $0x18] sm:$0xff] }
  0xe9   :  { %v375_v13 = vadd.f32 %v3457_v4, %v366_v11  ;;  %v2819_v29 = vpop.f32.mrb[3].mxu0  ;;  %v207_v11 = vld [vmem:[%s3727_s10 + $0x10] sm:$0xff] }
  0xea   :  { %v3552_v29 = vld [vmem:[%s3728_s11] ss:$0 sm:$0xff] }
  0xeb   :  { %v376_v20 = vmax.f32 %v375_v13, 0.0 }
  0xed   :  { %877 = vrot.lane.b32.xlu0 %v376_v20, %s3234_s5  ;;  %v464_v21 = vmul.f32 %v463_v15, %v376_v20  ;;  %v545_v23 = vmul.f32 %v544_v16, %v376_v20  ;;  %v626_v24 = vmul.f32 %v625_v17, %v376_v20  ;;  %v707_v26 = vmul.f32 %v706_v19, %v376_v20 }
  0xee   :  { %v3513_v16 = vpack.c.bf16 %v208_v12, %v207_v11 }
  0xef   :  { %2829 = vmatmul.mubr.msk.f32.vlgmr.msra.gmra.mrb[6].mxu1 %vm217_vm2, %v464_v21  ;;  %2840 = vmatmul.mubr.msk.f32.vlgmr.msra.gmra.mrb[4].mxu0 %vm217_vm2, %v545_v23 }
  0xf0   :  { %3107 = vmatpush3.bf16.msra.mxu1 %v3417_v31  ;;  %3113 = vmatpush3.bf16.msra.mxu0 %v3417_v31 }
  0xf1   :  { %3108 = vmatprep.subr.bf16.mxu1 %v3231_v0  ;;  %3114 = vmatprep.subr.bf16.mxu0 %v3231_v0 }
  0xf2   :  { %2850 = vmatprep.mubr.msk.f32.mxu1 %vm3232_vm0, %v3233_v6  ;;  %2861 = vmatprep.mubr.msk.f32.mxu0 %vm3232_vm0, %v3233_v6 }
  0xf4   :  { %3110 = vmatpush3.bf16.msra.mxu1 %v3430_v34  ;;  %3116 = vmatpush3.bf16.msra.mxu0 %v3430_v34 }
  0xf5   :  { %2864 = vmatprep.subr.mxu1 %v3233_v6  ;;  %2880 = vmatprep.subr.mxu0 %v3233_v6 }
  0xf7   :  { %2851 = vmatmul.mubr.msk.f32.vlgmr.msra.gmra.mrb[8].mxu1 %vm217_vm2, %v626_v24  ;;  %2862 = vmatmul.mubr.msk.f32.vlgmr.msra.gmra.mrb[6].mxu0 %vm217_vm2, %v707_v26 }
  0xf8   :  { %2866 = vmatprep.mubr.msk.f32.mxu1 %vm3232_vm0, %v3233_v6  ;;  %2882 = vmatprep.mubr.msk.f32.mxu0 %vm3232_vm0, %v3233_v6 }
  0xf9   :  { %2865 = vmatpush3.msra.mxu1 %v3489_v30  ;;  %2881 = vmatpush3.msra.mxu0 %v3489_v30 }
  0xfa   :  { %3117 = vmatprep.subr.bf16.mxu1 %v3231_v0  ;;  %3123 = vmatprep.subr.bf16.mxu0 %v3231_v0 }
 0x15f   :  { %v878_v17 = vpop.permute.xlu0 %877 }
 0x1c2   :  { %v534_v32 = vpop.f32.mrb[6].mxu1  ;;  %v615_v33 = vpop.f32.mrb[4].mxu0 }
 0x1c3   :  { %v781_v35 = vmax.f32 %v534_v32, %v615_v33  ;;  %v2830_v36 = vpop.f32.mrb[7].mxu1  ;;  %v2841_v37 = vpop.f32.mrb[5].mxu0 }
 0x1ca   :  { %v696_v38 = vpop.f32.mrb[8].mxu1  ;;  %v777_v39 = vpop.f32.mrb[6].mxu0 }
 0x1cb   :  { %v782_v40 = vmax.f32 %v781_v35, %v696_v38  ;;  %v2852_v41 = vpop.f32.mrb[9].mxu1  ;;  %v2863_v42 = vpop.f32.mrb[7].mxu0 }
 0x1cd   :  { %v783_v43 = vmax.f32 %v782_v40, %v777_v39 }
 0x1cf   :  { %v784_v44 = vsub.f32 %v534_v32, %v783_v43  ;;  %v787_v45 = vsub.f32 %v615_v33, %v783_v43  ;;  %v790_v46 = vsub.f32 %v696_v38, %v783_v43  ;;  %v793_v47 = vsub.f32 %v777_v39, %v783_v43 }
 0x1d1   :  { %v785_v48 = vmul.f32 1.442695, %v784_v44  ;;  %v788_v49 = vmul.f32 1.442695, %v787_v45  ;;  %v791_v50 = vmul.f32 1.442695, %v790_v46 }
 0x1d2   :  { %v794_v55 = vmul.f32 1.442695, %v793_v47  ;;  %v2625_v47 = vld [vmem:[%s3721_s0 + $0x8] sm:$0xff] }
 0x1d3   :  { %3211 = vpow2.f32 %v785_v48 }
 0x1d4   :  { %3213 = vpow2.f32 %v788_v49 }
 0x1d5   :  { %3215 = vpow2.f32 %v791_v50 }
 0x1d6   :  { %3217 = vpow2.f32 %v794_v55 }
 0x1dd   :  { %v3212_v57 = vpop.eup %3211 }
 0x1de   :  { %v3214_v58 = vpop.eup %3213 }
 0x1df   :  { %v796_v59 = vadd.f32 %v3214_v58, %v3212_v57  ;;  %v3216_v60 = vpop.eup %3215 }
 0x1e0   :  { %v3218_v62 = vpop.eup %3217 }
 0x1e1   :  { %v797_v61 = vadd.f32 %v3216_v60, %v796_v59 }
 0x1e3   :  { %v798_v63 = vadd.f32 %v3218_v62, %v797_v61 }
 0x1e5   :  { %3219 = vrcp.f32 %v798_v63 }
 0x1ef   :  { %v3220_v5 = vpop.eup %3219 }
 0x1f0   :  { %v801_v9 = vmul.f32 %v3220_v5, %v3212_v57  ;;  %v963_v10 = vmul.f32 %v3220_v5, %v3214_v58  ;;  %v1114_v13 = vmul.f32 %v3220_v5, %v3216_v60  ;;  %v1265_v15 = vmul.f32 %v3220_v5, %v3218_v62 }
 0x1f2   :  { %2867 = vmatmul.mubr.msk.f32.vlgmr.msra.gmra.mrb[10].mxu1 %vm802_vm3, %v801_v9  ;;  %2883 = vmatmul.mubr.msk.f32.vlgmr.msra.gmra.mrb[8].mxu0 %vm802_vm3, %v963_v10 }
 0x1f3   :  { %3119 = vmatpush3.bf16.msra.mxu1 %v3501_v7  ;;  %3125 = vmatpush3.bf16.msra.mxu0 %v3501_v7 }
 0x1f4   :  { %3120 = vmatprep.subr.bf16.mxu1 %v3231_v0  ;;  %3126 = vmatprep.subr.bf16.mxu0 %v3231_v0 }
 0x1f5   :  { %2877 = vmatprep.mubr.msk.f32.mxu1 %vm3232_vm0, %v3233_v6  ;;  %2893 = vmatprep.mubr.msk.f32.mxu0 %vm3232_vm0, %v3233_v6 }
 0x1f7   :  { %3122 = vmatpush3.bf16.msra.mxu1 %v3513_v16  ;;  %3128 = vmatpush3.bf16.msra.mxu0 %v3513_v16 }
 0x1f8   :  { %2896 = vmatprep.subr.mxu1 %v3233_v6  ;;  %2912 = vmatprep.subr.mxu0 %v3233_v6 }
 0x2c5   :  { %v872_v19 = vpop.f32.mrb[10].mxu1  ;;  %v1033_v20 = vpop.f32.mrb[8].mxu0 }
 0x2c6   :  { %v880_v21 = vmul.f32 %v878_v17, %v872_v19  ;;  %v1037_v23 = vmul.f32 %v1033_v20, %v878_v17  ;;  %v2868_v24 = vpop.f32.mrb[11].mxu1  ;;  %v2884_v26 = vpop.f32.mrb[9].mxu0 }
 0x2c8   :  { %2878 = vmatmul.mubr.msk.f32.vlgmr.msra.gmra.mrb[12].mxu1 %vm217_vm2, %v880_v21  ;;  %2894 = vmatmul.mubr.msk.f32.vlgmr.msra.gmra.mrb[10].mxu0 %vm217_vm2, %v1037_v23 }
 0x2c9   :  { %2897 = vmatpush3.msra.mxu1 %v3489_v30  ;;  %2913 = vmatpush3.msra.mxu0 %v3489_v30 }
 0x2ca   :  { %2898 = vmatprep.mubr.msk.f32.mxu1 %vm3232_vm0, %v3233_v6  ;;  %2914 = vmatprep.mubr.msk.f32.mxu0 %vm3232_vm0, %v3233_v6 }
 0x2cb   :  { %3129 = vmatprep.subr.bf16.mxu1 %v3231_v0  ;;  %3135 = vmatprep.subr.bf16.mxu0 %v3231_v0 }
 0x2cc   :  { %2899 = vmatmul.mubr.msk.f32.vlgmr.msra.gmra.mrb[14].mxu1 %vm802_vm3, %v1114_v13  ;;  %2915 = vmatmul.mubr.msk.f32.vlgmr.msra.gmra.mrb[12].mxu0 %vm802_vm3, %v1265_v15 }
 0x2cd   :  { %3131 = vmatpush3.bf16.msra.mxu1 %v3501_v7  ;;  %3137 = vmatpush3.bf16.msra.mxu0 %v3501_v7 }
 0x2ce   :  { %3132 = vmatprep.subr.bf16.mxu1 %v3231_v0  ;;  %3138 = vmatprep.subr.bf16.mxu0 %v3231_v0 }
 0x2cf   :  { %2909 = vmatprep.mubr.msk.f32.mxu1 %vm3232_vm0, %v3233_v6  ;;  %2925 = vmatprep.mubr.msk.f32.mxu0 %vm3232_vm0, %v3233_v6 }
 0x2d1   :  { %3134 = vmatpush3.bf16.msra.mxu1 %v3513_v16  ;;  %3140 = vmatpush3.bf16.msra.mxu0 %v3513_v16 }
 0x2d2   :  { %3141 = vmatprep.subr.bf16.mxu1 %v3231_v0  ;;  %3147 = vmatprep.subr.bf16.mxu0 %v3231_v0 }
 0x39b   :  { %v950_v32 = vpop.f32.mrb[12].mxu1  ;;  %v1107_v33 = vpop.f32.mrb[10].mxu0 }
 0x39c   :  { %v954_v35 = vadd.f32 %v950_v32, %v3484_v27  ;;  %v1111_v36 = vadd.f32 %v1107_v33, %v3484_v27  ;;  %v2879_v37 = vpop.f32.mrb[13].mxu1  ;;  %v2895_v38 = vpop.f32.mrb[11].mxu0 }
 0x39e   :  { %v961_v39 = vadd.f32 %v3552_v29, %v954_v35  ;;  %v1112_v40 = vadd.f32 %v3552_v29, %v1111_v36 }
 0x39f   :  { %v1184_v41 = vpop.f32.mrb[14].mxu1  ;;  %v1335_v42 = vpop.f32.mrb[12].mxu0 }
 0x3a0   :  { %962 = vst.msk [vmem:[%s3729_s14] sm:$0xff] %vm217_vm2, %v961_v39  ;;  %1113 = vst.msk [vmem:[%s3729_s14 + $0x8] sm:$0xff] %vm217_vm2, %v1112_v40  ;;  %v1188_v43 = vmul.f32 %v1184_v41, %v878_v17  ;;  %v1339_v44 = vmul.f32 %v1335_v42, %v878_v17  ;;  %v2900_v45 = vpop.f32.mrb[15].mxu1  ;;  %v2916_v46 = vpop.f32.mrb[13].mxu0 }
 0x3a2   :  { %2910 = vmatmul.mubr.msk.f32.vlgmr.msra.gmra.mrb[16].mxu1 %vm217_vm2, %v1188_v43  ;;  %2926 = vmatmul.mubr.msk.f32.vlgmr.msra.gmra.mrb[14].mxu0 %vm217_vm2, %v1339_v44 }
 0x3a3   :  { %3143 = vmatpush3.bf16.msra.mxu1 %v3331_v8  ;;  %3149 = vmatpush3.bf16.msra.mxu0 %v3362_v18 }
 0x3a4   :  { %3144 = vmatprep.subr.bf16.mxu1 %v3231_v0  ;;  %3150 = vmatprep.subr.bf16.mxu0 %v3231_v0 }
 0x3a5   :  { %2936 = vmatprep.mubr.msk.f32.mxu1 %vm3232_vm0, %v3233_v6  ;;  %2947 = vmatprep.mubr.msk.f32.mxu0 %vm3232_vm0, %v3233_v6 }
 0x3a7   :  { %3146 = vmatpush3.bf16.msra.mxu1 %v3347_v14  ;;  %3152 = vmatpush3.bf16.msra.mxu0 %v3379_v22 }
 0x3a8   :  { %3153 = vmatprep.subr.bf16.mxu1 %v3231_v0  ;;  %3159 = vmatprep.subr.bf16.mxu0 %v3231_v0 }
 0x3aa   :  { %2937 = vmatmul.mubr.msk.f32.vlgmr.msra.gmra.mrb[18].mxu1 %vm217_vm2, %v2625_v47  ;;  %2948 = vmatmul.mubr.msk.f32.vlgmr.msra.gmra.mrb[16].mxu0 %vm217_vm2, %v2625_v47 }
 0x3ab   :  { %3155 = vmatpush3.bf16.msra.mxu1 %v3397_v25  ;;  %2958 = vmatprep.mubr.msk.f32.mxu1 %vm3232_vm0, %v3233_v6 }
 0x3ac   :  { %3156 = vmatprep.subr.bf16.mxu1 %v3231_v0  ;;  %3161 = vmatpush3.bf16.msra.mxu0 %v3417_v31 }
 0x3ad   :  { %3162 = vmatprep.subr.bf16.mxu0 %v3231_v0  ;;  %2969 = vmatprep.mubr.msk.f32.mxu0 %vm3232_vm0, %v3233_v6 }
 0x3af   :  { %3158 = vmatpush3.bf16.msra.mxu1 %v3407_v28 }
 0x3b0   :  { %3165 = vmatprep.subr.bf16.mxu1 %v3231_v0  ;;  %3164 = vmatpush3.bf16.msra.mxu0 %v3430_v34 }
 0x3b1   :  { %3171 = vmatprep.subr.bf16.mxu0 %v3231_v0 }
 0x3b2   :  { %2959 = vmatmul.mubr.msk.f32.vlgmr.msra.gmra.mrb[20].mxu1 %vm217_vm2, %v2625_v47 }
 0x3b3   :  { %3167 = vmatpush3.bf16.msra.mxu1 %v3417_v31  ;;  %2980 = vmatprep.mubr.msk.f32.mxu1 %vm3232_vm0, %v3233_v6 }
 0x3b4   :  { %3168 = vmatprep.subr.bf16.mxu1 %v3231_v0 }
 0x3b7   :  { %3170 = vmatpush3.bf16.msra.mxu1 %v3430_v34 }
 0x3b8   :  { %3177 = vmatprep.subr.bf16.mxu1 %v3231_v0 }
 0x475   :  { %v1258_v8 = vpop.f32.mrb[16].mxu1  ;;  %v1409_v14 = vpop.f32.mrb[14].mxu0 }
 0x476   :  { %v1262_v18 = vadd.f32 %v1258_v8, %v3484_v27  ;;  %v1413_v22 = vadd.f32 %v1409_v14, %v3484_v27  ;;  %v2911_v25 = vpop.f32.mrb[17].mxu1  ;;  %v2927_v28 = vpop.f32.mrb[15].mxu0 }
 0x478   :  { %v1263_v48 = vadd.f32 %v3552_v29, %v1262_v18  ;;  %v1414_v49 = vadd.f32 %v3552_v29, %v1413_v22 }
 0x47a   :  { %1264 = vst.msk [vmem:[%s3729_s14 + $0x10] sm:$0xff] %vm217_vm2, %v1263_v48  ;;  %1415 = vst.msk [vmem:[%s3729_s14 + $0x18] sm:$0xff] %vm217_vm2, %v1414_v49 }
 0x47d   :  { %v1491_v50 = vpop.f32.mrb[18].mxu1  ;;  %v1569_v55 = vpop.f32.mrb[16].mxu0 }
 0x47e   :  { %v1653_v27 = vadd.f32 %v3438_v51, %v1491_v50  ;;  %v1734_v57 = vadd.f32 %v3440_v52, %v1491_v50  ;;  %v1815_v58 = vadd.f32 %v3442_v53, %v1491_v50  ;;  %v1896_v59 = vadd.f32 %v3444_v54, %v1491_v50  ;;  %v2938_v60 = vpop.f32.mrb[19].mxu1  ;;  %v2949_v61 = vpop.f32.mrb[17].mxu0 }
 0x47f   :  { %v1570_v62 = vadd.f32 %v1569_v55, %v3446_v56 }
 0x480   :  { %v1654_v63 = vadd.f32 %v3451_v1, %v1653_v27  ;;  %v1735_v2 = vadd.f32 %v3451_v1, %v1734_v57  ;;  %v1816_v3 = vadd.f32 %v3451_v1, %v1815_v58  ;;  %v1897_v5 = vadd.f32 %v3451_v1, %v1896_v59 }
 0x481   :  { %v1573_v51 = vadd.f32 %v3457_v4, %v1570_v62 }
 0x482   :  { %v1655_v9 = vmax.f32 %v1654_v63, 0.0  ;;  %v1736_v52 = vmax.f32 %v1735_v2, 0.0  ;;  %v1817_v10 = vmax.f32 %v1816_v3, 0.0  ;;  %v1898_v53 = vmax.f32 %v1897_v5, 0.0 }
 0x483   :  { %v1574_v11 = vmax.f32 %v1573_v51, 0.0 }
 0x485   :  { %2068 = vrot.lane.b32.xlu0 %v1574_v11, %s3234_s5  ;;  %v1656_v54 = vmul.f32 %v1655_v9, %v1574_v11  ;;  %v1737_v12 = vmul.f32 %v1736_v52, %v1574_v11  ;;  %v1818_v56 = vmul.f32 %v1817_v10, %v1574_v11  ;;  %v1899_v13 = vmul.f32 %v1898_v53, %v1574_v11  ;;  %v3627_v15 = vpop.f32.mrb[20].mxu1 }
 0x486   :  { %v2960_v17 = vpop.f32.mrb[21].mxu1 }
 0x487   :  { %2970 = vmatmul.mubr.msk.f32.vlgmr.msra.gmra.mrb[18].mxu0 %vm217_vm2, %v1656_v54  ;;  %2981 = vmatmul.mubr.msk.f32.vlgmr.msra.gmra.mrb[22].mxu1 %vm217_vm2, %v1737_v12 }
 0x488   :  { %3173 = vmatpush3.bf16.msra.mxu0 %v3417_v31  ;;  %3179 = vmatpush3.bf16.msra.mxu1 %v3417_v31 }
 0x489   :  { %3174 = vmatprep.subr.bf16.mxu0 %v3231_v0  ;;  %3180 = vmatprep.subr.bf16.mxu1 %v3231_v0 }
 0x48a   :  { %2991 = vmatprep.mubr.msk.f32.mxu0 %vm3232_vm0, %v3233_v6  ;;  %3002 = vmatprep.mubr.msk.f32.mxu1 %vm3232_vm0, %v3233_v6 }
 0x48c   :  { %3176 = vmatpush3.bf16.msra.mxu0 %v3430_v34  ;;  %3182 = vmatpush3.bf16.msra.mxu1 %v3430_v34 }
 0x48d   :  { %3005 = vmatprep.subr.mxu0 %v3233_v6  ;;  %3183 = vmatprep.subr.bf16.mxu1 %v3231_v0 }
 0x48f   :  { %2992 = vmatmul.mubr.msk.f32.vlgmr.msra.gmra.mrb[20].mxu0 %vm217_vm2, %v1818_v56  ;;  %3003 = vmatmul.mubr.msk.f32.vlgmr.msra.gmra.mrb[24].mxu1 %vm217_vm2, %v1899_v13 }
 0x490   :  { %3006 = vmatpush3.msra.mxu0 %v3489_v30  ;;  %3007 = vmatprep.mubr.msk.f32.mxu0 %vm3232_vm0, %v3233_v6 }
 0x491   :  { %3021 = vmatprep.subr.mxu0 %v3233_v6  ;;  %3185 = vmatpush3.bf16.msra.mxu1 %v3501_v7 }
 0x492   :  { %3186 = vmatprep.subr.bf16.mxu1 %v3231_v0  ;;  %3018 = vmatprep.mubr.msk.f32.mxu1 %vm3232_vm0, %v3233_v6 }
 0x495   :  { %3188 = vmatpush3.bf16.msra.mxu1 %v3513_v16 }
 0x496   :  { %3037 = vmatprep.subr.mxu1 %v3233_v6 }
 0x4f7   :  { %v2069_v48 = vpop.permute.xlu0 %2068 }
 0x55a   :  { %v1726_v31 = vpop.f32.mrb[18].mxu0  ;;  %v1807_v34 = vpop.f32.mrb[22].mxu1 }
 0x55b   :  { %v1973_v1 = vmax.f32 %v1726_v31, %v1807_v34  ;;  %v2971_v4 = vpop.f32.mrb[19].mxu0  ;;  %v2982_v19 = vpop.f32.mrb[23].mxu1 }
 0x562   :  { %v1888_v20 = vpop.f32.mrb[20].mxu0  ;;  %v1969_v21 = vpop.f32.mrb[24].mxu1 }
 0x563   :  { %v1974_v23 = vmax.f32 %v1973_v1, %v1888_v20  ;;  %v2993_v24 = vpop.f32.mrb[21].mxu0  ;;  %v3004_v26 = vpop.f32.mrb[25].mxu1 }
 0x565   :  { %v1975_v32 = vmax.f32 %v1974_v23, %v1969_v21 }
 0x567   :  { %v1976_v33 = vsub.f32 %v1726_v31, %v1975_v32  ;;  %v1979_v35 = vsub.f32 %v1807_v34, %v1975_v32  ;;  %v1982_v36 = vsub.f32 %v1888_v20, %v1975_v32  ;;  %v1985_v37 = vsub.f32 %v1969_v21, %v1975_v32 }
 0x569   :  { %v1977_v38 = vmul.f32 1.442695, %v1976_v33  ;;  %v1980_v39 = vmul.f32 1.442695, %v1979_v35  ;;  %v1983_v40 = vmul.f32 1.442695, %v1982_v36 }
 0x56a   :  { %v1986_v41 = vmul.f32 1.442695, %v1985_v37 }
 0x56b   :  { %3221 = vpow2.f32 %v1977_v38 }
 0x56c   :  { %3223 = vpow2.f32 %v1980_v39 }
 0x56d   :  { %3225 = vpow2.f32 %v1983_v40 }
 0x56e   :  { %3227 = vpow2.f32 %v1986_v41 }
 0x575   :  { %v3222_v42 = vpop.eup %3221 }
 0x576   :  { %v3224_v43 = vpop.eup %3223 }
 0x577   :  { %v1988_v44 = vadd.f32 %v3224_v43, %v3222_v42  ;;  %v3226_v45 = vpop.eup %3225 }
 0x578   :  { %v3228_v47 = vpop.eup %3227 }
 0x579   :  { %v1989_v46 = vadd.f32 %v3226_v45, %v1988_v44 }
 0x57b   :  { %v1990_v8 = vadd.f32 %v3228_v47, %v1989_v46 }
 0x57d   :  { %3229 = vrcp.f32 %v1990_v8 }
 0x587   :  { %v3230_v14 = vpop.eup %3229 }
 0x588   :  { %v1993_v18 = vmul.f32 %v3230_v14, %v3222_v42  ;;  %v2148_v22 = vmul.f32 %v3230_v14, %v3224_v43  ;;  %v2299_v25 = vmul.f32 %v3230_v14, %v3226_v45  ;;  %v2450_v28 = vmul.f32 %v3230_v14, %v3228_v47 }
 0x58a   :  { %3008 = vmatmul.mubr.msk.f32.vlgmr.msra.gmra.mrb[22].mxu0 %vm802_vm3, %v1993_v18 }
 0x58b   :  { %3022 = vmatpush3.msra.mxu0 %v3489_v30  ;;  %3023 = vmatprep.mubr.msk.f32.mxu0 %vm3232_vm0, %v3233_v6 }
 0x58c   :  { %3189 = vmatprep.subr.bf16.mxu0 %v3231_v0 }
 0x58e   :  { %3024 = vmatmul.mubr.msk.f32.vlgmr.msra.gmra.mrb[24].mxu0 %vm802_vm3, %v2148_v22 }
 0x58f   :  { %3191 = vmatpush3.bf16.msra.mxu0 %v3501_v7  ;;  %3034 = vmatprep.mubr.msk.f32.mxu0 %vm3232_vm0, %v3233_v6 }
 0x590   :  { %3192 = vmatprep.subr.bf16.mxu0 %v3231_v0 }
 0x593   :  { %3194 = vmatpush3.bf16.msra.mxu0 %v3513_v16 }
 0x594   :  { %3053 = vmatprep.subr.mxu0 %v3233_v6 }
 0x65d   :  { %v2063_v49 = vpop.f32.mrb[22].mxu0 }
 0x65e   :  { %v2071_v50 = vmul.f32 %v2069_v48, %v2063_v49  ;;  %v3009_v55 = vpop.f32.mrb[23].mxu0 }
 0x660   :  { %3019 = vmatmul.mubr.msk.f32.vlgmr.msra.gmra.mrb[26].mxu1 %vm217_vm2, %v2071_v50 }
 0x661   :  { %v2218_v27 = vpop.f32.mrb[24].mxu0  ;;  %3038 = vmatpush3.msra.mxu1 %v3489_v30  ;;  %3039 = vmatprep.mubr.msk.f32.mxu1 %vm3232_vm0, %v3233_v6 }
 0x662   :  { %v2222_v57 = vmul.f32 %v2218_v27, %v2069_v48  ;;  %v3025_v58 = vpop.f32.mrb[25].mxu0  ;;  %3195 = vmatprep.subr.bf16.mxu1 %v3231_v0 }
 0x664   :  { %3035 = vmatmul.mubr.msk.f32.vlgmr.msra.gmra.mrb[26].mxu0 %vm217_vm2, %v2222_v57  ;;  %3040 = vmatmul.mubr.msk.f32.vlgmr.msra.gmra.mrb[28].mxu1 %vm802_vm3, %v2299_v25 }
 0x665   :  { %3054 = vmatpush3.msra.mxu0 %v3489_v30  ;;  %3055 = vmatprep.mubr.msk.f32.mxu0 %vm3232_vm0, %v3233_v6 }
 0x666   :  { %3197 = vmatpush3.bf16.msra.mxu1 %v3501_v7  ;;  %3201 = vmatprep.subr.bf16.mxu0 %v3231_v0 }
 0x667   :  { %3198 = vmatprep.subr.bf16.mxu1 %v3231_v0  ;;  %3050 = vmatprep.mubr.msk.f32.mxu1 %vm3232_vm0, %v3233_v6 }
 0x668   :  { %3056 = vmatmul.mubr.msk.f32.vlgmr.msra.gmra.mrb[28].mxu0 %vm802_vm3, %v2450_v28 }
 0x669   :  { %3203 = vmatpush3.bf16.msra.mxu0 %v3501_v7  ;;  %3066 = vmatprep.mubr.msk.f32.mxu0 %vm3232_vm0, %v3233_v6 }
 0x66a   :  { %3200 = vmatpush3.bf16.msra.mxu1 %v3513_v16  ;;  %3204 = vmatprep.subr.bf16.mxu0 %v3231_v0 }
 0x66d   :  { %3206 = vmatpush3.bf16.msra.mxu0 %v3513_v16 }
 0x733   :  { %v2141_v30 = vpop.f32.mrb[26].mxu1 }
 0x734   :  { %v2145_v59 = vadd.f32 %v2141_v30, %v3627_v15  ;;  %v3020_v60 = vpop.f32.mrb[27].mxu1 }
 0x736   :  { %v2146_v61 = vadd.f32 %v3552_v29, %v2145_v59 }
 0x737   :  { %v2292_v62 = vpop.f32.mrb[26].mxu0  ;;  %v2369_v63 = vpop.f32.mrb[28].mxu1 }
 0x738   :  { %2147 = vst.msk [vmem:[%s3729_s14 + $0x20] sm:$0xff] %vm217_vm2, %v2146_v61  ;;  %v2296_v6 = vadd.f32 %v2292_v62, %v3627_v15  ;;  %v2373_v7 = vmul.f32 %v2369_v63, %v2069_v48  ;;  %v3036_v2 = vpop.f32.mrb[27].mxu0  ;;  %v3041_v0 = vpop.f32.mrb[29].mxu1 }
 0x73a   :  { %v2297_v16 = vadd.f32 %v3552_v29, %v2296_v6  ;;  %3051 = vmatmul.mubr.msk.f32.vlgmr.msra.gmra.mrb[30].mxu1 %vm217_vm2, %v2373_v7 }
 0x73b   :  { %v2520_v3 = vpop.f32.mrb[28].mxu0 }
 0x73c   :  { %2298 = vst.msk [vmem:[%s3729_s14 + $0x28] sm:$0xff] %vm217_vm2, %v2297_v16  ;;  %v2524_v5 = vmul.f32 %v2520_v3, %v2069_v48  ;;  %v3057_v51 = vpop.f32.mrb[29].mxu0 }
 0x73e   :  { %3067 = vmatmul.mubr.msk.f32.vlgmr.msra.gmra.mrb[30].mxu0 %vm217_vm2, %v2524_v5 }
 0x80d   :  { %v2443_v9 = vpop.f32.mrb[30].mxu1 }
 0x80e   :  { %v2447_v52 = vadd.f32 %v2443_v9, %v3627_v15  ;;  %v3052_v10 = vpop.f32.mrb[31].mxu1 }
 0x810   :  { %v2448_v53 = vadd.f32 %v3552_v29, %v2447_v52 }
 0x811   :  { %v2594_v11 = vpop.f32.mrb[30].mxu0 }
 0x812   :  { %2449 = vst.msk [vmem:[%s3729_s14 + $0x30] sm:$0xff] %vm217_vm2, %v2448_v53  ;;  %v2598_v54 = vadd.f32 %v2594_v11, %v3627_v15  ;;  %v3068_v12 = vpop.f32.mrb[31].mxu0 }
 0x814   :  { %v2599_v56 = vadd.f32 %v3552_v29, %v2598_v54 }
 0x816   :  { %2600 = vst.msk [vmem:[%s3729_s14 + $0x38] sm:$0xff] %vm217_vm2, %v2599_v56 }

// kernel: _lambda_.3
= control target key start
LH: loop header
LB: loop body
LE: loop exit
PB: predicated region body
PF: predicated region fallthrough
CT: control target
= control target key end

     0   :  { %13 = vsyncpa [#allocation3], 0  ;;  %s13083_s0 = inlined_call_operand.vmem [shape: f32[64,32], index: 0, kind: input, shape index: {}]   ;;  %s13084_s1 = inlined_call_operand.vmem [shape: f32[2,8,8], index: 1, kind: input, shape index: {}]   ;;  %s13085_s2 = inlined_call_operand.vmem [shape: f32[64,8], index: 2, kind: input, shape index: {}]   ;;  %s13086_s3 = inlined_call_operand.vmem [shape: f32[64,16], index: 3, kind: input, shape index: {}]   ;;  %s13087_s4 = inlined_call_operand.hbm [shape: f32[1560,64], index: 4, kind: input, shape index: {}]   ;;  %s13088_s5 = inlined_call_operand.hbm [shape: f32[1560,32], index: 5, kind: input, shape index: {}]   ;;  %s13089_s6 = inlined_call_operand.vmem [shape: f32[4,32,1], index: 6, kind: input, shape index: {}]   ;;  %s13090_s7 = inlined_call_operand.vmem [shape: f32[4,1], index: 7, kind: input, shape index: {}]   ;;  %s13091_s8 = inlined_call_operand.vmem [shape: f32[64,1], index: 8, kind: output, shape index: {}]  }
   0x1   :  { %14 = vsyncpa [#allocation5], 0  ;;  %s9706_s27 = smov [#allocation2]   ;;  %s9658_s9 = scalar_lea.hbm %s13087_s4, 24960 }
   0x2   :  { %s28_s28 = sshll.u32 %s9706_s27, 4  ;;  %p9659_p0 = scmp.ne.s32.totalorder %s13087_s4, %s9658_s9  ;;  %s29_s28 = int_to_ptr.vmem [resolvable:$true] %s28_s28 }
   0x3   :  { %p9662_p1 = scmp.lt.u32.totalorder %s9658_s9, %s13087_s4 }
   0x5   :  { %p9664_p2 = pnand %p9662_p1, %p9659_p0 }
   0x7   :  { %9667 = shalt.err (!%p9664_p2)
}
   0x8   :  { %s9668_s14 = scalar_lea.vmem %s29_s28, 24960  ;;  %p9673_p4 = scmp.lt.s32.totalorder %s29_s28, %s29_s28 }
   0x9   :  { %p9669_p3 = scmp.ne.s32.totalorder %s29_s28, %s9668_s14  ;;  %p9674_p5 = scmp.lt.s32.totalorder %s9668_s14, %s9668_s14 }
   0xb   :  { %p9675_p6 = por %p9674_p5, %p9673_p4 }
   0xd   :  { %p9676_p7 = pnand %p9675_p6, %p9669_p3 }
   0xf   :  { %9679 = shalt.err (!%p9676_p7)
}
  0x10   :  { %s9707_s15 = smov 128   ;;  %s9708_s16 = smov 8  }
  0x11   :  { %34 = dma.hbm_to_vmem [thread:$0]  %s13087_s4, 24960, %s29_s28, [#allocation3], %s9707_s15, %s9707_s15, %s9708_s16  }
  0x12   :  { %s9709_s19 = smov [#allocation4]   ;;  %s9680_s23 = scalar_lea.hbm %s13088_s5, 24960 }
  0x13   :  { %s40_s20 = sshll.u32 %s9709_s19, 4  ;;  %p9681_p8 = scmp.ne.s32.totalorder %s13088_s5, %s9680_s23  ;;  %s41_s20 = int_to_ptr.vmem [resolvable:$true] %s40_s20 }
  0x14   :  { %p9684_p9 = scmp.lt.u32.totalorder %s9680_s23, %s13088_s5 }
  0x16   :  { %p9686_p10 = pnand %p9684_p9, %p9681_p8 }
  0x18   :  { %9689 = shalt.err (!%p9686_p10)
}
  0x19   :  { %s9690_s29 = scalar_lea.vmem %s41_s20, 24960  ;;  %p9695_p12 = scmp.lt.s32.totalorder %s41_s20, %s41_s20 }
  0x1a   :  { %p9691_p11 = scmp.ne.s32.totalorder %s41_s20, %s9690_s29  ;;  %p9696_p13 = scmp.lt.s32.totalorder %s9690_s29, %s9690_s29 }
  0x1c   :  { %p9697_p0 = por %p9696_p13, %p9695_p12 }
  0x1e   :  { %p9698_p1 = pnand %p9697_p0, %p9691_p11 }
  0x20   :  { %9701 = shalt.err (!%p9698_p1)
}
  0x21   :  { %46 = dma.hbm_to_vmem [thread:$0]  %s13088_s5, 24960, %s41_s20, [#allocation5], %s9707_s15, %s9707_s15, %s9708_s16  }
  0x22   :  { %9702 = dma.done.wait [#allocation3], 24960  }
  0x23   :  { %9703 = vsyncadd [#allocation3], 4294942336 }
  0x24   :  { %9704 = dma.done.wait [#allocation5], 24960  }
  0x25   :  { %9705 = vsyncadd [#allocation5], 4294942336  ;;  %v9710_v0 = vmov 3   ;;  %v13092_v1 = vmov 0.0   ;;  %vm9712_vm0 = vmmov 0   ;;  %vm82_vm1 = vcmask 64512  }
  0x26   :  { %8954 = vset.pattern.permute.xlu1 %v9710_v0  ;;  %8208 = vmatprep.subr.mxu1 %v13092_v1  ;;  %v9814_v2 = vld [vmem:[%s13085_s2 + $0x8] sm:$0xff]  ;;  %v57_v3 = vld [vmem:[%s13083_s0] sm:$0xff]  ;;  %v59_v7 = vld [vmem:[%s13083_s0 + $0x10] sm:$0xff]  ;;  %v9713_v8 = vmov 1   ;;  %v13101_v23 = vmov 7   ;;  %v13103_v24 = vmov 5  }
  0x27   :  { %8210 = vmatprep.mubr.msk.f32.mxu1 %vm9712_vm0, %v13092_v1  ;;  %8953 = vset.pattern.permute.xlu0 %v9710_v0  ;;  %v9822_v4 = vld [vmem:[%s13084_s1 + $0x8] sm:$0xff]  ;;  %v9836_v6 = vld [vmem:[%s13085_s2] sm:$0xff]  ;;  %v9852_v9 = vld [vmem:[%s13085_s2 + $0x10] sm:$0xff]  ;;  %v13105_v30 = vmov 9   ;;  %v13096_v31 = vmov 11   ;;  %v13097_v34 = vmov 2  }
  0x28   :  { %8203 = vmatprep.subr.mxu0 %v13092_v1  ;;  %8205 = vmatprep.mubr.msk.f32.mxu0 %vm9712_vm0, %v13092_v1  ;;  %v58_v5 = vld [vmem:[%s13083_s0 + $0x8] sm:$0xff]  ;;  %v9857_v10 = vld [vmem:[%s13084_s1] sm:$0xff]  ;;  %v60_v11 = vld [vmem:[%s13083_s0 + $0x18] sm:$0xff]  ;;  %v13099_v48 = vmov 0   ;;  %s9720_s13 = smov 32   ;;  %vm235_vm2 = vcmask 261120  }
  0x29   :  { %1385 = vperm.xlu1 %8954, %v9814_v2   ;;  %8209 = vmatpush3.msra.mxu1 %v57_v3  ;;  %v9873_v12 = vld [vmem:[%s13085_s2 + $0x18] sm:$0xff]  ;;  %v61_v13 = vld [vmem:[%s13083_s0 + $0x20] sm:$0xff]  ;;  %v9890_v14 = vld [vmem:[%s13085_s2 + $0x30] sm:$0xff]  ;;  %s9725_s14 = smov 64   ;;  %vm2484_vm3 = vcmask 523264   ;;  %vm2936_vm4 = vcmask 195584  }
  0x2a   :  { %8211 = vmatmul.mubr.msk.f32.vlgmr.msra.gmra.mrb[0].mxu1 %vm82_vm1, %v9822_v4  ;;  %8218 = vmatprep.subr.mxu1 %v13092_v1  ;;  %v9897_v15 = vld [vmem:[%s13085_s2 + $0x20] sm:$0xff]  ;;  %v62_v16 = vld [vmem:[%s13083_s0 + $0x28] sm:$0xff]  ;;  %v9913_v17 = vld [vmem:[%s13085_s2 + $0x38] sm:$0xff]  ;;  %s9731_s10 = smov 96   ;;  %vm6702_vm5 = vcmask 7168  }
  0x2b   :  { %8219 = vmatpush3.msra.mxu1 %v58_v5  ;;  %8220 = vmatprep.mubr.msk.f32.mxu1 %vm9712_vm0, %v13092_v1  ;;  %v9919_v18 = vld [vmem:[%s13085_s2 + $0x28] sm:$0xff]  ;;  %v63_v19 = vld [vmem:[%s13083_s0 + $0x30] sm:$0xff]  ;;  %v64_v21 = vld [vmem:[%s13083_s0 + $0x38] sm:$0xff] }
  0x2c   :  { %8228 = vmatprep.subr.mxu1 %v13092_v1  ;;  %1381 = vperm.xlu0 %8953, %v9836_v6   ;;  %v9936_v20 = vld [vmem:[%s13086_s3 + $0x8] sm:$0xff]  ;;  %v9957_v22 = vld [vmem:[%s13086_s3 + $0x20] sm:$0xff]  ;;  %v10010_v26 = vld [vmem:[%s13086_s3 + $0x10] sm:$0xff] }
  0x2d   :  { %8955 = vset.pattern.permute.xlu1 %v9713_v8  ;;  %8204 = vmatpush3.msra.mxu0 %v57_v3  ;;  %v9987_v25 = vld [vmem:[%s13086_s3] sm:$0xff]  ;;  %13363 = vst [vmem:[#allocation8_spill] sm:$0xff] %v10010_v26  ;;  %v10017_v27 = vld [vmem:[%s13086_s3 + $0x28] sm:$0xff]  ;;  %v10024_v28 = vld [vmem:[%s13086_s3 + $0x38] sm:$0xff] }
  0x2e   :  { %1305 = vperm.xlu1 %8955, %v9814_v2   ;;  %8221 = vmatmul.mubr.msk.f32.vlgmr.msra.gmra.mrb[2].mxu1 %vm82_vm1, %v9822_v4  ;;  %13364 = vst [vmem:[#allocation9_spill] sm:$0xff] %v10024_v28  ;;  %v10043_v29 = vld [vmem:[%s13086_s3 + $0x18] sm:$0xff]  ;;  %v10076_v32 = vld [vmem:[%s13086_s3 + $0x30] sm:$0xff] }
  0x2f   :  { %8229 = vmatpush3.msra.mxu1 %v59_v7  ;;  %8230 = vmatprep.mubr.msk.f32.mxu1 %vm9712_vm0, %v13092_v1 }
  0x30   :  { %8238 = vmatprep.subr.mxu1 %v13092_v1  ;;  %1389 = vperm.xlu0 %8953, %v9852_v9  }
  0x31   :  { %8206 = vmatmul.mubr.msk.f32.vlgmr.msra.gmra.mrb[0].mxu0 %vm82_vm1, %v9857_v10  ;;  %8213 = vmatprep.subr.mxu0 %v13092_v1 }
  0x32   :  { %1309 = vperm.xlu1 %8955, %v9852_v9   ;;  %8231 = vmatmul.mubr.msk.f32.vlgmr.msra.gmra.mrb[4].mxu1 %vm82_vm1, %v9822_v4 }
  0x33   :  { %8239 = vmatpush3.msra.mxu1 %v60_v11  ;;  %8240 = vmatprep.mubr.msk.f32.mxu1 %vm9712_vm0, %v13092_v1 }
  0x34   :  { %8248 = vmatprep.subr.mxu1 %v13092_v1  ;;  %1393 = vperm.xlu0 %8953, %v9873_v12  }
  0x35   :  { %8214 = vmatpush3.msra.mxu0 %v58_v5  ;;  %8215 = vmatprep.mubr.msk.f32.mxu0 %vm9712_vm0, %v13092_v1 }
  0x36   :  { %1313 = vperm.xlu1 %8955, %v9873_v12   ;;  %8241 = vmatmul.mubr.msk.f32.vlgmr.msra.gmra.mrb[6].mxu1 %vm82_vm1, %v9822_v4 }
  0x37   :  { %8249 = vmatpush3.msra.mxu1 %v61_v13  ;;  %8250 = vmatprep.mubr.msk.f32.mxu1 %vm9712_vm0, %v13092_v1 }
  0x38   :  { %8258 = vmatprep.subr.mxu1 %v13092_v1  ;;  %1405 = vperm.xlu0 %8953, %v9890_v14  }
  0x39   :  { %8216 = vmatmul.mubr.msk.f32.vlgmr.msra.gmra.mrb[2].mxu0 %vm82_vm1, %v9857_v10  ;;  %8223 = vmatprep.subr.mxu0 %v13092_v1 }
  0x3a   :  { %8956 = vset.pattern.permute.xlu1 %v9710_v0  ;;  %8251 = vmatmul.mubr.msk.f32.vlgmr.msra.gmra.mrb[8].mxu1 %vm82_vm1, %v9822_v4 }
  0x3b   :  { %1397 = vperm.xlu1 %8956, %v9897_v15   ;;  %8259 = vmatpush3.msra.mxu1 %v62_v16 }
  0x3c   :  { %8260 = vmatprep.mubr.msk.f32.mxu1 %vm9712_vm0, %v13092_v1  ;;  %8268 = vmatprep.subr.mxu1 %v13092_v1 }
  0x3d   :  { %1409 = vperm.xlu0 %8953, %v9913_v17   ;;  %8224 = vmatpush3.msra.mxu0 %v59_v7 }
  0x3e   :  { %8261 = vmatmul.mubr.msk.f32.vlgmr.msra.gmra.mrb[10].mxu1 %vm82_vm1, %v9822_v4  ;;  %8225 = vmatprep.mubr.msk.f32.mxu0 %vm9712_vm0, %v13092_v1 }
  0x3f   :  { %1401 = vperm.xlu1 %8956, %v9919_v18   ;;  %8269 = vmatpush3.msra.mxu1 %v63_v19 }
  0x40   :  { %8270 = vmatprep.mubr.msk.f32.mxu1 %vm9712_vm0, %v13092_v1  ;;  %8278 = vmatprep.subr.mxu1 %v13092_v1 }
  0x41   :  { %1713 = vperm.xlu0 %8953, %v9936_v20   ;;  %8226 = vmatmul.mubr.msk.f32.vlgmr.msra.gmra.mrb[4].mxu0 %vm82_vm1, %v9857_v10 }
  0x42   :  { %8271 = vmatmul.mubr.msk.f32.vlgmr.msra.gmra.mrb[12].mxu1 %vm82_vm1, %v9822_v4  ;;  %8233 = vmatprep.subr.mxu0 %v13092_v1 }
  0x43   :  { %8957 = vset.pattern.permute.xlu1 %v9713_v8  ;;  %8279 = vmatpush3.msra.mxu1 %v64_v21 }
  0x44   :  { %1325 = vperm.xlu1 %8957, %v9890_v14   ;;  %8280 = vmatprep.mubr.msk.f32.mxu1 %vm9712_vm0, %v13092_v1 }
  0x45   :  { %1725 = vperm.xlu0 %8953, %v9957_v22   ;;  %8234 = vmatpush3.msra.mxu0 %v60_v11 }
  0x46   :  { %8281 = vmatmul.mubr.msk.f32.vlgmr.msra.gmra.mrb[14].mxu1 %vm82_vm1, %v9822_v4  ;;  %8235 = vmatprep.mubr.msk.f32.mxu0 %vm9712_vm0, %v13092_v1 }
  0x47   :  { %8236 = vmatmul.mubr.msk.f32.vlgmr.msra.gmra.mrb[6].mxu0 %vm82_vm1, %v9857_v10  ;;  %8243 = vmatprep.subr.mxu0 %v13092_v1 }
  0x48   :  { %8958 = vset.pattern.permute.xlu1 %v13101_v23  ;;  %8244 = vmatpush3.msra.mxu0 %v61_v13 }
  0x49   :  { %1541 = vperm.xlu1 %8958, %v9836_v6   ;;  %8971 = vset.pattern.permute.xlu0 %v9713_v8 }
  0x4a   :  { %1301 = vperm.xlu0 %8971, %v9836_v6   ;;  %8245 = vmatprep.mubr.msk.f32.mxu0 %vm9712_vm0, %v13092_v1 }
  0x4b   :  { %8246 = vmatmul.mubr.msk.f32.vlgmr.msra.gmra.mrb[8].mxu0 %vm82_vm1, %v9857_v10  ;;  %8253 = vmatprep.subr.mxu0 %v13092_v1 }
  0x4c   :  { %8254 = vmatpush3.msra.mxu0 %v62_v16  ;;  %8255 = vmatprep.mubr.msk.f32.mxu0 %vm9712_vm0, %v13092_v1 }
  0x4d   :  { %8959 = vset.pattern.permute.xlu1 %v13103_v24  ;;  %8263 = vmatprep.subr.mxu0 %v13092_v1 }
  0x4e   :  { %1461 = vperm.xlu1 %8959, %v9836_v6   ;;  %1317 = vperm.xlu0 %8971, %v9897_v15  }
  0x4f   :  { %8256 = vmatmul.mubr.msk.f32.vlgmr.msra.gmra.mrb[10].mxu0 %vm82_vm1, %v9857_v10 }
  0x50   :  { %8264 = vmatpush3.msra.mxu0 %v63_v19  ;;  %8265 = vmatprep.mubr.msk.f32.mxu0 %vm9712_vm0, %v13092_v1 }
  0x51   :  { %8273 = vmatprep.subr.mxu0 %v13092_v1 }
  0x52   :  { %8960 = vset.pattern.permute.xlu1 %v9710_v0  ;;  %1321 = vperm.xlu0 %8971, %v9919_v18  }
  0x53   :  { %1709 = vperm.xlu1 %8960, %v9987_v25   ;;  %8266 = vmatmul.mubr.msk.f32.vlgmr.msra.gmra.mrb[12].mxu0 %vm82_vm1, %v9857_v10 }
  0x54   :  { %8274 = vmatpush3.msra.mxu0 %v64_v21  ;;  %8275 = vmatprep.mubr.msk.f32.mxu0 %vm9712_vm0, %v13092_v1 }
  0x56   :  { %1329 = vperm.xlu0 %8971, %v9913_v17  }
  0x57   :  { %8961 = vset.pattern.permute.xlu1 %v13103_v24  ;;  %8276 = vmatmul.mubr.msk.f32.vlgmr.msra.gmra.mrb[14].mxu0 %vm82_vm1, %v9857_v10  ;;  %v13094_v10 = vmov 15  }
  0x58   :  { %1465 = vperm.xlu1 %8961, %v9814_v2  }
  0x5a   :  { %1629 = vperm.xlu0 %8971, %v9987_v25  }
  0x5c   :  { %8962 = vset.pattern.permute.xlu1 %v13101_v23 }
  0x5d   :  { %1549 = vperm.xlu1 %8962, %v9852_v9  }
  0x5e   :  { %1637 = vperm.xlu0 %8971, %v10010_v26  }
  0x61   :  { %8963 = vset.pattern.permute.xlu1 %v13103_v24 }
  0x62   :  { %1469 = vperm.xlu1 %8963, %v9852_v9   ;;  %1649 = vperm.xlu0 %8971, %v10017_v27  }
  0x66   :  { %8964 = vset.pattern.permute.xlu1 %v9713_v8  ;;  %1657 = vperm.xlu0 %8971, %v10024_v28  }
  0x67   :  { %1633 = vperm.xlu1 %8964, %v9936_v20  }
  0x6a   :  { %8982 = vset.pattern.permute.xlu0 %v13103_v24 }
  0x6b   :  { %8965 = vset.pattern.permute.xlu1 %v9710_v0  ;;  %1477 = vperm.xlu0 %8982, %v9897_v15  }
  0x6c   :  { %1717 = vperm.xlu1 %8965, %v10010_v26  }
  0x6f   :  { %1489 = vperm.xlu0 %8982, %v9913_v17  }
  0x70   :  { %8966 = vset.pattern.permute.xlu1 %v13103_v24 }
  0x71   :  { %1473 = vperm.xlu1 %8966, %v9873_v12  }
  0x73   :  { %1793 = vperm.xlu0 %8982, %v9936_v20  }
  0x75   :  { %8967 = vset.pattern.permute.xlu1 %v13101_v23 }
  0x76   :  { %1557 = vperm.xlu1 %8967, %v9897_v15  }
  0x77   :  { %8987 = vset.pattern.permute.xlu0 %v13101_v23 }
  0x78   :  { %1545 = vperm.xlu0 %8987, %v9814_v2  }
  0x7a   :  { %8968 = vset.pattern.permute.xlu1 %v9710_v0 }
  0x7b   :  { %1721 = vperm.xlu1 %8968, %v10043_v29  }
  0x7c   :  { %1553 = vperm.xlu0 %8987, %v9873_v12  }
  0x7f   :  { %8969 = vset.pattern.permute.xlu1 %v9713_v8 }
  0x80   :  { %1641 = vperm.xlu1 %8969, %v10043_v29   ;;  %1565 = vperm.xlu0 %8987, %v9890_v14  }
  0x84   :  { %8970 = vset.pattern.permute.xlu1 %v13101_v23  ;;  %1881 = vperm.xlu0 %8987, %v10043_v29  }
  0x85   :  { %1561 = vperm.xlu1 %8970, %v9919_v18  }
  0x88   :  { %1889 = vperm.xlu0 %8987, %v10017_v27  }
  0x89   :  { %8972 = vset.pattern.permute.xlu1 %v13103_v24 }
  0x8a   :  { %1481 = vperm.xlu1 %8972, %v9919_v18  }
  0x8c   :  { %9002 = vset.pattern.permute.xlu0 %v13105_v30 }
  0x8d   :  { %1957 = vperm.xlu0 %9002, %v10010_v26  }
  0x8e   :  { %8973 = vset.pattern.permute.xlu1 %v9713_v8 }
  0x8f   :  { %1645 = vperm.xlu1 %8973, %v9957_v22  }
  0x91   :  { %1965 = vperm.xlu0 %9002, %v9957_v22  }
  0x93   :  { %8974 = vset.pattern.permute.xlu1 %v9710_v0 }
  0x94   :  { %1729 = vperm.xlu1 %8974, %v10017_v27  }
  0x95   :  { %9005 = vset.pattern.permute.xlu0 %v13096_v31 }
  0x96   :  { %2033 = vperm.xlu0 %9005, %v9936_v20  }
  0x98   :  { %8975 = vset.pattern.permute.xlu1 %v13103_v24 }
  0x99   :  { %1485 = vperm.xlu1 %8975, %v9890_v14  }
  0x9a   :  { %2041 = vperm.xlu0 %9005, %v10043_v29  }
  0x9d   :  { %8976 = vset.pattern.permute.xlu1 %v13101_v23 }
  0x9e   :  { %1569 = vperm.xlu1 %8976, %v9913_v17   ;;  %2049 = vperm.xlu0 %9005, %v10017_v27  }
  0xa2   :  { %8977 = vset.pattern.permute.xlu1 %v9710_v0 }
  0xa3   :  { %1733 = vperm.xlu1 %8977, %v10076_v32  }
  0xa7   :  { %8978 = vset.pattern.permute.xlu1 %v9713_v8 }
  0xa8   :  { %v10081_v33 = vpop.permute.xlu1 %1385  ;;  %1653 = vperm.xlu1 %8978, %v10076_v32  }
  0xa9   :  { %13365 = vst [vmem:[#allocation10_spill] sm:$0xff] %v10081_v33 }
  0xab   :  { %v10181_v13 = vpop.permute.xlu0 %1381 }
  0xac   :  { %8979 = vset.pattern.permute.xlu1 %v13097_v34  ;;  %13387 = vst [vmem:[#allocation32_spill] sm:$0xff] %v10181_v13 }
  0xad   :  { %v10085_v35 = vpop.permute.xlu1 %1305  ;;  %1341 = vperm.xlu1 %8979, %v9836_v6  }
  0xae   :  { %13366 = vst [vmem:[#allocation11_spill] sm:$0xff] %v10085_v35 }
  0xb1   :  { %v10088_v36 = vpop.permute.xlu1 %1309  ;;  %8980 = vset.pattern.permute.xlu1 %v9710_v0 }
  0xb2   :  { %13367 = vst [vmem:[#allocation12_spill] sm:$0xff] %v10088_v36  ;;  %1737 = vperm.xlu1 %8980, %v10024_v28  }
  0xb5   :  { %v10092_v37 = vpop.permute.xlu1 %1313 }
  0xb6   :  { %13368 = vst [vmem:[#allocation13_spill] sm:$0xff] %v10092_v37  ;;  %8981 = vset.pattern.permute.xlu1 %v13101_v23 }
  0xb7   :  { %1869 = vperm.xlu1 %8981, %v9987_v25  }
  0xba   :  { %v10096_v38 = vpop.permute.xlu1 %1397 }
  0xbb   :  { %13369 = vst [vmem:[#allocation14_spill] sm:$0xff] %v10096_v38  ;;  %8983 = vset.pattern.permute.xlu1 %v13103_v24 }
  0xbc   :  { %1789 = vperm.xlu1 %8983, %v9987_v25  }
  0xbe   :  { %v10100_v39 = vpop.permute.xlu1 %1401 }
  0xbf   :  { %13370 = vst [vmem:[#allocation15_spill] sm:$0xff] %v10100_v39 }
  0xc0   :  { %8984 = vset.pattern.permute.xlu1 %v13097_v34 }
  0xc1   :  { %1345 = vperm.xlu1 %8984, %v9814_v2  }
  0xc3   :  { %v10104_v40 = vpop.permute.xlu1 %1325 }
  0xc4   :  { %13371 = vst [vmem:[#allocation16_spill] sm:$0xff] %v10104_v40 }
  0xc5   :  { %8985 = vset.pattern.permute.xlu1 %v13101_v23 }
  0xc6   :  { %1873 = vperm.xlu1 %8985, %v9936_v20  }
  0xc8   :  { %v10108_v41 = vpop.permute.xlu1 %1541 }
  0xc9   :  { %13372 = vst [vmem:[#allocation17_spill] sm:$0xff] %v10108_v41 }
  0xca   :  { %8986 = vset.pattern.permute.xlu1 %v13096_v31 }
  0xcb   :  { %2029 = vperm.xlu1 %8986, %v9987_v25  }
  0xcd   :  { %v10112_v42 = vpop.permute.xlu1 %1461 }
  0xce   :  { %13373 = vst [vmem:[#allocation18_spill] sm:$0xff] %v10112_v42 }
  0xcf   :  { %8988 = vset.pattern.permute.xlu1 %v13105_v30 }
  0xd0   :  { %1949 = vperm.xlu1 %8988, %v9987_v25  }
  0xd2   :  { %v10116_v43 = vpop.permute.xlu1 %1709 }
  0xd3   :  { %13374 = vst [vmem:[#allocation19_spill] sm:$0xff] %v10116_v43 }
  0xd4   :  { %8989 = vset.pattern.permute.xlu1 %v13097_v34 }
  0xd5   :  { %1349 = vperm.xlu1 %8989, %v9852_v9  }
  0xd7   :  { %v10120_v44 = vpop.permute.xlu1 %1465 }
  0xd8   :  { %13375 = vst [vmem:[#allocation20_spill] sm:$0xff] %v10120_v44 }
  0xd9   :  { %8990 = vset.pattern.permute.xlu1 %v13101_v23 }
  0xda   :  { %1877 = vperm.xlu1 %8990, %v10010_v26  }
  0xdc   :  { %v10124_v45 = vpop.permute.xlu1 %1549 }
  0xdd   :  { %13376 = vst [vmem:[#allocation21_spill] sm:$0xff] %v10124_v45 }
  0xde   :  { %8991 = vset.pattern.permute.xlu1 %v13103_v24 }
  0xdf   :  { %1797 = vperm.xlu1 %8991, %v10010_v26  }
  0xe1   :  { %v10128_v46 = vpop.permute.xlu1 %1469 }
  0xe2   :  { %13377 = vst [vmem:[#allocation22_spill] sm:$0xff] %v10128_v46 }
  0xe3   :  { %8992 = vset.pattern.permute.xlu1 %v13105_v30 }
  0xe4   :  { %1953 = vperm.xlu1 %8992, %v9936_v20  }
  0xe6   :  { %v10132_v47 = vpop.permute.xlu1 %1633 }
  0xe7   :  { %13378 = vst [vmem:[#allocation23_spill] sm:$0xff] %v10132_v47 }
  0xe8   :  { %8993 = vset.pattern.permute.xlu1 %v13099_v48 }
  0xe9   :  { %1269 = vperm.xlu1 %8993, %v9873_v12  }
  0xeb   :  { %v10136_v49 = vpop.permute.xlu1 %1717 }
  0xec   :  { %13379 = vst [vmem:[#allocation24_spill] sm:$0xff] %v10136_v49 }
  0xed   :  { %8994 = vset.pattern.permute.xlu1 %v13096_v31 }
  0xee   :  { %2037 = vperm.xlu1 %8994, %v10010_v26  }
  0xf0   :  { %v10140_v50 = vpop.permute.xlu1 %1473 }
  0xf1   :  { %13380 = vst [vmem:[#allocation25_spill] sm:$0xff] %v10140_v50 }
  0xf2   :  { %8995 = vset.pattern.permute.xlu1 %v13103_v24 }
  0xf3   :  { %1801 = vperm.xlu1 %8995, %v10043_v29  }
  0xf5   :  { %v10144_v51 = vpop.permute.xlu1 %1557 }
  0xf6   :  { %13381 = vst [vmem:[#allocation26_spill] sm:$0xff] %v10144_v51 }
  0xf7   :  { %8996 = vset.pattern.permute.xlu1 %v13097_v34 }
  0xf8   :  { %1357 = vperm.xlu1 %8996, %v9897_v15  }
  0xfa   :  { %v10148_v52 = vpop.permute.xlu1 %1721 }
  0xfb   :  { %13382 = vst [vmem:[#allocation27_spill] sm:$0xff] %v10148_v52  ;;  %v2742_v52 = vld [vmem:[#allocation2 + $0x8] sm:$0xff] }
  0xfc   :  { %8997 = vset.pattern.permute.xlu1 %v13099_v48 }
  0xfd   :  { %1274 = vperm.xlu1 %8997, %v9897_v15   ;;  %v10152_v53 = vpop.f32.mrb[0].mxu1 }
  0xfe   :  { %v8212_v54 = vpop.f32.mrb[1].mxu1 }
  0xff   :  { %v10154_v55 = vpop.permute.xlu1 %1641 }
 0x100   :  { %13383 = vst [vmem:[#allocation28_spill] sm:$0xff] %v10154_v55 }
 0x101   :  { %8998 = vset.pattern.permute.xlu1 %v13101_v23  ;;  %v10157_v56 = vpop.f32.mrb[2].mxu1 }
 0x102   :  { %1885 = vperm.xlu1 %8998, %v9957_v22   ;;  %v8222_v57 = vpop.f32.mrb[3].mxu1 }
 0x103   :  { %v10194_v57 = vpop.permute.xlu0 %1389 }
 0x104   :  { %v10160_v58 = vpop.permute.xlu1 %1561  ;;  %v10162_v59 = vpop.f32.mrb[0].mxu0  ;;  %13389 = vst [vmem:[#allocation34_spill] sm:$0xff] %v10194_v57 }
 0x105   :  { %13384 = vst [vmem:[#allocation29_spill] sm:$0xff] %v10160_v58  ;;  %v518_v60 = vpop.f32.mrb[4].mxu1  ;;  %v8207_v61 = vpop.f32.mrb[1].mxu0 }
 0x106   :  { %8999 = vset.pattern.permute.xlu1 %v13103_v24  ;;  %523 = vrot.lane.b32.xlu0 %v518_v60, %s9720_s13  ;;  %v8232_v62 = vpop.f32.mrb[5].mxu1 }
 0x107   :  { %1805 = vperm.xlu1 %8999, %v9957_v22  }
 0x109   :  { %v10167_v63 = vpop.permute.xlu1 %1481  ;;  %v10169_v0 = vpop.f32.mrb[6].mxu1 }
 0x10a   :  { %13385 = vst [vmem:[#allocation30_spill] sm:$0xff] %v10167_v63  ;;  %2053 = vperm.xlu0 %9005, %v10076_v32   ;;  %v8242_v3 = vpop.f32.mrb[7].mxu1  ;;  %v2744_v63 = vld [vmem:[#allocation2 + $0x18] sm:$0xff] }
 0x10b   :  { %9000 = vset.pattern.permute.xlu1 %v13105_v30 }
 0x10c   :  { %1961 = vperm.xlu1 %9000, %v10043_v29   ;;  %v10174_v4 = vpop.f32.mrb[2].mxu0 }
 0x10d   :  { %v10176_v5 = vpop.f32.mrb[8].mxu1  ;;  %v8217_v7 = vpop.f32.mrb[3].mxu0 }
 0x10e   :  { %v10178_v8 = vpop.permute.xlu1 %1645  ;;  %9019 = vset.pattern.permute.xlu0 %v13094_v10  ;;  %v8252_v11 = vpop.f32.mrb[9].mxu1 }
 0x10f   :  { %13386 = vst [vmem:[#allocation31_spill] sm:$0xff] %v10178_v8  ;;  %2189 = vperm.xlu0 %9019, %v9987_v25   ;;  %v13447_v8 = vmov 13  }
 0x110   :  { %9001 = vset.pattern.permute.xlu1 %v13099_v48 }
 0x111   :  { %1279 = vperm.xlu1 %9001, %v9919_v18   ;;  %v10186_v16 = vpop.f32.mrb[10].mxu1 }
 0x112   :  { %v8262_v19 = vpop.f32.mrb[11].mxu1 }
 0x113   :  { %v10188_v21 = vpop.permute.xlu1 %1729  ;;  %9020 = vset.pattern.permute.xlu0 %v13099_v48  ;;  %v10203_v19 = vpop.permute.xlu0 %1393 }
 0x114   :  { %13388 = vst [vmem:[#allocation33_spill] sm:$0xff] %v10188_v21  ;;  %1254 = vperm.xlu0 %9020, %v9836_v6   ;;  %v10192_v54 = vpop.f32.mrb[4].mxu0  ;;  %13391 = vst [vmem:[#allocation36_spill] sm:$0xff] %v10203_v19 }
 0x115   :  { %9003 = vset.pattern.permute.xlu1 %v13096_v31  ;;  %v1098_v60 = vpop.f32.mrb[12].mxu1  ;;  %v8227_v62 = vpop.f32.mrb[5].mxu0 }
 0x116   :  { %2045 = vperm.xlu1 %9003, %v9957_v22   ;;  %v8272_v61 = vpop.f32.mrb[13].mxu1 }
 0x117   :  { %v10211_v61 = vpop.permute.xlu0 %1405 }
 0x118   :  { %v10198_v3 = vpop.permute.xlu1 %1485  ;;  %1259 = vperm.xlu0 %9020, %v9814_v2   ;;  %13393 = vst [vmem:[#allocation38_spill] sm:$0xff] %v10211_v61 }
 0x119   :  { %13390 = vst [vmem:[#allocation35_spill] sm:$0xff] %v10198_v3  ;;  %v1243_v7 = vpop.f32.mrb[14].mxu1 }
 0x11a   :  { %9004 = vset.pattern.permute.xlu1 %v13103_v24  ;;  %v8282_v11 = vpop.f32.mrb[15].mxu1 }
 0x11b   :  { %1809 = vperm.xlu1 %9004, %v10017_v27   ;;  %v10220_v10 = vpop.permute.xlu0 %1409 }
 0x11c   :  { %1264 = vperm.xlu0 %9020, %v9852_v9   ;;  %13396 = vst [vmem:[#allocation41_spill] sm:$0xff] %v10220_v10 }
 0x11d   :  { %v10206_v1 = vpop.permute.xlu1 %1569 }
 0x11e   :  { %13392 = vst [vmem:[#allocation37_spill] sm:$0xff] %v10206_v1 }
 0x11f   :  { %9006 = vset.pattern.permute.xlu1 %v13097_v34  ;;  %v10228_v34 = vpop.permute.xlu0 %1713 }
 0x120   :  { %1365 = vperm.xlu1 %9006, %v9890_v14   ;;  %1582 = vperm.xlu0 %9020, %v9987_v25   ;;  %13398 = vst [vmem:[#allocation43_spill] sm:$0xff] %v10228_v34 }
 0x122   :  { %v10213_v62 = vpop.permute.xlu1 %1733 }
 0x123   :  { %13394 = vst [vmem:[#allocation39_spill] sm:$0xff] %v10213_v62  ;;  %v13109_v62 = vmov 6  }
 0x124   :  { %9007 = vset.pattern.permute.xlu1 %v13099_v48  ;;  %1587 = vperm.xlu0 %9020, %v9936_v20   ;;  %v10236_v48 = vpop.permute.xlu0 %1725 }
 0x125   :  { %1284 = vperm.xlu1 %9007, %v9890_v14   ;;  %13400 = vst [vmem:[#allocation45_spill] sm:$0xff] %v10236_v48 }
 0x127   :  { %v10218_v11 = vpop.permute.xlu1 %1653 }
 0x128   :  { %13395 = vst [vmem:[#allocation40_spill] sm:$0xff] %v10218_v11  ;;  %1592 = vperm.xlu0 %9020, %v10010_v26  }
 0x129   :  { %9008 = vset.pattern.permute.xlu1 %v13101_v23 }
 0x12a   :  { %1893 = vperm.xlu1 %9008, %v10076_v32  }
 0x12c   :  { %v10225_v31 = vpop.permute.xlu1 %1341  ;;  %1597 = vperm.xlu0 %9020, %v10043_v29  }
 0x12d   :  { %13397 = vst [vmem:[#allocation42_spill] sm:$0xff] %v10225_v31  ;;  %v13407_v31 = vmov 0  }
 0x12e   :  { %9009 = vset.pattern.permute.xlu1 %v13103_v24  ;;  %v10244_v24 = vpop.permute.xlu0 %1301 }
 0x12f   :  { %1813 = vperm.xlu1 %9009, %v10076_v32   ;;  %13402 = vst [vmem:[#allocation47_spill] sm:$0xff] %v10244_v24 }
 0x130   :  { %1602 = vperm.xlu0 %9020, %v9957_v22  }
 0x131   :  { %v10233_v14 = vpop.permute.xlu1 %1737 }
 0x132   :  { %13399 = vst [vmem:[#allocation44_spill] sm:$0xff] %v10233_v14 }
 0x133   :  { %9010 = vset.pattern.permute.xlu1 %v13105_v30  ;;  %v10250_v30 = vpop.permute.xlu0 %1317 }
 0x134   :  { %1969 = vperm.xlu1 %9010, %v10017_v27   ;;  %13404 = vst [vmem:[#allocation49_spill] sm:$0xff] %v10250_v30 }
 0x136   :  { %v10239_v23 = vpop.permute.xlu1 %1869 }
 0x137   :  { %13401 = vst [vmem:[#allocation46_spill] sm:$0xff] %v10239_v23  ;;  %v10255_v23 = vpop.f32.mrb[6].mxu0 }
 0x138   :  { %232 = vrot.lane.b32.xlu1 %v10152_v53, %s9720_s13  ;;  %v8237_v53 = vpop.f32.mrb[7].mxu0 }
 0x139   :  { %9011 = vset.pattern.permute.xlu1 %v13109_v62  ;;  %v10264_v21 = vpop.f32.mrb[8].mxu0 }
 0x13b   :  { %v10246_v1 = vpop.permute.xlu1 %1789 }
 0x13c   :  { %13403 = vst [vmem:[#allocation48_spill] sm:$0xff] %v10246_v1  ;;  %378 = vrot.lane.b32.xlu1 %v10157_v56, %s9720_s13  ;;  %v10262_v1 = vpop.permute.xlu0 %1321  ;;  %v8247_v56 = vpop.f32.mrb[9].mxu0 }
 0x13d   :  { %13408 = vst [vmem:[#allocation52_spill] sm:$0xff] %v10262_v1 }
 0x140   :  { %v10252_v14 = vpop.permute.xlu1 %1345  ;;  %1501 = vperm.xlu1 %9011, %v9836_v6   ;;  %v10270_v6 = vpop.f32.mrb[10].mxu0 }
 0x141   :  { %13405 = vst [vmem:[#allocation50_spill] sm:$0xff] %v10252_v14  ;;  %v10272_v11 = vpop.permute.xlu0 %1329 }
 0x142   :  { %13410 = vst [vmem:[#allocation54_spill] sm:$0xff] %v10272_v11 }
 0x144   :  { %668 = vrot.lane.b32.xlu1 %v10169_v0, %s9720_s13  ;;  %v8257_v0 = vpop.f32.mrb[11].mxu0 }
 0x145   :  { %v10259_v62 = vpop.permute.xlu1 %1873  ;;  %9012 = vset.pattern.permute.xlu1 %v13407_v31  ;;  %v10281_v3 = vpop.permute.xlu0 %1629  ;;  %v13416_v0 = vmov 7  }
 0x146   :  { %13406 = vst [vmem:[#allocation51_spill] sm:$0xff] %v10259_v62  ;;  %v10278_v62 = vpop.f32.mrb[12].mxu0  ;;  %13412 = vst [vmem:[#allocation56_spill] sm:$0xff] %v10281_v3 }
 0x147   :  { %v8267_v31 = vpop.f32.mrb[13].mxu0 }
 0x148   :  { %813 = vrot.lane.b32.xlu1 %v10176_v5, %s9720_s13  ;;  %v10283_v5 = vpop.f32.mrb[14].mxu0 }
 0x149   :  { %v10288_v48 = vpop.permute.xlu0 %1637 }
 0x14a   :  { %v10268_v14 = vpop.permute.xlu1 %2029  ;;  %13414 = vst [vmem:[#allocation58_spill] sm:$0xff] %v10288_v48 }
 0x14b   :  { %13409 = vst [vmem:[#allocation53_spill] sm:$0xff] %v10268_v14  ;;  %v8277_v14 = vpop.f32.mrb[15].mxu0 }
 0x14c   :  { %958 = vrot.lane.b32.xlu1 %v10186_v16, %s9720_s13 }
 0x14d   :  { %v10295_v31 = vpop.permute.xlu0 %1649 }
 0x14e   :  { %13417 = vst [vmem:[#allocation60_spill] sm:$0xff] %v10295_v31  ;;  %v13131_v31 = vmov 4  }
 0x14f   :  { %v10276_v53 = vpop.permute.xlu1 %1949 }
 0x150   :  { %13411 = vst [vmem:[#allocation55_spill] sm:$0xff] %v10276_v53  ;;  %1103 = vrot.lane.b32.xlu1 %v1098_v60, %s9720_s13  ;;  %v13419_v53 = vmov 5  }
 0x151   :  { %v10303_v14 = vpop.permute.xlu0 %1657 }
 0x152   :  { %13421 = vst [vmem:[#allocation63_spill] sm:$0xff] %v10303_v14  ;;  %v13429_v14 = vmov 11  }
 0x154   :  { %v10285_v56 = vpop.permute.xlu1 %1349  ;;  %1248 = vrot.lane.b32.xlu1 %v1243_v7, %s9720_s13 }
 0x155   :  { %13413 = vst [vmem:[#allocation57_spill] sm:$0xff] %v10285_v56  ;;  %v13422_v56 = vmov 9  }
 0x158   :  { %1289 = vperm.xlu1 %9012, %v9913_v17  }
 0x159   :  { %v10291_v16 = vpop.permute.xlu1 %1877 }
 0x15a   :  { %13415 = vst [vmem:[#allocation59_spill] sm:$0xff] %v10291_v16  ;;  %v13425_v16 = vmov 2  }
 0x15c   :  { %9013 = vset.pattern.permute.xlu1 %v13416_v0  ;;  %v10309_v0 = vpop.permute.xlu0 %1477 }
 0x15d   :  { %1897 = vperm.xlu1 %9013, %v10024_v28   ;;  %13424 = vst [vmem:[#allocation65_spill] sm:$0xff] %v10309_v0 }
 0x15e   :  { %v10297_v60 = vpop.permute.xlu1 %1797 }
 0x15f   :  { %13418 = vst [vmem:[#allocation61_spill] sm:$0xff] %v10297_v60 }
 0x161   :  { %9014 = vset.pattern.permute.xlu1 %v13419_v53  ;;  %v10315_v53 = vpop.permute.xlu0 %1489 }
 0x162   :  { %1817 = vperm.xlu1 %9014, %v10024_v28   ;;  %13427 = vst [vmem:[#allocation67_spill] sm:$0xff] %v10315_v53 }
 0x163   :  { %v10301_v7 = vpop.permute.xlu1 %1953 }
 0x164   :  { %13420 = vst [vmem:[#allocation62_spill] sm:$0xff] %v10301_v7 }
 0x166   :  { %9015 = vset.pattern.permute.xlu1 %v13422_v56 }
 0x167   :  { %1973 = vperm.xlu1 %9015, %v10076_v32  }
 0x168   :  { %v10307_v17 = vpop.permute.xlu1 %1269 }
 0x169   :  { %13423 = vst [vmem:[#allocation64_spill] sm:$0xff] %v10307_v17  ;;  %v10322_v17 = vpop.permute.xlu0 %1793 }
 0x16a   :  { %13430 = vst [vmem:[#allocation69_spill] sm:$0xff] %v10322_v17  ;;  %v13438_v17 = vmov 4  }
 0x16b   :  { %9016 = vset.pattern.permute.xlu1 %v13425_v16 }
 0x16c   :  { %1669 = vperm.xlu1 %9016, %v9987_v25  }
 0x16d   :  { %v10313_v60 = vpop.permute.xlu1 %2037 }
 0x16e   :  { %13426 = vst [vmem:[#allocation66_spill] sm:$0xff] %v10313_v60  ;;  %v10329_v60 = vpop.permute.xlu0 %1545 }
 0x16f   :  { %13432 = vst [vmem:[#allocation71_spill] sm:$0xff] %v10329_v60 }
 0x170   :  { %9017 = vset.pattern.permute.xlu1 %v13131_v31  ;;  %v13136_v31 = vmov 13  }
 0x171   :  { %1425 = vperm.xlu1 %9017, %v9814_v2  }
 0x172   :  { %v10319_v7 = vpop.permute.xlu1 %1801 }
 0x173   :  { %13428 = vst [vmem:[#allocation68_spill] sm:$0xff] %v10319_v7 }
 0x175   :  { %9018 = vset.pattern.permute.xlu1 %v13429_v14  ;;  %v10337_v14 = vpop.permute.xlu0 %1553 }
 0x176   :  { %2057 = vperm.xlu1 %9018, %v10024_v28   ;;  %13435 = vst [vmem:[#allocation74_spill] sm:$0xff] %v10337_v14 }
 0x177   :  { %v10325_v58 = vpop.permute.xlu1 %1357 }
 0x178   :  { %13431 = vst [vmem:[#allocation70_spill] sm:$0xff] %v10325_v58  ;;  %v13444_v58 = vmov 15  }
 0x179   :  { %v10343_v7 = vpop.permute.xlu0 %1565 }
 0x17a   :  { %9021 = vset.pattern.permute.xlu1 %v13422_v56  ;;  %13437 = vst [vmem:[#allocation76_spill] sm:$0xff] %v10343_v7  ;;  %v2741_v7 = vld [vmem:[#allocation2] sm:$0xff] }
 0x17b   :  { %1977 = vperm.xlu1 %9021, %v10024_v28   ;;  %v8489_v28 = vpack.c.bf16 %v2742_v52, %v2741_v7  ;;  %v2762_v52 = vld [vmem:[#allocation2 + $0xa8] sm:$0xff] }
 0x17c   :  { %v10331_v53 = vpop.permute.xlu1 %1274  ;;  %v2746_v7 = vld [vmem:[#allocation2 + $0x28] sm:$0xff] }
 0x17d   :  { %13433 = vst [vmem:[#allocation72_spill] sm:$0xff] %v10331_v53 }
 0x17f   :  { %9022 = vset.pattern.permute.xlu1 %v13136_v31  ;;  %v10349_v31 = vpop.permute.xlu0 %1881 }
 0x180   :  { %2109 = vperm.xlu1 %9022, %v9987_v25   ;;  %13440 = vst [vmem:[#allocation78_spill] sm:$0xff] %v10349_v31 }
 0x181   :  { %v10335_v2 = vpop.permute.xlu1 %1885 }
 0x182   :  { %13434 = vst [vmem:[#allocation73_spill] sm:$0xff] %v10335_v2 }
 0x183   :  { %v10356_v2 = vpop.permute.xlu0 %1889 }
 0x184   :  { %9023 = vset.pattern.permute.xlu1 %v13425_v16  ;;  %13442 = vst [vmem:[#allocation80_spill] sm:$0xff] %v10356_v2  ;;  %v2759_v2 = vld [vmem:[#allocation2 + $0x90] sm:$0xff] }
 0x185   :  { %1673 = vperm.xlu1 %9023, %v9936_v20  }
 0x186   :  { %v10341_v56 = vpop.permute.xlu1 %1805 }
 0x187   :  { %13436 = vst [vmem:[#allocation75_spill] sm:$0xff] %v10341_v56  ;;  %v10363_v51 = vpop.permute.xlu0 %1957 }
 0x188   :  { %13445 = vst [vmem:[#allocation82_spill] sm:$0xff] %v10363_v51 }
 0x189   :  { %9024 = vset.pattern.permute.xlu1 %v13438_v17 }
 0x18a   :  { %1429 = vperm.xlu1 %9024, %v9852_v9   ;;  %v2757_v9 = vld [vmem:[#allocation2 + $0x80] sm:$0xff] }
 0x18b   :  { %v10347_v53 = vpop.permute.xlu1 %1961 }
 0x18c   :  { %13439 = vst [vmem:[#allocation77_spill] sm:$0xff] %v10347_v53  ;;  %v2758_v53 = vld [vmem:[#allocation2 + $0x88] sm:$0xff] }
 0x18d   :  { %v8487_v31 = vpack.c.bf16 %v2758_v53, %v2757_v9  ;;  %v10371_v9 = vpop.permute.xlu0 %1965 }
 0x18e   :  { %9025 = vset.pattern.permute.xlu1 %v13425_v16  ;;  %13449 = vst [vmem:[#allocation85_spill] sm:$0xff] %v10371_v9 }
 0x18f   :  { %1677 = vperm.xlu1 %9025, %v10010_v26   ;;  %8488 = vmatprep.subr.bf16.mxu0 %v8487_v31  ;;  %v2743_v26 = vld [vmem:[#allocation2 + $0x10] sm:$0xff] }
 0x190   :  { %v10353_v25 = vpop.permute.xlu1 %1279  ;;  %8490 = vmatpush3.bf16.msra.mxu0 %v8489_v28  ;;  %v8493_v49 = vpack.c.bf16 %v2744_v63, %v2743_v26  ;;  %v2745_v28 = vld [vmem:[#allocation2 + $0x20] sm:$0xff]  ;;  %v2764_v26 = vld [vmem:[#allocation2 + $0xb8] sm:$0xff] }
 0x191   :  { %13441 = vst [vmem:[#allocation79_spill] sm:$0xff] %v10353_v25  ;;  %v8497_v51 = vpack.c.bf16 %v2746_v7, %v2745_v28  ;;  %v2750_v28 = vld [vmem:[#allocation2 + $0x48] sm:$0xff] }
 0x193   :  { %9026 = vset.pattern.permute.xlu1 %v13438_v17 }
 0x194   :  { %1433 = vperm.xlu1 %9026, %v9873_v12   ;;  %v2760_v12 = vld [vmem:[#allocation2 + $0x98] sm:$0xff] }
 0x195   :  { %v10359_v56 = vpop.permute.xlu1 %2045 }
 0x196   :  { %13443 = vst [vmem:[#allocation81_spill] sm:$0xff] %v10359_v56  ;;  %v8491_v56 = vpack.c.bf16 %v2760_v12, %v2759_v2  ;;  %v2748_v12 = vld [vmem:[#allocation2 + $0x38] sm:$0xff] }
 0x198   :  { %9027 = vset.pattern.permute.xlu1 %v13444_v58  ;;  %8492 = vmatprep.subr.bf16.mxu0 %v8491_v56  ;;  %v2747_v56 = vld [vmem:[#allocation2 + $0x30] sm:$0xff] }
 0x199   :  { %2193 = vperm.xlu1 %9027, %v9936_v20   ;;  %8494 = vmatpush3.bf16.msra.mxu0 %v8493_v49  ;;  %v10377_v49 = vpop.permute.xlu0 %2033  ;;  %v8501_v9 = vpack.c.bf16 %v2748_v12, %v2747_v56  ;;  %v2768_v56 = vld [vmem:[#allocation2 + $0xd8] sm:$0xff] }
 0x19a   :  { %v10365_v25 = vpop.permute.xlu1 %1809  ;;  %13451 = vst [vmem:[#allocation87_spill] sm:$0xff] %v10377_v49 }
 0x19b   :  { %13446 = vst [vmem:[#allocation83_spill] sm:$0xff] %v10365_v25  ;;  %v2761_v25 = vld [vmem:[#allocation2 + $0xa0] sm:$0xff] }
 0x19c   :  { %v8495_v31 = vpack.c.bf16 %v2762_v52, %v2761_v25  ;;  %v2765_v25 = vld [vmem:[#allocation2 + $0xc0] sm:$0xff] }
 0x19d   :  { %9028 = vset.pattern.permute.xlu1 %v13447_v8 }
 0x19e   :  { %2113 = vperm.xlu1 %9028, %v9936_v20   ;;  %8496 = vmatprep.subr.bf16.mxu0 %v8495_v31  ;;  %v2763_v20 = vld [vmem:[#allocation2 + $0xb0] sm:$0xff] }
 0x19f   :  { %v10369_v53 = vpop.permute.xlu1 %1365  ;;  %8498 = vmatpush3.bf16.msra.mxu0 %v8497_v51  ;;  %v8499_v63 = vpack.c.bf16 %v2764_v26, %v2763_v20  ;;  %v2749_v51 = vld [vmem:[#allocation2 + $0x40] sm:$0xff]  ;;  %v10383_v20 = vpop.permute.xlu0 %2041  ;;  %v2767_v26 = vld [vmem:[#allocation2 + $0xd0] sm:$0xff] }
 0x1a0   :  { %13448 = vst [vmem:[#allocation84_spill] sm:$0xff] %v10369_v53  ;;  %v8505_v7 = vpack.c.bf16 %v2750_v28, %v2749_v51  ;;  %13453 = vst [vmem:[#allocation89_spill] sm:$0xff] %v10383_v20  ;;  %v2753_v51 = vld [vmem:[#allocation2 + $0x60] sm:$0xff]  ;;  %v2754_v28 = vld [vmem:[#allocation2 + $0x68] sm:$0xff] }
 0x1a1   :  { %8500 = vmatprep.subr.bf16.mxu0 %v8499_v63  ;;  %v2752_v63 = vld [vmem:[#allocation2 + $0x58] sm:$0xff] }
 0x1a2   :  { %9029 = vset.pattern.permute.xlu1 %v13425_v16 }
 0x1a3   :  { %1681 = vperm.xlu1 %9029, %v10043_v29   ;;  %8502 = vmatpush3.bf16.msra.mxu0 %v8501_v9  ;;  %v2766_v29 = vld [vmem:[#allocation2 + $0xc8] sm:$0xff]  ;;  %v2751_v9 = vld [vmem:[#allocation2 + $0x50] sm:$0xff] }
 0x1a4   :  { %v10375_v2 = vpop.permute.xlu1 %1284  ;;  %v8503_v31 = vpack.c.bf16 %v2766_v29, %v2765_v25  ;;  %v2769_v25 = vld [vmem:[#allocation2 + $0xe0] sm:$0xff]  ;;  %v2770_v29 = vld [vmem:[#allocation2 + $0xe8] sm:$0xff] }
 0x1a5   :  { %13450 = vst [vmem:[#allocation86_spill] sm:$0xff] %v10375_v2 }
 0x1a6   :  { %8504 = vmatprep.subr.bf16.mxu0 %v8503_v31  ;;  %v8511_v31 = vpack.c.bf16 %v2770_v29, %v2769_v25 }
 0x1a7   :  { %9030 = vset.pattern.permute.xlu1 %v13438_v17  ;;  %8506 = vmatpush3.bf16.msra.mxu0 %v8505_v7  ;;  %v10390_v7 = vpop.permute.xlu0 %2049 }
 0x1a8   :  { %1437 = vperm.xlu1 %9030, %v9897_v15   ;;  %v8507_v15 = vpack.c.bf16 %v2768_v56, %v2767_v26  ;;  %13455 = vst [vmem:[#allocation91_spill] sm:$0xff] %v10390_v7  ;;  %v2771_v56 = vld [vmem:[#allocation2 + $0xf0] sm:$0xff] }
 0x1a9   :  { %v10381_v52 = vpop.permute.xlu1 %1893 }
 0x1aa   :  { %13452 = vst [vmem:[#allocation88_spill] sm:$0xff] %v10381_v52  ;;  %v8509_v52 = vpack.c.bf16 %v2752_v63, %v2751_v9  ;;  %8508 = vmatprep.subr.bf16.mxu0 %v8507_v15  ;;  %v2772_v9 = vld [vmem:[#allocation2 + $0xf8] sm:$0xff] }
 0x1ab   :  { %v8515_v15 = vpack.c.bf16 %v2772_v9, %v2771_v56  ;;  %v2756_v63 = vld [vmem:[#allocation2 + $0x78] sm:$0xff]  ;;  %v524_v29 = vpop.permute.xlu0 %523 }
 0x1ac   :  { %9031 = vset.pattern.permute.xlu1 %v13425_v16  ;;  %8510 = vmatpush3.bf16.msra.mxu0 %v8509_v52  ;;  %v2755_v52 = vld [vmem:[#allocation2 + $0x70] sm:$0xff] }
 0x1ad   :  { %1685 = vperm.xlu1 %9031, %v9957_v22   ;;  %v8513_v22 = vpack.c.bf16 %v2754_v28, %v2753_v51  ;;  %8512 = vmatprep.subr.bf16.mxu0 %v8511_v31  ;;  %v10406_v28 = vsel %vm235_vm2, %v10192_v54, %v524_v29 }
 0x1ae   :  { %v10387_v12 = vpop.permute.xlu1 %1813 }
 0x1af   :  { %13454 = vst [vmem:[#allocation90_spill] sm:$0xff] %v10387_v12  ;;  %v8517_v12 = vpack.c.bf16 %v2756_v63, %v2755_v52  ;;  %v1334_v52 = vmul.f32 %v10088_v36, %v10406_v28 }
 0x1b0   :  { %8514 = vmatpush3.bf16.msra.mxu0 %v8513_v22 }
 0x1b1   :  { %9032 = vset.pattern.permute.xlu1 %v13438_v17  ;;  %8516 = vmatprep.subr.bf16.mxu0 %v8515_v15 }
 0x1b2   :  { %1441 = vperm.xlu1 %9032, %v9919_v18  }
 0x1b3   :  { %v10393_v26 = vpop.permute.xlu1 %1969 }
 0x1b4   :  { %13456 = vst [vmem:[#allocation92_spill] sm:$0xff] %v10393_v26  ;;  %8518 = vmatpush3.bf16.msra.mxu0 %v8517_v12  ;;  %v13507_v26 = vld [vmem:[#allocation50_spill] sm:$0xff] }
 0x1b6   :  { %9103 = vset.pattern.permute.xlu1 %v13444_v58 }
 0x1b7   :  { %v233_v25 = vpop.permute.xlu1 %232 }
 0x1b8   :  { %v10398_v18 = vsel %vm235_vm2, %v10162_v59, %v233_v25 }
 0x1b9   :  { %v1332_v31 = vmul.f32 %v10244_v24, %v10398_v18  ;;  %v1412_v51 = vmul.f32 %v10181_v13, %v10398_v18  ;;  %v1660_v12 = vmul.f32 %v10281_v3, %v10398_v18  ;;  %v13506_v3 = vld [vmem:[#allocation42_spill] sm:$0xff] }
 0x1bb   :  { %v379_v22 = vpop.permute.xlu1 %378  ;;  %v9033_v56 = vpack.i.bf16 %v1332_v31, %v1412_v51  ;;  %v1414_v31 = vmul.f32 %v10194_v57, %v10406_v28  ;;  %v1740_v51 = vmul.f32 %v10116_v43, %v10398_v18  ;;  %v1372_v43 = vmul.f32 %v13506_v3, %v10398_v18 }
 0x1bc   :  { %v10410_v9 = vsel %vm235_vm2, %v10174_v4, %v379_v22 }
 0x1bd   :  { %9034 = vrot.lane.b32.xlu1 %v9033_v56, %s9725_s14  ;;  %v1493_v59 = vmul.f32 %v10120_v44, %v10410_v9  ;;  %v1333_v15 = vmul.f32 %v10085_v35, %v10410_v9  ;;  %v1413_v54 = vmul.f32 %v10081_v33, %v10410_v9  ;;  %v1573_v29 = vmul.f32 %v10329_v60, %v10410_v9  ;;  %v13501_v44 = vld [vmem:[#allocation48_spill] sm:$0xff] }
 0x1be   :  { %v9053_v36 = vpack.i.bf16 %v1334_v52, %v1414_v31  ;;  %v1820_v60 = vmul.f32 %v13501_v44, %v10398_v18  ;;  %v1373_v7 = vmul.f32 %v13507_v26, %v10410_v9  ;;  %v2809_v26 = vld [vmem:[#allocation2 + $0x220] sm:$0xff] }
 0x1bf   :  { %v10423_v4 = vpop.permute.xlu1 %1501  ;;  %v9048_v63 = vpack.i.bf16 %v1660_v12, %v1493_v59  ;;  %v9038_v25 = vpack.i.bf16 %v1333_v15, %v1413_v54  ;;  %v9043_v56 = vpack.i.bf16 %v1740_v51, %v1573_v29  ;;  %v1741_v59 = vmul.f32 %v10228_v34, %v10410_v9 }
 0x1c0   :  { %13457 = vst [vmem:[#allocation93_spill] sm:$0xff] %v10423_v4  ;;  %v1574_v12 = vmul.f32 %v10124_v45, %v10406_v28  ;;  %v1661_v15 = vmul.f32 %v10132_v47, %v10410_v9  ;;  %v1494_v29 = vmul.f32 %v10128_v46, %v10406_v28  ;;  %v13497_v47 = vmov 0  }
 0x1c1   :  { %9049 = vrot.lane.b32.xlu0 %v9048_v63, %s9725_s14  ;;  %9039 = vrot.lane.b32.xlu1 %v9038_v25, %s9725_s14 }
 0x1c2   :  { %v9058_v63 = vpack.i.bf16 %v1741_v59, %v1574_v12  ;;  %v9063_v51 = vpack.i.bf16 %v1661_v15, %v1494_v29  ;;  %v1662_v15 = vmul.f32 %v10288_v48, %v10406_v28  ;;  %v10638_v48 = vld [vmem:[%s13086_s3 + $0x20] sm:$0xff] }
 0x1c3   :  { %v669_v22 = vpop.permute.xlu1 %668 }
 0x1c4   :  { %v10443_v25 = vsel %vm235_vm2, %v10255_v23, %v669_v22 }
 0x1c5   :  { %9044 = vrot.lane.b32.xlu1 %v9043_v56, %s9725_s14  ;;  %9054 = vrot.lane.b32.xlu0 %v9053_v36, %s9725_s14  ;;  %v1335_v23 = vmul.f32 %v10092_v37, %v10443_v25  ;;  %v1495_v22 = vmul.f32 %v10140_v50, %v10443_v25 }
 0x1c7   :  { %v814_v54 = vpop.permute.xlu1 %813  ;;  %v9104_v29 = vpack.i.bf16 %v1662_v15, %v1495_v22 }
 0x1c8   :  { %v10447_v52 = vsel %vm235_vm2, %v10264_v21, %v814_v54  ;;  %v1415_v21 = vmul.f32 %v10203_v19, %v10443_v25 }
 0x1c9   :  { %9059 = vrot.lane.b32.xlu1 %v9058_v63, %s9725_s14  ;;  %v1336_v36 = vmul.f32 %v10250_v30, %v10447_v52  ;;  %v1416_v31 = vmul.f32 %v10096_v38, %v10447_v52  ;;  %v2783_v30 = vld [vmem:[#allocation2 + $0x150] sm:$0xff] }
 0x1ca   :  { %v9068_v63 = vpack.i.bf16 %v1335_v23, %v1415_v21 }
 0x1cb   :  { %v959_v56 = vpop.permute.xlu1 %958  ;;  %v9073_v59 = vpack.i.bf16 %v1336_v36, %v1416_v31 }
 0x1cc   :  { %v10464_v12 = vsel %vm235_vm2, %v10270_v6, %v959_v56 }
 0x1cd   :  { %9064 = vrot.lane.b32.xlu1 %v9063_v51, %s9725_s14  ;;  %9074 = vrot.lane.b32.xlu0 %v9073_v59, %s9725_s14  ;;  %v1337_v36 = vmul.f32 %v10262_v1, %v10464_v12  ;;  %v1417_v31 = vmul.f32 %v10100_v39, %v10464_v12  ;;  %v1496_v59 = vmul.f32 %v10309_v0, %v10447_v52  ;;  %v2799_v1 = vld [vmem:[#allocation2 + $0x1d0] sm:$0xff]  ;;  %v2800_v0 = vld [vmem:[#allocation2 + $0x1d8] sm:$0xff] }
 0x1ce   :  { %v8539_v38 = vpack.c.bf16 %v2800_v0, %v2799_v1  ;;  %v2785_v0 = vld [vmem:[#allocation2 + $0x160] sm:$0xff] }
 0x1cf   :  { %v1104_v54 = vpop.permute.xlu1 %1103  ;;  %v9078_v56 = vpack.i.bf16 %v1337_v36, %v1417_v31  ;;  %v2790_v36 = vld [vmem:[#allocation2 + $0x188] sm:$0xff]  ;;  %v2821_v31 = vld [vmem:[#allocation2 + $0x280] sm:$0xff] }
 0x1d0   :  { %v10476_v6 = vsel %vm235_vm2, %v10278_v62, %v1104_v54  ;;  %v1663_v62 = vmul.f32 %v10154_v55, %v10443_v25  ;;  %v9618_v55 = vld [vmem:[%s13085_s2 + $0x20] sm:$0xff] }
 0x1d1   :  { %9069 = vrot.lane.b32.xlu1 %v9068_v63, %s9725_s14  ;;  %9105 = vrot.lane.b32.xlu0 %v9104_v29, %s9725_s14  ;;  %v1338_v23 = vmul.f32 %v10104_v40, %v10476_v6  ;;  %v1418_v21 = vmul.f32 %v10211_v61, %v10476_v6  ;;  %v2773_v61 = vld [vmem:[#allocation2 + $0x100] sm:$0xff]  ;;  %v2774_v40 = vld [vmem:[#allocation2 + $0x108] sm:$0xff] }
 0x1d2   :  { %v9118_v54 = vpack.i.bf16 %v1663_v62, %v1496_v59 }
 0x1d3   :  { %v1249_v51 = vpop.permute.xlu1 %1248  ;;  %v9083_v63 = vpack.i.bf16 %v1338_v23, %v1418_v21  ;;  %v8521_v21 = vpack.c.bf16 %v2774_v40, %v2773_v61  ;;  %v1575_v40 = vmul.f32 %v10337_v14, %v10443_v25 }
 0x1d4   :  { %v10488_v22 = vsel %vm235_vm2, %v10283_v5, %v1249_v51  ;;  %v1572_v5 = vmul.f32 %v10108_v41, %v10398_v18 }
 0x1d5   :  { %1607 = vperm.xlu0 %9020, %v10017_v27   ;;  %9079 = vrot.lane.b32.xlu1 %v9078_v56, %s9725_s14  ;;  %v1419_v29 = vmul.f32 %v10220_v10, %v10488_v22  ;;  %v2789_v27 = vld [vmem:[#allocation2 + $0x180] sm:$0xff]  ;;  %v2822_v56 = vld [vmem:[#allocation2 + $0x288] sm:$0xff]  ;;  %v1339_v59 = vmul.f32 %v10272_v11, %v10488_v22 }
 0x1d6   :  { %v8519_v51 = vpack.c.bf16 %v2790_v36, %v2789_v27  ;;  %v8551_v23 = vpack.c.bf16 %v2822_v56, %v2821_v31  ;;  %v2792_v27 = vld [vmem:[#allocation2 + $0x198] sm:$0xff]  ;;  %v2793_v56 = vld [vmem:[#allocation2 + $0x1a0] sm:$0xff]  ;;  %v10530_v10 = vld [vmem:[%s13085_s2 + $0x28] sm:$0xff] }
 0x1d7   :  { %v10494_v15 = vpop.permute.xlu1 %1289  ;;  %v9088_v39 = vpack.i.bf16 %v1572_v5, %v1419_v29  ;;  %v2775_v5 = vld [vmem:[#allocation2 + $0x110] sm:$0xff]  ;;  %v2776_v36 = vld [vmem:[#allocation2 + $0x118] sm:$0xff] }
 0x1d8   :  { %13458 = vst [vmem:[#allocation94_spill] sm:$0xff] %v10494_v15  ;;  %8520 = vmatprep.subr.bf16.mxu1 %v8519_v51  ;;  %8552 = vmatprep.subr.bf16.mxu0 %v8551_v23  ;;  %v8525_v61 = vpack.c.bf16 %v2776_v36, %v2775_v5  ;;  %v2794_v23 = vld [vmem:[#allocation2 + $0x1a8] sm:$0xff]  ;;  %v2796_v5 = vld [vmem:[#allocation2 + $0x1b8] sm:$0xff] }
 0x1d9   :  { %9119 = vrot.lane.b32.xlu0 %v9118_v54, %s9725_s14  ;;  %9084 = vrot.lane.b32.xlu1 %v9083_v63, %s9725_s14  ;;  %v1492_v54 = vmul.f32 %v10112_v42, %v10398_v18  ;;  %v2791_v63 = vld [vmem:[#allocation2 + $0x190] sm:$0xff]  ;;  %v10539_v42 = vld [vmem:[%s13085_s2 + $0x38] sm:$0xff] }
 0x1da   :  { %8522 = vmatpush3.bf16.msra.mxu1 %v8521_v21  ;;  %v8523_v29 = vpack.c.bf16 %v2792_v27, %v2791_v63  ;;  %v8527_v21 = vpack.c.bf16 %v2794_v23, %v2793_v56  ;;  %v2778_v63 = vld [vmem:[#allocation2 + $0x128] sm:$0xff]  ;;  %v2779_v56 = vld [vmem:[#allocation2 + $0x130] sm:$0xff]  ;;  %v2780_v23 = vld [vmem:[#allocation2 + $0x138] sm:$0xff] }
 0x1db   :  { %v9093_v11 = vpack.i.bf16 %v1492_v54, %v1339_v59  ;;  %v10521_v59 = vld [vmem:[%s13085_s2 + $0x18] sm:$0xff]  ;;  %v2777_v54 = vld [vmem:[#allocation2 + $0x120] sm:$0xff] }
 0x1dc   :  { %v10504_v62 = vpop.permute.xlu1 %1897  ;;  %8524 = vmatprep.subr.bf16.mxu1 %v8523_v29  ;;  %v8529_v29 = vpack.c.bf16 %v2778_v63, %v2777_v54  ;;  %v13464_v54 = vld [vmem:[#allocation8_spill] sm:$0xff]  ;;  %v2797_v63 = vld [vmem:[#allocation2 + $0x1c0] sm:$0xff] }
 0x1dd   :  { %13459 = vst [vmem:[#allocation95_spill] sm:$0xff] %v10504_v62  ;;  %1612 = vperm.xlu0 %9020, %v10076_v32   ;;  %9089 = vrot.lane.b32.xlu1 %v9088_v39, %s9725_s14  ;;  %v13461_v39 = vld [vmem:[#allocation24_spill] sm:$0xff] }
 0x1de   :  { %v1742_v51 = vmul.f32 %v13461_v39, %v10406_v28  ;;  %8526 = vmatpush3.bf16.msra.mxu1 %v8525_v61 }
 0x1df   :  { %8528 = vmatprep.subr.bf16.mxu1 %v8527_v21 }
 0x1e0   :  { %v9098_v27 = vpack.i.bf16 %v1742_v51, %v1575_v40  ;;  %v8533_v40 = vpack.c.bf16 %v2780_v23, %v2779_v56  ;;  %v13463_v51 = vld [vmem:[#allocation30_spill] sm:$0xff]  ;;  %v2782_v23 = vld [vmem:[#allocation2 + $0x148] sm:$0xff] }
 0x1e1   :  { %v10512_v31 = vpop.permute.xlu1 %1817  ;;  %9126 = vset.pattern.permute.xlu0 %v13425_v16  ;;  %9094 = vrot.lane.b32.xlu1 %v9093_v11, %s9725_s14  ;;  %v2795_v11 = vld [vmem:[#allocation2 + $0x1b0] sm:$0xff]  ;;  %v1497_v21 = vmul.f32 %v13463_v51, %v10464_v12  ;;  %v2781_v56 = vld [vmem:[#allocation2 + $0x140] sm:$0xff] }
 0x1e2   :  { %13460 = vst [vmem:[#allocation96_spill] sm:$0xff] %v10512_v31  ;;  %1353 = vperm.xlu0 %9126, %v10521_v59   ;;  %8530 = vmatpush3.bf16.msra.mxu1 %v8529_v29  ;;  %v8531_v61 = vpack.c.bf16 %v2796_v5, %v2795_v11  ;;  %v13465_v29 = vld [vmem:[#allocation31_spill] sm:$0xff]  ;;  %v2807_v31 = vld [vmem:[#allocation2 + $0x210] sm:$0xff] }
 0x1e3   :  { %v1664_v11 = vmul.f32 %v13465_v29, %v10447_v52  ;;  %v2784_v29 = vld [vmem:[#allocation2 + $0x158] sm:$0xff] }
 0x1e4   :  { %8532 = vmatprep.subr.bf16.mxu1 %v8531_v61  ;;  %v8537_v61 = vpack.c.bf16 %v2782_v23, %v2781_v56  ;;  %v13470_v56 = vld [vmem:[#allocation26_spill] sm:$0xff] }
 0x1e5   :  { %9099 = vrot.lane.b32.xlu1 %v9098_v27, %s9725_s14  ;;  %v2798_v27 = vld [vmem:[#allocation2 + $0x1c8] sm:$0xff]  ;;  %v9133_v51 = vpack.i.bf16 %v1664_v11, %v1497_v21  ;;  %v2801_v21 = vld [vmem:[#allocation2 + $0x1e0] sm:$0xff]  ;;  %v1576_v23 = vmul.f32 %v13470_v56, %v10447_v52  ;;  %v10575_v56 = vpop.permute.xlu0 %2053 }
 0x1e6   :  { %v10525_v36 = vpop.permute.xlu1 %1973  ;;  %1361 = vperm.xlu0 %9126, %v10530_v10   ;;  %8534 = vmatpush3.bf16.msra.mxu1 %v8533_v40  ;;  %v8535_v5 = vpack.c.bf16 %v2798_v27, %v2797_v63  ;;  %v8541_v40 = vpack.c.bf16 %v2784_v29, %v2783_v30  ;;  %v13468_v27 = vld [vmem:[#allocation9_spill] sm:$0xff]  ;;  %v2802_v11 = vld [vmem:[#allocation2 + $0x1e8] sm:$0xff]  ;;  %v2803_v29 = vld [vmem:[#allocation2 + $0x1f0] sm:$0xff]  ;;  %13473 = vst [vmem:[#allocation100_spill] sm:$0xff] %v10575_v56 }
 0x1e7   :  { %13462 = vst [vmem:[#allocation97_spill] sm:$0xff] %v10525_v36  ;;  %v8543_v1 = vpack.c.bf16 %v2802_v11, %v2801_v21  ;;  %v2786_v30 = vld [vmem:[#allocation2 + $0x168] sm:$0xff]  ;;  %v2788_v21 = vld [vmem:[#allocation2 + $0x178] sm:$0xff]  ;;  %v9613_v11 = vld [vmem:[%s13085_s2 + $0x30] sm:$0xff] }
 0x1e8   :  { %8536 = vmatprep.subr.bf16.mxu1 %v8535_v5  ;;  %v2804_v5 = vld [vmem:[#allocation2 + $0x1f8] sm:$0xff] }
 0x1e9   :  { %2197 = vperm.xlu1 %9103, %v13464_v54   ;;  %v2808_v36 = vld [vmem:[#allocation2 + $0x218] sm:$0xff] }
 0x1ea   :  { %1369 = vperm.xlu0 %9126, %v10539_v42   ;;  %8538 = vmatpush3.bf16.msra.mxu1 %v8537_v61  ;;  %v8547_v61 = vpack.c.bf16 %v2804_v5, %v2803_v29 }
 0x1eb   :  { %v10544_v41 = vpop.permute.xlu1 %1669  ;;  %8540 = vmatprep.subr.bf16.mxu1 %v8539_v38 }
 0x1ec   :  { %13466 = vst [vmem:[#allocation8_spill] sm:$0xff] %v10544_v41 }
 0x1ed   :  { %9109 = vset.pattern.permute.xlu1 %v13447_v8 }
 0x1ee   :  { %9134 = vrot.lane.b32.xlu0 %v9133_v51, %s9725_s14  ;;  %2117 = vperm.xlu1 %9109, %v13464_v54   ;;  %v10556_v51 = vld [vmem:[%s13086_s3 + $0x28] sm:$0xff]  ;;  %v8545_v54 = vpack.c.bf16 %v2786_v30, %v2785_v0 }
 0x1ef   :  { %8542 = vmatpush3.bf16.msra.mxu1 %v8541_v40  ;;  %v2787_v40 = vld [vmem:[#allocation2 + $0x170] sm:$0xff] }
 0x1f0   :  { %v10549_v63 = vpop.permute.xlu1 %1425  ;;  %8544 = vmatprep.subr.bf16.mxu1 %v8543_v1  ;;  %v13471_v1 = vld [vmem:[#allocation27_spill] sm:$0xff]  ;;  %v8549_v30 = vpack.c.bf16 %v2788_v21, %v2787_v40  ;;  %v10594_v40 = vld [vmem:[%s13086_s3 + $0x18] sm:$0xff]  ;;  %v10597_v21 = vpop.permute.xlu0 %2189 }
 0x1f1   :  { %13467 = vst [vmem:[#allocation98_spill] sm:$0xff] %v10549_v63  ;;  %v1743_v0 = vmul.f32 %v13471_v1, %v10443_v25  ;;  %13476 = vst [vmem:[#allocation102_spill] sm:$0xff] %v10597_v21  ;;  %v13481_v1 = vld [vmem:[#allocation29_spill] sm:$0xff]  ;;  %v2823_v21 = vld [vmem:[#allocation2 + $0x290] sm:$0xff] }
 0x1f2   :  { %1697 = vperm.xlu0 %9126, %v13468_v27   ;;  %9110 = vset.pattern.permute.xlu1 %v13425_v16  ;;  %v9612_v27 = vld [vmem:[%s13085_s2] sm:$0xff]  ;;  %v1577_v50 = vmul.f32 %v13481_v1, %v10464_v12  ;;  %v13486_v1 = vld [vmem:[#allocation35_spill] sm:$0xff] }
 0x1f3   :  { %1689 = vperm.xlu1 %9110, %v10556_v51   ;;  %8546 = vmatpush3.bf16.msra.mxu1 %v8545_v54  ;;  %v9112_v5 = vpack.i.bf16 %v1743_v0, %v1576_v23  ;;  %v9615_v23 = vld [vmem:[%s13085_s2 + $0x8] sm:$0xff]  ;;  %v1498_v37 = vmul.f32 %v13486_v1, %v10476_v6 }
 0x1f4   :  { %8548 = vmatprep.subr.bf16.mxu1 %v8547_v61  ;;  %v13475_v61 = vmov 6  }
 0x1f5   :  { %v10559_v38 = vpop.permute.xlu1 %2057 }
 0x1f6   :  { %13469 = vst [vmem:[#allocation9_spill] sm:$0xff] %v10559_v38  ;;  %9139 = vset.pattern.permute.xlu0 %v13438_v17  ;;  %v2824_v38 = vld [vmem:[#allocation2 + $0x298] sm:$0xff] }
 0x1f7   :  { %1421 = vperm.xlu0 %9139, %v9612_v27   ;;  %9111 = vset.pattern.permute.xlu1 %v13438_v17  ;;  %v10580_v27 = vld [vmem:[%s13086_s3] sm:$0xff] }
 0x1f8   :  { %1445 = vperm.xlu1 %9111, %v9613_v11   ;;  %8550 = vmatpush3.bf16.msra.mxu1 %v8549_v30  ;;  %v9617_v30 = vld [vmem:[%s13085_s2 + $0x10] sm:$0xff] }
 0x1fa   :  { %v10573_v29 = vpop.permute.xlu1 %1977 }
 0x1fb   :  { %13472 = vst [vmem:[#allocation99_spill] sm:$0xff] %v10573_v29  ;;  %1749 = vperm.xlu0 %9139, %v10580_v27  }
 0x1fc   :  { %9113 = vrot.lane.b32.xlu1 %v9112_v5, %s9725_s14  ;;  %v10606_v5 = vpop.permute.xlu0 %1254 }
 0x1fd   :  { %9117 = vset.pattern.permute.xlu1 %v13444_v58  ;;  %13478 = vst [vmem:[#allocation104_spill] sm:$0xff] %v10606_v5  ;;  %v1292_v13 = vmul.f32 %v10606_v5, %v10398_v18 }
 0x1ff   :  { %v10585_v54 = vpop.permute.xlu1 %2109  ;;  %9142 = vset.pattern.permute.xlu0 %v13475_v61 }
 0x200   :  { %13474 = vst [vmem:[#allocation101_spill] sm:$0xff] %v10585_v54  ;;  %1505 = vperm.xlu0 %9142, %v9615_v23   ;;  %2201 = vperm.xlu1 %9117, %v10594_v40  }
 0x204   :  { %v10599_v0 = vpop.permute.xlu1 %1673  ;;  %1509 = vperm.xlu0 %9142, %v9617_v30   ;;  %9123 = vset.pattern.permute.xlu1 %v13447_v8  ;;  %v10616_v30 = vpop.permute.xlu0 %1259 }
 0x205   :  { %13477 = vst [vmem:[#allocation103_spill] sm:$0xff] %v10599_v0  ;;  %2121 = vperm.xlu1 %9123, %v10594_v40   ;;  %13480 = vst [vmem:[#allocation106_spill] sm:$0xff] %v10616_v30 }
 0x208   :  { %1513 = vperm.xlu0 %9142, %v10521_v59   ;;  %v10627_v19 = vpop.permute.xlu0 %1264 }
 0x209   :  { %v10609_v23 = vpop.permute.xlu1 %1429  ;;  %9124 = vset.pattern.permute.xlu1 %v13425_v16  ;;  %v13483_v16 = vld [vmem:[#allocation45_spill] sm:$0xff]  ;;  %13484 = vst [vmem:[#allocation108_spill] sm:$0xff] %v10627_v19 }
 0x20a   :  { %13479 = vst [vmem:[#allocation105_spill] sm:$0xff] %v10609_v23  ;;  %1693 = vperm.xlu1 %9124, %v10076_v32   ;;  %v1744_v59 = vmul.f32 %v13483_v16, %v10447_v52  ;;  %v13491_v16 = vld [vmem:[#allocation67_spill] sm:$0xff]  ;;  %v2828_v23 = vld [vmem:[#allocation2 + $0x2b8] sm:$0xff] }
 0x20b   :  { %v1499_v39 = vmul.f32 %v13491_v16, %v10488_v22  ;;  %v13495_v16 = vld [vmem:[#allocation76_spill] sm:$0xff] }
 0x20c   :  { %1517 = vperm.xlu0 %9142, %v9618_v55   ;;  %v9127_v32 = vpack.i.bf16 %v1744_v59, %v1577_v50  ;;  %v1578_v45 = vmul.f32 %v13495_v16, %v10476_v6  ;;  %v10690_v16 = vld [vmem:[%s13086_s3 + $0x10] sm:$0xff] }
 0x20e   :  { %v10620_v14 = vpop.permute.xlu1 %1677  ;;  %9125 = vset.pattern.permute.xlu1 %v13438_v17 }
 0x20f   :  { %13482 = vst [vmem:[#allocation107_spill] sm:$0xff] %v10620_v14  ;;  %1449 = vperm.xlu1 %9125, %v10539_v42  }
 0x210   :  { %1521 = vperm.xlu0 %9142, %v10530_v10   ;;  %v13488_v10 = vld [vmem:[#allocation60_spill] sm:$0xff] }
 0x211   :  { %v1665_v59 = vmul.f32 %v13488_v10, %v10464_v12 }
 0x213   :  { %v10629_v55 = vpop.permute.xlu1 %1433  ;;  %9128 = vrot.lane.b32.xlu1 %v9127_v32, %s9725_s14  ;;  %v9149_v32 = vpack.i.bf16 %v1665_v59, %v1498_v37  ;;  %v13493_v37 = vld [vmem:[#allocation40_spill] sm:$0xff] }
 0x214   :  { %13485 = vst [vmem:[#allocation109_spill] sm:$0xff] %v10629_v55  ;;  %1525 = vperm.xlu0 %9142, %v9613_v11   ;;  %9132 = vset.pattern.permute.xlu1 %v13444_v58  ;;  %v10646_v11 = vpop.permute.xlu0 %1582  ;;  %v1666_v59 = vmul.f32 %v13493_v37, %v10476_v6  ;;  %v13498_v37 = vld [vmem:[#allocation33_spill] sm:$0xff]  ;;  %v2827_v55 = vld [vmem:[#allocation2 + $0x2b0] sm:$0xff] }
 0x215   :  { %13489 = vst [vmem:[#allocation111_spill] sm:$0xff] %v10646_v11  ;;  %v1745_v34 = vmul.f32 %v13498_v37, %v10464_v12 }
 0x216   :  { %v9163_v10 = vpack.i.bf16 %v1666_v59, %v1499_v39  ;;  %v13499_v39 = vld [vmem:[#allocation63_spill] sm:$0xff] }
 0x217   :  { %2205 = vperm.xlu1 %9132, %v10638_v48  }
 0x218   :  { %v10641_v50 = vpop.permute.xlu1 %2193  ;;  %1529 = vperm.xlu0 %9142, %v10539_v42   ;;  %v10655_v46 = vpop.permute.xlu0 %1587  ;;  %v10660_v42 = vld [vmem:[%s13086_s3 + $0x8] sm:$0xff] }
 0x219   :  { %13487 = vst [vmem:[#allocation110_spill] sm:$0xff] %v10641_v50  ;;  %13492 = vst [vmem:[#allocation113_spill] sm:$0xff] %v10655_v46  ;;  %v13200_v50 = vmov 10  }
 0x21b   :  { %9138 = vset.pattern.permute.xlu1 %v13447_v8 }
 0x21c   :  { %9150 = vrot.lane.b32.xlu0 %v9149_v32, %s9725_s14  ;;  %2125 = vperm.xlu1 %9138, %v10638_v48   ;;  %v10672_v57 = vpop.permute.xlu0 %1592 }
 0x21d   :  { %v10651_v1 = vpop.permute.xlu1 %2113  ;;  %13496 = vst [vmem:[#allocation115_spill] sm:$0xff] %v10672_v57 }
 0x21e   :  { %13490 = vst [vmem:[#allocation112_spill] sm:$0xff] %v10651_v1 }
 0x220   :  { %1833 = vperm.xlu0 %9142, %v10660_v42   ;;  %9140 = vset.pattern.permute.xlu1 %v13475_v61  ;;  %v10678_v61 = vld [vmem:[%s13086_s3 + $0x38] sm:$0xff]  ;;  %v10695_v33 = vpop.permute.xlu0 %1597 }
 0x221   :  { %1829 = vperm.xlu1 %9140, %v10580_v27   ;;  %13502 = vst [vmem:[#allocation117_spill] sm:$0xff] %v10695_v33 }
 0x222   :  { %v10667_v32 = vpop.permute.xlu1 %1681 }
 0x223   :  { %13494 = vst [vmem:[#allocation114_spill] sm:$0xff] %v10667_v32 }
 0x224   :  { %9164 = vrot.lane.b32.xlu0 %v9163_v10, %s9725_s14  ;;  %v1667_v10 = vmul.f32 %v13499_v39, %v10488_v22  ;;  %v10703_v35 = vpop.permute.xlu0 %1602 }
 0x225   :  { %9141 = vset.pattern.permute.xlu1 %v13497_v47  ;;  %v9143_v47 = vpack.i.bf16 %v1745_v34, %v1578_v45  ;;  %13504 = vst [vmem:[#allocation119_spill] sm:$0xff] %v10703_v35 }
 0x226   :  { %1617 = vperm.xlu1 %9141, %v10678_v61   ;;  %v9177_v37 = vpack.i.bf16 %v1820_v60, %v1667_v10  ;;  %v2805_v60 = vld [vmem:[#allocation2 + $0x200] sm:$0xff]  ;;  %v2806_v10 = vld [vmem:[#allocation2 + $0x208] sm:$0xff] }
 0x227   :  { %v10685_v59 = vpop.permute.xlu1 %1437  ;;  %v8553_v1 = vpack.c.bf16 %v2806_v10, %v2805_v60  ;;  %v1293_v60 = vmul.f32 %v10616_v30, %v10410_v9  ;;  %v2825_v10 = vld [vmem:[#allocation2 + $0x2a0] sm:$0xff]  ;;  %v10736_v30 = vld [vmem:[%s13086_s3 + $0x30] sm:$0xff] }
 0x228   :  { %13500 = vst [vmem:[#allocation116_spill] sm:$0xff] %v10685_v59  ;;  %1837 = vperm.xlu0 %9142, %v10690_v16  }
 0x22a   :  { %9144 = vrot.lane.b32.xlu1 %v9143_v47, %s9725_s14 }
 0x22b   :  { %9148 = vset.pattern.permute.xlu1 %v13444_v58 }
 0x22c   :  { %v10699_v39 = vpop.permute.xlu1 %1685  ;;  %9178 = vrot.lane.b32.xlu0 %v9177_v37, %s9725_s14 }
 0x22d   :  { %13503 = vst [vmem:[#allocation118_spill] sm:$0xff] %v10699_v39  ;;  %v8557_v39 = vpack.c.bf16 %v2808_v36, %v2807_v31 }
 0x22e   :  { %2209 = vperm.xlu1 %9148, %v10556_v51  }
 0x230   :  { %1841 = vperm.xlu0 %9142, %v10594_v40  }
 0x231   :  { %v10706_v34 = vpop.permute.xlu1 %1441 }
 0x232   :  { %13505 = vst [vmem:[#allocation120_spill] sm:$0xff] %v10706_v34  ;;  %9154 = vset.pattern.permute.xlu1 %v13447_v8 }
 0x233   :  { %v10709_v45 = vpop.permute.xlu0 %9049  ;;  %2129 = vperm.xlu1 %9154, %v10556_v51  }
 0x234   :  { %1845 = vperm.xlu0 %9142, %v10638_v48  }
 0x235   :  { %v9035_v47 = vpop.permute.xlu1 %9034 }
 0x236   :  { %v9037_v37 = vunpack.i.h.bf16 %v9035_v47  ;;  %v9036_v44 = vunpack.i.l.bf16 %v9035_v47 }
 0x237   :  { %v10717_v24 = vpop.permute.xlu0 %9054  ;;  %9155 = vset.pattern.permute.xlu1 %v13200_v50  ;;  %v2826_v50 = vld [vmem:[#allocation2 + $0x2a8] sm:$0xff] }
 0x238   :  { %1849 = vperm.xlu0 %9142, %v10556_v51   ;;  %1989 = vperm.xlu1 %9155, %v10580_v27   ;;  %v2493_v47 = vsel %vm2484_vm3, %v1372_v43, %v9036_v44  ;;  %v2485_v3 = vsel %vm2484_vm3, %v1292_v13, %v9037_v37  ;;  %v9056_v20 = vunpack.i.l.bf16 %v10717_v24  ;;  %v8555_v43 = vpack.c.bf16 %v2824_v38, %v2823_v21  ;;  %v13508_v44 = vld [vmem:[#allocation57_spill] sm:$0xff] }
 0x239   :  { %3025 = vmatprep.mubr.f32.mxu0 %v2493_v47  ;;  %v9040_v5 = vpop.permute.xlu1 %9039  ;;  %v1374_v13 = vmul.f32 %v13508_v44, %v10406_v28  ;;  %v13509_v37 = vld [vmem:[#allocation37_spill] sm:$0xff]  ;;  %v8559_v21 = vpack.c.bf16 %v2826_v50, %v2825_v10  ;;  %v2853_v44 = vld [vmem:[#allocation2 + $0x380] sm:$0xff]  ;;  %v9057_v31 = vunpack.i.h.bf16 %v10717_v24 }
 0x23a   :  { %v9042_v34 = vunpack.i.h.bf16 %v9040_v5  ;;  %v9041_v35 = vunpack.i.l.bf16 %v9040_v5  ;;  %3026 = vmatmul.mubr.f32.vlgmr.msra.gmra.mrb[16].mxu0 %v2485_v3  ;;  %v1579_v47 = vmul.f32 %v13509_v37, %v10488_v22  ;;  %v2810_v5 = vld [vmem:[#allocation2 + $0x228] sm:$0xff]  ;;  %v2812_v10 = vld [vmem:[#allocation2 + $0x238] sm:$0xff] }
 0x23b   :  { %8554 = vmatpush3.bf16.msra.mxu0 %v8553_v1  ;;  %v2854_v37 = vld [vmem:[#allocation2 + $0x388] sm:$0xff]  ;;  %v8561_v50 = vpack.c.bf16 %v2810_v5, %v2809_v26  ;;  %v2816_v5 = vld [vmem:[#allocation2 + $0x258] sm:$0xff] }
 0x23c   :  { %1853 = vperm.xlu0 %9142, %v10736_v30   ;;  %9156 = vset.pattern.permute.xlu1 %v13438_v17  ;;  %v2494_v3 = vsel %vm2484_vm3, %v1373_v7, %v9041_v35  ;;  %v2486_v38 = vsel %vm2484_vm3, %v1293_v60, %v9042_v34  ;;  %v13510_v1 = vld [vmem:[#allocation39_spill] sm:$0xff]  ;;  %v8583_v33 = vpack.c.bf16 %v2854_v37, %v2853_v44  ;;  %v2811_v60 = vld [vmem:[#allocation2 + $0x230] sm:$0xff] }
 0x23d   :  { %v10743_v36 = vpop.permute.xlu1 %9044  ;;  %3030 = vmatprep.mubr.f32.mxu0 %v2494_v3  ;;  %1753 = vperm.xlu1 %9156, %v10660_v42   ;;  %v1746_v59 = vmul.f32 %v13510_v1, %v10476_v6  ;;  %v2495_v35 = vsel %vm2484_vm3, %v1374_v13, %v9056_v20  ;;  %v1294_v7 = vmul.f32 %v10627_v19, %v10406_v28  ;;  %v2830_v44 = vld [vmem:[#allocation2 + $0x2c8] sm:$0xff]  ;;  %v2831_v37 = vld [vmem:[#allocation2 + $0x2d0] sm:$0xff] }
 0x23e   :  { %3031 = vmatmul.mubr.f32.gmra.mrb[18].mxu0 %v2486_v38  ;;  %8556 = vmatprep.subr.bf16.mxu0 %v8555_v43  ;;  %v8563_v34 = vpack.c.bf16 %v2828_v23, %v2827_v55  ;;  %v2829_v43 = vld [vmem:[#allocation2 + $0x2c0] sm:$0xff]  ;;  %v8565_v26 = vpack.c.bf16 %v2812_v10, %v2811_v60  ;;  %v2818_v10 = vld [vmem:[#allocation2 + $0x268] sm:$0xff] }
 0x23f   :  { %3035 = vmatprep.mubr.f32.mxu0 %v2495_v35  ;;  %v9157_v24 = vpack.i.bf16 %v1746_v59, %v1579_v47  ;;  %8558 = vmatpush3.bf16.msra.mxu0 %v8557_v39  ;;  %v2487_v20 = vsel %vm2484_vm3, %v1294_v7, %v9057_v31  ;;  %v13211_v39 = vmov 8   ;;  %v8567_v23 = vpack.c.bf16 %v2830_v44, %v2829_v43  ;;  %v2813_v55 = vld [vmem:[#allocation2 + $0x240] sm:$0xff]  ;;  %v2814_v59 = vld [vmem:[#allocation2 + $0x248] sm:$0xff]  ;;  %v2835_v43 = vld [vmem:[#allocation2 + $0x2f0] sm:$0xff] }
 0x240   :  { %1857 = vperm.xlu0 %9142, %v10678_v61   ;;  %8560 = vmatprep.subr.bf16.mxu0 %v8559_v21  ;;  %v8569_v47 = vpack.c.bf16 %v2814_v59, %v2813_v55  ;;  %v2815_v21 = vld [vmem:[#allocation2 + $0x250] sm:$0xff]  ;;  %v2833_v35 = vld [vmem:[#allocation2 + $0x2e0] sm:$0xff]  ;;  %v2834_v7 = vld [vmem:[#allocation2 + $0x2e8] sm:$0xff] }
 0x241   :  { %v10752_v3 = vpop.permute.xlu1 %9059  ;;  %9158 = vrot.lane.b32.xlu1 %v9157_v24, %s9725_s14  ;;  %8584 = vmatprep.subr.bf16.mxu1 %v8583_v33  ;;  %v2832_v33 = vld [vmem:[#allocation2 + $0x2d8] sm:$0xff]  ;;  %v10766_v24 = vpop.permute.xlu0 %9074  ;;  %v2817_v60 = vld [vmem:[#allocation2 + $0x260] sm:$0xff]  ;;  %v2870_v1 = vld [vmem:[#allocation2 + $0x408] sm:$0xff] }
 0x242   :  { %3036 = vmatmul.mubr.f32.gmra.mrb[20].mxu0 %v2487_v20  ;;  %9162 = vset.pattern.permute.xlu1 %v13444_v58  ;;  %v8571_v38 = vpack.c.bf16 %v2832_v33, %v2831_v37  ;;  %v2836_v44 = vld [vmem:[#allocation2 + $0x2f8] sm:$0xff]  ;;  %v2819_v37 = vld [vmem:[#allocation2 + $0x270] sm:$0xff]  ;;  %v9077_v19 = vunpack.i.h.bf16 %v10766_v24 }
 0x243   :  { %8562 = vmatpush3.bf16.msra.mxu0 %v8561_v50  ;;  %v8573_v50 = vpack.c.bf16 %v2816_v5, %v2815_v21  ;;  %v8579_v59 = vpack.c.bf16 %v2836_v44, %v2835_v43  ;;  %v2820_v33 = vld [vmem:[#allocation2 + $0x278] sm:$0xff]  ;;  %v2885_v44 = vld [vmem:[#allocation2 + $0x480] sm:$0xff] }
 0x244   :  { %9231 = vset.pattern.permute.xlu0 %v13211_v39  ;;  %8564 = vmatprep.subr.bf16.mxu0 %v8563_v34  ;;  %v8575_v34 = vpack.c.bf16 %v2834_v7, %v2833_v35  ;;  %v8581_v5 = vpack.c.bf16 %v2820_v33, %v2819_v37  ;;  %v13514_v7 = vld [vmem:[#allocation46_spill] sm:$0xff] }
 0x245   :  { %v10758_v13 = vpop.permute.xlu1 %9064  ;;  %1909 = vperm.xlu0 %9231, %v10580_v27   ;;  %2213 = vperm.xlu1 %9162, %v10736_v30   ;;  %v10774_v55 = vpop.permute.xlu0 %9105 }
 0x247   :  { %8566 = vmatpush3.bf16.msra.mxu0 %v8565_v26  ;;  %v13511_v26 = vmov 10  }
 0x248   :  { %8568 = vmatprep.subr.bf16.mxu0 %v8567_v23  ;;  %v8577_v23 = vpack.c.bf16 %v2818_v10, %v2817_v60  ;;  %v1532_v60 = vmul.f32 %v10423_v4, %v10398_v18 }
 0x249   :  { %v10762_v31 = vpop.permute.xlu1 %9069  ;;  %1913 = vperm.xlu0 %9231, %v10660_v42   ;;  %9168 = vset.pattern.permute.xlu1 %v13447_v8 }
 0x24a   :  { %2133 = vperm.xlu1 %9168, %v10736_v30  }
 0x24b   :  { %8570 = vmatpush3.bf16.msra.mxu0 %v8569_v47 }
 0x24c   :  { %8572 = vmatprep.subr.bf16.mxu0 %v8571_v38  ;;  %v13512_v38 = vld [vmem:[#allocation44_spill] sm:$0xff] }
 0x24d   :  { %v10769_v20 = vpop.permute.xlu1 %9079  ;;  %1917 = vperm.xlu0 %9231, %v10690_v16   ;;  %v1747_v21 = vmul.f32 %v13512_v38, %v10488_v22 }
 0x24e   :  { %9169 = vset.pattern.permute.xlu1 %v13511_v26 }
 0x24f   :  { %1993 = vperm.xlu1 %9169, %v10660_v42   ;;  %8574 = vmatpush3.bf16.msra.mxu0 %v8573_v50  ;;  %v1900_v50 = vmul.f32 %v13514_v7, %v10398_v18 }
 0x250   :  { %8576 = vmatprep.subr.bf16.mxu0 %v8575_v34 }
 0x251   :  { %v10776_v47 = vpop.permute.xlu1 %9084  ;;  %1921 = vperm.xlu0 %9231, %v10594_v40   ;;  %v9171_v43 = vpack.i.bf16 %v1900_v50, %v1747_v21 }
 0x253   :  { %9170 = vset.pattern.permute.xlu1 %v13438_v17  ;;  %8578 = vmatpush3.bf16.msra.mxu0 %v8577_v23  ;;  %v2886_v23 = vld [vmem:[#allocation2 + $0x488] sm:$0xff] }
 0x254   :  { %v10782_v35 = vpop.permute.xlu0 %1607  ;;  %1757 = vperm.xlu1 %9170, %v10690_v16   ;;  %8580 = vmatprep.subr.bf16.mxu0 %v8579_v59  ;;  %v8615_v37 = vpack.c.bf16 %v2886_v23, %v2885_v44  ;;  %v13517_v44 = vld [vmem:[#allocation64_spill] sm:$0xff] }
 0x255   :  { %13513 = vst [vmem:[#allocation121_spill] sm:$0xff] %v10782_v35  ;;  %1925 = vperm.xlu0 %9231, %v10638_v48   ;;  %v10788_v34 = vpop.permute.xlu1 %9089 }
 0x256   :  { %v9092_v10 = vunpack.i.h.bf16 %v10788_v34 }
 0x257   :  { %8582 = vmatpush3.bf16.msra.mxu0 %v8581_v5  ;;  %v9072_v5 = vunpack.i.h.bf16 %v10762_v31 }
 0x258   :  { %v10793_v33 = vpop.permute.xlu0 %9119  ;;  %9172 = vrot.lane.b32.xlu1 %v9171_v43, %s9725_s14  ;;  %v2509_v59 = vsel %vm2484_vm3, %v1532_v60, %v9092_v10  ;;  %8616 = vmatprep.subr.bf16.mxu0 %v8615_v37  ;;  %v9076_v60 = vunpack.i.l.bf16 %v10766_v24  ;;  %v9071_v10 = vunpack.i.l.bf16 %v10762_v31  ;;  %v13520_v24 = vld [vmem:[#allocation72_spill] sm:$0xff] }
 0x259   :  { %1929 = vperm.xlu0 %9231, %v10556_v51   ;;  %3130 = vmatprep.mubr.f32.mxu1 %v2509_v59  ;;  %v10803_v21 = vpop.permute.xlu1 %9094  ;;  %v13518_v59 = vld [vmem:[#allocation70_spill] sm:$0xff] }
 0x25a   :  { %9176 = vset.pattern.permute.xlu1 %v13444_v58  ;;  %v1376_v4 = vmul.f32 %v13518_v59, %v10447_v52 }
 0x25c   :  { %v10799_v39 = vpop.permute.xlu0 %1612  ;;  %2217 = vperm.xlu1 %9176, %v10678_v61  }
 0x25d   :  { %13515 = vst [vmem:[#allocation122_spill] sm:$0xff] %v10799_v39  ;;  %1933 = vperm.xlu0 %9231, %v10736_v30   ;;  %v10818_v23 = vpop.permute.xlu1 %9099 }
 0x260   :  { %9182 = vset.pattern.permute.xlu1 %v13447_v8  ;;  %v1295_v8 = vmul.f32 %v13517_v44, %v10443_v25 }
 0x261   :  { %v10807_v50 = vpop.permute.xlu0 %1353  ;;  %9244 = vset.pattern.permute.xlu0 %v13511_v26  ;;  %2137 = vperm.xlu1 %9182, %v10678_v61  }
 0x262   :  { %13516 = vst [vmem:[#allocation123_spill] sm:$0xff] %v10807_v50  ;;  %v1375_v43 = vmul.f32 %v10807_v50, %v10443_v25  ;;  %2017 = vperm.xlu0 %9244, %v10678_v61   ;;  %v2488_v31 = vsel %vm2484_vm3, %v1295_v8, %v9072_v5  ;;  %v1907_v61 = vmul.f32 %v10504_v62, %v10488_v22  ;;  %v9081_v8 = vunpack.i.l.bf16 %v10769_v20 }
 0x263   :  { %v2066_v5 = vmul.f32 %v10575_v56, %v10476_v6 }
 0x264   :  { %v2496_v37 = vsel %vm2484_vm3, %v1375_v43, %v9071_v10  ;;  %v13215_v10 = vmov 12   ;;  %v2497_v43 = vsel %vm2484_vm3, %v1376_v4, %v9076_v60  ;;  %v13523_v60 = vld [vmem:[#allocation51_spill] sm:$0xff] }
 0x265   :  { %3040 = vmatprep.mubr.f32.mxu0 %v2496_v37  ;;  %v10824_v38 = vpop.permute.xlu0 %1361  ;;  %9183 = vset.pattern.permute.xlu1 %v13511_v26  ;;  %v1296_v37 = vmul.f32 %v13520_v24, %v10447_v52  ;;  %v9258_v59 = vpack.i.bf16 %v2066_v5, %v1907_v61  ;;  %v9086_v24 = vunpack.i.l.bf16 %v10776_v47 }
 0x266   :  { %13519 = vst [vmem:[#allocation124_spill] sm:$0xff] %v10824_v38  ;;  %v1377_v44 = vmul.f32 %v10824_v38, %v10464_v12  ;;  %3041 = vmatmul.mubr.f32.gmra.mrb[22].mxu0 %v2488_v31  ;;  %9247 = vset.pattern.permute.xlu0 %v13215_v10  ;;  %v9082_v31 = vunpack.i.h.bf16 %v10769_v20  ;;  %v13525_v20 = vld [vmem:[#allocation53_spill] sm:$0xff] }
 0x267   :  { %1997 = vperm.xlu1 %9183, %v10690_v16   ;;  %3045 = vmatprep.mubr.f32.mxu0 %v2497_v43  ;;  %v2489_v4 = vsel %vm2484_vm3, %v1296_v37, %v9077_v19  ;;  %v1901_v43 = vmul.f32 %v13523_v60, %v10410_v9  ;;  %v1378_v19 = vmul.f32 %v10369_v53, %v10476_v6  ;;  %v9087_v37 = vunpack.i.h.bf16 %v10776_v47 }
 0x268   :  { %2069 = vperm.xlu0 %9247, %v10580_v27   ;;  %v10841_v38 = vpop.permute.xlu1 %2197  ;;  %v2498_v50 = vsel %vm2484_vm3, %v1377_v44, %v9081_v8  ;;  %v13524_v27 = vld [vmem:[#allocation79_spill] sm:$0xff]  ;;  %v2060_v61 = vmul.f32 %v13525_v20, %v10398_v18  ;;  %v13221_v8 = vmov 14   ;;  %v2140_v53 = vmul.f32 %v10585_v54, %v10398_v18 }
 0x269   :  { %13521 = vst [vmem:[#allocation125_spill] sm:$0xff] %v10841_v38  ;;  %v10844_v10 = vpop.permute.xlu0 %1369  ;;  %v1297_v62 = vmul.f32 %v13524_v27, %v10464_v12  ;;  %v2499_v47 = vsel %vm2484_vm3, %v1378_v19, %v9086_v24  ;;  %v13528_v54 = vld [vmem:[#allocation55_spill] sm:$0xff] }
 0x26a   :  { %13522 = vst [vmem:[#allocation126_spill] sm:$0xff] %v10844_v10  ;;  %3046 = vmatmul.mubr.f32.gmra.mrb[24].mxu0 %v2489_v4  ;;  %v1379_v27 = vmul.f32 %v10844_v10, %v10488_v22  ;;  %v9185_v56 = vpack.i.bf16 %v2060_v61, %v1901_v43  ;;  %v1980_v10 = vmul.f32 %v13528_v54, %v10398_v18  ;;  %v9047_v61 = vunpack.i.h.bf16 %v10743_v36 }
 0x26b   :  { %9184 = vset.pattern.permute.xlu1 %v13438_v17  ;;  %3050 = vmatprep.mubr.f32.mxu0 %v2498_v50  ;;  %v2490_v50 = vsel %vm2484_vm3, %v1297_v62, %v9082_v31  ;;  %v1298_v62 = vmul.f32 %v10375_v2, %v10476_v6  ;;  %v1987_v31 = vmul.f32 %v10573_v29, %v10488_v22 }
 0x26c   :  { %9259 = vrot.lane.b32.xlu0 %v9258_v59, %s9725_s14  ;;  %1761 = vperm.xlu1 %9184, %v10594_v40   ;;  %v13527_v59 = vld [vmem:[#allocation69_spill] sm:$0xff]  ;;  %v1299_v2 = vmul.f32 %v10494_v15, %v10488_v22  ;;  %v1700_v29 = vmul.f32 %v10544_v41, %v10398_v18  ;;  %v1701_v15 = vmul.f32 %v10599_v0, %v10410_v9  ;;  %v2869_v0 = vld [vmem:[#allocation2 + $0x400] sm:$0xff] }
 0x26d   :  { %v10861_v5 = vpop.permute.xlu0 %9134  ;;  %v10863_v44 = vpop.permute.xlu1 %2117  ;;  %9268 = vset.pattern.permute.xlu0 %v13221_v8  ;;  %v1821_v4 = vmul.f32 %v13527_v59, %v10410_v9  ;;  %v9091_v8 = vunpack.i.l.bf16 %v10788_v34  ;;  %v2491_v43 = vsel %vm2484_vm3, %v1298_v62, %v9087_v37  ;;  %v9275_v19 = vpack.i.bf16 %v2140_v53, %v1987_v31  ;;  %v2837_v53 = vld [vmem:[#allocation2 + $0x300] sm:$0xff]  ;;  %v2838_v37 = vld [vmem:[#allocation2 + $0x308] sm:$0xff] }
 0x26e   :  { %13526 = vst [vmem:[#allocation51_spill] sm:$0xff] %v10863_v44  ;;  %3051 = vmatmul.mubr.f32.gmra.mrb[26].mxu0 %v2490_v50  ;;  %v9096_v50 = vunpack.i.l.bf16 %v10803_v21  ;;  %v9052_v62 = vunpack.i.h.bf16 %v10709_v45 }
 0x26f   :  { %3055 = vmatprep.mubr.f32.mxu0 %v2499_v47  ;;  %v2500_v47 = vsel %vm2484_vm3, %v1379_v27, %v9091_v8  ;;  %v9062_v27 = vunpack.i.h.bf16 %v10752_v3  ;;  %v2525_v8 = vsel %vm2484_vm3, %v1700_v29, %v9047_v61  ;;  %v2839_v29 = vld [vmem:[#allocation2 + $0x310] sm:$0xff]  ;;  %v9067_v61 = vunpack.i.h.bf16 %v10758_v13 }
 0x270   :  { %2153 = vperm.xlu0 %9268, %v10660_v42   ;;  %9186 = vrot.lane.b32.xlu1 %v9185_v56, %s9725_s14  ;;  %v9190_v56 = vpack.i.bf16 %v1980_v10, %v1821_v4  ;;  %v2492_v31 = vsel %vm2484_vm3, %v1299_v2, %v9096_v50  ;;  %v2855_v4 = vld [vmem:[#allocation2 + $0x390] sm:$0xff]  ;;  %v1620_v2 = vmul.f32 %v10646_v11, %v10398_v18  ;;  %v2858_v11 = vld [vmem:[#allocation2 + $0x3a8] sm:$0xff] }
 0x271   :  { %v10884_v24 = vpop.permute.xlu0 %1697  ;;  %9195 = vset.pattern.permute.xlu1 %v13511_v26  ;;  %v8585_v50 = vpack.c.bf16 %v2838_v37, %v2837_v53  ;;  %v9102_v53 = vunpack.i.h.bf16 %v10818_v23 }
 0x272   :  { %13529 = vst [vmem:[#allocation53_spill] sm:$0xff] %v10884_v24  ;;  %3056 = vmatmul.mubr.f32.gmra.mrb[28].mxu0 %v2491_v43  ;;  %v10889_v34 = vpop.permute.xlu1 %1689  ;;  %v2856_v43 = vld [vmem:[#allocation2 + $0x398] sm:$0xff] }
 0x273   :  { %13530 = vst [vmem:[#allocation69_spill] sm:$0xff] %v10889_v34  ;;  %3060 = vmatprep.mubr.f32.mxu0 %v2500_v47  ;;  %v9097_v47 = vunpack.i.h.bf16 %v10803_v21  ;;  %v2840_v21 = vld [vmem:[#allocation2 + $0x318] sm:$0xff]  ;;  %v8587_v41 = vpack.c.bf16 %v2856_v43, %v2855_v4  ;;  %v1702_v43 = vmul.f32 %v10620_v14, %v10406_v28 }
 0x274   :  { %9276 = vrot.lane.b32.xlu0 %v9275_v19, %s9725_s14  ;;  %9191 = vrot.lane.b32.xlu1 %v9190_v56, %s9725_s14  ;;  %v8589_v4 = vpack.c.bf16 %v2840_v21, %v2839_v29  ;;  %v8617_v21 = vpack.c.bf16 %v2870_v1, %v2869_v0  ;;  %v13536_v14 = vld [vmem:[#allocation61_spill] sm:$0xff]  ;;  %v2859_v0 = vld [vmem:[#allocation2 + $0x3b0] sm:$0xff] }
 0x275   :  { %v2860_v1 = vld [vmem:[#allocation2 + $0x3b8] sm:$0xff] }
 0x276   :  { %v10901_v10 = vpop.permute.xlu0 %1421  ;;  %3061 = vmatmul.mubr.f32.gmra.mrb[30].mxu0 %v2492_v31 }
 0x277   :  { %13531 = vst [vmem:[#allocation55_spill] sm:$0xff] %v10901_v10  ;;  %v1452_v19 = vmul.f32 %v10901_v10, %v10398_v18  ;;  %v10907_v56 = vpop.permute.xlu1 %1445  ;;  %3235 = vmatprep.mubr.f32.mxu0 %v2525_v8  ;;  %v2517_v8 = vsel %vm2484_vm3, %v1620_v2, %v9052_v62  ;;  %v2857_v10 = vld [vmem:[#allocation2 + $0x3a0] sm:$0xff]  ;;  %v2061_v62 = vmul.f32 %v10377_v49, %v10410_v9  ;;  %v9108_v2 = vunpack.i.h.bf16 %v10774_v55 }
 0x278   :  { %13532 = vst [vmem:[#allocation127_spill] sm:$0xff] %v10907_v56  ;;  %2679 = vrot.lane.b32.xlu0 %v10660_v42, %s9708_s16  ;;  %2001 = vperm.xlu1 %9195, %v10594_v40   ;;  %v2526_v42 = vsel %vm2484_vm3, %v1701_v15, %v9062_v27  ;;  %v13534_v15 = vld [vmem:[#allocation62_spill] sm:$0xff] }
 0x279   :  { %v2501_v31 = vsel %vm2484_vm3, %v1452_v19, %v9097_v47  ;;  %v1621_v47 = vmul.f32 %v10655_v46, %v10410_v9  ;;  %v1981_v27 = vmul.f32 %v13534_v15, %v10410_v9  ;;  %v8591_v19 = vpack.c.bf16 %v2858_v11, %v2857_v10  ;;  %v2841_v11 = vld [vmem:[#allocation2 + $0x320] sm:$0xff]  ;;  %v2842_v10 = vld [vmem:[#allocation2 + $0x328] sm:$0xff] }
 0x27a   :  { %v10920_v37 = vpop.permute.xlu0 %1749  ;;  %3131 = vmatmul.mubr.f32.vlgmr.msra.gmra.mrb[16].mxu1 %v2501_v31  ;;  %3236 = vmatmul.mubr.f32.vlgmr.msra.gmra.mrb[32].mxu0 %v2517_v8  ;;  %v1822_v46 = vmul.f32 %v13536_v14, %v10406_v28  ;;  %v1622_v15 = vmul.f32 %v10672_v57, %v10406_v28  ;;  %v2887_v57 = vld [vmem:[#allocation2 + $0x490] sm:$0xff]  ;;  %v2888_v14 = vld [vmem:[#allocation2 + $0x498] sm:$0xff] }
 0x27b   :  { %13533 = vst [vmem:[#allocation128_spill] sm:$0xff] %v10920_v37  ;;  %v10923_v7 = vpop.permute.xlu1 %9113  ;;  %3240 = vmatprep.mubr.f32.mxu0 %v2526_v42  ;;  %8586 = vmatpush3.bf16.msra.mxu1 %v8585_v50  ;;  %v2518_v31 = vsel %vm2484_vm3, %v1621_v47, %v9067_v61  ;;  %v13535_v50 = vld [vmem:[#allocation59_spill] sm:$0xff]  ;;  %v2527_v42 = vsel %vm2484_vm3, %v1702_v43, %v9102_v53  ;;  %v9051_v61 = vunpack.i.l.bf16 %v10709_v45  ;;  %v9046_v43 = vunpack.i.l.bf16 %v10743_v36 }
 0x27c   :  { %2169 = vperm.xlu0 %9268, %v10556_v51   ;;  %9196 = vset.pattern.permute.xlu1 %v13438_v17  ;;  %v1902_v29 = vmul.f32 %v13535_v50, %v10406_v28  ;;  %v9116_v8 = vunpack.i.h.bf16 %v10923_v7  ;;  %v1703_v53 = vmul.f32 %v10667_v32, %v10443_v25  ;;  %v9202_v45 = vpack.i.bf16 %v1981_v27, %v1822_v46  ;;  %v2843_v27 = vld [vmem:[#allocation2 + $0x330] sm:$0xff] }
 0x27d   :  { %1765 = vperm.xlu1 %9196, %v10638_v48   ;;  %8588 = vmatprep.subr.bf16.mxu1 %v8587_v41  ;;  %v8593_v36 = vpack.c.bf16 %v2842_v10, %v2841_v11  ;;  %v8595_v46 = vpack.c.bf16 %v2860_v1, %v2859_v0  ;;  %v2871_v11 = vld [vmem:[#allocation2 + $0x410] sm:$0xff]  ;;  %v2872_v10 = vld [vmem:[#allocation2 + $0x418] sm:$0xff]  ;;  %v2862_v1 = vld [vmem:[#allocation2 + $0x3c8] sm:$0xff] }
 0x27e   :  { %3241 = vmatmul.mubr.f32.gmra.mrb[34].mxu0 %v2518_v31  ;;  %v9197_v41 = vpack.i.bf16 %v2061_v62, %v1902_v29  ;;  %v1453_v62 = vmul.f32 %v10549_v63, %v10410_v9  ;;  %v2519_v29 = vsel %vm2484_vm3, %v1622_v15, %v9108_v2  ;;  %v2528_v32 = vsel %vm2484_vm3, %v1703_v53, %v9116_v8  ;;  %v2844_v2 = vld [vmem:[#allocation2 + $0x338] sm:$0xff] }
 0x27f   :  { %v10947_v47 = vpop.permute.xlu0 %1505  ;;  %v10949_v49 = vpop.permute.xlu1 %2201  ;;  %3245 = vmatprep.mubr.f32.mxu0 %v2527_v42  ;;  %8590 = vmatpush3.bf16.msra.mxu1 %v8589_v4  ;;  %v9122_v4 = vunpack.i.h.bf16 %v10793_v33  ;;  %v9061_v8 = vunpack.i.l.bf16 %v10752_v3  ;;  %v2890_v3 = vld [vmem:[#allocation2 + $0x4a8] sm:$0xff] }
 0x280   :  { %13537 = vst [vmem:[#allocation129_spill] sm:$0xff] %v10947_v47  ;;  %13538 = vst [vmem:[#allocation130_spill] sm:$0xff] %v10949_v49  ;;  %v1533_v31 = vmul.f32 %v10947_v47, %v10410_v9  ;;  %2681 = vrot.lane.b32.xlu0 %v10690_v16, %s9708_s16  ;;  %8592 = vmatprep.subr.bf16.mxu1 %v8591_v19  ;;  %v13539_v19 = vld [vmem:[#allocation117_spill] sm:$0xff]  ;;  %v9066_v47 = vunpack.i.l.bf16 %v10758_v13  ;;  %v2502_v15 = vsel %vm2484_vm3, %v1453_v62, %v9051_v61  ;;  %v2861_v13 = vld [vmem:[#allocation2 + $0x3c0] sm:$0xff] }
 0x281   :  { %9198 = vrot.lane.b32.xlu1 %v9197_v41, %s9725_s14  ;;  %8618 = vmatpush3.bf16.msra.mxu0 %v8617_v21  ;;  %v1623_v63 = vmul.f32 %v13539_v19, %v10443_v25  ;;  %v8619_v21 = vpack.c.bf16 %v2888_v14, %v2887_v57  ;;  %v2889_v14 = vld [vmem:[#allocation2 + $0x4a0] sm:$0xff]  ;;  %v9107_v62 = vunpack.i.l.bf16 %v10774_v55  ;;  %v2846_v19 = vld [vmem:[#allocation2 + $0x348] sm:$0xff] }
 0x282   :  { %3246 = vmatmul.mubr.f32.gmra.mrb[36].mxu0 %v2519_v29  ;;  %v2510_v42 = vsel %vm2484_vm3, %v1533_v31, %v9046_v43  ;;  %9207 = vset.pattern.permute.xlu1 %v13511_v26  ;;  %v8597_v43 = vpack.c.bf16 %v2844_v2, %v2843_v27  ;;  %v8621_v31 = vpack.c.bf16 %v2872_v10, %v2871_v11  ;;  %v2864_v27 = vld [vmem:[#allocation2 + $0x3d8] sm:$0xff] }
 0x283   :  { %v10969_v50 = vpop.permute.xlu0 %1509  ;;  %3135 = vmatprep.mubr.f32.mxu1 %v2510_v42  ;;  %3250 = vmatprep.mubr.f32.mxu0 %v2528_v32  ;;  %v13542_v32 = vld [vmem:[#allocation105_spill] sm:$0xff]  ;;  %v2520_v57 = vsel %vm2484_vm3, %v1623_v63, %v9122_v4  ;;  %v9101_v63 = vunpack.i.l.bf16 %v10818_v23  ;;  %v8623_v55 = vpack.c.bf16 %v2890_v3, %v2889_v14  ;;  %v2874_v23 = vld [vmem:[#allocation2 + $0x428] sm:$0xff]  ;;  %v2847_v14 = vld [vmem:[#allocation2 + $0x350] sm:$0xff] }
 0x284   :  { %13540 = vst [vmem:[#allocation131_spill] sm:$0xff] %v10969_v50  ;;  %v1534_v41 = vmul.f32 %v10969_v50, %v10406_v28  ;;  %2173 = vperm.xlu0 %9268, %v10736_v30   ;;  %v10976_v0 = vpop.permute.xlu1 %2121  ;;  %3136 = vmatmul.mubr.f32.gmra.mrb[18].mxu1 %v2502_v15  ;;  %v1454_v53 = vmul.f32 %v13542_v32, %v10406_v28  ;;  %v13545_v2 = vld [vmem:[#allocation109_spill] sm:$0xff] }
 0x285   :  { %13541 = vst [vmem:[#allocation132_spill] sm:$0xff] %v10976_v0  ;;  %9203 = vrot.lane.b32.xlu1 %v9202_v45, %s9725_s14  ;;  %8594 = vmatpush3.bf16.msra.mxu1 %v8593_v36  ;;  %v8599_v15 = vpack.c.bf16 %v2862_v1, %v2861_v13  ;;  %v2845_v45 = vld [vmem:[#allocation2 + $0x340] sm:$0xff]  ;;  %v13544_v36 = vmov 12   ;;  %v1455_v11 = vmul.f32 %v13545_v2, %v10443_v25  ;;  %v2892_v13 = vld [vmem:[#allocation2 + $0x4b8] sm:$0xff]  ;;  %v9121_v1 = vunpack.i.l.bf16 %v10793_v33  ;;  %v2866_v33 = vld [vmem:[#allocation2 + $0x3e8] sm:$0xff] }
 0x286   :  { %3251 = vmatmul.mubr.f32.gmra.mrb[38].mxu0 %v2520_v57  ;;  %v2511_v61 = vsel %vm2484_vm3, %v1534_v41, %v9061_v8  ;;  %8596 = vmatprep.subr.bf16.mxu1 %v8595_v46  ;;  %v2503_v42 = vsel %vm2484_vm3, %v1454_v53, %v9066_v47  ;;  %v2863_v46 = vld [vmem:[#allocation2 + $0x3d0] sm:$0xff]  ;;  %v8601_v8 = vpack.c.bf16 %v2846_v19, %v2845_v45  ;;  %v2848_v3 = vld [vmem:[#allocation2 + $0x358] sm:$0xff]  ;;  %v13548_v19 = vld [vmem:[#allocation78_spill] sm:$0xff] }
 0x287   :  { %v10984_v29 = vpop.permute.xlu0 %1513  ;;  %3140 = vmatprep.mubr.f32.mxu1 %v2511_v61  ;;  %8620 = vmatprep.subr.bf16.mxu0 %v8619_v21  ;;  %v2873_v21 = vld [vmem:[#allocation2 + $0x420] sm:$0xff]  ;;  %v2891_v41 = vld [vmem:[#allocation2 + $0x4b0] sm:$0xff]  ;;  %v8603_v57 = vpack.c.bf16 %v2864_v27, %v2863_v46  ;;  %v9115_v61 = vunpack.i.l.bf16 %v10923_v7  ;;  %v2852_v32 = vld [vmem:[#allocation2 + $0x378] sm:$0xff] }
 0x288   :  { %13543 = vst [vmem:[#allocation133_spill] sm:$0xff] %v10984_v29  ;;  %v1535_v4 = vmul.f32 %v10984_v29, %v10443_v25  ;;  %9297 = vset.pattern.permute.xlu0 %v13544_v36  ;;  %3141 = vmatmul.mubr.f32.gmra.mrb[20].mxu1 %v2503_v42  ;;  %v2865_v42 = vld [vmem:[#allocation2 + $0x3e0] sm:$0xff]  ;;  %v8625_v45 = vpack.c.bf16 %v2874_v23, %v2873_v21  ;;  %v2875_v7 = vld [vmem:[#allocation2 + $0x430] sm:$0xff] }
 0x289   :  { %2077 = vperm.xlu0 %9297, %v10690_v16   ;;  %2005 = vperm.xlu1 %9207, %v10638_v48   ;;  %v10995_v47 = vpop.permute.xlu1 %1693  ;;  %v2504_v16 = vsel %vm2484_vm3, %v1455_v11, %v9107_v62  ;;  %v13551_v11 = vld [vmem:[#allocation66_spill] sm:$0xff]  ;;  %v8605_v21 = vpack.c.bf16 %v2848_v3, %v2847_v14  ;;  %v2850_v14 = vld [vmem:[#allocation2 + $0x368] sm:$0xff]  ;;  %v2867_v3 = vld [vmem:[#allocation2 + $0x3f0] sm:$0xff] }
 0x28a   :  { %13546 = vst [vmem:[#allocation134_spill] sm:$0xff] %v10995_v47  ;;  %v2512_v10 = vsel %vm2484_vm3, %v1535_v4, %v9101_v63  ;;  %8598 = vmatpush3.bf16.msra.mxu1 %v8597_v43  ;;  %8622 = vmatpush3.bf16.msra.mxu0 %v8621_v31  ;;  %v1903_v31 = vmul.f32 %v13548_v19, %v10443_v25  ;;  %v13549_v63 = vld [vmem:[#allocation116_spill] sm:$0xff]  ;;  %v2876_v4 = vld [vmem:[#allocation2 + $0x438] sm:$0xff]  ;;  %v2893_v23 = vld [vmem:[#allocation2 + $0x4c0] sm:$0xff] }
 0x28b   :  { %v10999_v53 = vpop.permute.xlu0 %1517  ;;  %3145 = vmatprep.mubr.f32.mxu1 %v2512_v10  ;;  %8600 = vmatprep.subr.bf16.mxu1 %v8599_v15  ;;  %v1456_v62 = vmul.f32 %v13549_v63, %v10447_v52  ;;  %v8627_v15 = vpack.c.bf16 %v2892_v13, %v2891_v41  ;;  %v2894_v10 = vld [vmem:[#allocation2 + $0x4c8] sm:$0xff]  ;;  %v8607_v41 = vpack.c.bf16 %v2866_v33, %v2865_v42  ;;  %v9136_v42 = vunpack.i.l.bf16 %v10861_v5  ;;  %v13555_v33 = vld [vmem:[#allocation82_spill] sm:$0xff] }
 0x28c   :  { %13547 = vst [vmem:[#allocation135_spill] sm:$0xff] %v10999_v53  ;;  %v1536_v43 = vmul.f32 %v10999_v53, %v10447_v52  ;;  %3146 = vmatmul.mubr.f32.gmra.mrb[22].mxu1 %v2504_v16  ;;  %8624 = vmatprep.subr.bf16.mxu0 %v8623_v55  ;;  %v2062_v55 = vmul.f32 %v13551_v11, %v10406_v28  ;;  %v13553_v16 = vld [vmem:[#allocation68_spill] sm:$0xff] }
 0x28d   :  { %2081 = vperm.xlu0 %9297, %v10594_v40   ;;  %9208 = vset.pattern.permute.xlu1 %v13438_v17  ;;  %v2505_v40 = vsel %vm2484_vm3, %v1456_v62, %v9121_v1  ;;  %v1823_v63 = vmul.f32 %v13553_v16, %v10443_v25  ;;  %v13554_v1 = vld [vmem:[#allocation118_spill] sm:$0xff]  ;;  %v1982_v62 = vmul.f32 %v13555_v33, %v10406_v28 }
 0x28e   :  { %1769 = vperm.xlu1 %9208, %v10556_v51   ;;  %v11012_v46 = vpop.permute.xlu1 %1449  ;;  %v2513_v27 = vsel %vm2484_vm3, %v1536_v43, %v9115_v61  ;;  %8602 = vmatpush3.bf16.msra.mxu1 %v8601_v8  ;;  %v9209_v51 = vpack.i.bf16 %v2062_v55, %v1903_v31  ;;  %v8629_v61 = vpack.c.bf16 %v2876_v4, %v2875_v7  ;;  %v2849_v8 = vld [vmem:[#allocation2 + $0x360] sm:$0xff]  ;;  %v9137_v4 = vunpack.i.h.bf16 %v10861_v5 }
 0x28f   :  { %13550 = vst [vmem:[#allocation78_spill] sm:$0xff] %v11012_v46  ;;  %3150 = vmatprep.mubr.f32.mxu1 %v2513_v27  ;;  %8604 = vmatprep.subr.bf16.mxu1 %v8603_v57  ;;  %v11018_v13 = vpop.permute.xlu0 %1521  ;;  %v8631_v43 = vpack.c.bf16 %v2894_v10, %v2893_v23  ;;  %v1704_v57 = vmul.f32 %v13554_v1, %v10447_v52  ;;  %v2877_v7 = vld [vmem:[#allocation2 + $0x440] sm:$0xff]  ;;  %v2895_v23 = vld [vmem:[#allocation2 + $0x4d0] sm:$0xff]  ;;  %v2896_v10 = vld [vmem:[#allocation2 + $0x4d8] sm:$0xff] }
 0x290   :  { %13552 = vst [vmem:[#allocation66_spill] sm:$0xff] %v11018_v13  ;;  %3151 = vmatmul.mubr.f32.gmra.mrb[24].mxu1 %v2505_v40  ;;  %8626 = vmatpush3.bf16.msra.mxu0 %v8625_v45  ;;  %v2868_v45 = vld [vmem:[#allocation2 + $0x3f8] sm:$0xff]  ;;  %v13556_v40 = vld [vmem:[#allocation119_spill] sm:$0xff]  ;;  %v9214_v53 = vpack.i.bf16 %v1982_v62, %v1823_v63  ;;  %v8609_v2 = vpack.c.bf16 %v2850_v14, %v2849_v8  ;;  %v2879_v63 = vld [vmem:[#allocation2 + $0x450] sm:$0xff] }
 0x291   :  { %2085 = vperm.xlu0 %9297, %v10638_v48   ;;  %8628 = vmatprep.subr.bf16.mxu0 %v8627_v15  ;;  %v2878_v48 = vld [vmem:[#allocation2 + $0x448] sm:$0xff]  ;;  %v1537_v15 = vmul.f32 %v11018_v13, %v10464_v12  ;;  %v8611_v29 = vpack.c.bf16 %v2868_v45, %v2867_v3  ;;  %v2880_v8 = vld [vmem:[#allocation2 + $0x458] sm:$0xff]  ;;  %v2897_v14 = vld [vmem:[#allocation2 + $0x4e0] sm:$0xff] }
 0x292   :  { %9210 = vrot.lane.b32.xlu1 %v9209_v51, %s9725_s14  ;;  %v9129_v31 = vpop.permute.xlu1 %9128  ;;  %8606 = vmatpush3.bf16.msra.mxu1 %v8605_v21  ;;  %v1624_v51 = vmul.f32 %v13556_v40, %v10447_v52  ;;  %v13557_v21 = vld [vmem:[#allocation120_spill] sm:$0xff]  ;;  %v2898_v3 = vld [vmem:[#allocation2 + $0x4e8] sm:$0xff] }
 0x293   :  { %v9131_v27 = vunpack.i.h.bf16 %v9129_v31  ;;  %v9130_v55 = vunpack.i.l.bf16 %v9129_v31  ;;  %9219 = vset.pattern.permute.xlu1 %v13511_v26  ;;  %8608 = vmatprep.subr.bf16.mxu1 %v8607_v41  ;;  %v1457_v1 = vmul.f32 %v13557_v21, %v10464_v12  ;;  %v2851_v31 = vld [vmem:[#allocation2 + $0x370] sm:$0xff]  ;;  %v8633_v41 = vpack.c.bf16 %v2878_v48, %v2877_v7  ;;  %v2882_v62 = vld [vmem:[#allocation2 + $0x468] sm:$0xff]  ;;  %v13561_v48 = vld [vmem:[#allocation73_spill] sm:$0xff] }
 0x294   :  { %8630 = vmatpush3.bf16.msra.mxu0 %v8629_v61  ;;  %v8635_v21 = vpack.c.bf16 %v2896_v10, %v2895_v23  ;;  %v2521_v61 = vsel %vm2484_vm3, %v1624_v51, %v9137_v4  ;;  %v1904_v4 = vmul.f32 %v13561_v48, %v10447_v52  ;;  %v2883_v23 = vld [vmem:[#allocation2 + $0x470] sm:$0xff]  ;;  %v2884_v10 = vld [vmem:[#allocation2 + $0x478] sm:$0xff] }
 0x295   :  { %v2514_v5 = vsel %vm2484_vm3, %v1537_v15, %v9130_v55  ;;  %v2529_v13 = vsel %vm2484_vm3, %v1704_v57, %v9131_v27  ;;  %8632 = vmatprep.subr.bf16.mxu0 %v8631_v43  ;;  %v2506_v40 = vsel %vm2484_vm3, %v1457_v1, %v9136_v42  ;;  %v8613_v43 = vpack.c.bf16 %v2852_v32, %v2851_v31  ;;  %v11044_v57 = vpop.permute.xlu0 %1525  ;;  %v11049_v1 = vld [vmem:[%s13086_s3 + $0x28] sm:$0xff]  ;;  %v2881_v42 = vld [vmem:[#allocation2 + $0x460] sm:$0xff]  ;;  %v2900_v32 = vld [vmem:[#allocation2 + $0x4f8] sm:$0xff] }
 0x296   :  { %9215 = vrot.lane.b32.xlu1 %v9214_v53, %s9725_s14  ;;  %v11040_v50 = vpop.permute.xlu1 %2205  ;;  %3155 = vmatprep.mubr.f32.mxu1 %v2514_v5  ;;  %v8637_v53 = vpack.c.bf16 %v2880_v8, %v2879_v63  ;;  %13559 = vst [vmem:[#allocation82_spill] sm:$0xff] %v11044_v57  ;;  %v8641_v15 = vpack.c.bf16 %v2882_v62, %v2881_v42 }
 0x297   :  { %13558 = vst [vmem:[#allocation68_spill] sm:$0xff] %v11040_v50  ;;  %3255 = vmatprep.mubr.f32.mxu0 %v2529_v13  ;;  %3156 = vmatmul.mubr.f32.gmra.mrb[26].mxu1 %v2506_v40  ;;  %v8639_v13 = vpack.c.bf16 %v2898_v3, %v2897_v14  ;;  %v13562_v40 = vld [vmem:[#allocation89_spill] sm:$0xff]  ;;  %v8645_v8 = vpack.c.bf16 %v2884_v10, %v2883_v23 }
 0x298   :  { %3256 = vmatmul.mubr.f32.gmra.mrb[40].mxu0 %v2521_v61  ;;  %8610 = vmatpush3.bf16.msra.mxu1 %v8609_v2  ;;  %v2899_v2 = vld [vmem:[#allocation2 + $0x4f0] sm:$0xff]  ;;  %v2063_v51 = vmul.f32 %v13562_v40, %v10443_v25  ;;  %v13566_v61 = vld [vmem:[#allocation77_spill] sm:$0xff] }
 0x299   :  { %8612 = vmatprep.subr.bf16.mxu1 %v8611_v29  ;;  %8634 = vmatpush3.bf16.msra.mxu0 %v8633_v41  ;;  %v2224_v29 = vmul.f32 %v11040_v50, %v10447_v52  ;;  %v8643_v55 = vpack.c.bf16 %v2900_v32, %v2899_v2  ;;  %v13565_v41 = vld [vmem:[#allocation75_spill] sm:$0xff]  ;;  %v1983_v14 = vmul.f32 %v13566_v61, %v10443_v25  ;;  %v11077_v3 = vld [vmem:[%s13086_s3 + $0x38] sm:$0xff] }
 0x29a   :  { %2009 = vperm.xlu1 %9219, %v11049_v1   ;;  %8636 = vmatprep.subr.bf16.mxu0 %v8635_v21  ;;  %v11064_v21 = vpop.permute.xlu0 %1529  ;;  %v9221_v31 = vpack.i.bf16 %v2063_v51, %v1904_v4  ;;  %v1824_v63 = vmul.f32 %v13565_v41, %v10447_v52  ;;  %v1705_v32 = vmul.f32 %v10889_v34, %v10464_v12  ;;  %v13569_v51 = vld [vmem:[#allocation80_spill] sm:$0xff] }
 0x29b   :  { %v11052_v45 = vpop.permute.xlu1 %2125  ;;  %13563 = vst [vmem:[#allocation73_spill] sm:$0xff] %v11064_v21  ;;  %v1625_v4 = vmul.f32 %v10782_v35, %v10464_v12 }
 0x29c   :  { %13560 = vst [vmem:[#allocation136_spill] sm:$0xff] %v11052_v45  ;;  %v2144_v7 = vmul.f32 %v11052_v45, %v10447_v52  ;;  %8614 = vmatpush3.bf16.msra.mxu1 %v8613_v43 }
 0x29d   :  { %8638 = vmatpush3.bf16.msra.mxu0 %v8637_v53  ;;  %v9226_v53 = vpack.i.bf16 %v1983_v14, %v1824_v63 }
 0x29e   :  { %v9298_v27 = vpack.i.bf16 %v2144_v7, %v2224_v29  ;;  %9220 = vset.pattern.permute.xlu1 %v13438_v17  ;;  %8640 = vmatprep.subr.bf16.mxu0 %v8639_v13  ;;  %v9151_v13 = vpop.permute.xlu0 %9150 }
 0x29f   :  { %1773 = vperm.xlu1 %9220, %v10736_v30   ;;  %v9153_v42 = vunpack.i.h.bf16 %v9151_v13  ;;  %v9152_v62 = vunpack.i.l.bf16 %v9151_v13 }
 0x2a0   :  { %9299 = vrot.lane.b32.xlu0 %v9298_v27, %s9725_s14  ;;  %v11067_v5 = vpop.permute.xlu1 %1829 }
 0x2a1   :  { %13564 = vst [vmem:[#allocation89_spill] sm:$0xff] %v11067_v5  ;;  %8642 = vmatpush3.bf16.msra.mxu0 %v8641_v15  ;;  %v1458_v15 = vmul.f32 %v10907_v56, %v10476_v6  ;;  %v2522_v10 = vsel %vm2484_vm3, %v1625_v4, %v9153_v42  ;;  %v13573_v42 = vld [vmem:[#allocation85_spill] sm:$0xff]  ;;  %v1459_v56 = vmul.f32 %v11012_v46, %v10488_v22  ;;  %v13583_v46 = vld [vmem:[#allocation92_spill] sm:$0xff] }
 0x2a2   :  { %8644 = vmatprep.subr.bf16.mxu0 %v8643_v55 }
 0x2a3   :  { %9222 = vrot.lane.b32.xlu1 %v9221_v31, %s9725_s14  ;;  %v2507_v23 = vsel %vm2484_vm3, %v1458_v15, %v9152_v62  ;;  %v1905_v31 = vmul.f32 %v13569_v51, %v10464_v12  ;;  %v1984_v62 = vmul.f32 %v13573_v42, %v10447_v52  ;;  %v11124_v15 = vld [vmem:[%s13086_s3] sm:$0xff] }
 0x2a4   :  { %2097 = vperm.xlu0 %9297, %v11077_v3   ;;  %9232 = vset.pattern.permute.xlu1 %v13511_v26  ;;  %v1538_v26 = vmul.f32 %v11044_v57, %v10476_v6 }
 0x2a5   :  { %v11081_v43 = vpop.permute.xlu1 %1617  ;;  %8646 = vmatpush3.bf16.msra.mxu0 %v8645_v8 }
 0x2a6   :  { %13567 = vst [vmem:[#allocation75_spill] sm:$0xff] %v11081_v43  ;;  %v1627_v42 = vmul.f32 %v11081_v43, %v10488_v22 }
 0x2a7   :  { %9227 = vrot.lane.b32.xlu1 %v9226_v53, %s9725_s14  ;;  %v13572_v53 = vld [vmem:[#allocation83_spill] sm:$0xff] }
 0x2a8   :  { %2687 = vrot.lane.b32.xlu0 %v11049_v1, %s9708_s16  ;;  %v1825_v13 = vmul.f32 %v13572_v53, %v10464_v12 }
 0x2a9   :  { %v9145_v2 = vpop.permute.xlu1 %9144  ;;  %9559 = vset.pattern.permute.xlu0 %v13444_v58 }
 0x2aa   :  { %v9147_v29 = vunpack.i.h.bf16 %v9145_v2  ;;  %v9146_v7 = vunpack.i.l.bf16 %v9145_v2  ;;  %v13574_v2 = vmov 14  }
 0x2ab   :  { %2013 = vperm.xlu1 %9232, %v10736_v30   ;;  %v13570_v30 = vld [vmem:[#allocation81_spill] sm:$0xff] }
 0x2ac   :  { %v2515_v27 = vsel %vm2484_vm3, %v1538_v26, %v9146_v7  ;;  %v2530_v58 = vsel %vm2484_vm3, %v1705_v32, %v9147_v29  ;;  %v2064_v63 = vmul.f32 %v13570_v30, %v10447_v52  ;;  %v9239_v32 = vpack.i.bf16 %v1984_v62, %v1825_v13  ;;  %v2917_v29 = vld [vmem:[#allocation2 + $0x580] sm:$0xff]  ;;  %v2918_v7 = vld [vmem:[#allocation2 + $0x588] sm:$0xff] }
 0x2ad   :  { %v11098_v55 = vpop.permute.xlu1 %2209  ;;  %3160 = vmatprep.mubr.f32.mxu1 %v2515_v27  ;;  %3260 = vmatprep.mubr.f32.mxu0 %v2530_v58  ;;  %v8647_v4 = vpack.c.bf16 %v2918_v7, %v2917_v29  ;;  %v13580_v62 = vld [vmem:[#allocation91_spill] sm:$0xff]  ;;  %v1539_v29 = vmul.f32 %v11064_v21, %v10488_v22 }
 0x2ae   :  { %13568 = vst [vmem:[#allocation77_spill] sm:$0xff] %v11098_v55  ;;  %3161 = vmatmul.mubr.f32.gmra.mrb[28].mxu1 %v2507_v23  ;;  %3261 = vmatmul.mubr.f32.gmra.mrb[42].mxu0 %v2522_v10  ;;  %v9234_v14 = vpack.i.bf16 %v2064_v63, %v1905_v31  ;;  %v13578_v23 = vld [vmem:[#allocation88_spill] sm:$0xff]  ;;  %v1706_v31 = vmul.f32 %v10995_v47, %v10476_v6  ;;  %v13581_v47 = vld [vmem:[#allocation90_spill] sm:$0xff] }
 0x2af   :  { %9233 = vset.pattern.permute.xlu1 %v13438_v17  ;;  %v11116_v17 = vpop.permute.xlu0 %1833  ;;  %8648 = vmatprep.subr.bf16.mxu1 %v8647_v4  ;;  %v1906_v10 = vmul.f32 %v13578_v23, %v10476_v6  ;;  %v1826_v34 = vmul.f32 %v13581_v47, %v10476_v6  ;;  %v1985_v47 = vmul.f32 %v13583_v46, %v10464_v12  ;;  %v2920_v23 = vld [vmem:[#allocation2 + $0x598] sm:$0xff] }
 0x2b0   :  { %1777 = vperm.xlu1 %9233, %v11077_v3   ;;  %13575 = vst [vmem:[#allocation138_spill] sm:$0xff] %v11116_v17 }
 0x2b2   :  { %v11108_v8 = vpop.permute.xlu1 %2129 }
 0x2b3   :  { %13571 = vst [vmem:[#allocation137_spill] sm:$0xff] %v11108_v8  ;;  %v9165_v58 = vpop.permute.xlu0 %9164 }
 0x2b4   :  { %9235 = vrot.lane.b32.xlu1 %v9234_v14, %s9725_s14  ;;  %v9166_v63 = vunpack.i.l.bf16 %v9165_v58  ;;  %v13579_v14 = vmov 8   ;;  %v9167_v7 = vunpack.i.h.bf16 %v9165_v58 }
 0x2b5   :  { %9245 = vset.pattern.permute.xlu1 %v13574_v2 }
 0x2b6   :  { %v2508_v58 = vsel %vm2484_vm3, %v1459_v56, %v9166_v63 }
 0x2b7   :  { %v11118_v26 = vpop.permute.xlu1 %1989 }
 0x2b8   :  { %13576 = vst [vmem:[#allocation139_spill] sm:$0xff] %v11118_v26  ;;  %9240 = vrot.lane.b32.xlu1 %v9239_v32, %s9725_s14  ;;  %v2065_v32 = vmul.f32 %v13580_v62, %v10464_v12 }
 0x2ba   :  { %v9248_v57 = vpack.i.bf16 %v2065_v32, %v1906_v10 }
 0x2bc   :  { %2149 = vperm.xlu1 %9245, %v11124_v15   ;;  %v11127_v27 = vpop.permute.xlu1 %1753 }
 0x2bd   :  { %13577 = vst [vmem:[#allocation140_spill] sm:$0xff] %v11127_v27 }
 0x2c0   :  { %9246 = vset.pattern.permute.xlu1 %v13579_v14  ;;  %v9159_v13 = vpop.permute.xlu1 %9158  ;;  %v1626_v14 = vmul.f32 %v10799_v39, %v10476_v6  ;;  %v1707_v39 = vmul.f32 %v10884_v24, %v10488_v22 }
 0x2c1   :  { %1937 = vperm.xlu1 %9246, %v11077_v3   ;;  %v9161_v4 = vunpack.i.h.bf16 %v9159_v13  ;;  %v9160_v35 = vunpack.i.l.bf16 %v9159_v13 }
 0x2c2   :  { %v2523_v13 = vsel %vm2484_vm3, %v1626_v14, %v9167_v7  ;;  %v13589_v7 = vld [vmem:[#allocation9_spill] sm:$0xff]  ;;  %v13590_v14 = vld [vmem:[#allocation102_spill] sm:$0xff] }
 0x2c3   :  { %v2516_v50 = vsel %vm2484_vm3, %v1539_v29, %v9160_v35  ;;  %v2531_v45 = vsel %vm2484_vm3, %v1706_v31, %v9161_v4  ;;  %v13584_v35 = vld [vmem:[#allocation97_spill] sm:$0xff]  ;;  %v11157_v31 = vpop.permute.xlu0 %1837  ;;  %v2067_v4 = vmul.f32 %v13589_v7, %v10488_v22 }
 0x2c4   :  { %v11147_v21 = vpop.permute.xlu1 %2213  ;;  %3165 = vmatprep.mubr.f32.mxu1 %v2516_v50  ;;  %3265 = vmatprep.mubr.f32.mxu0 %v2531_v45  ;;  %v1986_v10 = vmul.f32 %v13584_v35, %v10476_v6  ;;  %13585 = vst [vmem:[#allocation142_spill] sm:$0xff] %v11157_v31  ;;  %v9253_v50 = vpack.i.bf16 %v1985_v47, %v1826_v34  ;;  %v13586_v45 = vld [vmem:[#allocation96_spill] sm:$0xff]  ;;  %v9627_v34 = vld [vmem:[%s13086_s3 + $0x8] sm:$0xff] }
 0x2c5   :  { %13582 = vst [vmem:[#allocation141_spill] sm:$0xff] %v11147_v21  ;;  %9249 = vrot.lane.b32.xlu1 %v9248_v57, %s9725_s14  ;;  %3166 = vmatmul.mubr.f32.gmra.mrb[30].mxu1 %v2508_v58  ;;  %v1827_v56 = vmul.f32 %v13586_v45, %v10488_v22  ;;  %v2220_v58 = vmul.f32 %v13590_v14, %v10398_v18 }
 0x2c6   :  { %3266 = vmatmul.mubr.f32.gmra.mrb[44].mxu0 %v2523_v13  ;;  %9269 = vset.pattern.permute.xlu1 %v13544_v36  ;;  %v1780_v14 = vmul.f32 %v10920_v37, %v10398_v18 }
 0x2c7   :  { %v9263_v63 = vpack.i.bf16 %v1986_v10, %v1827_v56  ;;  %v9179_v32 = vpop.permute.xlu0 %9178  ;;  %v9270_v47 = vpack.i.bf16 %v2220_v58, %v2067_v4  ;;  %v2902_v56 = vld [vmem:[#allocation2 + $0x508] sm:$0xff]  ;;  %v1860_v58 = vmul.f32 %v11067_v5, %v10398_v18 }
 0x2c8   :  { %v9181_v7 = vunpack.i.h.bf16 %v9179_v32  ;;  %v9180_v45 = vunpack.i.l.bf16 %v9179_v32  ;;  %v2934_v4 = vld [vmem:[#allocation2 + $0x608] sm:$0xff] }
 0x2c9   :  { %9254 = vrot.lane.b32.xlu1 %v9253_v50, %s9725_s14  ;;  %v11162_v57 = vpop.permute.xlu1 %2133  ;;  %v2901_v50 = vld [vmem:[#allocation2 + $0x500] sm:$0xff] }
 0x2ca   :  { %13587 = vst [vmem:[#allocation143_spill] sm:$0xff] %v11162_v57  ;;  %v8649_v32 = vpack.c.bf16 %v2902_v56, %v2901_v50  ;;  %v2524_v43 = vsel %vm2484_vm3, %v1627_v42, %v9180_v45  ;;  %v2921_v50 = vld [vmem:[#allocation2 + $0x5a0] sm:$0xff] }
 0x2cb   :  { %v11174_v13 = vpop.permute.xlu0 %1841  ;;  %v2905_v45 = vld [vmem:[#allocation2 + $0x520] sm:$0xff] }
 0x2cc   :  { %13591 = vst [vmem:[#allocation145_spill] sm:$0xff] %v11174_v13 }
 0x2cd   :  { %9264 = vrot.lane.b32.xlu1 %v9263_v63, %s9725_s14  ;;  %v2919_v63 = vld [vmem:[#allocation2 + $0x590] sm:$0xff] }
 0x2ce   :  { %v11165_v29 = vpop.permute.xlu1 %1993  ;;  %v8651_v30 = vpack.c.bf16 %v2920_v23, %v2919_v63  ;;  %v2924_v63 = vld [vmem:[#allocation2 + $0x5b8] sm:$0xff] }
 0x2cf   :  { %13588 = vst [vmem:[#allocation144_spill] sm:$0xff] %v11165_v29  ;;  %v11190_v24 = vpop.permute.xlu0 %1845 }
 0x2d0   :  { %13593 = vst [vmem:[#allocation147_spill] sm:$0xff] %v11190_v24 }
 0x2d1   :  { %2073 = vperm.xlu1 %9269, %v9627_v34   ;;  %v2933_v34 = vld [vmem:[#allocation2 + $0x600] sm:$0xff] }
 0x2d3   :  { %v11176_v10 = vpop.permute.xlu1 %1757  ;;  %v11208_v42 = vpop.permute.xlu0 %1849 }
 0x2d4   :  { %13592 = vst [vmem:[#allocation146_spill] sm:$0xff] %v11176_v10  ;;  %13597 = vst [vmem:[#allocation149_spill] sm:$0xff] %v11208_v42 }
 0x2d5   :  { %9271 = vrot.lane.b32.xlu1 %v9270_v47, %s9725_s14  ;;  %v11184_v47 = vpack.c.bf16 %v2934_v4, %v2933_v34  ;;  %v2904_v34 = vld [vmem:[#allocation2 + $0x518] sm:$0xff]  ;;  %v13594_v4 = vld [vmem:[#allocation112_spill] sm:$0xff] }
 0x2d6   :  { %9280 = vset.pattern.permute.xlu1 %v13574_v2  ;;  %v2141_v37 = vmul.f32 %v13594_v4, %v10410_v9 }
 0x2d7   :  { %v9173_v35 = vpop.permute.xlu1 %9172  ;;  %8680 = vmatprep.subr.bf16.mxu0 %v11184_v47 }
 0x2d8   :  { %v9175_v46 = vunpack.i.h.bf16 %v9173_v35  ;;  %v9174_v62 = vunpack.i.l.bf16 %v9173_v35  ;;  %v2903_v35 = vld [vmem:[#allocation2 + $0x510] sm:$0xff] }
 0x2d9   :  { %2677 = vrot.lane.b32.xlu1 %v11124_v15, %s9708_s16  ;;  %v2533_v15 = vsel %vm2484_vm3, %v1780_v14, %v9181_v7  ;;  %v8653_v56 = vpack.c.bf16 %v2904_v34, %v2903_v35  ;;  %v2906_v7 = vld [vmem:[#allocation2 + $0x528] sm:$0xff]  ;;  %v2907_v34 = vld [vmem:[#allocation2 + $0x530] sm:$0xff] }
 0x2da   :  { %v2532_v53 = vsel %vm2484_vm3, %v1707_v39, %v9174_v62  ;;  %v2541_v5 = vsel %vm2484_vm3, %v1860_v58, %v9175_v46  ;;  %v2922_v39 = vld [vmem:[#allocation2 + $0x5a8] sm:$0xff]  ;;  %v13596_v46 = vld [vmem:[#allocation110_spill] sm:$0xff]  ;;  %v9628_v62 = vld [vmem:[%s13086_s3 + $0x10] sm:$0xff] }
 0x2db   :  { %v11199_v51 = vpop.permute.xlu1 %2217  ;;  %3270 = vmatprep.mubr.f32.mxu0 %v2532_v53  ;;  %3340 = vmatprep.mubr.f32.mxu1 %v2541_v5  ;;  %v2221_v23 = vmul.f32 %v13596_v46, %v10410_v9  ;;  %v8655_v5 = vpack.c.bf16 %v2922_v39, %v2921_v50  ;;  %v2925_v50 = vld [vmem:[#allocation2 + $0x5c0] sm:$0xff]  ;;  %v2926_v39 = vld [vmem:[#allocation2 + $0x5c8] sm:$0xff] }
 0x2dc   :  { %13595 = vst [vmem:[#allocation148_spill] sm:$0xff] %v11199_v51  ;;  %3271 = vmatmul.mubr.f32.gmra.mrb[46].mxu0 %v2524_v43  ;;  %3341 = vmatmul.mubr.f32.vlgmr.msra.gmra.mrb[32].mxu1 %v2533_v15  ;;  %v2923_v43 = vld [vmem:[#allocation2 + $0x5b0] sm:$0xff]  ;;  %v2227_v58 = vmul.f32 %v11199_v51, %v10488_v22  ;;  %v2908_v15 = vld [vmem:[#allocation2 + $0x538] sm:$0xff] }
 0x2dd   :  { %2157 = vperm.xlu1 %9280, %v9628_v62   ;;  %8650 = vmatpush3.bf16.msra.mxu1 %v8649_v32  ;;  %v9281_v53 = vpack.i.bf16 %v2141_v37, %v2221_v23  ;;  %v8659_v35 = vpack.c.bf16 %v2924_v63, %v2923_v43  ;;  %v11217_v23 = vpop.permute.xlu0 %1853  ;;  %v11222_v62 = vld [vmem:[%s13086_s3 + $0x18] sm:$0xff]  ;;  %v2910_v43 = vld [vmem:[#allocation2 + $0x548] sm:$0xff]  ;;  %v2927_v63 = vld [vmem:[#allocation2 + $0x5d0] sm:$0xff] }
 0x2de   :  { %8652 = vmatprep.subr.bf16.mxu1 %v8651_v30  ;;  %v8657_v30 = vpack.c.bf16 %v2906_v7, %v2905_v45  ;;  %13599 = vst [vmem:[#allocation151_spill] sm:$0xff] %v11217_v23  ;;  %v8663_v45 = vpack.c.bf16 %v2926_v39, %v2925_v50  ;;  %v2909_v7 = vld [vmem:[#allocation2 + $0x540] sm:$0xff]  ;;  %v2911_v39 = vld [vmem:[#allocation2 + $0x550] sm:$0xff]  ;;  %v2912_v51 = vld [vmem:[#allocation2 + $0x558] sm:$0xff] }
 0x2e0   :  { %v11210_v14 = vpop.permute.xlu1 %2137 }
 0x2e1   :  { %13598 = vst [vmem:[#allocation150_spill] sm:$0xff] %v11210_v14  ;;  %9282 = vrot.lane.b32.xlu1 %v9281_v53, %s9725_s14  ;;  %v2147_v32 = vmul.f32 %v11210_v14, %v10488_v22  ;;  %8654 = vmatpush3.bf16.msra.mxu1 %v8653_v56  ;;  %v2142_v53 = vmul.f32 %v10863_v44, %v10406_v28  ;;  %v2929_v14 = vld [vmem:[#allocation2 + $0x5e0] sm:$0xff] }
 0x2e2   :  { %8656 = vmatprep.subr.bf16.mxu1 %v8655_v5  ;;  %v8661_v5 = vpack.c.bf16 %v2908_v15, %v2907_v34  ;;  %v11240_v34 = vpop.permute.xlu0 %1857  ;;  %v8669_v44 = vpack.c.bf16 %v2912_v51, %v2911_v39  ;;  %v2932_v39 = vld [vmem:[#allocation2 + $0x5f8] sm:$0xff] }
 0x2e3   :  { %v9314_v37 = vpack.i.bf16 %v2147_v32, %v2227_v58  ;;  %v2928_v58 = vld [vmem:[#allocation2 + $0x5d8] sm:$0xff]  ;;  %v2222_v32 = vmul.f32 %v10841_v38, %v10406_v28  ;;  %13601 = vst [vmem:[#allocation153_spill] sm:$0xff] %v11240_v34  ;;  %v2930_v38 = vld [vmem:[#allocation2 + $0x5e8] sm:$0xff] }
 0x2e4   :  { %v8667_v50 = vpack.c.bf16 %v2928_v58, %v2927_v63  ;;  %v2020_v63 = vmul.f32 %v11118_v26, %v10398_v18  ;;  %v2916_v26 = vld [vmem:[#allocation2 + $0x578] sm:$0xff] }
 0x2e5   :  { %2161 = vperm.xlu1 %9280, %v11222_v62   ;;  %9315 = vrot.lane.b32.xlu0 %v9314_v37, %s9725_s14  ;;  %v11235_v37 = vld [vmem:[%s13086_s3 + $0x20] sm:$0xff] }
 0x2e6   :  { %v11226_v56 = vpop.permute.xlu1 %1997  ;;  %8658 = vmatpush3.bf16.msra.mxu1 %v8657_v30  ;;  %v8665_v30 = vpack.c.bf16 %v2910_v43, %v2909_v7  ;;  %v2914_v43 = vld [vmem:[#allocation2 + $0x568] sm:$0xff]  ;;  %v11254_v51 = vpop.permute.xlu0 %1909 }
 0x2e7   :  { %13600 = vst [vmem:[#allocation152_spill] sm:$0xff] %v11226_v56  ;;  %8660 = vmatprep.subr.bf16.mxu1 %v8659_v35  ;;  %v9286_v35 = vpack.i.bf16 %v2142_v53, %v2222_v32  ;;  %v1861_v53 = vmul.f32 %v11116_v17, %v10410_v9  ;;  %13603 = vst [vmem:[#allocation155_spill] sm:$0xff] %v11254_v51 }
 0x2e9   :  { %2165 = vperm.xlu1 %9280, %v11235_v37   ;;  %2691 = vrot.lane.b32.xlu0 %v11077_v3, %s9708_s16 }
 0x2ea   :  { %8662 = vmatpush3.bf16.msra.mxu1 %v8661_v5  ;;  %v2143_v5 = vmul.f32 %v10976_v0, %v10443_v25 }
 0x2eb   :  { %v11242_v15 = vpop.permute.xlu1 %1761  ;;  %8664 = vmatprep.subr.bf16.mxu1 %v8663_v45  ;;  %v2913_v45 = vld [vmem:[#allocation2 + $0x560] sm:$0xff] }
 0x2ec   :  { %13602 = vst [vmem:[#allocation154_spill] sm:$0xff] %v11242_v15  ;;  %v8673_v0 = vpack.c.bf16 %v2914_v43, %v2913_v45  ;;  %v2935_v43 = vld [vmem:[#allocation2 + $0x610] sm:$0xff] }
 0x2ed   :  { %9287 = vrot.lane.b32.xlu1 %v9286_v35, %s9725_s14  ;;  %v8671_v35 = vpack.c.bf16 %v2930_v38, %v2929_v14  ;;  %v2915_v14 = vld [vmem:[#allocation2 + $0x570] sm:$0xff] }
 0x2ee   :  { %9291 = vset.pattern.permute.xlu1 %v13544_v36  ;;  %8666 = vmatpush3.bf16.msra.mxu1 %v8665_v30  ;;  %v2223_v36 = vmul.f32 %v10949_v49, %v10443_v25  ;;  %v2931_v30 = vld [vmem:[#allocation2 + $0x5f0] sm:$0xff]  ;;  %v8677_v45 = vpack.c.bf16 %v2916_v26, %v2915_v14 }
 0x2ef   :  { %v9187_v7 = vpop.permute.xlu1 %9186  ;;  %8668 = vmatprep.subr.bf16.mxu1 %v8667_v50 }
 0x2f0   :  { %v9189_v58 = vunpack.i.h.bf16 %v9187_v7  ;;  %v9188_v32 = vunpack.i.l.bf16 %v9187_v7  ;;  %v9292_v46 = vpack.i.bf16 %v2143_v5, %v2223_v36  ;;  %v1781_v7 = vmul.f32 %v11127_v27, %v10410_v9  ;;  %v5624_v27 = vld [vmem:[#allocation4 + $0x140] sm:$0xff] }
 0x2f1   :  { %2089 = vperm.xlu1 %9291, %v11049_v1   ;;  %v1940_v1 = vmul.f32 %v11254_v51, %v10398_v18 }
 0x2f2   :  { %v2542_v17 = vsel %vm2484_vm3, %v1861_v53, %v9188_v32  ;;  %v2709_v50 = vsel %vm2484_vm3, %v2020_v63, %v9189_v58  ;;  %8670 = vmatpush3.bf16.msra.mxu1 %v8669_v44  ;;  %v8675_v53 = vpack.c.bf16 %v2932_v39, %v2931_v30  ;;  %v2225_v32 = vmul.f32 %v11098_v55, %v10464_v12  ;;  %v13706_v55 = vld [vmem:[#allocation18_spill] sm:$0xff] }
 0x2f3   :  { %v9192_v38 = vpop.permute.xlu1 %9191  ;;  %3345 = vmatprep.mubr.f32.mxu1 %v2542_v17  ;;  %3445 = vmatprep.mubr.f32.mxu0 %v2709_v50 }
 0x2f4   :  { %v9194_v49 = vunpack.i.h.bf16 %v9192_v38  ;;  %v9193_v4 = vunpack.i.l.bf16 %v9192_v38  ;;  %8672 = vmatprep.subr.bf16.mxu1 %v8671_v35  ;;  %v11287_v35 = vpop.permute.xlu0 %1913 }
 0x2f5   :  { %9293 = vrot.lane.b32.xlu1 %v9292_v46, %s9725_s14  ;;  %v13605_v46 = vmov 0.0   ;;  %13607 = vst [vmem:[#allocation158_spill] sm:$0xff] %v11287_v35 }
 0x2f6   :  { %v2534_v44 = vsel %vm2484_vm3, %v1781_v7, %v9193_v4  ;;  %v2701_v5 = vsel %vm2484_vm3, %v1940_v1, %v9194_v49  ;;  %8674 = vmatpush3.bf16.msra.mxu1 %v8673_v0  ;;  %v9631_v49 = vld [vmem:[%s13086_s3 + $0x30] sm:$0xff]  ;;  %v2145_v0 = vmul.f32 %v11108_v8, %v10464_v12  ;;  %v1941_v7 = vmul.f32 %v11287_v35, %v10410_v9  ;;  %v13710_v8 = vld [vmem:[#allocation102_spill] sm:$0xff] }
 0x2f7   :  { %v11266_v17 = vpop.permute.xlu1 %2001  ;;  %3346 = vmatmul.mubr.f32.gmra.mrb[34].mxu1 %v2534_v44  ;;  %3446 = vmatmul.mubr.f32.vlgmr.msra.gmra.mrb[48].mxu0 %v2701_v5  ;;  %v2226_v5 = vmul.f32 %v11147_v21, %v10476_v6 }
 0x2f8   :  { %13604 = vst [vmem:[#allocation156_spill] sm:$0xff] %v11266_v17  ;;  %8676 = vmatprep.subr.bf16.mxu1 %v8675_v53  ;;  %8682 = vmatpush3.bf16.msra.mxu0 %v11184_v47  ;;  %v1862_v47 = vmul.f32 %v11157_v31, %v10406_v28  ;;  %v9304_v39 = vpack.i.bf16 %v2145_v0, %v2225_v32  ;;  %v5623_v31 = vld [vmem:[#allocation4 + $0x138] sm:$0xff] }
 0x2f9   :  { %2683 = vrot.lane.b32.xlu1 %v11222_v62, %s9708_s16  ;;  %8287 = vmatprep.subr.mxu0 %v2935_v43  ;;  %v2021_v62 = vmul.f32 %v11165_v29, %v10410_v9  ;;  %v2146_v53 = vmul.f32 %v11162_v57, %v10476_v6  ;;  %v1863_v32 = vmul.f32 %v11174_v13, %v10443_v25  ;;  %v5640_v29 = vld [vmem:[#allocation4 + $0x1c0] sm:$0xff] }
 0x2fa   :  { %8678 = vmatpush3.bf16.msra.mxu1 %v8677_v45  ;;  %v13705_v57 = vld [vmem:[#allocation17_spill] sm:$0xff] }
 0x2fb   :  { %8301 = vmatprep.subr.mxu1 %v13605_v46  ;;  %v9309_v45 = vpack.i.bf16 %v2146_v53, %v2226_v5  ;;  %v1783_v53 = vmul.f32 %v11242_v15, %v10443_v25 }
 0x2fc   :  { %v11272_v4 = vpop.permute.xlu1 %1765  ;;  %8288 = vmatpush3.msra.mxu0 %v2935_v43  ;;  %v11307_v43 = vpop.permute.xlu0 %1917 }
 0x2fd   :  { %13606 = vst [vmem:[#allocation157_spill] sm:$0xff] %v11272_v4  ;;  %2093 = vperm.xlu1 %9291, %v9631_v49   ;;  %8321 = vmatprep.subr.mxu0 %v13605_v46  ;;  %13609 = vst [vmem:[#allocation160_spill] sm:$0xff] %v11307_v43 }
 0x300   :  { %v9199_v26 = vpop.permute.xlu1 %9198 }
 0x301   :  { %v9201_v63 = vunpack.i.h.bf16 %v9199_v26  ;;  %v9200_v58 = vunpack.i.l.bf16 %v9199_v26  ;;  %9303 = vset.pattern.permute.xlu1 %v13574_v2  ;;  %v1782_v2 = vmul.f32 %v11176_v10, %v10406_v28 }
 0x302   :  { %2177 = vperm.xlu1 %9303, %v11077_v3  }
 0x303   :  { %v2543_v36 = vsel %vm2484_vm3, %v1862_v47, %v9200_v58  ;;  %v2710_v30 = vsel %vm2484_vm3, %v2021_v62, %v9201_v63 }
 0x304   :  { %v9204_v50 = vpop.permute.xlu1 %9203  ;;  %3350 = vmatprep.mubr.f32.mxu1 %v2543_v36  ;;  %3450 = vmatprep.mubr.f32.mxu0 %v2710_v30  ;;  %v2022_v36 = vmul.f32 %v11226_v56, %v10406_v28 }
 0x305   :  { %v9206_v38 = vunpack.i.h.bf16 %v9204_v50  ;;  %v9205_v14 = vunpack.i.l.bf16 %v9204_v50  ;;  %v11319_v50 = vpop.permute.xlu0 %1921 }
 0x306   :  { %9305 = vrot.lane.b32.xlu1 %v9304_v39, %s9725_s14  ;;  %13611 = vst [vmem:[#allocation162_spill] sm:$0xff] %v11319_v50 }
 0x307   :  { %v2535_v3 = vsel %vm2484_vm3, %v1782_v2, %v9205_v14  ;;  %v2702_v1 = vsel %vm2484_vm3, %v1941_v7, %v9206_v38 }
 0x308   :  { %v11301_v44 = vpop.permute.xlu1 %2005  ;;  %3351 = vmatmul.mubr.f32.gmra.mrb[36].mxu1 %v2535_v3  ;;  %3451 = vmatmul.mubr.f32.gmra.mrb[50].mxu0 %v2702_v1  ;;  %v1942_v1 = vmul.f32 %v11307_v43, %v10406_v28 }
 0x309   :  { %13608 = vst [vmem:[#allocation159_spill] sm:$0xff] %v11301_v44 }
 0x30a   :  { %2685 = vrot.lane.b32.xlu1 %v11235_v37, %s9708_s16 }
 0x30d   :  { %v11309_v0 = vpop.permute.xlu1 %1769  ;;  %v7469_v26 = vpop.f32.mrb[16].mxu0 }
 0x30e   :  { %13610 = vst [vmem:[#allocation161_spill] sm:$0xff] %v11309_v0  ;;  %9310 = vrot.lane.b32.xlu1 %v9309_v45, %s9725_s14  ;;  %v7470_v47 = vpop.f32.mrb[17].mxu0 }
 0x30f   :  { %v11312_v62 = vadd.f32 %v7470_v47, %v7469_v26 }
 0x311   :  { %v9211_v63 = vpop.permute.xlu1 %9210  ;;  %v7472_v58 = vpop.f32.mrb[18].mxu0 }
 0x312   :  { %v9213_v37 = vunpack.i.h.bf16 %v9211_v63  ;;  %v9212_v30 = vunpack.i.l.bf16 %v9211_v63  ;;  %v7473_v39 = vpop.f32.mrb[19].mxu0  ;;  %2689 = vrot.lane.b32.xlu1 %v9631_v49, %s9708_s16 }
 0x313   :  { %v11321_v7 = vadd.f32 %v7473_v39, %v7472_v58  ;;  %v11333_v58 = vpop.permute.xlu0 %1925  ;;  %v1864_v39 = vmul.f32 %v11190_v24, %v10447_v52 }
 0x314   :  { %v2544_v2 = vsel %vm2484_vm3, %v1863_v32, %v9212_v30  ;;  %v2711_v38 = vsel %vm2484_vm3, %v2022_v36, %v9213_v37  ;;  %13612 = vst [vmem:[#allocation163_spill] sm:$0xff] %v11333_v58 }
 0x315   :  { %v9216_v14 = vpop.permute.xlu1 %9215  ;;  %3355 = vmatprep.mubr.f32.mxu1 %v2544_v2  ;;  %3455 = vmatprep.mubr.f32.mxu0 %v2711_v38  ;;  %v7475_v3 = vpop.f32.mrb[20].mxu0  ;;  %v2023_v2 = vmul.f32 %v11266_v17, %v10443_v25 }
 0x316   :  { %v9218_v5 = vunpack.i.h.bf16 %v9216_v14  ;;  %v9217_v49 = vunpack.i.l.bf16 %v9216_v14  ;;  %v7476_v45 = vpop.f32.mrb[21].mxu0 }
 0x317   :  { %v11329_v26 = vadd.f32 %v7476_v45, %v7475_v3  ;;  %v11339_v37 = vpop.permute.xlu0 %1929  ;;  %v1784_v45 = vmul.f32 %v11272_v4, %v10447_v52 }
 0x318   :  { %v2536_v47 = vsel %vm2484_vm3, %v1783_v53, %v9217_v49  ;;  %v2703_v63 = vsel %vm2484_vm3, %v1942_v1, %v9218_v5  ;;  %13615 = vst [vmem:[#allocation166_spill] sm:$0xff] %v11339_v37  ;;  %v1943_v49 = vmul.f32 %v11319_v50, %v10443_v25  ;;  %v1785_v50 = vmul.f32 %v11309_v0, %v10464_v12 }
 0x319   :  { %v11335_v32 = vpop.permute.xlu1 %2009  ;;  %3356 = vmatmul.mubr.f32.gmra.mrb[38].mxu1 %v2536_v47  ;;  %3456 = vmatmul.mubr.f32.gmra.mrb[52].mxu0 %v2703_v63 }
 0x31a   :  { %13613 = vst [vmem:[#allocation164_spill] sm:$0xff] %v11335_v32 }
 0x31b   :  { %v11345_v3 = vpop.permute.xlu0 %1933 }
 0x31c   :  { %13616 = vst [vmem:[#allocation167_spill] sm:$0xff] %v11345_v3 }
 0x31e   :  { %v11337_v36 = vpop.permute.xlu1 %1773 }
 0x31f   :  { %13614 = vst [vmem:[#allocation165_spill] sm:$0xff] %v11337_v36 }
 0x322   :  { %v9223_v30 = vpop.permute.xlu1 %9222 }
 0x323   :  { %v9225_v38 = vunpack.i.h.bf16 %v9223_v30  ;;  %v9224_v14 = vunpack.i.l.bf16 %v9223_v30 }
 0x325   :  { %v2545_v1 = vsel %vm2484_vm3, %v1864_v39, %v9224_v14  ;;  %v2712_v53 = vsel %vm2484_vm3, %v2023_v2, %v9225_v38  ;;  %v11357_v39 = vpop.permute.xlu0 %2017 }
 0x326   :  { %v9228_v5 = vpop.permute.xlu1 %9227  ;;  %3360 = vmatprep.mubr.f32.mxu1 %v2545_v1  ;;  %3460 = vmatprep.mubr.f32.mxu0 %v2712_v53  ;;  %13618 = vst [vmem:[#allocation169_spill] sm:$0xff] %v11357_v39  ;;  %v1865_v1 = vmul.f32 %v11208_v42, %v10464_v12  ;;  %v2024_v53 = vmul.f32 %v11301_v44, %v10447_v52 }
 0x327   :  { %v9230_v47 = vunpack.i.h.bf16 %v9228_v5  ;;  %v9229_v63 = vunpack.i.l.bf16 %v9228_v5 }
 0x329   :  { %v2537_v17 = vsel %vm2484_vm3, %v1784_v45, %v9229_v63  ;;  %v2704_v30 = vsel %vm2484_vm3, %v1943_v49, %v9230_v47  ;;  %v11361_v38 = vpop.permute.xlu0 %2069 }
 0x32a   :  { %v11355_v24 = vpop.permute.xlu1 %2013  ;;  %3361 = vmatmul.mubr.f32.gmra.mrb[40].mxu1 %v2537_v17  ;;  %3461 = vmatmul.mubr.f32.gmra.mrb[54].mxu0 %v2704_v30  ;;  %13620 = vst [vmem:[#allocation171_spill] sm:$0xff] %v11361_v38  ;;  %v1944_v30 = vmul.f32 %v11333_v58, %v10447_v52 }
 0x32b   :  { %13617 = vst [vmem:[#allocation168_spill] sm:$0xff] %v11355_v24 }
 0x32d   :  { %v9260_v47 = vpop.permute.xlu0 %9259 }
 0x32e   :  { %v9261_v10 = vunpack.i.l.bf16 %v9260_v47 }
 0x32f   :  { %v11359_v2 = vpop.permute.xlu1 %1777 }
 0x330   :  { %13619 = vst [vmem:[#allocation170_spill] sm:$0xff] %v11359_v2 }
 0x333   :  { %v9236_v14 = vpop.permute.xlu1 %9235 }
 0x334   :  { %v9238_v5 = vunpack.i.h.bf16 %v9236_v14  ;;  %v9237_v45 = vunpack.i.l.bf16 %v9236_v14 }
 0x336   :  { %v2546_v49 = vsel %vm2484_vm3, %v1865_v1, %v9237_v45  ;;  %v2713_v17 = vsel %vm2484_vm3, %v2024_v53, %v9238_v5  ;;  %v11379_v5 = vpop.permute.xlu0 %2153 }
 0x337   :  { %v9241_v63 = vpop.permute.xlu1 %9240  ;;  %3365 = vmatprep.mubr.f32.mxu1 %v2546_v49  ;;  %3465 = vmatprep.mubr.f32.mxu0 %v2713_v17  ;;  %13622 = vst [vmem:[#allocation173_spill] sm:$0xff] %v11379_v5 }
 0x338   :  { %v9243_v42 = vunpack.i.h.bf16 %v9241_v63  ;;  %v9242_v4 = vunpack.i.l.bf16 %v9241_v63 }
 0x339   :  { %v7478_v43 = vpop.f32.mrb[22].mxu0 }
 0x33a   :  { %v7479_v44 = vpop.f32.mrb[23].mxu0  ;;  %v2538_v14 = vsel %vm2484_vm3, %v1785_v50, %v9242_v4  ;;  %v2705_v1 = vsel %vm2484_vm3, %v1944_v30, %v9243_v42  ;;  %v11385_v56 = vpop.permute.xlu0 %9276 }
 0x33b   :  { %v11375_v45 = vpop.permute.xlu1 %2149  ;;  %v11377_v53 = vadd.f32 %v7479_v44, %v7478_v43  ;;  %3366 = vmatmul.mubr.f32.gmra.mrb[42].mxu1 %v2538_v14  ;;  %3466 = vmatmul.mubr.f32.gmra.mrb[56].mxu0 %v2705_v1  ;;  %v1866_v44 = vmul.f32 %v11217_v23, %v10476_v6  ;;  %v2025_v43 = vmul.f32 %v11335_v32, %v10464_v12 }
 0x33c   :  { %13621 = vst [vmem:[#allocation172_spill] sm:$0xff] %v11375_v45  ;;  %v1945_v32 = vmul.f32 %v11339_v37, %v10464_v12 }
 0x33d   :  { %v7481_v49 = vpop.f32.mrb[24].mxu0 }
 0x33e   :  { %v7482_v17 = vpop.f32.mrb[25].mxu0  ;;  %v11401_v23 = vpop.permute.xlu0 %2679 }
 0x33f   :  { %v11381_v58 = vadd.f32 %v7482_v17, %v7481_v49 }
 0x340   :  { %v11383_v0 = vpop.permute.xlu1 %1937 }
 0x341   :  { %13623 = vst [vmem:[#allocation174_spill] sm:$0xff] %v11383_v0  ;;  %v7484_v63 = vpop.f32.mrb[26].mxu0 }
 0x342   :  { %v7485_v15 = vpop.f32.mrb[27].mxu0 }
 0x343   :  { %v11387_v4 = vadd.f32 %v7485_v15, %v7484_v63  ;;  %v2026_v15 = vmul.f32 %v11355_v24, %v10476_v6 }
 0x344   :  { %v9250_v42 = vpop.permute.xlu1 %9249 }
 0x345   :  { %v9252_v50 = vunpack.i.h.bf16 %v9250_v42  ;;  %v9251_v30 = vunpack.i.l.bf16 %v9250_v42  ;;  %v7487_v14 = vpop.f32.mrb[28].mxu0  ;;  %v1786_v42 = vmul.f32 %v11337_v36, %v10476_v6 }
 0x346   :  { %v7488_v1 = vpop.f32.mrb[29].mxu0 }
 0x347   :  { %v11393_v49 = vadd.f32 %v7488_v1, %v7487_v14  ;;  %v2547_v17 = vsel %vm2484_vm3, %v1866_v44, %v9251_v30  ;;  %v2714_v13 = vsel %vm2484_vm3, %v2025_v43, %v9252_v50  ;;  %v1867_v43 = vmul.f32 %v11240_v34, %v10488_v22 }
 0x348   :  { %v9255_v63 = vpop.permute.xlu1 %9254  ;;  %3370 = vmatprep.mubr.f32.mxu1 %v2547_v17  ;;  %3470 = vmatprep.mubr.f32.mxu0 %v2714_v13  ;;  %v9262_v50 = vunpack.i.h.bf16 %v9260_v47  ;;  %v1787_v47 = vmul.f32 %v11359_v2, %v10488_v22  ;;  %v9279_v2 = vunpack.i.h.bf16 %v11385_v56 }
 0x349   :  { %v9257_v14 = vunpack.i.h.bf16 %v9255_v63  ;;  %v9256_v1 = vunpack.i.l.bf16 %v9255_v63  ;;  %v7490_v44 = vpop.f32.mrb[30].mxu0  ;;  %v2548_v35 = vsel %vm2484_vm3, %v1867_v43, %v9261_v10  ;;  %v1946_v63 = vmul.f32 %v11345_v3, %v10476_v6 }
 0x34a   :  { %v7491_v30 = vpop.f32.mrb[31].mxu0  ;;  %v2715_v36 = vsel %vm2484_vm3, %v2026_v15, %v9262_v50 }
 0x34b   :  { %v11407_v24 = vadd.f32 %v7491_v30, %v7490_v44  ;;  %v2539_v13 = vsel %vm2484_vm3, %v1786_v42, %v9256_v1  ;;  %v2706_v17 = vsel %vm2484_vm3, %v1945_v32, %v9257_v14  ;;  %v11417_v30 = vpop.permute.xlu0 %2169 }
 0x34c   :  { %v9265_v37 = vpop.permute.xlu1 %9264  ;;  %3371 = vmatmul.mubr.f32.gmra.mrb[44].mxu1 %v2539_v13  ;;  %3471 = vmatmul.mubr.f32.gmra.mrb[58].mxu0 %v2706_v17  ;;  %13624 = vst [vmem:[#allocation175_spill] sm:$0xff] %v11417_v30 }
 0x34d   :  { %v9267_v34 = vunpack.i.h.bf16 %v9265_v37  ;;  %v9266_v44 = vunpack.i.l.bf16 %v9265_v37  ;;  %3375 = vmatprep.mubr.f32.mxu1 %v2548_v35  ;;  %3475 = vmatprep.mubr.f32.mxu0 %v2715_v36  ;;  %v7525_v42 = vpop.f32.mrb[16].mxu1  ;;  %v7581_v1 = vpop.f32.mrb[32].mxu0 }
 0x34e   :  { %v7526_v32 = vpop.f32.mrb[17].mxu1  ;;  %v7582_v14 = vpop.f32.mrb[33].mxu0 }
 0x34f   :  { %v7527_v13 = vadd.f32 %v7526_v32, %v7525_v42  ;;  %v7583_v10 = vadd.f32 %v7582_v14, %v7581_v1  ;;  %v2540_v15 = vsel %vm2484_vm3, %v1787_v47, %v9266_v44  ;;  %v2707_v43 = vsel %vm2484_vm3, %v1946_v63, %v9267_v34  ;;  %v2682_v63 = vpop.permute.xlu0 %2681 }
 0x350   :  { %v11421_v50 = vpop.permute.xlu1 %2073  ;;  %3376 = vmatmul.mubr.f32.gmra.mrb[46].mxu1 %v2540_v15  ;;  %3476 = vmatmul.mubr.f32.gmra.mrb[60].mxu0 %v2707_v43  ;;  %v1947_v42 = vmul.f32 %v11383_v0, %v10488_v22  ;;  %v2027_v34 = vmul.f32 %v11357_v39, %v10488_v22  ;;  %v2180_v47 = vmul.f32 %v11375_v45, %v10398_v18  ;;  %v5622_v45 = vld [vmem:[#allocation4 + $0x130] sm:$0xff] }
 0x351   :  { %13625 = vst [vmem:[#allocation176_spill] sm:$0xff] %v11421_v50  ;;  %v3133_v37 = vadd.f32 %v7527_v13, %v11312_v62  ;;  %v7584_v35 = vpop.f32.mrb[34].mxu0  ;;  %v2100_v14 = vmul.f32 %v11361_v38, %v10398_v18  ;;  %v9278_v13 = vunpack.i.l.bf16 %v11385_v56  ;;  %v9632_v18 = vld [vmem:[%s13085_s2] sm:$0xff] }
 0x352   :  { %v7585_v36 = vpop.f32.mrb[35].mxu0 }
 0x353   :  { %v11424_v17 = vadd.f32 %v7583_v10, %v3133_v37  ;;  %v7586_v3 = vadd.f32 %v7585_v36, %v7584_v35  ;;  %v2717_v39 = vsel %vm2484_vm3, %v2100_v14, %v9279_v2 }
 0x354   :  { %v9272_v1 = vpop.permute.xlu1 %9271 }
 0x355   :  { %v9274_v44 = vunpack.i.h.bf16 %v9272_v1  ;;  %v9273_v62 = vunpack.i.l.bf16 %v9272_v1  ;;  %v7587_v32 = vpop.f32.mrb[36].mxu0  ;;  %v2708_v1 = vsel %vm2484_vm3, %v1947_v42, %v9278_v13 }
 0x356   :  { %v7588_v10 = vpop.f32.mrb[37].mxu0 }
 0x357   :  { %v7589_v15 = vadd.f32 %v7588_v10, %v7587_v32  ;;  %v7528_v43 = vpop.f32.mrb[18].mxu1  ;;  %v2716_v37 = vsel %vm2484_vm3, %v2027_v34, %v9273_v62  ;;  %v2725_v35 = vsel %vm2484_vm3, %v2180_v47, %v9274_v44  ;;  %v9633_v47 = vld [vmem:[%s13085_s2 + $0x8] sm:$0xff]  ;;  %v9634_v44 = vld [vmem:[%s13085_s2 + $0x10] sm:$0xff] }
 0x358   :  { %v2678_v36 = vpop.permute.xlu1 %2677  ;;  %3480 = vmatprep.mubr.f32.mxu0 %v2716_v37  ;;  %3550 = vmatprep.mubr.f32.mxu1 %v2725_v35  ;;  %v7529_v0 = vpop.f32.mrb[19].mxu1  ;;  %v11451_v42 = vsel %vm82_vm1, %v9633_v47, %v11401_v23 }
 0x359   :  { %v11444_v56 = vsel %vm82_vm1, %v9632_v18, %v2678_v36  ;;  %v7530_v32 = vadd.f32 %v7529_v0, %v7528_v43  ;;  %3481 = vmatmul.mubr.f32.gmra.mrb[62].mxu0 %v2708_v1  ;;  %3551 = vmatmul.mubr.f32.vlgmr.msra.gmra.mrb[48].mxu1 %v2717_v39  ;;  %v7590_v34 = vpop.f32.mrb[38].mxu0  ;;  %13627 = vst [vmem:[#allocation178_spill] sm:$0xff] %v11451_v42  ;;  %v11461_v39 = vpop.permute.xlu0 %2173 }
 0x35a   :  { %13626 = vst [vmem:[#allocation177_spill] sm:$0xff] %v11444_v56  ;;  %8289 = vmatprep.mubr.msk.f32.mxu0 %vm2936_vm4, %v11444_v56  ;;  %v7591_v2 = vpop.f32.mrb[39].mxu0  ;;  %v11459_v0 = vsel %vm82_vm1, %v9634_v44, %v2682_v63  ;;  %13629 = vst [vmem:[#allocation180_spill] sm:$0xff] %v11461_v39  ;;  %v2101_v36 = vmul.f32 %v11421_v50, %v10410_v9  ;;  %v5638_v50 = vld [vmem:[#allocation4 + $0x1b0] sm:$0xff] }
 0x35b   :  { %13628 = vst [vmem:[#allocation179_spill] sm:$0xff] %v11459_v0  ;;  %v3138_v62 = vadd.f32 %v7530_v32, %v11321_v7  ;;  %v7592_v14 = vadd.f32 %v7591_v2, %v7590_v34  ;;  %v7531_v13 = vpop.f32.mrb[20].mxu1  ;;  %v2181_v7 = vmul.f32 %v11379_v5, %v10410_v9  ;;  %v5639_v5 = vld [vmem:[#allocation4 + $0x1b8] sm:$0xff] }
 0x35c   :  { %v11464_v10 = vpop.permute.xlu1 %2157  ;;  %v7532_v23 = vpop.f32.mrb[21].mxu1 }
 0x35d   :  { %13630 = vst [vmem:[#allocation181_spill] sm:$0xff] %v11464_v10  ;;  %v7533_v43 = vadd.f32 %v7532_v23, %v7531_v13  ;;  %8290 = vmatmul.mubr.msk.f32.vlgmr.msra.gmra.mrb[64].mxu0 %vm2936_vm4, %v11451_v42  ;;  %v11468_v37 = vadd.f32 %v7586_v3, %v3138_v62  ;;  %v11479_v3 = vpop.permute.xlu0 %2077  ;;  %v5620_v42 = vld [vmem:[#allocation4 + $0x120] sm:$0xff] }
 0x35e   :  { %8292 = vmatprep.mubr.msk.f32.mxu0 %vm2936_vm4, %v11459_v0  ;;  %13631 = vst [vmem:[#allocation182_spill] sm:$0xff] %v11479_v3 }
 0x35f   :  { %v3143_v63 = vadd.f32 %v7533_v43, %v11329_v26  ;;  %v7534_v35 = vpop.f32.mrb[22].mxu1 }
 0x360   :  { %v9283_v1 = vpop.permute.xlu1 %9282  ;;  %v7535_v18 = vpop.f32.mrb[23].mxu1 }
 0x361   :  { %v9285_v32 = vunpack.i.h.bf16 %v9283_v1  ;;  %v9284_v34 = vunpack.i.l.bf16 %v9283_v1  ;;  %v7536_v47 = vadd.f32 %v7535_v18, %v7534_v35  ;;  %v11477_v2 = vadd.f32 %v7589_v15, %v3143_v63  ;;  %v11489_v63 = vpop.permute.xlu0 %2081 }
 0x362   :  { %13633 = vst [vmem:[#allocation184_spill] sm:$0xff] %v11489_v63 }
 0x363   :  { %v3148_v44 = vadd.f32 %v7536_v47, %v11377_v53  ;;  %v7537_v62 = vpop.f32.mrb[24].mxu1  ;;  %v2726_v26 = vsel %vm2484_vm3, %v2181_v7, %v9284_v34  ;;  %v2718_v13 = vsel %vm2484_vm3, %v2101_v36, %v9285_v32  ;;  %v2102_v7 = vmul.f32 %v11479_v3, %v10406_v28 }
 0x364   :  { %v11484_v23 = vpop.permute.xlu1 %2161  ;;  %3555 = vmatprep.mubr.f32.mxu1 %v2726_v26  ;;  %v7538_v9 = vpop.f32.mrb[25].mxu1  ;;  %v2182_v47 = vmul.f32 %v11464_v10, %v10406_v28  ;;  %v2103_v28 = vmul.f32 %v11489_v63, %v10443_v25  ;;  %v5635_v63 = vld [vmem:[#allocation4 + $0x198] sm:$0xff]  ;;  %v5621_v10 = vld [vmem:[#allocation4 + $0x128] sm:$0xff] }
 0x365   :  { %13632 = vst [vmem:[#allocation183_spill] sm:$0xff] %v11484_v23  ;;  %v7539_v43 = vadd.f32 %v7538_v9, %v7537_v62  ;;  %3556 = vmatmul.mubr.f32.gmra.mrb[50].mxu1 %v2718_v13  ;;  %v11486_v0 = vadd.f32 %v7592_v14, %v3148_v44 }
 0x367   :  { %v3153_v15 = vadd.f32 %v7539_v43, %v11381_v58  ;;  %v11497_v58 = vpop.permute.xlu0 %2085 }
 0x368   :  { %v11491_v35 = vpop.permute.xlu1 %2165  ;;  %13635 = vst [vmem:[#allocation186_spill] sm:$0xff] %v11497_v58 }
 0x369   :  { %13634 = vst [vmem:[#allocation185_spill] sm:$0xff] %v11491_v35 }
 0x36a   :  { %v7540_v53 = vpop.f32.mrb[26].mxu1 }
 0x36b   :  { %v7593_v1 = vpop.f32.mrb[40].mxu0  ;;  %v7541_v18 = vpop.f32.mrb[27].mxu1 }
 0x36c   :  { %v9288_v36 = vpop.permute.xlu1 %9287  ;;  %v7542_v32 = vadd.f32 %v7541_v18, %v7540_v53  ;;  %v7594_v34 = vpop.f32.mrb[41].mxu0 }
 0x36d   :  { %v9290_v14 = vunpack.i.h.bf16 %v9288_v36  ;;  %v9289_v44 = vunpack.i.l.bf16 %v9288_v36  ;;  %v7595_v62 = vadd.f32 %v7594_v34, %v7593_v1  ;;  %v9300_v53 = vpop.permute.xlu0 %9299  ;;  %v2183_v1 = vmul.f32 %v11484_v23, %v10443_v25  ;;  %v5618_v23 = vld [vmem:[#allocation4 + $0x110] sm:$0xff] }
 0x36e   :  { %v3158_v26 = vadd.f32 %v7542_v32, %v11387_v4  ;;  %v2184_v4 = vmul.f32 %v11491_v35, %v10447_v52  ;;  %v9301_v32 = vunpack.i.l.bf16 %v9300_v53 }
 0x36f   :  { %v11500_v13 = vadd.f32 %v7595_v62, %v3153_v15  ;;  %v2727_v9 = vsel %vm2484_vm3, %v2182_v47, %v9289_v44  ;;  %v2719_v43 = vsel %vm2484_vm3, %v2102_v7, %v9290_v14  ;;  %v9302_v47 = vunpack.i.h.bf16 %v9300_v53  ;;  %v9635_v44 = vld [vmem:[%s13085_s2 + $0x18] sm:$0xff] }
 0x370   :  { %v11504_v3 = vpop.permute.xlu1 %2089  ;;  %3560 = vmatprep.mubr.f32.mxu1 %v2727_v9  ;;  %v2729_v25 = vsel %vm2484_vm3, %v2184_v4, %v9301_v32  ;;  %v2104_v9 = vmul.f32 %v11497_v58, %v10447_v52 }
 0x371   :  { %13636 = vst [vmem:[#allocation187_spill] sm:$0xff] %v11504_v3  ;;  %3561 = vmatmul.mubr.f32.gmra.mrb[52].mxu1 %v2719_v43  ;;  %v11528_v53 = vpop.permute.xlu0 %2097 }
 0x372   :  { %13639 = vst [vmem:[#allocation190_spill] sm:$0xff] %v11528_v53 }
 0x374   :  { %v9294_v18 = vpop.permute.xlu1 %9293 }
 0x375   :  { %v9296_v15 = vunpack.i.h.bf16 %v9294_v18  ;;  %v9295_v36 = vunpack.i.l.bf16 %v9294_v18 }
 0x377   :  { %v2728_v7 = vsel %vm2484_vm3, %v2183_v1, %v9295_v36  ;;  %v2720_v34 = vsel %vm2484_vm3, %v2103_v28, %v9296_v15  ;;  %v2721_v28 = vsel %vm2484_vm3, %v2104_v9, %v9302_v47  ;;  %v2105_v47 = vmul.f32 %v11504_v3, %v10464_v12 }
 0x378   :  { %v2684_v14 = vpop.permute.xlu1 %2683  ;;  %3565 = vmatprep.mubr.f32.mxu1 %v2728_v7  ;;  %v2688_v7 = vpop.permute.xlu0 %2687 }
 0x379   :  { %v11518_v62 = vsel %vm82_vm1, %v9635_v44, %v2684_v14  ;;  %3566 = vmatmul.mubr.f32.gmra.mrb[54].mxu1 %v2720_v34  ;;  %v2185_v34 = vmul.f32 %v11417_v30, %v10464_v12  ;;  %v9637_v12 = vld [vmem:[%s13085_s2 + $0x20] sm:$0xff] }
 0x37a   :  { %13637 = vst [vmem:[#allocation188_spill] sm:$0xff] %v11518_v62  ;;  %3570 = vmatprep.mubr.f32.mxu1 %v2729_v25  ;;  %8293 = vmatmul.mubr.msk.f32.gmra.mrb[66].mxu0 %vm2936_vm4, %v11518_v62  ;;  %v5665_v62 = vld [vmem:[#allocation4 + $0x288] sm:$0xff] }
 0x37c   :  { %v11525_v43 = vpop.permute.xlu1 %2093 }
 0x37d   :  { %13638 = vst [vmem:[#allocation189_spill] sm:$0xff] %v11525_v43  ;;  %3571 = vmatmul.mubr.f32.gmra.mrb[56].mxu1 %v2721_v28 }
 0x381   :  { %v11530_v18 = vpop.permute.xlu1 %2177  ;;  %v7543_v1 = vpop.f32.mrb[28].mxu1 }
 0x382   :  { %13640 = vst [vmem:[#allocation191_spill] sm:$0xff] %v11530_v18  ;;  %v7596_v15 = vpop.f32.mrb[42].mxu0  ;;  %v7544_v36 = vpop.f32.mrb[29].mxu1 }
 0x383   :  { %v7545_v4 = vadd.f32 %v7544_v36, %v7543_v1  ;;  %v7597_v32 = vpop.f32.mrb[43].mxu0 }
 0x384   :  { %v7598_v52 = vadd.f32 %v7597_v32, %v7596_v15  ;;  %v9636_v15 = vld [vmem:[%s13085_s2 + $0x28] sm:$0xff]  ;;  %v2186_v32 = vmul.f32 %v11461_v39, %v10476_v6 }
 0x385   :  { %v3163_v14 = vadd.f32 %v7545_v4, %v11393_v49  ;;  %v9306_v44 = vpop.permute.xlu1 %9305  ;;  %v11545_v36 = vsel %vm82_vm1, %v9636_v15, %v2688_v7  ;;  %v9316_v4 = vpop.permute.xlu0 %9315 }
 0x386   :  { %v11537_v25 = vadd.f32 %v7598_v52, %v3158_v26  ;;  %v9308_v9 = vunpack.i.h.bf16 %v9306_v44  ;;  %v9307_v28 = vunpack.i.l.bf16 %v9306_v44  ;;  %13641 = vst [vmem:[#allocation192_spill] sm:$0xff] %v11545_v36  ;;  %v2187_v52 = vmul.f32 %v11530_v18, %v10488_v22 }
 0x387   :  { %v9318_v15 = vunpack.i.h.bf16 %v9316_v4 }
 0x388   :  { %v2730_v58 = vsel %vm2484_vm3, %v2185_v34, %v9307_v28  ;;  %v2722_v1 = vsel %vm2484_vm3, %v2105_v47, %v9308_v9  ;;  %v9317_v9 = vunpack.i.l.bf16 %v9316_v4  ;;  %v2107_v4 = vmul.f32 %v11528_v53, %v10488_v22 }
 0x389   :  { %v2686_v49 = vpop.permute.xlu1 %2685  ;;  %3575 = vmatprep.mubr.f32.mxu1 %v2730_v58  ;;  %v2106_v58 = vmul.f32 %v11525_v43, %v10476_v6  ;;  %v2692_v47 = vpop.permute.xlu0 %2691 }
 0x38a   :  { %v11551_v26 = vsel %vm82_vm1, %v9637_v12, %v2686_v49  ;;  %3576 = vmatmul.mubr.f32.gmra.mrb[58].mxu1 %v2722_v1  ;;  %v9638_v12 = vld [vmem:[%s13085_s2 + $0x38] sm:$0xff] }
 0x38b   :  { %13642 = vst [vmem:[#allocation193_spill] sm:$0xff] %v11551_v26  ;;  %8295 = vmatprep.mubr.msk.f32.mxu0 %vm2936_vm4, %v11551_v26  ;;  %v11569_v6 = vsel %vm82_vm1, %v9638_v12, %v2692_v47  ;;  %v5664_v26 = vld [vmem:[#allocation4 + $0x280] sm:$0xff] }
 0x38c   :  { %8296 = vmatmul.mubr.msk.f32.gmra.mrb[68].mxu0 %vm2936_vm4, %v11545_v36  ;;  %13643 = vst [vmem:[#allocation194_spill] sm:$0xff] %v11569_v6 }
 0x38d   :  { %v9311_v7 = vpop.permute.xlu1 %9310 }
 0x38e   :  { %v9313_v34 = vunpack.i.h.bf16 %v9311_v7  ;;  %v9312_v44 = vunpack.i.l.bf16 %v9311_v7  ;;  %v9639_v7 = vld [vmem:[%s13085_s2 + $0x30] sm:$0xff] }
 0x390   :  { %v2731_v28 = vsel %vm2484_vm3, %v2186_v32, %v9312_v44  ;;  %v2723_v1 = vsel %vm2484_vm3, %v2106_v58, %v9313_v34  ;;  %v2732_v32 = vsel %vm2484_vm3, %v2187_v52, %v9317_v9  ;;  %v2724_v58 = vsel %vm2484_vm3, %v2107_v4, %v9318_v15 }
 0x391   :  { %3580 = vmatprep.mubr.f32.mxu1 %v2731_v28  ;;  %v2690_v49 = vpop.permute.xlu1 %2689 }
 0x392   :  { %3581 = vmatmul.mubr.f32.gmra.mrb[60].mxu1 %v2723_v1  ;;  %v11575_v18 = vsel %vm82_vm1, %v9639_v7, %v2690_v49 }
 0x393   :  { %13644 = vst [vmem:[#allocation195_spill] sm:$0xff] %v11575_v18  ;;  %3585 = vmatprep.mubr.f32.mxu1 %v2732_v32  ;;  %8298 = vmatprep.mubr.msk.f32.mxu0 %vm2936_vm4, %v11575_v18 }
 0x394   :  { %8299 = vmatmul.mubr.msk.f32.gmra.mrb[70].mxu0 %vm2936_vm4, %v11569_v6 }
 0x395   :  { %8323 = vmatprep.mubr.msk.f32.mxu0 %vm9712_vm0, %v13605_v46 }
 0x396   :  { %3586 = vmatmul.mubr.f32.gmra.mrb[62].mxu1 %v2724_v58 }
 0x397   :  { %8303 = vmatprep.mubr.msk.f32.mxu1 %vm9712_vm0, %v13605_v46 }
 0x398   :  { %v7546_v52 = vpop.f32.mrb[30].mxu1 }
 0x399   :  { %v7599_v34 = vpop.f32.mrb[44].mxu0  ;;  %v7547_v44 = vpop.f32.mrb[31].mxu1 }
 0x39a   :  { %v7548_v22 = vadd.f32 %v7547_v44, %v7546_v52  ;;  %v7600_v47 = vpop.f32.mrb[45].mxu0 }
 0x39b   :  { %v7601_v9 = vadd.f32 %v7600_v47, %v7599_v34 }
 0x39c   :  { %v3168_v28 = vadd.f32 %v7548_v22, %v11407_v24 }
 0x39d   :  { %v3268_v1 = vadd.f32 %v7601_v9, %v3163_v14 }
 0x3af   :  { %v7602_v49 = vpop.f32.mrb[46].mxu0  ;;  %v7637_v12 = vpop.f32.mrb[32].mxu1 }
 0x3b0   :  { %v7603_v7 = vpop.f32.mrb[47].mxu0  ;;  %v7638_v15 = vpop.f32.mrb[33].mxu1 }
 0x3b1   :  { %v7604_v32 = vadd.f32 %v7603_v7, %v7602_v49  ;;  %v7639_v4 = vadd.f32 %v7638_v15, %v7637_v12 }
 0x3b3   :  { %v3273_v53 = vadd.f32 %v7604_v32, %v3168_v28  ;;  %v3343_v58 = vadd.f32 %v7639_v4, %v11424_v17 }
 0x3ca   :  { %v7640_v43 = vpop.f32.mrb[34].mxu1  ;;  %v7693_v39 = vpop.f32.mrb[48].mxu0 }
 0x3cb   :  { %v7641_v3 = vpop.f32.mrb[35].mxu1  ;;  %v7694_v6 = vpop.f32.mrb[49].mxu0 }
 0x3cc   :  { %v7642_v30 = vadd.f32 %v7641_v3, %v7640_v43  ;;  %v7695_v52 = vadd.f32 %v7694_v6, %v7693_v39 }
 0x3ce   :  { %v3348_v34 = vadd.f32 %v7642_v30, %v11468_v37  ;;  %v3448_v44 = vadd.f32 %v7695_v52, %v3343_v58 }
 0x3db   :  { %v7643_v24 = vpop.f32.mrb[36].mxu1  ;;  %v7696_v14 = vpop.f32.mrb[50].mxu0 }
 0x3dc   :  { %v7644_v22 = vpop.f32.mrb[37].mxu1  ;;  %v7697_v47 = vpop.f32.mrb[51].mxu0 }
 0x3dd   :  { %v7645_v9 = vadd.f32 %v7644_v22, %v7643_v24  ;;  %v7698_v18 = vadd.f32 %v7697_v47, %v7696_v14 }
 0x3df   :  { %v3353_v49 = vadd.f32 %v7645_v9, %v11477_v2  ;;  %v3453_v28 = vadd.f32 %v7698_v18, %v3348_v34 }
 0x3ec   :  { %v7646_v12 = vpop.f32.mrb[38].mxu1  ;;  %v7699_v17 = vpop.f32.mrb[52].mxu0 }
 0x3ed   :  { %v7647_v7 = vpop.f32.mrb[39].mxu1  ;;  %v7700_v15 = vpop.f32.mrb[53].mxu0 }
 0x3ee   :  { %v7648_v32 = vadd.f32 %v7647_v7, %v7646_v12  ;;  %v7701_v4 = vadd.f32 %v7700_v15, %v7699_v17 }
 0x3f0   :  { %v3358_v39 = vadd.f32 %v7648_v32, %v11486_v0  ;;  %v3458_v3 = vadd.f32 %v7701_v4, %v3353_v49 }
 0x3fd   :  { %v7649_v30 = vpop.f32.mrb[40].mxu1  ;;  %v7702_v37 = vpop.f32.mrb[54].mxu0 }
 0x3fe   :  { %v7650_v43 = vpop.f32.mrb[41].mxu1  ;;  %v7703_v6 = vpop.f32.mrb[55].mxu0 }
 0x3ff   :  { %v7651_v58 = vadd.f32 %v7650_v43, %v7649_v30  ;;  %v7704_v52 = vadd.f32 %v7703_v6, %v7702_v37 }
 0x401   :  { %v3363_v24 = vadd.f32 %v7651_v58, %v11500_v13  ;;  %v11595_v14 = vadd.f32 %v7704_v52, %v3358_v39 }
 0x40e   :  { %v7652_v2 = vpop.f32.mrb[42].mxu1  ;;  %v7705_v18 = vpop.f32.mrb[56].mxu0 }
 0x40f   :  { %v7653_v34 = vpop.f32.mrb[43].mxu1  ;;  %v7706_v22 = vpop.f32.mrb[57].mxu0 }
 0x410   :  { %v7654_v47 = vadd.f32 %v7653_v34, %v7652_v2  ;;  %v7707_v9 = vadd.f32 %v7706_v22, %v7705_v18 }
 0x412   :  { %v3368_v12 = vadd.f32 %v7654_v47, %v11537_v25  ;;  %v11598_v0 = vadd.f32 %v7707_v9, %v3363_v24 }
 0x41f   :  { %v7655_v49 = vpop.f32.mrb[44].mxu1  ;;  %v7708_v17 = vpop.f32.mrb[58].mxu0 }
 0x420   :  { %v7656_v7 = vpop.f32.mrb[45].mxu1  ;;  %v7709_v15 = vpop.f32.mrb[59].mxu0 }
 0x421   :  { %v7657_v32 = vadd.f32 %v7656_v7, %v7655_v49  ;;  %v7710_v4 = vadd.f32 %v7709_v15, %v7708_v17 }
 0x423   :  { %v3373_v30 = vadd.f32 %v7657_v32, %v3268_v1  ;;  %v11600_v13 = vadd.f32 %v7710_v4, %v3368_v12  ;;  %v7658_v39 = vpop.f32.mrb[46].mxu1  ;;  %v7711_v37 = vpop.f32.mrb[60].mxu0 }
 0x424   :  { %v7659_v43 = vpop.f32.mrb[47].mxu1  ;;  %v7712_v6 = vpop.f32.mrb[61].mxu0 }
 0x425   :  { %v7660_v58 = vadd.f32 %v7659_v43, %v7658_v39  ;;  %v7713_v52 = vadd.f32 %v7712_v6, %v7711_v37 }
 0x427   :  { %v3378_v2 = vadd.f32 %v7660_v58, %v3273_v53  ;;  %v11602_v18 = vadd.f32 %v7713_v52, %v3373_v30 }
 0x42c   :  { %v7714_v25 = vpop.f32.mrb[62].mxu0  ;;  %v7749_v24 = vpop.f32.mrb[48].mxu1 }
 0x42d   :  { %v7715_v34 = vpop.f32.mrb[63].mxu0  ;;  %v7750_v22 = vpop.f32.mrb[49].mxu1 }
 0x42e   :  { %v7716_v47 = vadd.f32 %v7715_v34, %v7714_v25  ;;  %v7751_v9 = vadd.f32 %v7750_v22, %v7749_v24 }
 0x430   :  { %v11604_v49 = vadd.f32 %v7716_v47, %v3378_v2  ;;  %v8291_v1 = vpop.f32.mrb[64].mxu0  ;;  %v3553_v12 = vadd.f32 %v7751_v9, %v3448_v44 }
 0x431   :  { %v3657_v17 = vpop.f32.mrb[65].mxu0 }
 0x432   :  { %v3658_v7 = vadd.f32 %v3657_v17, %v3553_v12 }
 0x434   :  { %v7333_v15 = vmul.f32 -1.442695, %v3658_v7 }
 0x436   :  { %9560 = vpow2.f32 %v7333_v15 }
 0x438   :  { %v7752_v32 = vpop.f32.mrb[50].mxu1 }
 0x439   :  { %v7753_v4 = vpop.f32.mrb[51].mxu1 }
 0x43a   :  { %v7754_v39 = vadd.f32 %v7753_v4, %v7752_v32 }
 0x43c   :  { %v3558_v53 = vadd.f32 %v7754_v39, %v3453_v28  ;;  %v9640_v28 = vld [vmem:[%s13083_s0] sm:$0xff] }
 0x43d   :  { %v11616_v39 = vld [vmem:[%s13084_s1] sm:$0xff] }
 0x43e   :  { %v3663_v30 = vadd.f32 %v8291_v1, %v3558_v53 }
 0x440   :  { %v9561_v37 = vpop.eup %9560  ;;  %v7334_v43 = vmul.f32 -1.442695, %v3663_v30 }
 0x441   :  { %v3720_v6 = vadd.f32 1.0, %v9561_v37 }
 0x442   :  { %9562 = vpow2.f32 %v7334_v43  ;;  %v11628_v43 = vld [vmem:[%s13084_s1 + $0x8] sm:$0xff] }
 0x443   :  { %9564 = vrcp.f32 %v3720_v6 }
 0x444   :  { %v7755_v58 = vpop.f32.mrb[52].mxu1 }
 0x445   :  { %v7756_v52 = vpop.f32.mrb[53].mxu1 }
 0x446   :  { %v7757_v2 = vadd.f32 %v7756_v52, %v7755_v58  ;;  %v9643_v58 = vld [vmem:[%s13083_s0 + $0x8] sm:$0xff] }
 0x448   :  { %v3563_v25 = vadd.f32 %v7757_v2, %v3458_v3 }
 0x44c   :  { %v9563_v24 = vpop.eup %9562  ;;  %v7758_v44 = vpop.f32.mrb[54].mxu1 }
 0x44d   :  { %v11606_v34 = vpop.eup %9564  ;;  %v3721_v22 = vadd.f32 1.0, %v9563_v24  ;;  %v7759_v47 = vpop.f32.mrb[55].mxu1 }
 0x44e   :  { %13645 = vst [vmem:[#allocation196_spill] sm:$0xff] %v11606_v34  ;;  %v8294_v9 = vpop.f32.mrb[66].mxu0  ;;  %v7760_v12 = vadd.f32 %v7759_v47, %v7758_v44  ;;  %v3744_v1 = vmul.f32 %v9640_v28, %v11606_v34  ;;  %v13673_v34 = vld [vmem:[#allocation24_spill] sm:$0xff] }
 0x44f   :  { %v3667_v17 = vpop.f32.mrb[67].mxu0  ;;  %9566 = vrcp.f32 %v3721_v22 }
 0x450   :  { %v3668_v7 = vadd.f32 %v3667_v17, %v3563_v25  ;;  %v3568_v15 = vadd.f32 %v7760_v12, %v11595_v14  ;;  %v7761_v3 = vpop.f32.mrb[56].mxu1  ;;  %8302 = vmatpush3.msra.mxu1 %v3744_v1 }
 0x451   :  { %v7762_v4 = vpop.f32.mrb[57].mxu1  ;;  %8304 = vmatmul.mubr.msk.f32.vlgmr.msra.gmra.mrb[64].mxu1 %vm82_vm1, %v11616_v39  ;;  %8306 = vmatprep.subr.mxu1 %v13605_v46 }
 0x452   :  { %v7335_v32 = vmul.f32 -1.442695, %v3668_v7  ;;  %v3673_v53 = vadd.f32 %v8294_v9, %v3568_v15  ;;  %v7763_v30 = vadd.f32 %v7762_v4, %v7761_v3  ;;  %8307 = vmatpush3.msra.mxu1 %v3744_v1  ;;  %8308 = vmatprep.mubr.msk.f32.mxu1 %vm9712_vm0, %v13605_v46 }
 0x453   :  { %8311 = vmatprep.subr.mxu1 %v13605_v46 }
 0x454   :  { %9568 = vpow2.f32 %v7335_v32  ;;  %v7336_v14 = vmul.f32 -1.442695, %v3673_v53  ;;  %v3573_v37 = vadd.f32 %v7763_v30, %v11598_v0 }
 0x455   :  { %8309 = vmatmul.mubr.msk.f32.vlgmr.msra.gmra.mrb[66].mxu1 %vm82_vm1, %v11628_v43 }
 0x456   :  { %9570 = vpow2.f32 %v7336_v14  ;;  %8313 = vmatprep.mubr.msk.f32.mxu1 %vm9712_vm0, %v13605_v46 }
 0x459   :  { %v11634_v6 = vpop.eup %9566 }
 0x45a   :  { %13646 = vst [vmem:[#allocation197_spill] sm:$0xff] %v11634_v6  ;;  %v3745_v0 = vmul.f32 %v9643_v58, %v11634_v6 }
 0x45c   :  { %8312 = vmatpush3.msra.mxu1 %v3745_v0 }
 0x45d   :  { %v7764_v2 = vpop.f32.mrb[58].mxu1  ;;  %8314 = vmatmul.mubr.msk.f32.vlgmr.msra.gmra.mrb[68].mxu1 %vm82_vm1, %v11616_v39  ;;  %8316 = vmatprep.subr.mxu1 %v13605_v46 }
 0x45e   :  { %v9569_v52 = vpop.eup %9568  ;;  %v7765_v24 = vpop.f32.mrb[59].mxu1  ;;  %8317 = vmatpush3.msra.mxu1 %v3745_v0  ;;  %8318 = vmatprep.mubr.msk.f32.mxu1 %vm9712_vm0, %v13605_v46 }
 0x45f   :  { %v3722_v25 = vadd.f32 1.0, %v9569_v52  ;;  %v7766_v44 = vadd.f32 %v7765_v24, %v7764_v2  ;;  %v8297_v22 = vpop.f32.mrb[68].mxu0  ;;  %8326 = vmatprep.subr.mxu1 %v13605_v46  ;;  %v9644_v2 = vld [vmem:[%s13083_s0 + $0x10] sm:$0xff] }
 0x460   :  { %v9571_v47 = vpop.eup %9570  ;;  %v3677_v9 = vpop.f32.mrb[69].mxu0 }
 0x461   :  { %9572 = vrcp.f32 %v3722_v25  ;;  %v3723_v12 = vadd.f32 1.0, %v9571_v47  ;;  %v3578_v17 = vadd.f32 %v7766_v44, %v11600_v13  ;;  %v3678_v28 = vadd.f32 %v3677_v9, %v3573_v37  ;;  %8319 = vmatmul.mubr.msk.f32.vlgmr.msra.gmra.mrb[70].mxu1 %vm82_vm1, %v11628_v43 }
 0x462   :  { %8328 = vmatprep.mubr.msk.f32.mxu1 %vm9712_vm0, %v13605_v46 }
 0x463   :  { %9574 = vrcp.f32 %v3723_v12  ;;  %v3683_v1 = vadd.f32 %v8297_v22, %v3578_v17  ;;  %v7337_v7 = vmul.f32 -1.442695, %v3678_v28 }
 0x465   :  { %v7338_v15 = vmul.f32 -1.442695, %v3683_v1  ;;  %9576 = vpow2.f32 %v7337_v7  ;;  %v7767_v3 = vpop.f32.mrb[60].mxu1 }
 0x466   :  { %v7768_v32 = vpop.f32.mrb[61].mxu1 }
 0x467   :  { %9578 = vpow2.f32 %v7338_v15  ;;  %v7769_v4 = vadd.f32 %v7768_v32, %v7767_v3  ;;  %v8300_v53 = vpop.f32.mrb[70].mxu0 }
 0x468   :  { %v3687_v30 = vpop.f32.mrb[71].mxu0 }
 0x469   :  { %v7770_v14 = vpop.f32.mrb[62].mxu1  ;;  %v3583_v13 = vadd.f32 %v7769_v4, %v11602_v18  ;;  %v9645_v18 = vld [vmem:[%s13083_s0 + $0x18] sm:$0xff]  ;;  %v9646_v4 = vld [vmem:[%s13083_s0 + $0x20] sm:$0xff] }
 0x46a   :  { %v7771_v58 = vpop.f32.mrb[63].mxu1 }
 0x46b   :  { %v11652_v37 = vpop.eup %9572  ;;  %v7772_v0 = vadd.f32 %v7771_v58, %v7770_v14  ;;  %v3688_v52 = vadd.f32 %v3687_v30, %v3583_v13  ;;  %v9647_v13 = vld [vmem:[%s13083_s0 + $0x28] sm:$0xff] }
 0x46c   :  { %13647 = vst [vmem:[#allocation198_spill] sm:$0xff] %v11652_v37  ;;  %v3746_v25 = vmul.f32 %v9644_v2, %v11652_v37 }
 0x46d   :  { %v11658_v24 = vpop.eup %9574  ;;  %v3588_v44 = vadd.f32 %v7772_v0, %v11604_v49  ;;  %v7339_v22 = vmul.f32 -1.442695, %v3688_v52  ;;  %v9648_v52 = vld [vmem:[%s13083_s0 + $0x30] sm:$0xff] }
 0x46e   :  { %13648 = vst [vmem:[#allocation199_spill] sm:$0xff] %v11658_v24  ;;  %8322 = vmatpush3.msra.mxu0 %v3746_v25  ;;  %8327 = vmatpush3.msra.mxu1 %v3746_v25  ;;  %v3747_v47 = vmul.f32 %v9645_v18, %v11658_v24 }
 0x46f   :  { %8329 = vmatmul.mubr.msk.f32.vlgmr.msra.gmra.mrb[72].mxu1 %vm82_vm1, %v11628_v43  ;;  %8331 = vmatprep.subr.mxu0 %v13605_v46  ;;  %v9577_v9 = vpop.eup %9576  ;;  %v3693_v12 = vadd.f32 %v8300_v53, %v3588_v44  ;;  %9580 = vpow2.f32 %v7339_v22  ;;  %v9649_v44 = vld [vmem:[%s13083_s0 + $0x38] sm:$0xff] }
 0x470   :  { %8336 = vmatprep.subr.mxu1 %v13605_v46  ;;  %8324 = vmatmul.mubr.msk.f32.vlgmr.msra.gmra.mrb[72].mxu0 %vm82_vm1, %v11616_v39  ;;  %v3724_v49 = vadd.f32 1.0, %v9577_v9 }
 0x471   :  { %8332 = vmatpush3.msra.mxu0 %v3747_v47  ;;  %8337 = vmatpush3.msra.mxu1 %v3747_v47  ;;  %v9579_v17 = vpop.eup %9578  ;;  %v7340_v28 = vmul.f32 -1.442695, %v3693_v12 }
 0x472   :  { %8338 = vmatprep.mubr.msk.f32.mxu1 %vm9712_vm0, %v13605_v46  ;;  %8333 = vmatprep.mubr.msk.f32.mxu0 %vm9712_vm0, %v13605_v46  ;;  %v3725_v1 = vadd.f32 1.0, %v9579_v17  ;;  %9582 = vrcp.f32 %v3724_v49 }
 0x473   :  { %8339 = vmatmul.mubr.msk.f32.vlgmr.msra.gmra.mrb[74].mxu1 %vm82_vm1, %v11628_v43  ;;  %8341 = vmatprep.subr.mxu0 %v13605_v46  ;;  %9584 = vpow2.f32 %v7340_v28 }
 0x474   :  { %8334 = vmatmul.mubr.msk.f32.vlgmr.msra.gmra.mrb[74].mxu0 %vm82_vm1, %v11616_v39  ;;  %8346 = vmatprep.subr.mxu1 %v13605_v46  ;;  %9586 = vrcp.f32 %v3725_v1 }
 0x475   :  { %8348 = vmatprep.mubr.msk.f32.mxu1 %vm9712_vm0, %v13605_v46  ;;  %8343 = vmatprep.mubr.msk.f32.mxu0 %vm9712_vm0, %v13605_v46 }
 0x479   :  { %v9581_v7 = vpop.eup %9580 }
 0x47a   :  { %v3726_v15 = vadd.f32 1.0, %v9581_v7 }
 0x47c   :  { %v11685_v3 = vpop.eup %9582  ;;  %9588 = vrcp.f32 %v3726_v15 }
 0x47d   :  { %13649 = vst [vmem:[#allocation200_spill] sm:$0xff] %v11685_v3  ;;  %v9585_v32 = vpop.eup %9584  ;;  %v3748_v53 = vmul.f32 %v9646_v4, %v11685_v3 }
 0x47e   :  { %v11691_v30 = vpop.eup %9586  ;;  %v3727_v14 = vadd.f32 1.0, %v9585_v32 }
 0x47f   :  { %13650 = vst [vmem:[#allocation201_spill] sm:$0xff] %v11691_v30  ;;  %8342 = vmatpush3.msra.mxu0 %v3748_v53  ;;  %8347 = vmatpush3.msra.mxu1 %v3748_v53  ;;  %v3749_v58 = vmul.f32 %v9647_v13, %v11691_v30  ;;  %v5589_v30 = vld [vmem:[#allocation4 + $0x28] sm:$0xff] }
 0x480   :  { %9590 = vrcp.f32 %v3727_v14  ;;  %8349 = vmatmul.mubr.msk.f32.vlgmr.msra.gmra.mrb[76].mxu1 %vm82_vm1, %v11628_v43  ;;  %8351 = vmatprep.subr.mxu0 %v13605_v46 }
 0x481   :  { %8356 = vmatprep.subr.mxu1 %v13605_v46  ;;  %8344 = vmatmul.mubr.msk.f32.vlgmr.msra.gmra.mrb[76].mxu0 %vm82_vm1, %v11616_v39 }
 0x482   :  { %8352 = vmatpush3.msra.mxu0 %v3749_v58  ;;  %8357 = vmatpush3.msra.mxu1 %v3749_v58 }
 0x483   :  { %8358 = vmatprep.mubr.msk.f32.mxu1 %vm9712_vm0, %v13605_v46  ;;  %8353 = vmatprep.mubr.msk.f32.mxu0 %vm9712_vm0, %v13605_v46 }
 0x484   :  { %8359 = vmatmul.mubr.msk.f32.vlgmr.msra.gmra.mrb[78].mxu1 %vm82_vm1, %v11628_v43  ;;  %8361 = vmatprep.subr.mxu0 %v13605_v46 }
 0x485   :  { %8366 = vmatprep.subr.mxu1 %v13605_v46  ;;  %8354 = vmatmul.mubr.msk.f32.vlgmr.msra.gmra.mrb[78].mxu0 %vm82_vm1, %v11616_v39 }
 0x486   :  { %v11713_v0 = vpop.eup %9588  ;;  %8368 = vmatprep.mubr.msk.f32.mxu1 %vm9712_vm0, %v13605_v46  ;;  %8363 = vmatprep.mubr.msk.f32.mxu0 %vm9712_vm0, %v13605_v46 }
 0x487   :  { %13651 = vst [vmem:[#allocation202_spill] sm:$0xff] %v11713_v0  ;;  %v3750_v2 = vmul.f32 %v9648_v52, %v11713_v0  ;;  %v5588_v0 = vld [vmem:[#allocation4 + $0x20] sm:$0xff] }
 0x488   :  { %v8693_v3 = vpack.c.bf16 %v5589_v30, %v5588_v0  ;;  %v5611_v30 = vld [vmem:[#allocation4 + $0xd8] sm:$0xff]  ;;  %v5594_v0 = vld [vmem:[#allocation4 + $0x50] sm:$0xff] }
 0x489   :  { %8362 = vmatpush3.msra.mxu0 %v3750_v2  ;;  %8367 = vmatpush3.msra.mxu1 %v3750_v2 }
 0x48a   :  { %v11723_v25 = vpop.eup %9590  ;;  %8369 = vmatmul.mubr.msk.f32.vlgmr.msra.gmra.mrb[80].mxu1 %vm82_vm1, %v11628_v43  ;;  %8371 = vmatprep.subr.mxu0 %v13605_v46 }
 0x48b   :  { %13652 = vst [vmem:[#allocation203_spill] sm:$0xff] %v11723_v25  ;;  %8376 = vmatprep.subr.mxu1 %v13605_v46  ;;  %8364 = vmatmul.mubr.msk.f32.vlgmr.msra.gmra.mrb[80].mxu0 %vm82_vm1, %v11616_v39  ;;  %v3751_v22 = vmul.f32 %v9649_v44, %v11723_v25 }
 0x48c   :  { %8378 = vmatprep.mubr.msk.f32.mxu1 %vm9712_vm0, %v13605_v46  ;;  %8373 = vmatprep.mubr.msk.f32.mxu0 %vm9712_vm0, %v13605_v46  ;;  %v13675_v46 = vld [vmem:[#allocation58_spill] sm:$0xff] }
 0x48d   :  { %8372 = vmatpush3.msra.mxu0 %v3751_v22  ;;  %8377 = vmatpush3.msra.mxu1 %v3751_v22 }
 0x48e   :  { %8379 = vmatmul.mubr.msk.f32.vlgmr.msra.gmra.mrb[82].mxu1 %vm82_vm1, %v11628_v43 }
 0x48f   :  { %8374 = vmatmul.mubr.msk.f32.vlgmr.msra.gmra.mrb[82].mxu0 %vm82_vm1, %v11616_v39 }
 0x524   :  { %v11743_v18 = vpop.f32.mrb[64].mxu1 }
 0x525   :  { %v8305_v47 = vpop.f32.mrb[65].mxu1 }
 0x528   :  { %v3888_v9 = vpop.f32.mrb[66].mxu1 }
 0x529   :  { %3893 = vrot.lane.b32.xlu1 %v3888_v9, %s9720_s13  ;;  %v8310_v12 = vpop.f32.mrb[67].mxu1 }
 0x530   :  { %v11746_v49 = vpop.f32.mrb[68].mxu1 }
 0x531   :  { %v8315_v17 = vpop.f32.mrb[69].mxu1 }
 0x534   :  { %v4033_v28 = vpop.f32.mrb[70].mxu1 }
 0x535   :  { %4038 = vrot.lane.b32.xlu0 %v4033_v28, %s9720_s13  ;;  %v8320_v1 = vpop.f32.mrb[71].mxu1 }
 0x542   :  { %v4178_v7 = vpop.f32.mrb[72].mxu1 }
 0x543   :  { %4183 = vrot.lane.b32.xlu1 %v4178_v7, %s9720_s13  ;;  %v8330_v43 = vpop.f32.mrb[73].mxu1  ;;  %v11750_v15 = vpop.f32.mrb[72].mxu0 }
 0x544   :  { %v8325_v39 = vpop.f32.mrb[73].mxu0 }
 0x546   :  { %v4323_v32 = vpop.f32.mrb[74].mxu1 }
 0x547   :  { %4328 = vrot.lane.b32.xlu0 %v4323_v32, %s9720_s13  ;;  %v8340_v4 = vpop.f32.mrb[75].mxu1  ;;  %v11753_v53 = vpop.f32.mrb[74].mxu0 }
 0x548   :  { %v8335_v14 = vpop.f32.mrb[75].mxu0  ;;  %v5600_v4 = vld [vmem:[#allocation4 + $0x80] sm:$0xff] }
 0x549   :  { %v5601_v14 = vld [vmem:[#allocation4 + $0x88] sm:$0xff] }
 0x553   :  { %v4468_v13 = vpop.f32.mrb[76].mxu1 }
 0x554   :  { %4473 = vrot.lane.b32.xlu1 %v4468_v13, %s9720_s13  ;;  %v8350_v58 = vpop.f32.mrb[77].mxu1  ;;  %v11756_v52 = vpop.f32.mrb[76].mxu0  ;;  %v5584_v13 = vld [vmem:[#allocation4] sm:$0xff] }
 0x555   :  { %v8345_v2 = vpop.f32.mrb[77].mxu0  ;;  %v8683_v58 = vpack.c.bf16 %v5601_v14, %v5600_v4  ;;  %v5606_v4 = vld [vmem:[#allocation4 + $0xb0] sm:$0xff]  ;;  %v5607_v14 = vld [vmem:[#allocation4 + $0xb8] sm:$0xff] }
 0x556   :  { %v5585_v2 = vld [vmem:[#allocation4 + $0x8] sm:$0xff] }
 0x557   :  { %v4613_v44 = vpop.f32.mrb[78].mxu1  ;;  %8684 = vmatprep.subr.bf16.mxu0 %v8683_v58  ;;  %v8695_v58 = vpack.c.bf16 %v5607_v14, %v5606_v4  ;;  %v5612_v4 = vld [vmem:[#allocation4 + $0xe0] sm:$0xff]  ;;  %v5613_v14 = vld [vmem:[#allocation4 + $0xe8] sm:$0xff] }
 0x558   :  { %4618 = vrot.lane.b32.xlu0 %v4613_v44, %s9720_s13  ;;  %v8360_v22 = vpop.f32.mrb[79].mxu1  ;;  %v11759_v47 = vpop.f32.mrb[78].mxu0  ;;  %v8685_v44 = vpack.c.bf16 %v5585_v2, %v5584_v13  ;;  %v5590_v13 = vld [vmem:[#allocation4 + $0x30] sm:$0xff]  ;;  %v5591_v2 = vld [vmem:[#allocation4 + $0x38] sm:$0xff] }
 0x559   :  { %v8355_v9 = vpop.f32.mrb[79].mxu0  ;;  %v5602_v22 = vld [vmem:[#allocation4 + $0x90] sm:$0xff] }
 0x55a   :  { %8686 = vmatpush3.bf16.msra.mxu0 %v8685_v44  ;;  %v5603_v9 = vld [vmem:[#allocation4 + $0x98] sm:$0xff]  ;;  %v8697_v44 = vpack.c.bf16 %v5591_v2, %v5590_v13  ;;  %v5596_v13 = vld [vmem:[#allocation4 + $0x60] sm:$0xff]  ;;  %v5597_v2 = vld [vmem:[#allocation4 + $0x68] sm:$0xff] }
 0x55d   :  { %v4758_v12 = vpop.f32.mrb[80].mxu1 }
 0x55e   :  { %4763 = vrot.lane.b32.xlu1 %v4758_v12, %s9720_s13  ;;  %v8370_v17 = vpop.f32.mrb[81].mxu1  ;;  %v11762_v28 = vpop.f32.mrb[80].mxu0  ;;  %v5586_v12 = vld [vmem:[#allocation4 + $0x10] sm:$0xff] }
 0x55f   :  { %v8365_v1 = vpop.f32.mrb[81].mxu0  ;;  %v8687_v17 = vpack.c.bf16 %v5603_v9, %v5602_v22  ;;  %v5608_v22 = vld [vmem:[#allocation4 + $0xc0] sm:$0xff]  ;;  %v5609_v9 = vld [vmem:[#allocation4 + $0xc8] sm:$0xff] }
 0x560   :  { %v5587_v1 = vld [vmem:[#allocation4 + $0x18] sm:$0xff] }
 0x561   :  { %v4903_v7 = vpop.f32.mrb[82].mxu1  ;;  %v8689_v25 = vpack.c.bf16 %v5587_v1, %v5586_v12  ;;  %8688 = vmatprep.subr.bf16.mxu0 %v8687_v17  ;;  %v5592_v12 = vld [vmem:[#allocation4 + $0x40] sm:$0xff]  ;;  %v5593_v17 = vld [vmem:[#allocation4 + $0x48] sm:$0xff] }
 0x562   :  { %4908 = vrot.lane.b32.xlu0 %v4903_v7, %s9720_s13  ;;  %v8380_v43 = vpop.f32.mrb[83].mxu1  ;;  %v11765_v39 = vpop.f32.mrb[82].mxu0  ;;  %v5604_v7 = vld [vmem:[#allocation4 + $0xa0] sm:$0xff]  ;;  %v8701_v1 = vpack.c.bf16 %v5593_v17, %v5592_v12  ;;  %v5598_v12 = vld [vmem:[#allocation4 + $0x70] sm:$0xff]  ;;  %v5599_v17 = vld [vmem:[#allocation4 + $0x78] sm:$0xff] }
 0x563   :  { %v8375_v32 = vpop.f32.mrb[83].mxu0  ;;  %8690 = vmatpush3.bf16.msra.mxu0 %v8689_v25  ;;  %v5605_v43 = vld [vmem:[#allocation4 + $0xa8] sm:$0xff]  ;;  %v8699_v25 = vpack.c.bf16 %v5609_v9, %v5608_v22  ;;  %v5614_v22 = vld [vmem:[#allocation4 + $0xf0] sm:$0xff]  ;;  %v5615_v9 = vld [vmem:[#allocation4 + $0xf8] sm:$0xff] }
 0x564   :  { %v8691_v32 = vpack.c.bf16 %v5605_v43, %v5604_v7  ;;  %v5610_v7 = vld [vmem:[#allocation4 + $0xd0] sm:$0xff]  ;;  %v5595_v43 = vld [vmem:[#allocation4 + $0x58] sm:$0xff] }
 0x566   :  { %8692 = vmatprep.subr.bf16.mxu0 %v8691_v32  ;;  %v8705_v32 = vpack.c.bf16 %v5595_v43, %v5594_v0  ;;  %v13653_v0 = vld [vmem:[#allocation47_spill] sm:$0xff]  ;;  %v13654_v43 = vld [vmem:[#allocation32_spill] sm:$0xff] }
 0x567   :  { %8694 = vmatpush3.bf16.msra.mxu0 %v8693_v3  ;;  %v8703_v3 = vpack.c.bf16 %v5611_v30, %v5610_v7 }
 0x568   :  { %8696 = vmatprep.subr.bf16.mxu0 %v8695_v58  ;;  %v8707_v58 = vpack.c.bf16 %v5613_v14, %v5612_v4 }
 0x56b   :  { %8698 = vmatpush3.bf16.msra.mxu0 %v8697_v44  ;;  %v8709_v44 = vpack.c.bf16 %v5597_v2, %v5596_v13 }
 0x56c   :  { %8700 = vmatprep.subr.bf16.mxu0 %v8699_v25  ;;  %v8711_v25 = vpack.c.bf16 %v5615_v9, %v5614_v22  ;;  %v13658_v22 = vld [vmem:[#allocation11_spill] sm:$0xff] }
 0x56f   :  { %8702 = vmatpush3.bf16.msra.mxu0 %v8701_v1  ;;  %v8713_v1 = vpack.c.bf16 %v5599_v17, %v5598_v12  ;;  %v13659_v12 = vld [vmem:[#allocation10_spill] sm:$0xff]  ;;  %v13660_v17 = vld [vmem:[#allocation71_spill] sm:$0xff] }
 0x570   :  { %8704 = vmatprep.subr.bf16.mxu0 %v8703_v3 }
 0x573   :  { %8706 = vmatpush3.bf16.msra.mxu0 %v8705_v32 }
 0x574   :  { %8708 = vmatprep.subr.bf16.mxu0 %v8707_v58  ;;  %v13656_v58 = vld [vmem:[#allocation19_spill] sm:$0xff] }
 0x577   :  { %8710 = vmatpush3.bf16.msra.mxu0 %v8709_v44 }
 0x578   :  { %8712 = vmatprep.subr.bf16.mxu0 %v8711_v25 }
 0x57b   :  { %8714 = vmatpush3.bf16.msra.mxu0 %v8713_v1 }
 0x59b   :  { %v3894_v7 = vpop.permute.xlu1 %3893 }
 0x59c   :  { %v11769_v30 = vsel %vm235_vm2, %v11743_v18, %v3894_v7  ;;  %v13657_v18 = vld [vmem:[#allocation56_spill] sm:$0xff] }
 0x59d   :  { %v4920_v3 = vmul.f32 %v11769_v30, %v13653_v0  ;;  %v4936_v32 = vmul.f32 %v11769_v30, %v13654_v43  ;;  %v11782_v2 = vmul.f32 %v11769_v30, %v13656_v58  ;;  %v11786_v44 = vmul.f32 %v11769_v30, %v13657_v18  ;;  %v5633_v18 = vld [vmem:[#allocation4 + $0x188] sm:$0xff] }
 0x59f   :  { %v9319_v4 = vpack.i.bf16 %v4920_v3, %v4936_v32  ;;  %v11806_v3 = vmul.f32 %v11769_v30, %v13525_v20  ;;  %v11814_v32 = vmul.f32 %v11769_v30, %v13528_v54 }
 0x5a1   :  { %9320 = vrot.lane.b32.xlu1 %v9319_v4, %s9725_s14 }
 0x5a7   :  { %v4039_v14 = vpop.permute.xlu0 %4038 }
 0x5a8   :  { %v11778_v13 = vsel %vm235_vm2, %v11746_v49, %v4039_v14  ;;  %v13661_v49 = vld [vmem:[#allocation20_spill] sm:$0xff] }
 0x5a9   :  { %13655 = vst [vmem:[#allocation47_spill] sm:$0xff] %v11778_v13  ;;  %v4921_v9 = vmul.f32 %v11778_v13, %v13658_v22  ;;  %v4937_v25 = vmul.f32 %v11778_v13, %v13659_v12  ;;  %v11794_v1 = vmul.f32 %v11778_v13, %v13660_v17  ;;  %v11798_v7 = vmul.f32 %v11778_v13, %v13661_v49  ;;  %v5616_v22 = vld [vmem:[#allocation4 + $0x100] sm:$0xff]  ;;  %v5617_v12 = vld [vmem:[#allocation4 + $0x108] sm:$0xff]  ;;  %v13663_v49 = vld [vmem:[#allocation43_spill] sm:$0xff] }
 0x5aa   :  { %v11802_v0 = vmul.f32 %v11778_v13, %v13523_v60  ;;  %v11810_v43 = vmul.f32 %v11778_v13, %v13527_v59  ;;  %v5632_v59 = vld [vmem:[#allocation4 + $0x180] sm:$0xff]  ;;  %v11831_v58 = vmul.f32 %v11778_v13, %v13663_v49  ;;  %v13664_v60 = vld [vmem:[#allocation23_spill] sm:$0xff] }
 0x5ab   :  { %v9324_v4 = vpack.i.bf16 %v4921_v9, %v4937_v25  ;;  %v8715_v54 = vpack.c.bf16 %v5633_v18, %v5632_v59  ;;  %v8717_v9 = vpack.c.bf16 %v5617_v12, %v5616_v22  ;;  %v11835_v20 = vmul.f32 %v11778_v13, %v13664_v60  ;;  %v13666_v18 = vld [vmem:[#allocation34_spill] sm:$0xff]  ;;  %v13669_v49 = vld [vmem:[#allocation59_spill] sm:$0xff] }
 0x5ac   :  { %v13670_v60 = vld [vmem:[#allocation87_spill] sm:$0xff] }
 0x5ad   :  { %9325 = vrot.lane.b32.xlu0 %v9324_v4, %s9725_s14  ;;  %8716 = vmatprep.subr.bf16.mxu1 %v8715_v54  ;;  %v13665_v4 = vld [vmem:[#allocation12_spill] sm:$0xff]  ;;  %v13667_v54 = vld [vmem:[#allocation21_spill] sm:$0xff] }
 0x5ae   :  { %8718 = vmatpush3.bf16.msra.mxu1 %v8717_v9  ;;  %v11855_v9 = vmul.f32 %v11778_v13, %v13670_v60 }
 0x5b5   :  { %v4184_v25 = vpop.permute.xlu1 %4183 }
 0x5b6   :  { %v11827_v17 = vsel %vm235_vm2, %v11750_v15, %v4184_v25  ;;  %v13668_v15 = vld [vmem:[#allocation22_spill] sm:$0xff] }
 0x5b7   :  { %13662 = vst [vmem:[#allocation32_spill] sm:$0xff] %v11827_v17  ;;  %v4922_v59 = vmul.f32 %v11827_v17, %v13665_v4  ;;  %v4938_v22 = vmul.f32 %v11827_v17, %v13666_v18  ;;  %v11843_v12 = vmul.f32 %v11827_v17, %v13667_v54  ;;  %v11847_v25 = vmul.f32 %v11827_v17, %v13668_v15  ;;  %v13671_v4 = vld [vmem:[#allocation61_spill] sm:$0xff]  ;;  %v13672_v18 = vld [vmem:[#allocation62_spill] sm:$0xff]  ;;  %v13677_v15 = vld [vmem:[#allocation36_spill] sm:$0xff] }
 0x5b8   :  { %v11851_v14 = vmul.f32 %v11827_v17, %v13669_v49  ;;  %v11859_v24 = vmul.f32 %v11827_v17, %v13671_v4  ;;  %v11863_v54 = vmul.f32 %v11778_v13, %v13672_v18  ;;  %v11871_v60 = vmul.f32 %v11827_v17, %v13673_v34  ;;  %v13676_v49 = vld [vmem:[#allocation13_spill] sm:$0xff] }
 0x5b9   :  { %v4329_v37 = vpop.permute.xlu0 %4328  ;;  %v9329_v6 = vpack.i.bf16 %v4922_v59, %v4938_v22  ;;  %v11879_v18 = vmul.f32 %v11827_v17, %v13675_v46  ;;  %v13679_v46 = vld [vmem:[#allocation25_spill] sm:$0xff]  ;;  %v5634_v22 = vld [vmem:[#allocation4 + $0x190] sm:$0xff] }
 0x5ba   :  { %v11875_v4 = vsel %vm235_vm2, %v11753_v53, %v4329_v37  ;;  %v13678_v37 = vld [vmem:[#allocation74_spill] sm:$0xff] }
 0x5bb   :  { %13674 = vst [vmem:[#allocation19_spill] sm:$0xff] %v11875_v4  ;;  %9330 = vrot.lane.b32.xlu1 %v9329_v6, %s9725_s14  ;;  %v4923_v34 = vmul.f32 %v11875_v4, %v13676_v49  ;;  %v4939_v36 = vmul.f32 %v11875_v4, %v13677_v15  ;;  %v11892_v53 = vmul.f32 %v11875_v4, %v13678_v37 }
 0x5bc   :  { %v11896_v35 = vmul.f32 %v11875_v4, %v13679_v46  ;;  %v11900_v59 = vmul.f32 %v11875_v4, %v13548_v19  ;;  %v11904_v6 = vmul.f32 %v11827_v17, %v13551_v11  ;;  %v11908_v49 = vmul.f32 %v11875_v4, %v13553_v16 }
 0x5bd   :  { %v11912_v15 = vmul.f32 %v11827_v17, %v13555_v33  ;;  %v9334_v37 = vpack.i.bf16 %v4923_v34, %v4939_v36  ;;  %v5619_v33 = vld [vmem:[#allocation4 + $0x118] sm:$0xff]  ;;  %v5636_v36 = vld [vmem:[#allocation4 + $0x1a0] sm:$0xff]  ;;  %v5637_v34 = vld [vmem:[#allocation4 + $0x1a8] sm:$0xff]  ;;  %v8719_v46 = vpack.c.bf16 %v5635_v63, %v5634_v22  ;;  %v8747_v19 = vpack.c.bf16 %v5665_v62, %v5664_v26 }
 0x5be   :  { %v8721_v56 = vpack.c.bf16 %v5619_v33, %v5618_v23  ;;  %v8723_v38 = vpack.c.bf16 %v5637_v34, %v5636_v36  ;;  %v8725_v11 = vpack.c.bf16 %v5621_v10, %v5620_v42  ;;  %v8727_v16 = vpack.c.bf16 %v5639_v5, %v5638_v50  ;;  %v13680_v63 = vld [vmem:[#allocation27_spill] sm:$0xff]  ;;  %v13681_v23 = vld [vmem:[#allocation28_spill] sm:$0xff]  ;;  %v13686_v33 = vld [vmem:[#allocation26_spill] sm:$0xff] }
 0x5bf   :  { %9335 = vrot.lane.b32.xlu0 %v9334_v37, %s9725_s14  ;;  %8720 = vmatprep.subr.bf16.mxu1 %v8719_v46  ;;  %v5641_v37 = vld [vmem:[#allocation4 + $0x1c8] sm:$0xff]  ;;  %v11925_v22 = vmul.f32 %v11875_v4, %v13680_v63  ;;  %v11929_v62 = vmul.f32 %v11875_v4, %v13681_v23  ;;  %v8729_v26 = vpack.c.bf16 %v5623_v31, %v5622_v45  ;;  %v5642_v42 = vld [vmem:[#allocation4 + $0x1d0] sm:$0xff] }
 0x5c0   :  { %8748 = vmatprep.subr.bf16.mxu0 %v8747_v19  ;;  %8722 = vmatpush3.bf16.msra.mxu1 %v8721_v56  ;;  %v5625_v56 = vld [vmem:[#allocation4 + $0x148] sm:$0xff]  ;;  %v11937_v50 = vmul.f32 %v11875_v4, %v13562_v40  ;;  %v11941_v10 = vmul.f32 %v11875_v4, %v13566_v61  ;;  %v8731_v46 = vpack.c.bf16 %v5641_v37, %v5640_v29  ;;  %v13684_v19 = vld [vmem:[#allocation49_spill] sm:$0xff] }
 0x5c1   :  { %8724 = vmatprep.subr.bf16.mxu1 %v8723_v38  ;;  %v5643_v38 = vld [vmem:[#allocation4 + $0x1d8] sm:$0xff]  ;;  %v13685_v45 = vld [vmem:[#allocation14_spill] sm:$0xff] }
 0x5c2   :  { %13683 = vst [vmem:[#allocation11_spill] sm:$0xff] %v11941_v10  ;;  %v8735_v36 = vpack.c.bf16 %v5643_v38, %v5642_v42  ;;  %v5626_v38 = vld [vmem:[#allocation4 + $0x150] sm:$0xff]  ;;  %v13697_v42 = vld [vmem:[#allocation80_spill] sm:$0xff]  ;;  %v13718_v4 = vld [vmem:[#allocation38_spill] sm:$0xff] }
 0x5c4   :  { %8726 = vmatpush3.bf16.msra.mxu1 %v8725_v11 }
 0x5c5   :  { %8728 = vmatprep.subr.bf16.mxu1 %v8727_v16  ;;  %v8733_v16 = vpack.c.bf16 %v5625_v56, %v5624_v27  ;;  %v13699_v56 = vld [vmem:[#allocation81_spill] sm:$0xff] }
 0x5c6   :  { %v4474_v51 = vpop.permute.xlu1 %4473 }
 0x5c7   :  { %v11933_v5 = vsel %vm235_vm2, %v11756_v52, %v4474_v51  ;;  %v13687_v52 = vld [vmem:[#allocation65_spill] sm:$0xff] }
 0x5c8   :  { %13682 = vst [vmem:[#allocation56_spill] sm:$0xff] %v11933_v5  ;;  %v4924_v31 = vmul.f32 %v11933_v5, %v13684_v19  ;;  %v4940_v11 = vmul.f32 %v11933_v5, %v13685_v45  ;;  %v11949_v51 = vmul.f32 %v11933_v5, %v13686_v33  ;;  %v11953_v40 = vmul.f32 %v11933_v5, %v13687_v52  ;;  %v13690_v19 = vld [vmem:[#allocation45_spill] sm:$0xff] }
 0x5c9   :  { %v11957_v61 = vmul.f32 %v11933_v5, %v13561_v48  ;;  %v11961_v29 = vmul.f32 %v11933_v5, %v13565_v41  ;;  %v11969_v45 = vmul.f32 %v11933_v5, %v13690_v19  ;;  %8730 = vmatpush3.bf16.msra.mxu1 %v8729_v26  ;;  %v13692_v41 = vld [vmem:[#allocation31_spill] sm:$0xff]  ;;  %v13693_v26 = vld [vmem:[#allocation52_spill] sm:$0xff]  ;;  %v13695_v52 = vld [vmem:[#allocation29_spill] sm:$0xff] }
 0x5ca   :  { %v4619_v34 = vpop.permute.xlu0 %4618  ;;  %v9339_v37 = vpack.i.bf16 %v4924_v31, %v4940_v11  ;;  %v11977_v27 = vmul.f32 %v11933_v5, %v13692_v41  ;;  %8732 = vmatprep.subr.bf16.mxu1 %v8731_v46  ;;  %v5627_v31 = vld [vmem:[#allocation4 + $0x158] sm:$0xff]  ;;  %v13696_v19 = vld [vmem:[#allocation30_spill] sm:$0xff] }
 0x5cb   :  { %13688 = vst [vmem:[#allocation10_spill] sm:$0xff] %v11957_v61  ;;  %13689 = vst [vmem:[#allocation71_spill] sm:$0xff] %v11961_v29  ;;  %v11973_v48 = vsel %vm235_vm2, %v11759_v47, %v4619_v34  ;;  %v13694_v47 = vld [vmem:[#allocation15_spill] sm:$0xff]  ;;  %v8737_v21 = vpack.c.bf16 %v5627_v31, %v5626_v38  ;;  %v13708_v38 = vld [vmem:[#allocation46_spill] sm:$0xff] }
 0x5cc   :  { %13691 = vst [vmem:[#allocation20_spill] sm:$0xff] %v11973_v48  ;;  %9340 = vrot.lane.b32.xlu1 %v9339_v37, %s9725_s14  ;;  %v4925_v11 = vmul.f32 %v11973_v48, %v13693_v26  ;;  %v4941_v33 = vmul.f32 %v11973_v48, %v13694_v47  ;;  %v11990_v34 = vmul.f32 %v11973_v48, %v13695_v52  ;;  %v13701_v26 = vld [vmem:[#allocation83_spill] sm:$0xff]  ;;  %v13703_v47 = vld [vmem:[#allocation85_spill] sm:$0xff]  ;;  %v13709_v31 = vld [vmem:[#allocation48_spill] sm:$0xff] }
 0x5cd   :  { %v11994_v41 = vmul.f32 %v11973_v48, %v13696_v19  ;;  %v11998_v46 = vmul.f32 %v11973_v48, %v13697_v42  ;;  %v12002_v37 = vmul.f32 %v11933_v5, %v13699_v56  ;;  %v12006_v23 = vmul.f32 %v11973_v48, %v13701_v26  ;;  %8734 = vmatpush3.bf16.msra.mxu1 %v8733_v16  ;;  %v13715_v19 = vld [vmem:[#allocation92_spill] sm:$0xff]  ;;  %v13733_v29 = vld [vmem:[#allocation67_spill] sm:$0xff]  ;;  %v5644_v61 = vld [vmem:[#allocation4 + $0x1e0] sm:$0xff] }
 0x5ce   :  { %v12010_v52 = vmul.f32 %v11933_v5, %v13703_v47  ;;  %v9344_v63 = vpack.i.bf16 %v4925_v11, %v4941_v33  ;;  %v4968_v56 = vmul.f32 %v11769_v30, %v13705_v57  ;;  %v4952_v26 = vmul.f32 %v11769_v30, %v13706_v55  ;;  %8736 = vmatprep.subr.bf16.mxu1 %v8735_v36  ;;  %v13707_v47 = vld [vmem:[#allocation33_spill] sm:$0xff]  ;;  %v13713_v11 = vld [vmem:[#allocation91_spill] sm:$0xff]  ;;  %v13717_v5 = vld [vmem:[#allocation16_spill] sm:$0xff] }
 0x5cf   :  { %13698 = vst [vmem:[#allocation43_spill] sm:$0xff] %v11998_v46  ;;  %13700 = vst [vmem:[#allocation23_spill] sm:$0xff] %v12002_v37  ;;  %v12027_v16 = vmul.f32 %v11973_v48, %v13707_v47  ;;  %v12031_v57 = vmul.f32 %v11769_v30, %v13708_v38  ;;  %v12035_v55 = vmul.f32 %v11769_v30, %v13709_v31  ;;  %v13727_v37 = vld [vmem:[#allocation100_spill] sm:$0xff] }
 0x5d0   :  { %13702 = vst [vmem:[#allocation12_spill] sm:$0xff] %v12006_v23  ;;  %13704 = vst [vmem:[#allocation34_spill] sm:$0xff] %v12010_v52  ;;  %v4764_v33 = vpop.permute.xlu1 %4763  ;;  %9345 = vrot.lane.b32.xlu0 %v9344_v63, %s9725_s14  ;;  %v12039_v42 = vmul.f32 %v11769_v30, %v13710_v8  ;;  %v13712_v63 = vld [vmem:[#allocation60_spill] sm:$0xff]  ;;  %v12051_v38 = vmul.f32 %v11973_v48, %v13713_v11  ;;  %v12055_v31 = vmul.f32 %v11973_v48, %v13715_v19  ;;  %v13721_v11 = vld [vmem:[#allocation39_spill] sm:$0xff] }
 0x5d1   :  { %v12043_v36 = vsel %vm235_vm2, %v11762_v28, %v4764_v33  ;;  %v12047_v47 = vmul.f32 %v11973_v48, %v13712_v63  ;;  %v13719_v28 = vld [vmem:[#allocation76_spill] sm:$0xff]  ;;  %v13720_v63 = vld [vmem:[#allocation35_spill] sm:$0xff]  ;;  %8738 = vmatpush3.bf16.msra.mxu1 %v8737_v21  ;;  %v13725_v52 = vld [vmem:[#allocation90_spill] sm:$0xff] }
 0x5d2   :  { %13711 = vst [vmem:[#allocation21_spill] sm:$0xff] %v12043_v36  ;;  %13714 = vst [vmem:[#allocation22_spill] sm:$0xff] %v12051_v38  ;;  %v4926_v8 = vmul.f32 %v12043_v36, %v13717_v5  ;;  %v4942_v17 = vmul.f32 %v12043_v36, %v13718_v4  ;;  %v12063_v33 = vmul.f32 %v12043_v36, %v13719_v28  ;;  %v13722_v19 = vld [vmem:[#allocation40_spill] sm:$0xff] }
 0x5d3   :  { %13716 = vst [vmem:[#allocation59_spill] sm:$0xff] %v12055_v31  ;;  %v12067_v13 = vmul.f32 %v12043_v36, %v13720_v63  ;;  %v12071_v23 = vmul.f32 %v12043_v36, %v13721_v11  ;;  %v12075_v48 = vmul.f32 %v12043_v36, %v13722_v19  ;;  %v13723_v5 = vld [vmem:[#allocation88_spill] sm:$0xff]  ;;  %v12083_v28 = vmul.f32 %v12043_v36, %v13725_v52 }
 0x5d4   :  { %v12079_v4 = vmul.f32 %v12043_v36, %v13723_v5  ;;  %v4909_v46 = vpop.permute.xlu0 %4908  ;;  %v9349_v63 = vpack.i.bf16 %v4926_v8, %v4942_v17  ;;  %v9414_v21 = vpack.i.bf16 %v12027_v16, %v12063_v33  ;;  %v12091_v19 = vmul.f32 %v12043_v36, %v13727_v37  ;;  %v13729_v8 = vld [vmem:[#allocation97_spill] sm:$0xff] }
 0x5d5   :  { %13726 = vst [vmem:[#allocation61_spill] sm:$0xff] %v12083_v28  ;;  %v9419_v11 = vpack.i.bf16 %v12047_v47, %v12067_v13  ;;  %v12095_v5 = vsel %vm235_vm2, %v11765_v39, %v4909_v46  ;;  %v12103_v16 = vmul.f32 %v12043_v36, %v13729_v8  ;;  %v13730_v13 = vld [vmem:[#allocation41_spill] sm:$0xff]  ;;  %v13731_v47 = vld [vmem:[#allocation54_spill] sm:$0xff]  ;;  %v13735_v28 = vld [vmem:[#allocation63_spill] sm:$0xff] }
 0x5d6   :  { %13724 = vst [vmem:[#allocation87_spill] sm:$0xff] %v12079_v4  ;;  %13728 = vst [vmem:[#allocation62_spill] sm:$0xff] %v12095_v5  ;;  %9350 = vrot.lane.b32.xlu1 %v9349_v63, %s9725_s14  ;;  %v4943_v37 = vmul.f32 %v12095_v5, %v13730_v13  ;;  %v4927_v33 = vmul.f32 %v12095_v5, %v13731_v47  ;;  %v13732_v39 = vld [vmem:[#allocation37_spill] sm:$0xff]  ;;  %v4959_v52 = vmul.f32 %v12095_v5, %v13733_v29  ;;  %v13734_v4 = vld [vmem:[#allocation44_spill] sm:$0xff] }
 0x5d7   :  { %v4975_v46 = vmul.f32 %v12095_v5, %v13732_v39  ;;  %v5007_v17 = vmul.f32 %v12095_v5, %v13734_v4  ;;  %v4991_v8 = vmul.f32 %v12095_v5, %v13735_v28  ;;  %v13736_v36 = vld [vmem:[#allocation95_spill] sm:$0xff]  ;;  %v13737_v13 = vld [vmem:[#allocation96_spill] sm:$0xff]  ;;  %v5697_v28 = vld [vmem:[#allocation4 + $0x388] sm:$0xff] }
 0x5d8   :  { %v12120_v63 = vmul.f32 %v12095_v5, %v13736_v36  ;;  %v12124_v31 = vmul.f32 %v12095_v5, %v13737_v13  ;;  %v9354_v47 = vpack.i.bf16 %v4968_v56, %v4943_v37  ;;  %v9364_v38 = vpack.i.bf16 %v4952_v26, %v4927_v33  ;;  %v13738_v56 = vld [vmem:[#allocation9_spill] sm:$0xff]  ;;  %v5629_v37 = vld [vmem:[#allocation4 + $0x168] sm:$0xff] }
 0x5d9   :  { %v9424_v39 = vpack.i.bf16 %v12071_v23, %v4975_v46  ;;  %v9429_v29 = vpack.i.bf16 %v12075_v48, %v4959_v52  ;;  %v9434_v10 = vpack.i.bf16 %v12031_v57, %v5007_v17  ;;  %v9444_v4 = vpack.i.bf16 %v12035_v55, %v4991_v8  ;;  %v13739_v48 = vld [vmem:[#allocation99_spill] sm:$0xff]  ;;  %v13740_v57 = vld [vmem:[#allocation101_spill] sm:$0xff]  ;;  %v5645_v52 = vld [vmem:[#allocation4 + $0x1e8] sm:$0xff] }
 0x5da   :  { %9355 = vrot.lane.b32.xlu0 %v9354_v47, %s9725_s14  ;;  %9365 = vrot.lane.b32.xlu1 %v9364_v38, %s9725_s14  ;;  %v12138_v23 = vmul.f32 %v12095_v5, %v13738_v56  ;;  %v12142_v26 = vmul.f32 %v12095_v5, %v13739_v48  ;;  %v12146_v55 = vmul.f32 %v11769_v30, %v13740_v57  ;;  %v5628_v17 = vld [vmem:[#allocation4 + $0x160] sm:$0xff]  ;;  %v5646_v46 = vld [vmem:[#allocation4 + $0x1f0] sm:$0xff]  ;;  %v5647_v8 = vld [vmem:[#allocation4 + $0x1f8] sm:$0xff] }
 0x5db   :  { %v8739_v13 = vpack.c.bf16 %v5645_v52, %v5644_v61  ;;  %v8741_v47 = vpack.c.bf16 %v5629_v37, %v5628_v17  ;;  %v5630_v56 = vld [vmem:[#allocation4 + $0x170] sm:$0xff]  ;;  %v5631_v48 = vld [vmem:[#allocation4 + $0x178] sm:$0xff]  ;;  %v13741_v57 = vpack.i.bf16 %v11782_v2, %v11794_v1  ;;  %v13742_v36 = vpack.i.bf16 %v11786_v44, %v11798_v7  ;;  %v5696_v33 = vld [vmem:[#allocation4 + $0x380] sm:$0xff] }
 0x5dc   :  { %v8743_v38 = vpack.c.bf16 %v5647_v8, %v5646_v46  ;;  %v8745_v5 = vpack.c.bf16 %v5631_v48, %v5630_v56  ;;  %v8779_v61 = vpack.c.bf16 %v5697_v28, %v5696_v33  ;;  %v13743_v52 = vpack.i.bf16 %v11831_v58, %v11843_v12  ;;  %v5667_v28 = vld [vmem:[#allocation4 + $0x298] sm:$0xff]  ;;  %v5650_v46 = vld [vmem:[#allocation4 + $0x210] sm:$0xff] }
 0x5dd   :  { %8740 = vmatprep.subr.bf16.mxu1 %v8739_v13  ;;  %v13744_v2 = vpack.i.bf16 %v11835_v20, %v11847_v25  ;;  %v13745_v44 = vpack.i.bf16 %v11871_v60, %v11892_v53  ;;  %v13746_v1 = vpack.i.bf16 %v11879_v18, %v11896_v35  ;;  %v13747_v7 = vpack.i.bf16 %v11925_v22, %v11949_v51  ;;  %v13763_v53 = vld [vmem:[#allocation43_spill] sm:$0xff]  ;;  %v13766_v22 = vld [vmem:[#allocation12_spill] sm:$0xff]  ;;  %v13772_v51 = vld [vmem:[#allocation61_spill] sm:$0xff] }
 0x5de   :  { %9360 = vrot.lane.b32.xlu0 %v13741_v57, %s9725_s14  ;;  %9370 = vrot.lane.b32.xlu1 %v13742_v36, %s9725_s14  ;;  %v13748_v58 = vpack.i.bf16 %v11929_v62, %v11953_v40  ;;  %v13749_v20 = vpack.i.bf16 %v11969_v45, %v11990_v34  ;;  %v13750_v35 = vpack.i.bf16 %v11977_v27, %v11994_v41  ;;  %v13769_v62 = vld [vmem:[#allocation87_spill] sm:$0xff]  ;;  %v5648_v45 = vld [vmem:[#allocation4 + $0x200] sm:$0xff]  ;;  %v5649_v27 = vld [vmem:[#allocation4 + $0x208] sm:$0xff] }
 0x5df   :  { %8742 = vmatpush3.bf16.msra.mxu1 %v8741_v47  ;;  %v13751_v12 = vpack.i.bf16 %v11806_v3, %v11802_v0  ;;  %v13752_v25 = vpack.i.bf16 %v11814_v32, %v11810_v43  ;;  %v13753_v60 = vpack.i.bf16 %v11855_v9, %v11851_v14  ;;  %v13754_v18 = vpack.i.bf16 %v11863_v54, %v11859_v24  ;;  %v13757_v43 = vld [vmem:[#allocation10_spill] sm:$0xff]  ;;  %v13759_v14 = vld [vmem:[#allocation11_spill] sm:$0xff]  ;;  %v5651_v8 = vld [vmem:[#allocation4 + $0x218] sm:$0xff] }
 0x5e0   :  { %8744 = vmatprep.subr.bf16.mxu1 %v8743_v38  ;;  %v13755_v0 = vpack.i.bf16 %v11904_v6, %v11900_v59  ;;  %v13756_v3 = vpack.i.bf16 %v11912_v15, %v11908_v49  ;;  %v13758_v32 = vpack.i.bf16 %v11937_v50, %v13757_v43  ;;  %v13760_v9 = vld [vmem:[#allocation71_spill] sm:$0xff]  ;;  %v13765_v6 = vld [vmem:[#allocation34_spill] sm:$0xff]  ;;  %v8749_v36 = vpack.c.bf16 %v5649_v27, %v5648_v45  ;;  %v13778_v47 = vld [vmem:[#allocation112_spill] sm:$0xff] }
 0x5e1   :  { %v13761_v24 = vpack.i.bf16 %v13759_v14, %v13760_v9  ;;  %v13762_v54 = vld [vmem:[#allocation23_spill] sm:$0xff]  ;;  %v13767_v49 = vpack.i.bf16 %v13765_v6, %v13766_v22  ;;  %v13768_v15 = vld [vmem:[#allocation22_spill] sm:$0xff]  ;;  %v13776_v17 = vpack.i.bf16 %v12091_v19, %v12120_v63  ;;  %v13777_v37 = vpack.i.bf16 %v12103_v16, %v12124_v31  ;;  %v13783_v31 = vld [vmem:[#allocation125_spill] sm:$0xff] }
 0x5e2   :  { %9375 = vrot.lane.b32.xlu0 %v13743_v52, %s9725_s14  ;;  %9380 = vrot.lane.b32.xlu1 %v13744_v2, %s9725_s14  ;;  %v13764_v59 = vpack.i.bf16 %v13762_v54, %v13763_v53  ;;  %v13770_v50 = vpack.i.bf16 %v13768_v15, %v13769_v62  ;;  %v13779_v56 = vld [vmem:[#allocation47_spill] sm:$0xff]  ;;  %v13780_v57 = vld [vmem:[#allocation110_spill] sm:$0xff]  ;;  %v5668_v2 = vld [vmem:[#allocation4 + $0x2a0] sm:$0xff] }
 0x5e3   :  { %8746 = vmatpush3.bf16.msra.mxu1 %v8745_v5  ;;  %v5081_v48 = vmul.f32 %v13779_v56, %v13778_v47  ;;  %v5097_v19 = vmul.f32 %v13779_v56, %v13780_v57  ;;  %v13781_v63 = vld [vmem:[#allocation51_spill] sm:$0xff]  ;;  %v13790_v43 = vld [vmem:[#allocation56_spill] sm:$0xff]  ;;  %v13793_v22 = vld [vmem:[#allocation106_spill] sm:$0xff] }
 0x5e4   :  { %8780 = vmatprep.subr.bf16.mxu1 %v8779_v61  ;;  %v13782_v61 = vld [vmem:[#allocation32_spill] sm:$0xff]  ;;  %v5654_v15 = vld [vmem:[#allocation4 + $0x230] sm:$0xff]  ;;  %v13796_v27 = vld [vmem:[#allocation77_spill] sm:$0xff] }
 0x5e5   :  { %v5082_v52 = vmul.f32 %v13782_v61, %v13781_v63  ;;  %v5098_v16 = vmul.f32 %v13782_v61, %v13783_v31  ;;  %v13791_v14 = vld [vmem:[#allocation68_spill] sm:$0xff]  ;;  %v9524_v9 = vpack.i.bf16 %v5081_v48, %v5097_v19  ;;  %v13800_v57 = vld [vmem:[#allocation150_spill] sm:$0xff] }
 0x5e6   :  { %9385 = vrot.lane.b32.xlu0 %v13745_v44, %s9725_s14  ;;  %9390 = vrot.lane.b32.xlu1 %v13746_v1, %s9725_s14  ;;  %v5669_v44 = vld [vmem:[#allocation4 + $0x2a8] sm:$0xff]  ;;  %v8753_v1 = vpack.c.bf16 %v5651_v8, %v5650_v46  ;;  %v5655_v62 = vld [vmem:[#allocation4 + $0x238] sm:$0xff]  ;;  %v5656_v46 = vld [vmem:[#allocation4 + $0x240] sm:$0xff] }
 0x5e7   :  { %v5657_v8 = vld [vmem:[#allocation4 + $0x248] sm:$0xff] }
 0x5e8   :  { %v13801_v19 = vld [vmem:[#allocation62_spill] sm:$0xff] }
 0x5e9   :  { %v5087_v63 = vmul.f32 %v13801_v19, %v13800_v57 }
 0x5ea   :  { %9395 = vrot.lane.b32.xlu0 %v13747_v7, %s9725_s14  ;;  %9400 = vrot.lane.b32.xlu1 %v13748_v58, %s9725_s14  ;;  %v13784_v7 = vpack.i.bf16 %v12039_v42, %v12138_v23  ;;  %v13785_v58 = vpack.i.bf16 %v12146_v55, %v12142_v26  ;;  %v5100_v42 = vmul.f32 %v13790_v43, %v13791_v14  ;;  %v5670_v26 = vld [vmem:[#allocation4 + $0x2b0] sm:$0xff]  ;;  %v5671_v55 = vld [vmem:[#allocation4 + $0x2b8] sm:$0xff] }
 0x5eb   :  { %v8755_v23 = vpack.c.bf16 %v5669_v44, %v5668_v2  ;;  %v5675_v2 = vld [vmem:[#allocation4 + $0x2d8] sm:$0xff]  ;;  %v8765_v44 = vpack.c.bf16 %v5657_v8, %v5656_v46  ;;  %v13807_v46 = vld [vmem:[#allocation70_spill] sm:$0xff] }
 0x5ec   :  { %v4932_v8 = vmul.f32 %v13790_v43, %v13807_v46 }
 0x5ee   :  { %9405 = vrot.lane.b32.xlu0 %v13749_v20, %s9725_s14  ;;  %9410 = vrot.lane.b32.xlu1 %v13750_v35, %s9725_s14  ;;  %v13786_v20 = vld [vmem:[#allocation132_spill] sm:$0xff]  ;;  %v13787_v35 = vld [vmem:[#allocation19_spill] sm:$0xff] }
 0x5f2   :  { %9415 = vrot.lane.b32.xlu0 %v9414_v21, %s9725_s14  ;;  %9420 = vrot.lane.b32.xlu1 %v9419_v11, %s9725_s14  ;;  %v13774_v11 = vld [vmem:[#allocation42_spill] sm:$0xff] }
 0x5f3   :  { %v4928_v5 = vmul.f32 %v11769_v30, %v13774_v11 }
 0x5f6   :  { %9425 = vrot.lane.b32.xlu0 %v9424_v39, %s9725_s14  ;;  %9430 = vrot.lane.b32.xlu1 %v9429_v29, %s9725_s14  ;;  %v13775_v39 = vld [vmem:[#allocation104_spill] sm:$0xff] }
 0x5f7   :  { %v4912_v29 = vmul.f32 %v11769_v30, %v13775_v39  ;;  %v13798_v39 = vld [vmem:[#allocation21_spill] sm:$0xff] }
 0x5fa   :  { %9435 = vrot.lane.b32.xlu0 %v9434_v10, %s9725_s14  ;;  %9445 = vrot.lane.b32.xlu1 %v9444_v4, %s9725_s14  ;;  %v13771_v10 = vld [vmem:[#allocation59_spill] sm:$0xff] }
 0x5fb   :  { %v13773_v40 = vpack.i.bf16 %v13771_v10, %v13772_v51  ;;  %v5666_v4 = vld [vmem:[#allocation4 + $0x290] sm:$0xff]  ;;  %v13794_v51 = vld [vmem:[#allocation137_spill] sm:$0xff] }
 0x5fc   :  { %v8751_v13 = vpack.c.bf16 %v5667_v28, %v5666_v4  ;;  %v13799_v4 = vld [vmem:[#allocation141_spill] sm:$0xff] }
 0x5fd   :  { %v5102_v28 = vmul.f32 %v13798_v39, %v13799_v4 }
 0x5fe   :  { %9440 = vrot.lane.b32.xlu0 %v13751_v12, %s9725_s14  ;;  %9450 = vrot.lane.b32.xlu1 %v13752_v25, %s9725_s14  ;;  %v5083_v12 = vmul.f32 %v13787_v35, %v13786_v20  ;;  %v13788_v25 = vld [vmem:[#allocation130_spill] sm:$0xff]  ;;  %v5676_v20 = vld [vmem:[#allocation4 + $0x2e0] sm:$0xff] }
 0x602   :  { %9455 = vrot.lane.b32.xlu0 %v13753_v60, %s9725_s14  ;;  %9460 = vrot.lane.b32.xlu1 %v13754_v18, %s9725_s14  ;;  %v5099_v60 = vmul.f32 %v13787_v35, %v13788_v25  ;;  %v5652_v18 = vld [vmem:[#allocation4 + $0x220] sm:$0xff] }
 0x604   :  { %v9534_v53 = vpack.i.bf16 %v5083_v12, %v5099_v60  ;;  %v5677_v12 = vld [vmem:[#allocation4 + $0x2e8] sm:$0xff] }
 0x606   :  { %9465 = vrot.lane.b32.xlu0 %v13755_v0, %s9725_s14  ;;  %9470 = vrot.lane.b32.xlu1 %v13756_v3, %s9725_s14  ;;  %v5653_v0 = vld [vmem:[#allocation4 + $0x228] sm:$0xff]  ;;  %v13789_v3 = vld [vmem:[#allocation136_spill] sm:$0xff] }
 0x607   :  { %v8757_v54 = vpack.c.bf16 %v5653_v0, %v5652_v18  ;;  %v9650_v18 = vld [vmem:[%s13083_s0] sm:$0xff]  ;;  %v8771_v0 = vpack.c.bf16 %v5677_v12, %v5676_v20  ;;  %v13811_v20 = vld [vmem:[#allocation93_spill] sm:$0xff] }
 0x608   :  { %v12347_v12 = vmul.f32 %v11769_v30, %v13811_v20 }
 0x60a   :  { %9475 = vrot.lane.b32.xlu0 %v13758_v32, %s9725_s14  ;;  %9480 = vrot.lane.b32.xlu1 %v13761_v24, %s9725_s14  ;;  %v5084_v32 = vmul.f32 %v13790_v43, %v13789_v3  ;;  %v9529_v24 = vpack.i.bf16 %v5082_v52, %v5098_v16  ;;  %v13802_v52 = vld [vmem:[#allocation148_spill] sm:$0xff]  ;;  %v5674_v16 = vld [vmem:[#allocation4 + $0x2d0] sm:$0xff]  ;;  %v5660_v3 = vld [vmem:[#allocation4 + $0x260] sm:$0xff] }
 0x60b   :  { %v5103_v31 = vmul.f32 %v13801_v19, %v13802_v52 }
 0x60c   :  { %v9539_v10 = vpack.i.bf16 %v5084_v32, %v5100_v42  ;;  %v5661_v32 = vld [vmem:[#allocation4 + $0x268] sm:$0xff]  ;;  %v5678_v42 = vld [vmem:[#allocation4 + $0x2f0] sm:$0xff] }
 0x60d   :  { %v9554_v25 = vpack.i.bf16 %v5087_v63, %v5103_v31 }
 0x60e   :  { %9485 = vrot.lane.b32.xlu0 %v13764_v59, %s9725_s14  ;;  %9490 = vrot.lane.b32.xlu1 %v13767_v49, %s9725_s14  ;;  %v13792_v59 = vld [vmem:[#allocation50_spill] sm:$0xff]  ;;  %v4913_v49 = vmul.f32 %v13779_v56, %v13793_v22 }
 0x60f   :  { %v4929_v6 = vmul.f32 %v13779_v56, %v13792_v59  ;;  %v9651_v59 = vld [vmem:[%s13083_s0 + $0x8] sm:$0xff] }
 0x612   :  { %9495 = vrot.lane.b32.xlu0 %v13770_v50, %s9725_s14  ;;  %9500 = vrot.lane.b32.xlu1 %v13773_v40, %s9725_s14  ;;  %v13795_v40 = vld [vmem:[#allocation20_spill] sm:$0xff] }
 0x613   :  { %v9321_v34 = vpop.permute.xlu1 %9320  ;;  %v5085_v45 = vmul.f32 %v13795_v40, %v13794_v51  ;;  %v5728_v51 = vld [vmem:[#allocation4 + $0x480] sm:$0xff] }
 0x614   :  { %v9323_v41 = vunpack.i.h.bf16 %v9321_v34  ;;  %v9322_v21 = vunpack.i.l.bf16 %v9321_v34  ;;  %v5101_v34 = vmul.f32 %v13795_v40, %v13796_v27 }
 0x616   :  { %9505 = vrot.lane.b32.xlu0 %v13776_v17, %s9725_s14  ;;  %9510 = vrot.lane.b32.xlu1 %v13777_v37, %s9725_s14  ;;  %v5368_v33 = vsel %vm2484_vm3, %v4928_v5, %v9322_v21  ;;  %v5360_v38 = vsel %vm2484_vm3, %v4912_v29, %v9323_v41  ;;  %v8759_v41 = vpack.c.bf16 %v5671_v55, %v5670_v26  ;;  %v13797_v5 = vld [vmem:[#allocation143_spill] sm:$0xff]  ;;  %v5673_v17 = vld [vmem:[#allocation4 + $0x2c8] sm:$0xff]  ;;  %v13803_v26 = vld [vmem:[#allocation57_spill] sm:$0xff] }
 0x617   :  { %5843 = vmatprep.mubr.f32.mxu0 %v5368_v33  ;;  %v5086_v29 = vmul.f32 %v13798_v39, %v13797_v5  ;;  %v8761_v37 = vpack.c.bf16 %v5655_v62, %v5654_v15  ;;  %v9544_v47 = vpack.i.bf16 %v5085_v45, %v5101_v34  ;;  %v4930_v55 = vmul.f32 %v13782_v61, %v13803_v26  ;;  %v5662_v62 = vld [vmem:[#allocation4 + $0x270] sm:$0xff]  ;;  %v5729_v45 = vld [vmem:[#allocation4 + $0x488] sm:$0xff] }
 0x618   :  { %5844 = vmatmul.mubr.f32.vlgmr.msra.gmra.mrb[84].mxu0 %v5360_v38 }
 0x619   :  { %8750 = vmatpush3.bf16.msra.mxu0 %v8749_v36  ;;  %v5672_v36 = vld [vmem:[#allocation4 + $0x2c0] sm:$0xff]  ;;  %v9549_v48 = vpack.i.bf16 %v5086_v29, %v5102_v28  ;;  %v9652_v29 = vld [vmem:[%s13083_s0 + $0x10] sm:$0xff] }
 0x61a   :  { %9515 = vrot.lane.b32.xlu0 %v13784_v7, %s9725_s14  ;;  %9520 = vrot.lane.b32.xlu1 %v13785_v58, %s9725_s14  ;;  %v5659_v7 = vld [vmem:[#allocation4 + $0x258] sm:$0xff]  ;;  %v8767_v58 = vpack.c.bf16 %v5675_v2, %v5674_v16 }
 0x61b   :  { %8752 = vmatprep.subr.bf16.mxu0 %v8751_v13  ;;  %v8763_v13 = vpack.c.bf16 %v5673_v17, %v5672_v36  ;;  %v8811_v17 = vpack.c.bf16 %v5729_v45, %v5728_v51  ;;  %v13809_v16 = vld [vmem:[#allocation124_spill] sm:$0xff]  ;;  %v13823_v51 = vld [vmem:[#allocation138_spill] sm:$0xff] }
 0x61c   :  { %v4933_v2 = vmul.f32 %v13795_v40, %v13809_v16  ;;  %v12395_v45 = vmul.f32 %v13779_v56, %v13823_v51  ;;  %v12433_v16 = vld [vmem:[#allocation4 + $0x318] sm:$0xff] }
 0x61d   :  { %8754 = vmatpush3.bf16.msra.mxu0 %v8753_v1  ;;  %v5658_v1 = vld [vmem:[#allocation4 + $0x250] sm:$0xff] }
 0x61e   :  { %9525 = vrot.lane.b32.xlu0 %v9524_v9, %s9725_s14  ;;  %9530 = vrot.lane.b32.xlu1 %v9529_v24, %s9725_s14  ;;  %v8769_v60 = vpack.c.bf16 %v5659_v7, %v5658_v1 }
 0x61f   :  { %v9326_v50 = vpop.permute.xlu0 %9325  ;;  %8756 = vmatprep.subr.bf16.mxu0 %v8755_v23  ;;  %v5679_v23 = vld [vmem:[#allocation4 + $0x2f8] sm:$0xff] }
 0x620   :  { %v9328_v21 = vunpack.i.h.bf16 %v9326_v50  ;;  %v9327_v11 = vunpack.i.l.bf16 %v9326_v50  ;;  %v8775_v15 = vpack.c.bf16 %v5679_v23, %v5678_v42  ;;  %v5663_v50 = vld [vmem:[#allocation4 + $0x278] sm:$0xff] }
 0x621   :  { %8758 = vmatpush3.bf16.msra.mxu0 %v8757_v54  ;;  %v13804_v54 = vld [vmem:[#allocation108_spill] sm:$0xff]  ;;  %v8777_v4 = vpack.c.bf16 %v5663_v50, %v5662_v62  ;;  %v13822_v50 = vld [vmem:[#allocation113_spill] sm:$0xff] }
 0x622   :  { %9535 = vrot.lane.b32.xlu0 %v9534_v53, %s9725_s14  ;;  %9540 = vrot.lane.b32.xlu1 %v9539_v10, %s9725_s14  ;;  %v5369_v33 = vsel %vm2484_vm3, %v4929_v6, %v9327_v11  ;;  %v5361_v38 = vsel %vm2484_vm3, %v4913_v49, %v9328_v21  ;;  %v4914_v53 = vmul.f32 %v13782_v61, %v13804_v54  ;;  %v13806_v11 = vld [vmem:[#allocation64_spill] sm:$0xff] }
 0x623   :  { %5848 = vmatprep.mubr.f32.mxu0 %v5369_v33  ;;  %8760 = vmatprep.subr.bf16.mxu0 %v8759_v41  ;;  %v8773_v6 = vpack.c.bf16 %v5661_v32, %v5660_v3  ;;  %v13805_v41 = vld [vmem:[#allocation123_spill] sm:$0xff]  ;;  %v4915_v5 = vmul.f32 %v13787_v35, %v13806_v11  ;;  %v13816_v23 = vld [vmem:[#allocation128_spill] sm:$0xff] }
 0x624   :  { %5849 = vmatmul.mubr.f32.gmra.mrb[86].mxu0 %v5361_v38  ;;  %v4931_v21 = vmul.f32 %v13787_v35, %v13805_v41  ;;  %v13814_v3 = vld [vmem:[#allocation111_spill] sm:$0xff]  ;;  %v13825_v11 = vld [vmem:[#allocation84_spill] sm:$0xff] }
 0x625   :  { %8762 = vmatpush3.bf16.msra.mxu0 %v8761_v37  ;;  %v12359_v32 = vmul.f32 %v11769_v30, %v13814_v3  ;;  %v13833_v3 = vld [vmem:[#allocation126_spill] sm:$0xff] }
 0x626   :  { %9545 = vrot.lane.b32.xlu0 %v9544_v47, %s9725_s14  ;;  %9550 = vrot.lane.b32.xlu1 %v9549_v48, %s9725_s14 }
 0x627   :  { %8764 = vmatprep.subr.bf16.mxu0 %v8763_v13  ;;  %v13808_v13 = vld [vmem:[#allocation72_spill] sm:$0xff] }
 0x628   :  { %v4916_v47 = vmul.f32 %v13790_v43, %v13808_v13 }
 0x629   :  { %8766 = vmatpush3.bf16.msra.mxu0 %v8765_v44  ;;  %v13810_v44 = vld [vmem:[#allocation79_spill] sm:$0xff] }
 0x62a   :  { %9555 = vrot.lane.b32.xlu0 %v9554_v25, %s9725_s14  ;;  %6530 = vrot.lane.b32.xlu1 %v9650_v18, %s9720_s13  ;;  %v4917_v1 = vmul.f32 %v13795_v40, %v13810_v44  ;;  %v13812_v25 = vld [vmem:[#allocation55_spill] sm:$0xff]  ;;  %v13813_v18 = vld [vmem:[#allocation8_spill] sm:$0xff]  ;;  %v12437_v44 = vld [vmem:[#allocation4 + $0x408] sm:$0xff] }
 0x62b   :  { %8768 = vmatprep.subr.bf16.mxu0 %v8767_v58 }
 0x62d   :  { %v9331_v14 = vpop.permute.xlu1 %9330  ;;  %8770 = vmatpush3.bf16.msra.mxu0 %v8769_v60  ;;  %v12351_v60 = vmul.f32 %v11769_v30, %v13812_v25 }
 0x62e   :  { %v9333_v9 = vunpack.i.h.bf16 %v9331_v14  ;;  %v9332_v24 = vunpack.i.l.bf16 %v9331_v14  ;;  %6532 = vrot.lane.b32.xlu1 %v9651_v59, %s9720_s13  ;;  %8772 = vmatprep.subr.bf16.mxu0 %v8771_v0  ;;  %v12355_v0 = vmul.f32 %v11769_v30, %v13813_v18  ;;  %v13815_v14 = vld [vmem:[#allocation89_spill] sm:$0xff] }
 0x62f   :  { %v12363_v42 = vmul.f32 %v11769_v30, %v13815_v14  ;;  %v4935_v14 = vmul.f32 %v13801_v19, %v13833_v3 }
 0x630   :  { %v5370_v22 = vsel %vm2484_vm3, %v4930_v55, %v9332_v24  ;;  %v5362_v49 = vsel %vm2484_vm3, %v4914_v53, %v9333_v9  ;;  %v12367_v9 = vmul.f32 %v11769_v30, %v13816_v23  ;;  %v13817_v24 = vld [vmem:[#allocation129_spill] sm:$0xff]  ;;  %v13818_v55 = vld [vmem:[#allocation98_spill] sm:$0xff]  ;;  %v13819_v53 = vld [vmem:[#allocation139_spill] sm:$0xff] }
 0x631   :  { %v9336_v10 = vpop.permute.xlu0 %9335  ;;  %5853 = vmatprep.mubr.f32.mxu0 %v5370_v22  ;;  %8774 = vmatpush3.bf16.msra.mxu0 %v8773_v6  ;;  %v12371_v26 = vmul.f32 %v13779_v56, %v13817_v24  ;;  %v12375_v54 = vmul.f32 %v13779_v56, %v13818_v55  ;;  %v12379_v59 = vmul.f32 %v11769_v30, %v13819_v53  ;;  %v13820_v6 = vld [vmem:[#allocation155_spill] sm:$0xff]  ;;  %v13834_v23 = vld [vmem:[#allocation94_spill] sm:$0xff]  ;;  %v12451_v55 = vld [vmem:[#allocation4 + $0x3a0] sm:$0xff] }
 0x632   :  { %v9338_v27 = vunpack.i.h.bf16 %v9336_v10  ;;  %v9337_v34 = vunpack.i.l.bf16 %v9336_v10  ;;  %5854 = vmatmul.mubr.f32.gmra.mrb[88].mxu0 %v5362_v49  ;;  %6534 = vrot.lane.b32.xlu1 %v9652_v29, %s9720_s13  ;;  %v12383_v22 = vmul.f32 %v11769_v30, %v13820_v6  ;;  %v12391_v10 = vmul.f32 %v13779_v56, %v13822_v50  ;;  %v13826_v29 = vld [vmem:[#allocation86_spill] sm:$0xff]  ;;  %v12455_v6 = vld [vmem:[#allocation4 + $0x490] sm:$0xff] }
 0x633   :  { %8776 = vmatprep.subr.bf16.mxu0 %v8775_v15  ;;  %v13821_v15 = vld [vmem:[#allocation103_spill] sm:$0xff]  ;;  %v4919_v24 = vmul.f32 %v13801_v19, %v13834_v23  ;;  %v12453_v53 = vld [vmem:[#allocation4 + $0x3a8] sm:$0xff] }
 0x634   :  { %v5371_v28 = vsel %vm2484_vm3, %v4931_v21, %v9337_v34  ;;  %v5363_v36 = vsel %vm2484_vm3, %v4915_v5, %v9338_v27  ;;  %v12387_v62 = vmul.f32 %v13779_v56, %v13821_v15  ;;  %v13824_v27 = vld [vmem:[#allocation140_spill] sm:$0xff]  ;;  %v4934_v5 = vmul.f32 %v13798_v39, %v13825_v11  ;;  %v13836_v50 = vld [vmem:[#allocation114_spill] sm:$0xff] }
 0x635   :  { %5858 = vmatprep.mubr.f32.mxu0 %v5371_v28  ;;  %8778 = vmatpush3.bf16.msra.mxu0 %v8777_v4  ;;  %v12399_v34 = vmul.f32 %v13779_v56, %v13824_v27  ;;  %v4918_v4 = vmul.f32 %v13798_v39, %v13826_v29  ;;  %v12405_v28 = vld [vmem:[#allocation4 + $0x300] sm:$0xff]  ;;  %v12463_v51 = vmul.f32 %v13787_v35, %v13836_v50 }
 0x636   :  { %5859 = vmatmul.mubr.f32.gmra.mrb[90].mxu0 %v5363_v36  ;;  %8812 = vmatprep.subr.bf16.mxu0 %v8811_v17  ;;  %v12407_v36 = vld [vmem:[#allocation4 + $0x308] sm:$0xff]  ;;  %v12409_v17 = vld [vmem:[#allocation4 + $0x390] sm:$0xff]  ;;  %v12467_v29 = vld [vmem:[#allocation4 + $0x320] sm:$0xff] }
 0x63e   :  { %v9341_v37 = vpop.permute.xlu1 %9340 }
 0x63f   :  { %v9343_v33 = vunpack.i.h.bf16 %v9341_v37  ;;  %v9342_v38 = vunpack.i.l.bf16 %v9341_v37  ;;  %v12411_v37 = vld [vmem:[#allocation4 + $0x398] sm:$0xff] }
 0x641   :  { %v5372_v48 = vsel %vm2484_vm3, %v4932_v8, %v9342_v38  ;;  %v5364_v57 = vsel %vm2484_vm3, %v4916_v47, %v9343_v33  ;;  %v12413_v33 = vld [vmem:[#allocation4 + $0x310] sm:$0xff]  ;;  %v13828_v8 = vld [vmem:[#allocation105_spill] sm:$0xff] }
 0x642   :  { %v9346_v63 = vpop.permute.xlu0 %9345  ;;  %5863 = vmatprep.mubr.f32.mxu0 %v5372_v48  ;;  %v13827_v38 = vld [vmem:[#allocation131_spill] sm:$0xff]  ;;  %v12421_v13 = vmul.f32 %v13782_v61, %v13828_v8  ;;  %v13829_v47 = vld [vmem:[#allocation133_spill] sm:$0xff]  ;;  %v8783_v8 = vpack.c.bf16 %v12411_v37, %v12409_v17  ;;  %v12493_v37 = vld [vmem:[#allocation4 + $0x3b8] sm:$0xff] }
 0x643   :  { %v9348_v52 = vunpack.i.h.bf16 %v9346_v63  ;;  %v9347_v31 = vunpack.i.l.bf16 %v9346_v63  ;;  %5864 = vmatmul.mubr.f32.gmra.mrb[92].mxu0 %v5364_v57  ;;  %v12417_v46 = vmul.f32 %v13782_v61, %v13827_v38  ;;  %v12425_v48 = vmul.f32 %v13787_v35, %v13829_v47  ;;  %v13830_v57 = vld [vmem:[#allocation144_spill] sm:$0xff] }
 0x644   :  { %v12429_v63 = vmul.f32 %v13779_v56, %v13830_v57  ;;  %v8781_v38 = vpack.c.bf16 %v12407_v36, %v12405_v28  ;;  %v8785_v47 = vpack.c.bf16 %v12433_v16, %v12413_v33  ;;  %v12477_v57 = vld [vmem:[#allocation4 + $0x410] sm:$0xff]  ;;  %v12495_v33 = vld [vmem:[#allocation4 + $0x4a0] sm:$0xff]  ;;  %v12497_v16 = vld [vmem:[#allocation4 + $0x4a8] sm:$0xff] }
 0x645   :  { %v5373_v7 = vsel %vm2484_vm3, %v4933_v2, %v9347_v31  ;;  %v5365_v58 = vsel %vm2484_vm3, %v4917_v1, %v9348_v52  ;;  %v12435_v2 = vld [vmem:[#allocation4 + $0x400] sm:$0xff]  ;;  %v13831_v1 = vld [vmem:[#allocation107_spill] sm:$0xff] }
 0x646   :  { %5868 = vmatprep.mubr.f32.mxu0 %v5373_v7  ;;  %v12441_v7 = vmul.f32 %v13782_v61, %v13831_v1  ;;  %v13837_v1 = vld [vmem:[#allocation117_spill] sm:$0xff] }
 0x647   :  { %5869 = vmatmul.mubr.f32.gmra.mrb[94].mxu0 %v5365_v58  ;;  %v13832_v58 = vld [vmem:[#allocation109_spill] sm:$0xff] }
 0x648   :  { %v9351_v49 = vpop.permute.xlu1 %9350  ;;  %v12445_v20 = vmul.f32 %v13787_v35, %v13832_v58  ;;  %v12485_v58 = vmul.f32 %v13787_v35, %v13837_v1  ;;  %v12521_v1 = vld [vmem:[#allocation4 + $0x3c0] sm:$0xff] }
 0x649   :  { %v9353_v41 = vunpack.i.h.bf16 %v9351_v49  ;;  %v9352_v21 = vunpack.i.l.bf16 %v9351_v49  ;;  %v13835_v49 = vld [vmem:[#allocation115_spill] sm:$0xff] }
 0x64a   :  { %v12459_v15 = vmul.f32 %v13782_v61, %v13835_v49 }
 0x64b   :  { %v5374_v52 = vsel %vm2484_vm3, %v4934_v5, %v9352_v21  ;;  %v5366_v31 = vsel %vm2484_vm3, %v4918_v4, %v9353_v41  ;;  %v12465_v5 = vld [vmem:[#allocation4 + $0x498] sm:$0xff]  ;;  %v12469_v4 = vld [vmem:[#allocation4 + $0x328] sm:$0xff] }
 0x64c   :  { %v9366_v25 = vpop.permute.xlu1 %9365  ;;  %v9356_v18 = vpop.permute.xlu0 %9355  ;;  %5873 = vmatprep.mubr.f32.mxu0 %v5374_v52  ;;  %v12479_v52 = vld [vmem:[#allocation4 + $0x418] sm:$0xff]  ;;  %v8815_v23 = vpack.c.bf16 %v12465_v5, %v12455_v6 }
 0x64d   :  { %v9368_v27 = vunpack.i.h.bf16 %v9366_v25  ;;  %v9367_v41 = vunpack.i.l.bf16 %v9366_v25  ;;  %v9358_v21 = vunpack.i.h.bf16 %v9356_v18  ;;  %v9357_v11 = vunpack.i.l.bf16 %v9356_v18  ;;  %5874 = vmatmul.mubr.f32.gmra.mrb[96].mxu0 %v5366_v31  ;;  %v12481_v31 = vld [vmem:[#allocation4 + $0x3b0] sm:$0xff] }
 0x64f   :  { %v5375_v25 = vsel %vm2484_vm3, %v4935_v14, %v9357_v11  ;;  %v5384_v28 = vsel %vm2484_vm3, %v12347_v12, %v9358_v21  ;;  %v5367_v36 = vsel %vm2484_vm3, %v4919_v24, %v9367_v41  ;;  %v5376_v17 = vsel %vm2484_vm3, %v12351_v60, %v9368_v27  ;;  %v12505_v60 = vld [vmem:[#allocation4 + $0x330] sm:$0xff]  ;;  %v12507_v41 = vld [vmem:[#allocation4 + $0x338] sm:$0xff]  ;;  %v12509_v21 = vld [vmem:[#allocation4 + $0x420] sm:$0xff] }
 0x650   :  { %v9371_v18 = vpop.permute.xlu1 %9370  ;;  %v9361_v3 = vpop.permute.xlu0 %9360  ;;  %5878 = vmatprep.mubr.f32.mxu0 %v5375_v25  ;;  %5948 = vmatprep.mubr.f32.mxu1 %v5384_v28  ;;  %v8813_v14 = vpack.c.bf16 %v12437_v44, %v12435_v2  ;;  %v8787_v12 = vpack.c.bf16 %v12453_v53, %v12451_v55  ;;  %v12511_v11 = vld [vmem:[#allocation4 + $0x428] sm:$0xff]  ;;  %v8789_v2 = vpack.c.bf16 %v12469_v4, %v12467_v29  ;;  %v13842_v55 = vld [vmem:[#allocation120_spill] sm:$0xff] }
 0x651   :  { %v9373_v24 = vunpack.i.h.bf16 %v9371_v18  ;;  %v9372_v49 = vunpack.i.l.bf16 %v9371_v18  ;;  %v9363_v50 = vunpack.i.h.bf16 %v9361_v3  ;;  %v9362_v27 = vunpack.i.l.bf16 %v9361_v3  ;;  %5879 = vmatmul.mubr.f32.gmra.mrb[98].mxu0 %v5367_v36  ;;  %5949 = vmatmul.mubr.f32.vlgmr.msra.gmra.mrb[84].mxu1 %v5376_v17  ;;  %v12531_v28 = vld [vmem:[#allocation4 + $0x3c8] sm:$0xff]  ;;  %v12533_v36 = vld [vmem:[#allocation4 + $0x4b0] sm:$0xff]  ;;  %v12535_v17 = vld [vmem:[#allocation4 + $0x4b8] sm:$0xff] }
 0x652   :  { %8782 = vmatpush3.bf16.msra.mxu1 %v8781_v38  ;;  %v8817_v44 = vpack.c.bf16 %v12479_v52, %v12477_v57 }
 0x653   :  { %v5385_v25 = vsel %vm2484_vm3, %v12371_v26, %v9362_v27  ;;  %v5400_v38 = vsel %vm2484_vm3, %v12355_v0, %v9363_v50  ;;  %v5377_v29 = vsel %vm2484_vm3, %v12375_v54, %v9372_v49  ;;  %v5392_v4 = vsel %vm2484_vm3, %v12359_v32, %v9373_v24  ;;  %8784 = vmatprep.subr.bf16.mxu1 %v8783_v8  ;;  %v13838_v54 = vld [vmem:[#allocation135_spill] sm:$0xff]  ;;  %v12545_v8 = vld [vmem:[#allocation4 + $0x340] sm:$0xff]  ;;  %v12551_v0 = vld [vmem:[#allocation4 + $0x438] sm:$0xff] }
 0x654   :  { %v9381_v18 = vpop.permute.xlu1 %9380  ;;  %v9376_v3 = vpop.permute.xlu0 %9375  ;;  %5953 = vmatprep.mubr.f32.mxu1 %v5385_v25  ;;  %6053 = vmatprep.mubr.f32.mxu0 %v5400_v38  ;;  %v12543_v32 = vmul.f32 %v13790_v43, %v13838_v54  ;;  %v12547_v25 = vld [vmem:[#allocation4 + $0x348] sm:$0xff]  ;;  %v12549_v38 = vld [vmem:[#allocation4 + $0x430] sm:$0xff]  ;;  %v13839_v26 = vld [vmem:[#allocation116_spill] sm:$0xff] }
 0x655   :  { %v9383_v24 = vunpack.i.h.bf16 %v9381_v18  ;;  %v9382_v49 = vunpack.i.l.bf16 %v9381_v18  ;;  %v9378_v50 = vunpack.i.h.bf16 %v9376_v3  ;;  %v9377_v27 = vunpack.i.l.bf16 %v9376_v3  ;;  %5954 = vmatmul.mubr.f32.gmra.mrb[86].mxu1 %v5377_v29  ;;  %6054 = vmatmul.mubr.f32.vlgmr.msra.gmra.mrb[100].mxu0 %v5392_v4  ;;  %v12583_v18 = vld [vmem:[#allocation4 + $0x350] sm:$0xff] }
 0x656   :  { %8786 = vmatpush3.bf16.msra.mxu1 %v8785_v47  ;;  %8814 = vmatpush3.bf16.msra.mxu0 %v8813_v14  ;;  %v4948_v54 = vmul.f32 %v13790_v43, %v13839_v26 }
 0x657   :  { %v5386_v29 = vsel %vm2484_vm3, %v12417_v46, %v9377_v27  ;;  %v5401_v4 = vsel %vm2484_vm3, %v12387_v62, %v9378_v50  ;;  %v5378_v3 = vsel %vm2484_vm3, %v12421_v13, %v9382_v49  ;;  %v5393_v47 = vsel %vm2484_vm3, %v12391_v10, %v9383_v24  ;;  %8788 = vmatprep.subr.bf16.mxu1 %v8787_v12  ;;  %v13840_v27 = vld [vmem:[#allocation66_spill] sm:$0xff]  ;;  %v12575_v50 = vld [vmem:[#allocation4 + $0x3d0] sm:$0xff]  ;;  %v12577_v13 = vld [vmem:[#allocation4 + $0x3d8] sm:$0xff] }
 0x658   :  { %v9391_v14 = vpop.permute.xlu1 %9390  ;;  %v9386_v26 = vpop.permute.xlu0 %9385  ;;  %5958 = vmatprep.mubr.f32.mxu1 %v5386_v29  ;;  %6058 = vmatprep.mubr.f32.mxu0 %v5401_v4  ;;  %v12573_v62 = vmul.f32 %v13795_v40, %v13840_v27  ;;  %v12579_v10 = vld [vmem:[#allocation4 + $0x4c0] sm:$0xff]  ;;  %v12581_v4 = vld [vmem:[#allocation4 + $0x4c8] sm:$0xff]  ;;  %v12585_v46 = vld [vmem:[#allocation4 + $0x358] sm:$0xff] }
 0x659   :  { %v9393_v12 = vunpack.i.h.bf16 %v9391_v14  ;;  %v9392_v24 = vunpack.i.l.bf16 %v9391_v14  ;;  %v9388_v49 = vunpack.i.h.bf16 %v9386_v26  ;;  %v9387_v29 = vunpack.i.l.bf16 %v9386_v26  ;;  %5959 = vmatmul.mubr.f32.gmra.mrb[88].mxu1 %v5378_v3  ;;  %6059 = vmatmul.mubr.f32.gmra.mrb[102].mxu0 %v5393_v47  ;;  %v13841_v27 = vld [vmem:[#allocation118_spill] sm:$0xff]  ;;  %v13843_v26 = vld [vmem:[#allocation119_spill] sm:$0xff] }
 0x65a   :  { %8816 = vmatprep.subr.bf16.mxu0 %v8815_v23  ;;  %8790 = vmatpush3.bf16.msra.mxu1 %v8789_v2  ;;  %v4996_v53 = vmul.f32 %v13790_v43, %v13841_v27  ;;  %v4949_v14 = vmul.f32 %v13795_v40, %v13842_v55  ;;  %v12596_v3 = vmul.f32 %v13790_v43, %v13843_v26  ;;  %v12609_v2 = vld [vmem:[#allocation4 + $0x440] sm:$0xff]  ;;  %v12611_v55 = vld [vmem:[#allocation4 + $0x448] sm:$0xff] }
 0x65b   :  { %8818 = vmatpush3.bf16.msra.mxu0 %v8817_v44  ;;  %v5387_v47 = vsel %vm2484_vm3, %v12425_v48, %v9387_v29  ;;  %v5402_v6 = vsel %vm2484_vm3, %v12441_v7, %v9388_v49  ;;  %v5379_v5 = vsel %vm2484_vm3, %v12445_v20, %v9392_v24  ;;  %v5394_v23 = vsel %vm2484_vm3, %v12459_v15, %v9393_v12  ;;  %v13846_v29 = vld [vmem:[#allocation82_spill] sm:$0xff] }
 0x65c   :  { %v9401_v27 = vpop.permute.xlu1 %9400  ;;  %v9396_v26 = vpop.permute.xlu0 %9395  ;;  %5963 = vmatprep.mubr.f32.mxu1 %v5387_v47  ;;  %6063 = vmatprep.mubr.f32.mxu0 %v5402_v6  ;;  %v8799_v48 = vpack.c.bf16 %v12577_v13, %v12575_v50  ;;  %v8827_v7 = vpack.c.bf16 %v12581_v4, %v12579_v10  ;;  %v8801_v20 = vpack.c.bf16 %v12585_v46, %v12583_v18  ;;  %v13847_v6 = vld [vmem:[#allocation69_spill] sm:$0xff]  ;;  %v5695_v4 = vld [vmem:[#allocation4 + $0x378] sm:$0xff] }
 0x65d   :  { %v9403_v57 = vunpack.i.h.bf16 %v9401_v27  ;;  %v9402_v52 = vunpack.i.l.bf16 %v9401_v27  ;;  %v9398_v15 = vunpack.i.h.bf16 %v9396_v26  ;;  %v9397_v44 = vunpack.i.l.bf16 %v9396_v26  ;;  %5964 = vmatmul.mubr.f32.gmra.mrb[90].mxu1 %v5379_v5  ;;  %6064 = vmatmul.mubr.f32.gmra.mrb[104].mxu0 %v5394_v23  ;;  %v12646_v23 = vld [vmem:[#allocation4 + $0x3e0] sm:$0xff] }
 0x65e   :  { %v13844_v12 = vpack.c.bf16 %v12493_v37, %v12481_v31  ;;  %v13845_v24 = vpack.c.bf16 %v12497_v16, %v12495_v33  ;;  %v8829_v49 = vpack.c.bf16 %v12611_v55, %v12609_v2  ;;  %v12629_v47 = vmul.f32 %v13798_v39, %v13846_v29  ;;  %v12648_v2 = vld [vmem:[#allocation4 + $0x3e8] sm:$0xff]  ;;  %v12666_v29 = vld [vmem:[#allocation4 + $0x360] sm:$0xff] }
 0x65f   :  { %v12633_v27 = vmul.f32 %v13795_v40, %v13847_v6  ;;  %v13848_v5 = vpack.c.bf16 %v12507_v41, %v12505_v60  ;;  %v13849_v31 = vpack.c.bf16 %v12511_v11, %v12509_v21  ;;  %v5388_v37 = vsel %vm2484_vm3, %v12543_v32, %v9397_v44  ;;  %v13850_v41 = vld [vmem:[#allocation127_spill] sm:$0xff]  ;;  %v13851_v11 = vld [vmem:[#allocation121_spill] sm:$0xff] }
 0x660   :  { %8792 = vmatprep.subr.bf16.mxu1 %v13844_v12  ;;  %8820 = vmatprep.subr.bf16.mxu0 %v13845_v24  ;;  %v5403_v33 = vsel %vm2484_vm3, %v12463_v51, %v9398_v15  ;;  %v5380_v16 = vsel %vm2484_vm3, %v4948_v54, %v9402_v52  ;;  %v9411_v55 = vpop.permute.xlu1 %9410  ;;  %v9406_v26 = vpop.permute.xlu0 %9405  ;;  %v5395_v60 = vsel %vm2484_vm3, %v12485_v58, %v9403_v57  ;;  %v12656_v44 = vld [vmem:[#allocation4 + $0x4d0] sm:$0xff]  ;;  %v5739_v12 = vld [vmem:[#allocation4 + $0x4d8] sm:$0xff]  ;;  %v13854_v6 = vld [vmem:[#allocation73_spill] sm:$0xff] }
 0x661   :  { %8794 = vmatpush3.bf16.msra.mxu1 %v13848_v5  ;;  %8822 = vmatpush3.bf16.msra.mxu0 %v13849_v31  ;;  %v4950_v21 = vmul.f32 %v13798_v39, %v13850_v41  ;;  %v4981_v32 = vmul.f32 %v13795_v40, %v13851_v11  ;;  %v9413_v51 = vunpack.i.h.bf16 %v9411_v55  ;;  %v9412_v15 = vunpack.i.l.bf16 %v9411_v55  ;;  %v13855_v31 = vld [vmem:[#allocation134_spill] sm:$0xff]  ;;  %v12693_v11 = vld [vmem:[#allocation4 + $0x3f8] sm:$0xff]  ;;  %v13860_v46 = vld [vmem:[#allocation53_spill] sm:$0xff] }
 0x662   :  { %5968 = vmatprep.mubr.f32.mxu1 %v5388_v37  ;;  %6068 = vmatprep.mubr.f32.mxu0 %v5403_v33  ;;  %v9408_v54 = vunpack.i.h.bf16 %v9406_v26  ;;  %v9407_v52 = vunpack.i.l.bf16 %v9406_v26  ;;  %v13852_v24 = vpack.c.bf16 %v12531_v28, %v12521_v1  ;;  %v13853_v58 = vpack.c.bf16 %v12535_v17, %v12533_v36 }
 0x663   :  { %5969 = vmatmul.mubr.f32.gmra.mrb[92].mxu1 %v5380_v16  ;;  %6069 = vmatmul.mubr.f32.gmra.mrb[106].mxu0 %v5395_v60  ;;  %v8803_v57 = vpack.c.bf16 %v12648_v2, %v12646_v23  ;;  %v12670_v5 = vmul.f32 %v13801_v19, %v13854_v6  ;;  %v12674_v37 = vmul.f32 %v13798_v39, %v13855_v31  ;;  %v5693_v16 = vld [vmem:[#allocation4 + $0x368] sm:$0xff]  ;;  %v5722_v23 = vld [vmem:[#allocation4 + $0x450] sm:$0xff]  ;;  %v5723_v2 = vld [vmem:[#allocation4 + $0x458] sm:$0xff] }
 0x664   :  { %8796 = vmatprep.subr.bf16.mxu1 %v13852_v24  ;;  %8824 = vmatprep.subr.bf16.mxu0 %v13853_v58  ;;  %v13856_v1 = vpack.c.bf16 %v12547_v25, %v12545_v8  ;;  %v13857_v28 = vpack.c.bf16 %v12551_v0, %v12549_v38  ;;  %v5389_v36 = vsel %vm2484_vm3, %v12573_v62, %v9407_v52  ;;  %v9421_v55 = vpop.permute.xlu1 %9420  ;;  %v9416_v26 = vpop.permute.xlu0 %9415  ;;  %v13858_v25 = vld [vmem:[#allocation78_spill] sm:$0xff]  ;;  %v5740_v52 = vld [vmem:[#allocation4 + $0x4e0] sm:$0xff]  ;;  %v5743_v31 = vld [vmem:[#allocation4 + $0x4f8] sm:$0xff] }
 0x665   :  { %v5404_v17 = vsel %vm2484_vm3, %v4996_v53, %v9408_v54  ;;  %v5381_v33 = vsel %vm2484_vm3, %v4949_v14, %v9412_v15  ;;  %5973 = vmatprep.mubr.f32.mxu1 %v5389_v36  ;;  %v5396_v8 = vsel %vm2484_vm3, %v12596_v3, %v9413_v51  ;;  %v8831_v0 = vpack.c.bf16 %v5739_v12, %v12656_v44  ;;  %v12691_v14 = vld [vmem:[#allocation4 + $0x3f0] sm:$0xff]  ;;  %v13859_v15 = vld [vmem:[#allocation122_spill] sm:$0xff] }
 0x666   :  { %8798 = vmatpush3.bf16.msra.mxu1 %v13856_v1  ;;  %8826 = vmatpush3.bf16.msra.mxu0 %v13857_v28  ;;  %v4951_v38 = vmul.f32 %v13801_v19, %v13858_v25  ;;  %v9423_v62 = vunpack.i.h.bf16 %v9421_v55  ;;  %v9422_v60 = vunpack.i.l.bf16 %v9421_v55  ;;  %v9418_v53 = vunpack.i.h.bf16 %v9416_v26  ;;  %v5741_v44 = vld [vmem:[#allocation4 + $0x4e8] sm:$0xff]  ;;  %v5694_v12 = vld [vmem:[#allocation4 + $0x370] sm:$0xff]  ;;  %v5727_v55 = vld [vmem:[#allocation4 + $0x478] sm:$0xff] }
 0x667   :  { %6073 = vmatprep.mubr.f32.mxu0 %v5404_v17  ;;  %v9417_v41 = vunpack.i.l.bf16 %v9416_v26  ;;  %5974 = vmatmul.mubr.f32.gmra.mrb[94].mxu1 %v5381_v33  ;;  %v8805_v3 = vpack.c.bf16 %v5693_v16, %v12666_v29  ;;  %v8833_v51 = vpack.c.bf16 %v5723_v2, %v5722_v23  ;;  %v4982_v54 = vmul.f32 %v13798_v39, %v13859_v15  ;;  %v5761_v17 = vld [vmem:[#allocation4 + $0x588] sm:$0xff]  ;;  %v5726_v33 = vld [vmem:[#allocation4 + $0x470] sm:$0xff]  ;;  %v5744_v26 = vld [vmem:[#allocation4 + $0x500] sm:$0xff] }
 0x668   :  { %6074 = vmatmul.mubr.f32.gmra.mrb[108].mxu0 %v5396_v8  ;;  %8800 = vmatprep.subr.bf16.mxu1 %v8799_v48  ;;  %v5405_v13 = vsel %vm2484_vm3, %v12633_v27, %v9418_v53  ;;  %v5382_v10 = vsel %vm2484_vm3, %v4950_v21, %v9422_v60  ;;  %v5724_v48 = vld [vmem:[#allocation4 + $0x460] sm:$0xff]  ;;  %v9431_v24 = vpop.permute.xlu1 %9430  ;;  %v9426_v58 = vpop.permute.xlu0 %9425  ;;  %v5397_v29 = vsel %vm2484_vm3, %v4981_v32, %v9423_v62  ;;  %v5742_v21 = vld [vmem:[#allocation4 + $0x4f0] sm:$0xff] }
 0x669   :  { %8828 = vmatprep.subr.bf16.mxu0 %v8827_v7  ;;  %v5390_v50 = vsel %vm2484_vm3, %v12629_v47, %v9417_v41  ;;  %v5725_v7 = vld [vmem:[#allocation4 + $0x468] sm:$0xff]  ;;  %6078 = vmatprep.mubr.f32.mxu0 %v5405_v13  ;;  %v8807_v18 = vpack.c.bf16 %v12693_v11, %v12691_v14  ;;  %v9432_v47 = vunpack.i.l.bf16 %v9431_v24  ;;  %v9428_v27 = vunpack.i.h.bf16 %v9426_v58  ;;  %v5760_v32 = vld [vmem:[#allocation4 + $0x580] sm:$0xff]  ;;  %v13861_v62 = vld [vmem:[#allocation75_spill] sm:$0xff] }
 0x66a   :  { %8802 = vmatpush3.bf16.msra.mxu1 %v8801_v20  ;;  %8830 = vmatpush3.bf16.msra.mxu0 %v8829_v49  ;;  %v4999_v20 = vmul.f32 %v13801_v19, %v13860_v46  ;;  %v9433_v49 = vunpack.i.h.bf16 %v9431_v24  ;;  %v9427_v6 = vunpack.i.l.bf16 %v9426_v58  ;;  %v8835_v1 = vpack.c.bf16 %v5741_v44, %v5740_v52  ;;  %v5762_v41 = vld [vmem:[#allocation4 + $0x590] sm:$0xff] }
 0x66b   :  { %5978 = vmatprep.mubr.f32.mxu1 %v5390_v50  ;;  %8804 = vmatprep.subr.bf16.mxu1 %v8803_v57  ;;  %v8809_v28 = vpack.c.bf16 %v5695_v4, %v5694_v12  ;;  %v8837_v36 = vpack.c.bf16 %v5725_v7, %v5724_v48  ;;  %v5406_v23 = vsel %vm2484_vm3, %v12674_v37, %v9428_v27  ;;  %v5745_v57 = vld [vmem:[#allocation4 + $0x508] sm:$0xff]  ;;  %v5746_v13 = vld [vmem:[#allocation4 + $0x510] sm:$0xff] }
 0x66c   :  { %5979 = vmatmul.mubr.f32.gmra.mrb[96].mxu1 %v5382_v10  ;;  %6079 = vmatmul.mubr.f32.gmra.mrb[110].mxu0 %v5397_v29  ;;  %v5391_v16 = vsel %vm2484_vm3, %v12670_v5, %v9427_v6  ;;  %v5383_v2 = vsel %vm2484_vm3, %v4951_v38, %v9432_v47  ;;  %v9446_v8 = vpop.permute.xlu1 %9445  ;;  %v5398_v25 = vsel %vm2484_vm3, %v4982_v54, %v9433_v49  ;;  %v5763_v38 = vld [vmem:[#allocation4 + $0x598] sm:$0xff]  ;;  %v5765_v49 = vld [vmem:[#allocation4 + $0x5a8] sm:$0xff] }
 0x66d   :  { %8832 = vmatprep.subr.bf16.mxu0 %v8831_v0  ;;  %v9436_v0 = vpop.permute.xlu0 %9435  ;;  %5983 = vmatprep.mubr.f32.mxu1 %v5391_v16  ;;  %v4983_v60 = vmul.f32 %v13801_v19, %v13861_v62  ;;  %v8839_v53 = vpack.c.bf16 %v5743_v31, %v5742_v21  ;;  %v9448_v5 = vunpack.i.h.bf16 %v9446_v8  ;;  %v9447_v14 = vunpack.i.l.bf16 %v9446_v8  ;;  %v5747_v10 = vld [vmem:[#allocation4 + $0x518] sm:$0xff]  ;;  %v13862_v27 = vld [vmem:[#allocation142_spill] sm:$0xff] }
 0x66e   :  { %8806 = vmatpush3.bf16.msra.mxu1 %v8805_v3  ;;  %8834 = vmatpush3.bf16.msra.mxu0 %v8833_v51  ;;  %v9438_v11 = vunpack.i.h.bf16 %v9436_v0  ;;  %v9437_v37 = vunpack.i.l.bf16 %v9436_v0  ;;  %v5776_v3 = vld [vmem:[#allocation4 + $0x600] sm:$0xff]  ;;  %v5777_v51 = vld [vmem:[#allocation4 + $0x608] sm:$0xff]  ;;  %v8843_v15 = vpack.c.bf16 %v5761_v17, %v5760_v32  ;;  %v8841_v52 = vpack.c.bf16 %v5727_v55, %v5726_v33  ;;  %v5767_v8 = vld [vmem:[#allocation4 + $0x5b8] sm:$0xff] }
 0x66f   :  { %6083 = vmatprep.mubr.f32.mxu0 %v5406_v23  ;;  %8808 = vmatprep.subr.bf16.mxu1 %v8807_v18  ;;  %v8845_v44 = vpack.c.bf16 %v5745_v57, %v5744_v26  ;;  %v5399_v50 = vsel %vm2484_vm3, %v4983_v60, %v9447_v14  ;;  %v5408_v7 = vsel %vm2484_vm3, %v12367_v9, %v9448_v5  ;;  %v13863_v21 = vld [vmem:[#allocation158_spill] sm:$0xff]  ;;  %v13866_v60 = vld [vmem:[#allocation152_spill] sm:$0xff] }
 0x670   :  { %5984 = vmatmul.mubr.f32.gmra.mrb[98].mxu1 %v5383_v2  ;;  %6084 = vmatmul.mubr.f32.gmra.mrb[112].mxu0 %v5398_v25  ;;  %v5407_v54 = vsel %vm2484_vm3, %v4999_v20, %v9437_v37  ;;  %v5416_v12 = vsel %vm2484_vm3, %v12363_v42, %v9438_v11  ;;  %v9451_v4 = vpop.permute.xlu1 %9450  ;;  %v8847_v24 = vpack.c.bf16 %v5763_v38, %v5762_v41  ;;  %v5764_v42 = vld [vmem:[#allocation4 + $0x5a0] sm:$0xff]  ;;  %v5749_v32 = vld [vmem:[#allocation4 + $0x528] sm:$0xff]  ;;  %v5750_v11 = vld [vmem:[#allocation4 + $0x530] sm:$0xff] }
 0x671   :  { %8836 = vmatprep.subr.bf16.mxu0 %v8835_v1  ;;  %v9441_v48 = vpop.permute.xlu0 %9440  ;;  %6088 = vmatprep.mubr.f32.mxu0 %v5407_v54  ;;  %v8875_v58 = vpack.c.bf16 %v5777_v51, %v5776_v3  ;;  %v9453_v29 = vunpack.i.h.bf16 %v9451_v4  ;;  %v9452_v18 = vunpack.i.l.bf16 %v9451_v4  ;;  %v8849_v47 = vpack.c.bf16 %v5747_v10, %v5746_v13  ;;  %v13864_v23 = vld [vmem:[#allocation146_spill] sm:$0xff]  ;;  %v13865_v25 = vld [vmem:[#allocation145_spill] sm:$0xff]  ;;  %v5751_v37 = vld [vmem:[#allocation4 + $0x538] sm:$0xff] }
 0x672   :  { %8810 = vmatpush3.bf16.msra.mxu1 %v8809_v28  ;;  %8838 = vmatpush3.bf16.msra.mxu0 %v8837_v36  ;;  %v9443_v46 = vunpack.i.h.bf16 %v9441_v48  ;;  %v9442_v20 = vunpack.i.l.bf16 %v9441_v48  ;;  %v5026_v6 = vmul.f32 %v13782_v61, %v13862_v27  ;;  %v5041_v31 = vmul.f32 %v13779_v56, %v13863_v21  ;;  %v5748_v36 = vld [vmem:[#allocation4 + $0x520] sm:$0xff]  ;;  %v13867_v51 = vld [vmem:[#allocation154_spill] sm:$0xff] }
 0x673   :  { %6158 = vmatprep.mubr.f32.mxu1 %v5416_v12  ;;  %8840 = vmatprep.subr.bf16.mxu0 %v8839_v53  ;;  %v5409_v28 = vsel %vm2484_vm3, %v12399_v34, %v9452_v18  ;;  %v5552_v16 = vsel %vm2484_vm3, %v12383_v22, %v9453_v29  ;;  %v5010_v2 = vmul.f32 %v13782_v61, %v13864_v23  ;;  %v5766_v34 = vld [vmem:[#allocation4 + $0x5b0] sm:$0xff]  ;;  %v5768_v10 = vld [vmem:[#allocation4 + $0x5c0] sm:$0xff]  ;;  %v5769_v4 = vld [vmem:[#allocation4 + $0x5c8] sm:$0xff] }
 0x674   :  { %6089 = vmatmul.mubr.f32.gmra.mrb[114].mxu0 %v5399_v50  ;;  %8844 = vmatprep.subr.bf16.mxu1 %v8843_v15  ;;  %v5417_v9 = vsel %vm2484_vm3, %v12395_v45, %v9442_v20  ;;  %v5560_v1 = vsel %vm2484_vm3, %v12379_v59, %v9443_v46  ;;  %v9461_v17 = vpop.permute.xlu1 %9460  ;;  %v8851_v55 = vpack.c.bf16 %v5765_v49, %v5764_v42  ;;  %v13870_v29 = vld [vmem:[#allocation156_spill] sm:$0xff]  ;;  %v5778_v46 = vld [vmem:[#allocation4 + $0x610] sm:$0xff]  ;;  %v5753_v27 = vld [vmem:[#allocation4 + $0x548] sm:$0xff] }
 0x675   :  { %6159 = vmatmul.mubr.f32.vlgmr.msra.gmra.mrb[100].mxu1 %v5408_v7  ;;  %v9456_v33 = vpop.permute.xlu0 %9455  ;;  %6263 = vmatprep.mubr.f32.mxu0 %v5560_v1  ;;  %v9463_v45 = vunpack.i.h.bf16 %v9461_v17  ;;  %v9462_v26 = vunpack.i.l.bf16 %v9461_v17  ;;  %v8853_v0 = vpack.c.bf16 %v5749_v32, %v5748_v36  ;;  %v5027_v62 = vmul.f32 %v13787_v35, %v13865_v25  ;;  %v13869_v7 = vld [vmem:[#allocation147_spill] sm:$0xff]  ;;  %v13872_v1 = vld [vmem:[#allocation162_spill] sm:$0xff] }
 0x676   :  { %8842 = vmatpush3.bf16.msra.mxu0 %v8841_v52  ;;  %8846 = vmatpush3.bf16.msra.mxu1 %v8845_v44  ;;  %v9458_v57 = vunpack.i.h.bf16 %v9456_v33  ;;  %v9457_v59 = vunpack.i.l.bf16 %v9456_v33  ;;  %v5058_v22 = vmul.f32 %v13782_v61, %v13866_v60  ;;  %v5011_v15 = vmul.f32 %v13787_v35, %v13867_v51  ;;  %v13868_v52 = vld [vmem:[#allocation160_spill] sm:$0xff]  ;;  %v5770_v23 = vld [vmem:[#allocation4 + $0x5d0] sm:$0xff] }
 0x677   :  { %6163 = vmatprep.mubr.f32.mxu1 %v5417_v9  ;;  %8848 = vmatprep.subr.bf16.mxu1 %v8847_v24  ;;  %v5410_v5 = vsel %vm2484_vm3, %v5010_v2, %v9462_v26  ;;  %v5553_v14 = vsel %vm2484_vm3, %v5041_v31, %v9463_v45  ;;  %v5042_v44 = vmul.f32 %v13782_v61, %v13868_v52  ;;  %v13871_v31 = vld [vmem:[#allocation157_spill] sm:$0xff]  ;;  %v5771_v2 = vld [vmem:[#allocation4 + $0x5d8] sm:$0xff] }
 0x678   :  { %8876 = vmatprep.subr.bf16.mxu0 %v8875_v58  ;;  %v5418_v53 = vsel %vm2484_vm3, %v5026_v6, %v9457_v59  ;;  %v5561_v41 = vsel %vm2484_vm3, %v12429_v63, %v9458_v57  ;;  %v9471_v38 = vpop.permute.xlu1 %9470  ;;  %v8855_v54 = vpack.c.bf16 %v5767_v8, %v5766_v34  ;;  %v8857_v48 = vpack.c.bf16 %v5751_v37, %v5750_v11  ;;  %v13873_v45 = vld [vmem:[#allocation149_spill] sm:$0xff]  ;;  %v13874_v57 = vld [vmem:[#allocation159_spill] sm:$0xff]  ;;  %v5755_v60 = vld [vmem:[#allocation4 + $0x558] sm:$0xff] }
 0x679   :  { %6164 = vmatmul.mubr.f32.gmra.mrb[102].mxu1 %v5409_v28  ;;  %6264 = vmatmul.mubr.f32.vlgmr.msra.gmra.mrb[116].mxu0 %v5552_v16  ;;  %v9466_v3 = vpop.permute.xlu0 %9465  ;;  %v9473_v12 = vunpack.i.h.bf16 %v9471_v38  ;;  %v9472_v50 = vunpack.i.l.bf16 %v9471_v38  ;;  %v5028_v24 = vmul.f32 %v13790_v43, %v13869_v7  ;;  %v5059_v18 = vmul.f32 %v13787_v35, %v13870_v29  ;;  %v5772_v52 = vld [vmem:[#allocation4 + $0x5e0] sm:$0xff]  ;;  %v5757_v29 = vld [vmem:[#allocation4 + $0x568] sm:$0xff] }
 0x67a   :  { %8850 = vmatpush3.bf16.msra.mxu1 %v8849_v47  ;;  %6168 = vmatprep.mubr.f32.mxu1 %v5418_v53  ;;  %v9468_v63 = vunpack.i.h.bf16 %v9466_v3  ;;  %v9467_v13 = vunpack.i.l.bf16 %v9466_v3  ;;  %v5752_v47 = vld [vmem:[#allocation4 + $0x540] sm:$0xff]  ;;  %v5012_v9 = vmul.f32 %v13790_v43, %v13871_v31  ;;  %v5043_v28 = vmul.f32 %v13787_v35, %v13872_v1  ;;  %v5775_v1 = vld [vmem:[#allocation4 + $0x5f8] sm:$0xff] }
 0x67b   :  { %6268 = vmatprep.mubr.f32.mxu0 %v5561_v41  ;;  %8852 = vmatprep.subr.bf16.mxu1 %v8851_v55  ;;  %v5411_v49 = vsel %vm2484_vm3, %v5011_v15, %v9472_v50  ;;  %v8859_v36 = vpack.c.bf16 %v5769_v4, %v5768_v10  ;;  %v8861_v55 = vpack.c.bf16 %v5753_v27, %v5752_v47  ;;  %v13875_v41 = vld [vmem:[#allocation161_spill] sm:$0xff] }
 0x67c   :  { %8878 = vmatpush3.bf16.msra.mxu0 %v8875_v58  ;;  %v5419_v20 = vsel %vm2484_vm3, %v5027_v62, %v9467_v13  ;;  %v5562_v42 = vsel %vm2484_vm3, %v5058_v22, %v9468_v63  ;;  %v5554_v58 = vsel %vm2484_vm3, %v5042_v44, %v9473_v12  ;;  %v9481_v6 = vpop.permute.xlu1 %9480  ;;  %v5029_v26 = vmul.f32 %v13795_v40, %v13873_v45  ;;  %v5754_v62 = vld [vmem:[#allocation4 + $0x550] sm:$0xff]  ;;  %v5773_v44 = vld [vmem:[#allocation4 + $0x5e8] sm:$0xff]  ;;  %v13878_v63 = vld [vmem:[#allocation164_spill] sm:$0xff] }
 0x67d   :  { %6169 = vmatmul.mubr.f32.gmra.mrb[104].mxu1 %v5410_v5  ;;  %6269 = vmatmul.mubr.f32.gmra.mrb[118].mxu0 %v5553_v14  ;;  %v9476_v21 = vpop.permute.xlu0 %9475  ;;  %v9483_v32 = vunpack.i.h.bf16 %v9481_v6  ;;  %v9482_v17 = vunpack.i.l.bf16 %v9481_v6  ;;  %v5060_v59 = vmul.f32 %v13790_v43, %v13874_v57  ;;  %v5013_v5 = vmul.f32 %v13795_v40, %v13875_v41  ;;  %v13876_v14 = vld [vmem:[#allocation163_spill] sm:$0xff] }
 0x67e   :  { %8854 = vmatpush3.bf16.msra.mxu1 %v8853_v0  ;;  %6173 = vmatprep.mubr.f32.mxu1 %v5419_v20  ;;  %v9478_v33 = vunpack.i.h.bf16 %v9476_v21  ;;  %v9477_v16 = vunpack.i.l.bf16 %v9476_v21  ;;  %v5044_v11 = vmul.f32 %v13790_v43, %v13876_v14  ;;  %v8863_v37 = vpack.c.bf16 %v5771_v2, %v5770_v23  ;;  %v13877_v12 = vld [vmem:[#allocation151_spill] sm:$0xff]  ;;  %v13879_v20 = vld [vmem:[#allocation165_spill] sm:$0xff]  ;;  %v13885_v14 = vld [vmem:[#allocation172_spill] sm:$0xff] }
 0x67f   :  { %6273 = vmatprep.mubr.f32.mxu0 %v5562_v42  ;;  %8856 = vmatprep.subr.bf16.mxu1 %v8855_v54  ;;  %v5412_v0 = vsel %vm2484_vm3, %v5012_v9, %v9482_v17  ;;  %v5555_v25 = vsel %vm2484_vm3, %v5043_v28, %v9483_v32  ;;  %v8865_v54 = vpack.c.bf16 %v5755_v60, %v5754_v62  ;;  %v5774_v9 = vld [vmem:[#allocation4 + $0x5f0] sm:$0xff]  ;;  %v13882_v17 = vld [vmem:[#allocation168_spill] sm:$0xff] }
 0x680   :  { %8385 = vmatprep.subr.mxu0 %v5778_v46  ;;  %v5420_v34 = vsel %vm2484_vm3, %v5028_v24, %v9477_v16  ;;  %v5563_v8 = vsel %vm2484_vm3, %v5059_v18, %v9478_v33  ;;  %v9491_v22 = vpop.permute.xlu1 %9490  ;;  %v5030_v50 = vmul.f32 %v13798_v39, %v13877_v12  ;;  %v5061_v13 = vmul.f32 %v13795_v40, %v13878_v63  ;;  %v5756_v24 = vld [vmem:[#allocation4 + $0x560] sm:$0xff]  ;;  %v5758_v45 = vld [vmem:[#allocation4 + $0x570] sm:$0xff]  ;;  %v13887_v12 = vld [vmem:[#allocation174_spill] sm:$0xff] }
 0x681   :  { %6174 = vmatmul.mubr.f32.gmra.mrb[106].mxu1 %v5411_v49  ;;  %6274 = vmatmul.mubr.f32.gmra.mrb[120].mxu0 %v5554_v58  ;;  %v9486_v53 = vpop.permute.xlu0 %9485  ;;  %v9493_v38 = vunpack.i.h.bf16 %v9491_v22  ;;  %v9492_v3 = vunpack.i.l.bf16 %v9491_v22  ;;  %v5014_v42 = vmul.f32 %v13798_v39, %v13879_v20  ;;  %v13880_v49 = vld [vmem:[#allocation166_spill] sm:$0xff]  ;;  %v8867_v47 = vpack.c.bf16 %v5773_v44, %v5772_v52  ;;  %v13886_v44 = vld [vmem:[#allocation169_spill] sm:$0xff]  ;;  %v13888_v63 = vld [vmem:[#allocation171_spill] sm:$0xff] }
 0x682   :  { %8858 = vmatpush3.bf16.msra.mxu1 %v8857_v48  ;;  %6178 = vmatprep.mubr.f32.mxu1 %v5420_v34  ;;  %v9488_v51 = vunpack.i.h.bf16 %v9486_v53  ;;  %v9487_v15 = vunpack.i.l.bf16 %v9486_v53  ;;  %v5045_v58 = vmul.f32 %v13795_v40, %v13880_v49  ;;  %v8869_v28 = vpack.c.bf16 %v5757_v29, %v5756_v24  ;;  %v13883_v34 = vld [vmem:[#allocation170_spill] sm:$0xff] }
 0x683   :  { %6278 = vmatprep.mubr.f32.mxu0 %v5563_v8  ;;  %8860 = vmatprep.subr.bf16.mxu1 %v8859_v36  ;;  %v5413_v48 = vsel %vm2484_vm3, %v5013_v5, %v9492_v3  ;;  %v5556_v7 = vsel %vm2484_vm3, %v5044_v11, %v9493_v38  ;;  %v13881_v36 = vld [vmem:[#allocation153_spill] sm:$0xff]  ;;  %v5062_v33 = vmul.f32 %v13798_v39, %v13882_v17 }
 0x684   :  { %8386 = vmatpush3.msra.mxu0 %v5778_v46  ;;  %v5421_v10 = vsel %vm2484_vm3, %v5029_v26, %v9487_v15  ;;  %v5564_v4 = vsel %vm2484_vm3, %v5060_v59, %v9488_v51  ;;  %v9501_v18 = vpop.permute.xlu1 %9500  ;;  %v5031_v32 = vmul.f32 %v13801_v19, %v13881_v36  ;;  %v5759_v26 = vld [vmem:[#allocation4 + $0x578] sm:$0xff]  ;;  %v5015_v8 = vmul.f32 %v13801_v19, %v13883_v34  ;;  %v13892_v36 = vld [vmem:[#allocation181_spill] sm:$0xff] }
 0x685   :  { %6179 = vmatmul.mubr.f32.gmra.mrb[108].mxu1 %v5412_v0  ;;  %6279 = vmatmul.mubr.f32.gmra.mrb[122].mxu0 %v5555_v25  ;;  %v9496_v46 = vpop.permute.xlu0 %9495  ;;  %v9503_v27 = vunpack.i.h.bf16 %v9501_v18  ;;  %v9502_v6 = vunpack.i.l.bf16 %v9501_v18  ;;  %v13884_v0 = vld [vmem:[#allocation167_spill] sm:$0xff]  ;;  %v8871_v62 = vpack.c.bf16 %v5775_v1, %v5774_v9  ;;  %v8873_v5 = vpack.c.bf16 %v5759_v26, %v5758_v45 }
 0x686   :  { %8862 = vmatpush3.bf16.msra.mxu1 %v8861_v55  ;;  %6183 = vmatprep.mubr.f32.mxu1 %v5421_v10  ;;  %v9498_v21 = vunpack.i.h.bf16 %v9496_v46  ;;  %v9497_v31 = vunpack.i.l.bf16 %v9496_v46  ;;  %v5046_v25 = vmul.f32 %v13798_v39, %v13884_v0  ;;  %v5088_v11 = vmul.f32 %v11769_v30, %v13885_v14  ;;  %v13896_v26 = vld [vmem:[#allocation183_spill] sm:$0xff]  ;;  %v13897_v0 = vld [vmem:[#allocation188_spill] sm:$0xff] }
 0x687   :  { %6283 = vmatprep.mubr.f32.mxu0 %v5564_v4  ;;  %8864 = vmatprep.subr.bf16.mxu1 %v8863_v37  ;;  %v5414_v2 = vsel %vm2484_vm3, %v5014_v42, %v9502_v6  ;;  %v5557_v55 = vsel %vm2484_vm3, %v5045_v58, %v9503_v27  ;;  %v13889_v58 = vld [vmem:[#allocation173_spill] sm:$0xff]  ;;  %v13890_v27 = vld [vmem:[#allocation176_spill] sm:$0xff] }
 0x688   :  { %v5422_v16 = vsel %vm2484_vm3, %v5030_v50, %v9497_v31  ;;  %v5565_v23 = vsel %vm2484_vm3, %v5061_v13, %v9498_v21  ;;  %v9511_v57 = vpop.permute.xlu1 %9510  ;;  %v5047_v50 = vmul.f32 %v13801_v19, %v13887_v12  ;;  %v5072_v13 = vmul.f32 %v11769_v30, %v13888_v63  ;;  %v13891_v31 = vld [vmem:[#allocation177_spill] sm:$0xff]  ;;  %v13905_v63 = vld [vmem:[#allocation194_spill] sm:$0xff] }
 0x689   :  { %6184 = vmatmul.mubr.f32.gmra.mrb[110].mxu1 %v5413_v48  ;;  %6284 = vmatmul.mubr.f32.gmra.mrb[124].mxu0 %v5556_v7  ;;  %v9506_v59 = vpop.permute.xlu0 %9505  ;;  %v9513_v60 = vunpack.i.h.bf16 %v9511_v57  ;;  %v9512_v22 = vunpack.i.l.bf16 %v9511_v57  ;;  %v5073_v6 = vmul.f32 %v13779_v56, %v13890_v27  ;;  %v5091_v57 = vmul.f32 %v13787_v35, %v13896_v26 }
 0x68a   :  { %8866 = vmatpush3.bf16.msra.mxu1 %v8865_v54  ;;  %6188 = vmatprep.mubr.f32.mxu1 %v5422_v16  ;;  %v9508_v53 = vunpack.i.h.bf16 %v9506_v59  ;;  %v9507_v41 = vunpack.i.l.bf16 %v9506_v59  ;;  %v5063_v54 = vmul.f32 %v13801_v19, %v13886_v44  ;;  %v13893_v16 = vld [vmem:[#allocation178_spill] sm:$0xff] }
 0x68b   :  { %6288 = vmatprep.mubr.f32.mxu0 %v5565_v23  ;;  %8868 = vmatprep.subr.bf16.mxu1 %v8867_v47  ;;  %v5415_v3 = vsel %vm2484_vm3, %v5015_v8, %v9512_v22  ;;  %v5558_v51 = vsel %vm2484_vm3, %v5046_v25, %v9513_v60  ;;  %v5089_v47 = vmul.f32 %v13779_v56, %v13889_v58  ;;  %v13898_v60 = vld [vmem:[#allocation193_spill] sm:$0xff]  ;;  %v13899_v22 = vld [vmem:[#allocation184_spill] sm:$0xff] }
 0x68c   :  { %v5423_v37 = vsel %vm2484_vm3, %v5031_v32, %v9507_v41  ;;  %v5566_v38 = vsel %vm2484_vm3, %v5062_v33, %v9508_v53  ;;  %v9521_v15 = vpop.permute.xlu1 %9520  ;;  %v5090_v32 = vmul.f32 %v13782_v61, %v13892_v36  ;;  %v13900_v53 = vld [vmem:[#allocation185_spill] sm:$0xff] }
 0x68d   :  { %6189 = vmatmul.mubr.f32.gmra.mrb[112].mxu1 %v5414_v2  ;;  %6289 = vmatmul.mubr.f32.gmra.mrb[126].mxu0 %v5557_v55  ;;  %v9516_v52 = vpop.permute.xlu0 %9515  ;;  %v9523_v10 = vunpack.i.h.bf16 %v9521_v15  ;;  %v9522_v4 = vunpack.i.l.bf16 %v9521_v15  ;;  %v13894_v2 = vld [vmem:[#allocation179_spill] sm:$0xff]  ;;  %v13895_v55 = vld [vmem:[#allocation182_spill] sm:$0xff]  ;;  %v5092_v41 = vmul.f32 %v13790_v43, %v13900_v53 }
 0x68e   :  { %8870 = vmatpush3.bf16.msra.mxu1 %v8869_v28  ;;  %6193 = vmatprep.mubr.f32.mxu1 %v5423_v37  ;;  %v9518_v48 = vunpack.i.h.bf16 %v9516_v52  ;;  %v9517_v7 = vunpack.i.l.bf16 %v9516_v52  ;;  %v5074_v45 = vmul.f32 %v13782_v61, %v13895_v55  ;;  %v5075_v61 = vmul.f32 %v13787_v35, %v13899_v22  ;;  %v13901_v37 = vld [vmem:[#allocation192_spill] sm:$0xff]  ;;  %v13903_v15 = vld [vmem:[#allocation186_spill] sm:$0xff]  ;;  %v13904_v52 = vld [vmem:[#allocation175_spill] sm:$0xff] }
 0x68f   :  { %6293 = vmatprep.mubr.f32.mxu0 %v5566_v38  ;;  %8872 = vmatprep.subr.bf16.mxu1 %v8871_v62  ;;  %v5559_v18 = vsel %vm2484_vm3, %v5047_v50, %v9522_v4  ;;  %v5568_v46 = vsel %vm2484_vm3, %v5072_v13, %v9523_v10  ;;  %v5076_v35 = vmul.f32 %v13790_v43, %v13903_v15  ;;  %v13906_v4 = vld [vmem:[#allocation187_spill] sm:$0xff]  ;;  %v13908_v43 = vld [vmem:[#allocation180_spill] sm:$0xff] }
 0x690   :  { %v5567_v24 = vsel %vm2484_vm3, %v5063_v54, %v9517_v7  ;;  %v5576_v29 = vsel %vm2484_vm3, %v5088_v11, %v9518_v48  ;;  %v9531_v20 = vpop.permute.xlu1 %9530  ;;  %v5093_v44 = vmul.f32 %v13795_v40, %v13904_v52  ;;  %v5077_v48 = vmul.f32 %v13795_v40, %v13906_v4 }
 0x691   :  { %6194 = vmatmul.mubr.f32.gmra.mrb[114].mxu1 %v5415_v3  ;;  %6294 = vmatmul.mubr.f32.gmra.mrb[128].mxu0 %v5558_v51  ;;  %v9526_v42 = vpop.permute.xlu0 %9525  ;;  %v9532_v21 = vunpack.i.l.bf16 %v9531_v20  ;;  %v9533_v17 = vunpack.i.h.bf16 %v9531_v20  ;;  %v13902_v51 = vld [vmem:[#allocation195_spill] sm:$0xff]  ;;  %v13907_v7 = vmov 0.0  }
 0x692   :  { %8874 = vmatpush3.bf16.msra.mxu1 %v8873_v5  ;;  %6298 = vmatprep.mubr.f32.mxu0 %v5567_v24  ;;  %v9528_v30 = vunpack.i.h.bf16 %v9526_v42  ;;  %v9527_v49 = vunpack.i.l.bf16 %v9526_v42  ;;  %v5094_v24 = vmul.f32 %v13798_v39, %v13908_v43  ;;  %v13909_v42 = vld [vmem:[#allocation189_spill] sm:$0xff] }
 0x693   :  { %6368 = vmatprep.mubr.f32.mxu1 %v5576_v29  ;;  %v5578_v56 = vsel %vm2484_vm3, %v5090_v32, %v9532_v21  ;;  %v5570_v34 = vsel %vm2484_vm3, %v5074_v45, %v9533_v17 }
 0x694   :  { %v5577_v9 = vsel %vm2484_vm3, %v5089_v47, %v9527_v49  ;;  %v5569_v1 = vsel %vm2484_vm3, %v5073_v6, %v9528_v30  ;;  %v9541_v23 = vpop.permute.xlu1 %9540  ;;  %v5078_v30 = vmul.f32 %v13798_v39, %v13909_v42  ;;  %v13910_v49 = vld [vmem:[#allocation191_spill] sm:$0xff]  ;;  %v13911_v6 = vld [vmem:[#allocation190_spill] sm:$0xff] }
 0x695   :  { %6299 = vmatmul.mubr.f32.gmra.mrb[130].mxu0 %v5559_v18  ;;  %6369 = vmatmul.mubr.f32.vlgmr.msra.gmra.mrb[116].mxu1 %v5568_v46  ;;  %v9536_v28 = vpop.permute.xlu0 %9535  ;;  %v9542_v8 = vunpack.i.l.bf16 %v9541_v23  ;;  %v9543_v5 = vunpack.i.h.bf16 %v9541_v23  ;;  %v5095_v40 = vmul.f32 %v13801_v19, %v13910_v49  ;;  %v5079_v21 = vmul.f32 %v13801_v19, %v13911_v6 }
 0x696   :  { %8387 = vmatprep.mubr.msk.f32.mxu0 %vm2936_vm4, %v13891_v31  ;;  %6373 = vmatprep.mubr.f32.mxu1 %v5577_v9  ;;  %v9537_v33 = vunpack.i.l.bf16 %v9536_v28  ;;  %v9538_v59 = vunpack.i.h.bf16 %v9536_v28 }
 0x697   :  { %v5580_v38 = vsel %vm2484_vm3, %v5092_v41, %v9542_v8  ;;  %v5572_v12 = vsel %vm2484_vm3, %v5076_v35, %v9543_v5 }
 0x698   :  { %v5579_v25 = vsel %vm2484_vm3, %v5091_v57, %v9537_v33  ;;  %v5571_v14 = vsel %vm2484_vm3, %v5075_v61, %v9538_v59  ;;  %v9551_v3 = vpop.permute.xlu1 %9550 }
 0x699   :  { %6374 = vmatmul.mubr.f32.gmra.mrb[118].mxu1 %v5569_v1  ;;  %8388 = vmatmul.mubr.msk.f32.vlgmr.msra.gmra.mrb[132].mxu0 %vm2936_vm4, %v13893_v16  ;;  %v9546_v62 = vpop.permute.xlu0 %9545  ;;  %v9552_v50 = vunpack.i.l.bf16 %v9551_v3  ;;  %v9553_v29 = vunpack.i.h.bf16 %v9551_v3 }
 0x69a   :  { %6378 = vmatprep.mubr.f32.mxu1 %v5578_v56  ;;  %8390 = vmatprep.mubr.msk.f32.mxu0 %vm2936_vm4, %v13894_v2  ;;  %v9547_v11 = vunpack.i.l.bf16 %v9546_v62  ;;  %v9548_v54 = vunpack.i.h.bf16 %v9546_v62 }
 0x69b   :  { %v5582_v20 = vsel %vm2484_vm3, %v5094_v24, %v9552_v50  ;;  %v5574_v47 = vsel %vm2484_vm3, %v5078_v30, %v9553_v29 }
 0x69c   :  { %v5581_v13 = vsel %vm2484_vm3, %v5093_v44, %v9547_v11  ;;  %v5573_v18 = vsel %vm2484_vm3, %v5077_v48, %v9548_v54 }
 0x69d   :  { %6379 = vmatmul.mubr.f32.gmra.mrb[120].mxu1 %v5570_v34  ;;  %8391 = vmatmul.mubr.msk.f32.gmra.mrb[134].mxu0 %vm2936_vm4, %v13897_v0  ;;  %v9556_v10 = vpop.permute.xlu0 %9555 }
 0x69e   :  { %6383 = vmatprep.mubr.f32.mxu1 %v5579_v25  ;;  %8393 = vmatprep.mubr.msk.f32.mxu0 %vm2936_vm4, %v13898_v60  ;;  %v9557_v46 = vunpack.i.l.bf16 %v9556_v10  ;;  %v9558_v58 = vunpack.i.h.bf16 %v9556_v10 }
 0x6a0   :  { %v5583_v27 = vsel %vm2484_vm3, %v5095_v40, %v9557_v46  ;;  %v5575_v31 = vsel %vm2484_vm3, %v5079_v21, %v9558_v58 }
 0x6a1   :  { %6384 = vmatmul.mubr.f32.gmra.mrb[122].mxu1 %v5571_v14  ;;  %8394 = vmatmul.mubr.msk.f32.gmra.mrb[136].mxu0 %vm2936_vm4, %v13901_v37 }
 0x6a2   :  { %6388 = vmatprep.mubr.f32.mxu1 %v5580_v38  ;;  %8396 = vmatprep.mubr.msk.f32.mxu0 %vm2936_vm4, %v13902_v51 }
 0x6a5   :  { %6389 = vmatmul.mubr.f32.gmra.mrb[124].mxu1 %v5572_v12  ;;  %8397 = vmatmul.mubr.msk.f32.gmra.mrb[138].mxu0 %vm2936_vm4, %v13905_v63 }
 0x6a6   :  { %6393 = vmatprep.mubr.f32.mxu1 %v5581_v13  ;;  %8429 = vmatprep.mubr.msk.f32.mxu0 %vm9712_vm0, %v13907_v7 }
 0x6a9   :  { %6394 = vmatmul.mubr.f32.gmra.mrb[126].mxu1 %v5573_v18 }
 0x6aa   :  { %6398 = vmatprep.mubr.f32.mxu1 %v5582_v20 }
 0x6ad   :  { %6399 = vmatmul.mubr.f32.gmra.mrb[128].mxu1 %v5574_v47 }
 0x6ae   :  { %6403 = vmatprep.mubr.f32.mxu1 %v5583_v27 }
 0x6b1   :  { %6404 = vmatmul.mubr.f32.gmra.mrb[130].mxu1 %v5575_v31 }
 0x6b2   :  { %8407 = vmatprep.mubr.msk.f32.mxu1 %vm9712_vm0, %v13907_v7 }
 0x6eb   :  { %v7848_v39 = vpop.f32.mrb[84].mxu0 }
 0x6ec   :  { %v7849_v9 = vpop.f32.mrb[85].mxu0 }
 0x6ed   :  { %v7850_v1 = vadd.f32 %v7849_v9, %v7848_v39 }
 0x6f7   :  { %v7851_v28 = vpop.f32.mrb[86].mxu0 }
 0x6f8   :  { %v7852_v36 = vpop.f32.mrb[87].mxu0 }
 0x6f9   :  { %v7853_v32 = vadd.f32 %v7852_v36, %v7851_v28 }
 0x705   :  { %v7854_v17 = vpop.f32.mrb[88].mxu0 }
 0x706   :  { %v7855_v33 = vpop.f32.mrb[89].mxu0 }
 0x707   :  { %v7856_v16 = vadd.f32 %v7855_v33, %v7854_v17 }
 0x709   :  { %v7857_v56 = vpop.f32.mrb[90].mxu0 }
 0x70a   :  { %v7858_v23 = vpop.f32.mrb[91].mxu0 }
 0x70b   :  { %v7859_v2 = vadd.f32 %v7858_v23, %v7857_v56 }
 0x716   :  { %v7860_v55 = vpop.f32.mrb[92].mxu0 }
 0x717   :  { %v7861_v19 = vpop.f32.mrb[93].mxu0 }
 0x718   :  { %v7862_v45 = vadd.f32 %v7861_v19, %v7860_v55 }
 0x71a   :  { %v7863_v26 = vpop.f32.mrb[94].mxu0 }
 0x71b   :  { %v7864_v57 = vpop.f32.mrb[95].mxu0 }
 0x71c   :  { %v7865_v59 = vadd.f32 %v7864_v57, %v7863_v26 }
 0x720   :  { %v7866_v34 = vpop.f32.mrb[96].mxu0 }
 0x721   :  { %v7867_v8 = vpop.f32.mrb[97].mxu0 }
 0x722   :  { %v7868_v0 = vadd.f32 %v7867_v8, %v7866_v34 }
 0x724   :  { %v7869_v25 = vpop.f32.mrb[98].mxu0  ;;  %v7904_v62 = vpop.f32.mrb[84].mxu1 }
 0x725   :  { %v7870_v60 = vpop.f32.mrb[99].mxu0  ;;  %v7905_v22 = vpop.f32.mrb[85].mxu1 }
 0x726   :  { %v7871_v61 = vadd.f32 %v7870_v60, %v7869_v25  ;;  %v7906_v53 = vadd.f32 %v7905_v22, %v7904_v62 }
 0x728   :  { %v5951_v41 = vadd.f32 %v7906_v53, %v7850_v1  ;;  %v7907_v5 = vpop.f32.mrb[86].mxu1  ;;  %v7960_v14 = vpop.f32.mrb[100].mxu0 }
 0x729   :  { %v7908_v11 = vpop.f32.mrb[87].mxu1  ;;  %v7961_v37 = vpop.f32.mrb[101].mxu0 }
 0x72a   :  { %v7909_v38 = vadd.f32 %v7908_v11, %v7907_v5  ;;  %v7962_v3 = vadd.f32 %v7961_v37, %v7960_v14 }
 0x72c   :  { %v5956_v51 = vadd.f32 %v7909_v38, %v7853_v32  ;;  %v6056_v15 = vadd.f32 %v7962_v3, %v5951_v41  ;;  %v7910_v35 = vpop.f32.mrb[88].mxu1  ;;  %v7963_v52 = vpop.f32.mrb[102].mxu0 }
 0x72d   :  { %v7911_v44 = vpop.f32.mrb[89].mxu1  ;;  %v7964_v54 = vpop.f32.mrb[103].mxu0 }
 0x72e   :  { %v7912_v12 = vadd.f32 %v7911_v44, %v7910_v35  ;;  %v7965_v50 = vadd.f32 %v7964_v54, %v7963_v52 }
 0x730   :  { %v5961_v63 = vadd.f32 %v7912_v12, %v7856_v16  ;;  %v6061_v13 = vadd.f32 %v7965_v50, %v5956_v51  ;;  %v7913_v10 = vpop.f32.mrb[90].mxu1  ;;  %v7966_v4 = vpop.f32.mrb[104].mxu0 }
 0x731   :  { %v7914_v48 = vpop.f32.mrb[91].mxu1  ;;  %v7967_v43 = vpop.f32.mrb[105].mxu0 }
 0x732   :  { %v7915_v24 = vadd.f32 %v7914_v48, %v7913_v10  ;;  %v7968_v29 = vadd.f32 %v7967_v43, %v7966_v4 }
 0x734   :  { %v5966_v18 = vadd.f32 %v7915_v24, %v7859_v2  ;;  %v6066_v46 = vadd.f32 %v7968_v29, %v5961_v63 }
 0x736   :  { %v7916_v20 = vpop.f32.mrb[92].mxu1  ;;  %v7969_v42 = vpop.f32.mrb[106].mxu0 }
 0x737   :  { %v7917_v30 = vpop.f32.mrb[93].mxu1  ;;  %v7970_v49 = vpop.f32.mrb[107].mxu0 }
 0x738   :  { %v7918_v40 = vadd.f32 %v7917_v30, %v7916_v20  ;;  %v7971_v58 = vadd.f32 %v7970_v49, %v7969_v42 }
 0x73a   :  { %v5971_v47 = vadd.f32 %v7918_v40, %v7862_v45  ;;  %v6071_v27 = vadd.f32 %v7971_v58, %v5966_v18  ;;  %v7919_v6 = vpop.f32.mrb[94].mxu1 }
 0x73b   :  { %v7972_v21 = vpop.f32.mrb[108].mxu0  ;;  %v7920_v31 = vpop.f32.mrb[95].mxu1 }
 0x73c   :  { %v7973_v39 = vpop.f32.mrb[109].mxu0  ;;  %v7921_v9 = vadd.f32 %v7920_v31, %v7919_v6 }
 0x73d   :  { %v7974_v1 = vadd.f32 %v7973_v39, %v7972_v21 }
 0x73e   :  { %v5976_v28 = vadd.f32 %v7921_v9, %v7865_v59 }
 0x73f   :  { %v6076_v36 = vadd.f32 %v7974_v1, %v5971_v47  ;;  %v7922_v32 = vpop.f32.mrb[96].mxu1  ;;  %v7975_v17 = vpop.f32.mrb[110].mxu0 }
 0x740   :  { %v7923_v33 = vpop.f32.mrb[97].mxu1  ;;  %v7976_v16 = vpop.f32.mrb[111].mxu0 }
 0x741   :  { %v7924_v56 = vadd.f32 %v7923_v33, %v7922_v32  ;;  %v7977_v23 = vadd.f32 %v7976_v16, %v7975_v17 }
 0x743   :  { %v5981_v2 = vadd.f32 %v7924_v56, %v7868_v0  ;;  %v6081_v55 = vadd.f32 %v7977_v23, %v5976_v28  ;;  %v7925_v19 = vpop.f32.mrb[98].mxu1  ;;  %v7978_v26 = vpop.f32.mrb[112].mxu0 }
 0x744   :  { %v7926_v45 = vpop.f32.mrb[99].mxu1  ;;  %v7979_v57 = vpop.f32.mrb[113].mxu0 }
 0x745   :  { %v7927_v34 = vadd.f32 %v7926_v45, %v7925_v19  ;;  %v7980_v8 = vadd.f32 %v7979_v57, %v7978_v26 }
 0x747   :  { %v5986_v25 = vadd.f32 %v7927_v34, %v7871_v61  ;;  %v6086_v62 = vadd.f32 %v7980_v8, %v5981_v2  ;;  %v7981_v60 = vpop.f32.mrb[114].mxu0 }
 0x748   :  { %v8016_v22 = vpop.f32.mrb[100].mxu1  ;;  %v7982_v59 = vpop.f32.mrb[115].mxu0 }
 0x749   :  { %v7983_v53 = vadd.f32 %v7982_v59, %v7981_v60  ;;  %v8017_v41 = vpop.f32.mrb[101].mxu1 }
 0x74a   :  { %v8018_v5 = vadd.f32 %v8017_v41, %v8016_v22 }
 0x74b   :  { %v6091_v14 = vadd.f32 %v7983_v53, %v5986_v25 }
 0x74c   :  { %v6161_v11 = vadd.f32 %v8018_v5, %v6056_v15  ;;  %v8019_v37 = vpop.f32.mrb[102].mxu1  ;;  %v8072_v38 = vpop.f32.mrb[116].mxu0 }
 0x74d   :  { %v8020_v0 = vpop.f32.mrb[103].mxu1  ;;  %v8073_v3 = vpop.f32.mrb[117].mxu0 }
 0x74e   :  { %v8021_v51 = vadd.f32 %v8020_v0, %v8019_v37  ;;  %v8074_v35 = vadd.f32 %v8073_v3, %v8072_v38 }
 0x750   :  { %v6166_v52 = vadd.f32 %v8021_v51, %v6061_v13  ;;  %v6266_v44 = vadd.f32 %v8074_v35, %v6161_v11  ;;  %v8022_v54 = vpop.f32.mrb[104].mxu1  ;;  %v8075_v12 = vpop.f32.mrb[118].mxu0 }
 0x751   :  { %v8023_v61 = vpop.f32.mrb[105].mxu1  ;;  %v8076_v50 = vpop.f32.mrb[119].mxu0 }
 0x752   :  { %v8024_v63 = vadd.f32 %v8023_v61, %v8022_v54  ;;  %v8077_v10 = vadd.f32 %v8076_v50, %v8075_v12 }
 0x754   :  { %v6171_v4 = vadd.f32 %v8024_v63, %v6066_v46  ;;  %v6271_v48 = vadd.f32 %v8077_v10, %v6166_v52  ;;  %v8025_v43 = vpop.f32.mrb[106].mxu1  ;;  %v8078_v24 = vpop.f32.mrb[120].mxu0 }
 0x755   :  { %v8026_v29 = vpop.f32.mrb[107].mxu1  ;;  %v8079_v15 = vpop.f32.mrb[121].mxu0 }
 0x756   :  { %v8027_v18 = vadd.f32 %v8026_v29, %v8025_v43  ;;  %v8080_v20 = vadd.f32 %v8079_v15, %v8078_v24 }
 0x758   :  { %v6176_v42 = vadd.f32 %v8027_v18, %v6071_v27  ;;  %v6276_v30 = vadd.f32 %v8080_v20, %v6171_v4  ;;  %v8028_v49 = vpop.f32.mrb[108].mxu1  ;;  %v8081_v40 = vpop.f32.mrb[122].mxu0 }
 0x759   :  { %v8029_v13 = vpop.f32.mrb[109].mxu1  ;;  %v8082_v58 = vpop.f32.mrb[123].mxu0 }
 0x75a   :  { %v8030_v47 = vadd.f32 %v8029_v13, %v8028_v49  ;;  %v8083_v6 = vadd.f32 %v8082_v58, %v8081_v40 }
 0x75c   :  { %v6181_v21 = vadd.f32 %v8030_v47, %v6076_v36  ;;  %v6281_v31 = vadd.f32 %v8083_v6, %v6176_v42  ;;  %v8031_v39 = vpop.f32.mrb[110].mxu1  ;;  %v8084_v9 = vpop.f32.mrb[124].mxu0 }
 0x75d   :  { %v8032_v46 = vpop.f32.mrb[111].mxu1  ;;  %v8085_v1 = vpop.f32.mrb[125].mxu0 }
 0x75e   :  { %v8033_v28 = vadd.f32 %v8032_v46, %v8031_v39  ;;  %v8086_v32 = vadd.f32 %v8085_v1, %v8084_v9 }
 0x760   :  { %v6186_v17 = vadd.f32 %v8033_v28, %v6081_v55  ;;  %v6286_v33 = vadd.f32 %v8086_v32, %v6181_v21  ;;  %v8034_v16 = vpop.f32.mrb[112].mxu1  ;;  %v8087_v56 = vpop.f32.mrb[126].mxu0 }
 0x761   :  { %v8035_v27 = vpop.f32.mrb[113].mxu1  ;;  %v8088_v23 = vpop.f32.mrb[127].mxu0 }
 0x762   :  { %v8036_v2 = vadd.f32 %v8035_v27, %v8034_v16  ;;  %v8089_v19 = vadd.f32 %v8088_v23, %v8087_v56 }
 0x764   :  { %v6191_v26 = vadd.f32 %v8036_v2, %v6086_v62  ;;  %v6291_v45 = vadd.f32 %v8089_v19, %v6186_v17  ;;  %v8037_v57 = vpop.f32.mrb[114].mxu1  ;;  %v8090_v34 = vpop.f32.mrb[128].mxu0 }
 0x765   :  { %v8038_v36 = vpop.f32.mrb[115].mxu1  ;;  %v8091_v8 = vpop.f32.mrb[129].mxu0 }
 0x766   :  { %v8039_v25 = vadd.f32 %v8038_v36, %v8037_v57  ;;  %v8092_v60 = vadd.f32 %v8091_v8, %v8090_v34  ;;  %v9654_v57 = vld [vmem:[%s13083_s0 + $0x20] sm:$0xff] }
 0x768   :  { %v6196_v22 = vadd.f32 %v8039_v25, %v6091_v14  ;;  %v6296_v59 = vadd.f32 %v8092_v60, %v6191_v26  ;;  %v8093_v53 = vpop.f32.mrb[130].mxu0  ;;  %v8128_v41 = vpop.f32.mrb[116].mxu1  ;;  %v9655_v25 = vld [vmem:[%s13083_s0 + $0x28] sm:$0xff] }
 0x769   :  { %v8094_v55 = vpop.f32.mrb[131].mxu0  ;;  %v8129_v5 = vpop.f32.mrb[117].mxu1 }
 0x76a   :  { %v8095_v11 = vadd.f32 %v8094_v55, %v8093_v53  ;;  %v8130_v37 = vadd.f32 %v8129_v5, %v8128_v41  ;;  %v6620_v53 = vld [vmem:[%s13089_s6 + $0x10] sm:$0xff]  ;;  %v6621_v5 = vld [vmem:[%s13089_s6 + $0x18] sm:$0xff] }
 0x76b   :  { %v9656_v41 = vld [vmem:[%s13083_s0 + $0x30] sm:$0xff] }
 0x76c   :  { %v12884_v38 = vadd.f32 %v8095_v11, %v6196_v22  ;;  %v8131_v0 = vpop.f32.mrb[118].mxu1  ;;  %v8389_v3 = vpop.f32.mrb[132].mxu0  ;;  %v6371_v62 = vadd.f32 %v8130_v37, %v6266_v44  ;;  %v6618_v22 = vld [vmem:[%s13089_s6] sm:$0xff]  ;;  %v9730_v11 = vmov 0.0|0.0   ;;  %v12926_v37 = vpack.c.bf16 %v6621_v5, %v6620_v53  ;;  %v13919_v5 = vld [vmem:[#allocation203_spill] sm:$0xff] }
 0x76d   :  { %v8132_v51 = vpop.f32.mrb[119].mxu1  ;;  %v6475_v35 = vpop.f32.mrb[133].mxu0  ;;  %8879 = vmatprep.subr.bf16.mxu1 %v9730_v11  ;;  %8891 = vmatprep.subr.bf16.mxu0 %v9730_v11 }
 0x76e   :  { %v8133_v52 = vadd.f32 %v8132_v51, %v8131_v0  ;;  %v6476_v54 = vadd.f32 %v6475_v35, %v6371_v62  ;;  %v9657_v0 = vld [vmem:[%s13083_s0 + $0x38] sm:$0xff]  ;;  %v6531_v62 = vpop.permute.xlu1 %6530  ;;  %v7373_v51 = vld [vmem:[%s13089_s6 + $0x40] sm:$0xff]  ;;  %v7374_v35 = vld [vmem:[%s13089_s6 + $0x48] sm:$0xff] }
 0x770   :  { %v6376_v12 = vadd.f32 %v8133_v52, %v6271_v48  ;;  %9592 = vtanh.f32 %v6476_v54  ;;  %v8134_v61 = vpop.f32.mrb[120].mxu1  ;;  %v8392_v14 = vpop.f32.mrb[134].mxu0  ;;  %v12943_v52 = vpack.c.bf16 %v7374_v35, %v7373_v51  ;;  %v7375_v54 = vld [vmem:[%s13089_s6 + $0x50] sm:$0xff]  ;;  %v7367_v35 = vld [vmem:[%s13089_s6 + $0x20] sm:$0xff] }
 0x771   :  { %v8135_v50 = vpop.f32.mrb[121].mxu1  ;;  %v6485_v63 = vpop.f32.mrb[135].mxu0 }
 0x772   :  { %v6481_v10 = vadd.f32 %v8389_v3, %v6376_v12  ;;  %v8136_v4 = vadd.f32 %v8135_v50, %v8134_v61  ;;  %8893 = vmatpush3.bf16.msra.mxu0 %v12943_v52  ;;  %v7376_v12 = vld [vmem:[%s13089_s6 + $0x58] sm:$0xff]  ;;  %v6533_v61 = vpop.permute.xlu1 %6532  ;;  %v13912_v50 = vld [vmem:[#allocation196_spill] sm:$0xff] }
 0x773   :  { %8894 = vmatprep.subr.bf16.mxu0 %v9730_v11 }
 0x774   :  { %9594 = vtanh.f32 %v6481_v10  ;;  %v6381_v43 = vadd.f32 %v8136_v4, %v6276_v30  ;;  %v8137_v24 = vpop.f32.mrb[122].mxu1  ;;  %v8395_v29 = vpop.f32.mrb[136].mxu0  ;;  %v6554_v4 = vmul.f32 %v13912_v50, %v6531_v62 }
 0x775   :  { %v8138_v15 = vpop.f32.mrb[123].mxu1  ;;  %v6495_v18 = vpop.f32.mrb[137].mxu0 }
 0x776   :  { %v6486_v20 = vadd.f32 %v6485_v63, %v6381_v43  ;;  %v8139_v44 = vadd.f32 %v8138_v15, %v8137_v24  ;;  %v6562_v63 = vsub.f32 1.0, %v13912_v50  ;;  %v7370_v50 = vld [vmem:[%s13089_s6 + $0x38] sm:$0xff] }
 0x778   :  { %9596 = vtanh.f32 %v6486_v20  ;;  %v6386_v42 = vadd.f32 %v8139_v44, %v6281_v31  ;;  %v8140_v49 = vpop.f32.mrb[124].mxu1  ;;  %v8398_v40 = vpop.f32.mrb[138].mxu0 }
 0x779   :  { %v8141_v48 = vpop.f32.mrb[125].mxu1  ;;  %v6505_v13 = vpop.f32.mrb[139].mxu0 }
 0x77a   :  { %v9593_v58 = vpop.eup %9592  ;;  %v6491_v47 = vadd.f32 %v8392_v14, %v6386_v42  ;;  %v8142_v6 = vadd.f32 %v8141_v48, %v8140_v49  ;;  %v12953_v14 = vpack.c.bf16 %v7376_v12, %v7375_v54  ;;  %v7368_v54 = vld [vmem:[%s13089_s6 + $0x28] sm:$0xff] }
 0x77b   :  { %6578 = vrot.lane.b32.xlu0 %v9593_v58, %s9720_s13  ;;  %v8886_v12 = vpack.c.bf16 %v7368_v54, %v7367_v35 }
 0x77c   :  { %9598 = vtanh.f32 %v6491_v47  ;;  %v6391_v21 = vadd.f32 %v8142_v6, %v6286_v33  ;;  %v8143_v30 = vpop.f32.mrb[126].mxu1  ;;  %v9653_v33 = vld [vmem:[%s13083_s0 + $0x18] sm:$0xff]  ;;  %8896 = vmatpush3.bf16.msra.mxu0 %v12953_v14 }
 0x77d   :  { %v8144_v39 = vpop.f32.mrb[127].mxu1  ;;  %8903 = vmatprep.subr.bf16.mxu0 %v9730_v11 }
 0x77e   :  { %v9595_v9 = vpop.eup %9594  ;;  %v6496_v46 = vadd.f32 %v6495_v18, %v6391_v21  ;;  %v8145_v1 = vadd.f32 %v8144_v39, %v8143_v30  ;;  %v6535_v18 = vpop.permute.xlu1 %6534  ;;  %v13915_v30 = vld [vmem:[#allocation199_spill] sm:$0xff] }
 0x77f   :  { %6580 = vrot.lane.b32.xlu0 %v9595_v9, %s9720_s13  ;;  %v6565_v39 = vsub.f32 1.0, %v13915_v30 }
 0x780   :  { %9600 = vtanh.f32 %v6496_v46  ;;  %v6396_v31 = vadd.f32 %v8145_v1, %v6291_v45  ;;  %v8146_v28 = vpop.f32.mrb[128].mxu1 }
 0x781   :  { %v8147_v32 = vpop.f32.mrb[129].mxu1 }
 0x782   :  { %v9597_v17 = vpop.eup %9596  ;;  %v6501_v16 = vadd.f32 %v8395_v29, %v6396_v31  ;;  %v8148_v56 = vadd.f32 %v8147_v32, %v8146_v28  ;;  %v13913_v29 = vld [vmem:[#allocation197_spill] sm:$0xff]  ;;  %v13916_v32 = vld [vmem:[#allocation200_spill] sm:$0xff] }
 0x783   :  { %6582 = vrot.lane.b32.xlu1 %v9597_v17, %s9720_s13  ;;  %6536 = vrot.lane.b32.xlu0 %v9653_v33, %s9720_s13  ;;  %v6563_v15 = vsub.f32 1.0, %v13913_v29  ;;  %v6555_v44 = vmul.f32 %v13913_v29, %v6533_v61  ;;  %v6566_v17 = vsub.f32 1.0, %v13916_v32  ;;  %v7369_v61 = vld [vmem:[%s13089_s6 + $0x30] sm:$0xff] }
 0x784   :  { %9602 = vtanh.f32 %v6501_v16  ;;  %v6401_v27 = vadd.f32 %v8148_v56, %v6296_v59  ;;  %v8149_v23 = vpop.f32.mrb[130].mxu1  ;;  %v6619_v59 = vld [vmem:[%s13089_s6 + $0x8] sm:$0xff]  ;;  %v7381_v29 = vld [vmem:[%s13089_s6 + $0x70] sm:$0xff] }
 0x785   :  { %v8150_v2 = vpop.f32.mrb[131].mxu1  ;;  %v12918_v55 = vpack.c.bf16 %v6619_v59, %v6618_v22 }
 0x786   :  { %v9599_v19 = vpop.eup %9598  ;;  %v6506_v26 = vadd.f32 %v6505_v13, %v6401_v27  ;;  %v8151_v45 = vadd.f32 %v8150_v2, %v8149_v23  ;;  %v13917_v2 = vld [vmem:[#allocation201_spill] sm:$0xff] }
 0x787   :  { %6538 = vrot.lane.b32.xlu1 %v9654_v57, %s9720_s13  ;;  %6584 = vrot.lane.b32.xlu0 %v9599_v19, %s9720_s13  ;;  %v6567_v19 = vsub.f32 1.0, %v13917_v2 }
 0x788   :  { %9604 = vtanh.f32 %v6506_v26  ;;  %v6406_v34 = vadd.f32 %v8151_v45, %v12884_v38  ;;  %8881 = vmatpush3.bf16.msra.mxu1 %v12918_v55 }
 0x789   :  { %8882 = vmatprep.subr.bf16.mxu1 %v9730_v11 }
 0x78a   :  { %v9601_v36 = vpop.eup %9600  ;;  %v6511_v8 = vadd.f32 %v8398_v40, %v6406_v34  ;;  %v13914_v40 = vld [vmem:[#allocation198_spill] sm:$0xff] }
 0x78b   :  { %6586 = vrot.lane.b32.xlu1 %v9601_v36, %s9720_s13  ;;  %6540 = vrot.lane.b32.xlu0 %v9655_v25, %s9720_s13  ;;  %v6564_v48 = vsub.f32 1.0, %v13914_v40  ;;  %v6556_v47 = vmul.f32 %v13914_v40, %v6535_v18 }
 0x78c   :  { %9606 = vtanh.f32 %v6511_v8  ;;  %8884 = vmatpush3.bf16.msra.mxu1 %v12926_v37  ;;  %v13918_v8 = vld [vmem:[#allocation202_spill] sm:$0xff] }
 0x78d   :  { %8885 = vmatprep.subr.bf16.mxu1 %v9730_v11  ;;  %v6568_v25 = vsub.f32 1.0, %v13918_v8 }
 0x78e   :  { %v9603_v60 = vpop.eup %9602 }
 0x78f   :  { %6542 = vrot.lane.b32.xlu1 %v9656_v41, %s9720_s13  ;;  %6588 = vrot.lane.b32.xlu0 %v9603_v60, %s9720_s13 }
 0x792   :  { %v9605_v38 = vpop.eup %9604 }
 0x793   :  { %6590 = vrot.lane.b32.xlu1 %v9605_v38, %s9720_s13  ;;  %6544 = vrot.lane.b32.xlu0 %v9657_v0, %s9720_s13  ;;  %v6569_v38 = vsub.f32 1.0, %v13919_v5 }
 0x796   :  { %v9607_v3 = vpop.eup %9606 }
 0x797   :  { %6592 = vrot.lane.b32.xlu0 %v9607_v3, %s9720_s13 }
 0x7ed   :  { %v6579_v10 = vpop.permute.xlu0 %6578 }
 0x7ee   :  { %v6602_v43 = vmul.f32 %v6579_v10, %v6562_v63  ;;  %v8889_v10 = vpack.c.bf16 %v7370_v50, %v7369_v61 }
 0x7f0   :  { %v6610_v24 = vadd.f32 %v6602_v43, %v6554_v4  ;;  %v7379_v4 = vld [vmem:[%s13089_s6 + $0x60] sm:$0xff]  ;;  %v7380_v43 = vld [vmem:[%s13089_s6 + $0x68] sm:$0xff] }
 0x7f1   :  { %v6581_v20 = vpop.permute.xlu0 %6580 }
 0x7f2   :  { %v6603_v42 = vmul.f32 %v6581_v20, %v6563_v15  ;;  %6628 = vrot.lane.b32.xlu1 %v6610_v24, %s9731_s10  ;;  %v8898_v24 = vpack.c.bf16 %v7380_v43, %v7379_v4  ;;  %v7382_v15 = vld [vmem:[%s13089_s6 + $0x78] sm:$0xff] }
 0x7f4   :  { %v6611_v49 = vadd.f32 %v6603_v42, %v6555_v44  ;;  %v8901_v44 = vpack.c.bf16 %v7382_v15, %v7381_v29 }
 0x7f5   :  { %v6583_v13 = vpop.permute.xlu1 %6582  ;;  %v6537_v58 = vpop.permute.xlu0 %6536 }
 0x7f6   :  { %v6604_v6 = vmul.f32 %v6583_v13, %v6564_v48  ;;  %6715 = vrot.lane.b32.xlu0 %v6611_v49, %s9731_s10  ;;  %v6557_v1 = vmul.f32 %v13915_v30, %v6537_v58 }
 0x7f8   :  { %v6612_v21 = vadd.f32 %v6604_v6, %v6556_v47 }
 0x7f9   :  { %v6539_v9 = vpop.permute.xlu1 %6538  ;;  %v6585_v46 = vpop.permute.xlu0 %6584 }
 0x7fa   :  { %v6605_v31 = vmul.f32 %v6585_v46, %v6565_v39  ;;  %6801 = vrot.lane.b32.xlu1 %v6612_v21, %s9731_s10  ;;  %v6558_v33 = vmul.f32 %v13916_v32, %v6539_v9  ;;  %v7383_v9 = vld [vmem:[%s13090_s7 + $0x3] ss:$0 sm:$0xff] }
 0x7fc   :  { %v6613_v28 = vadd.f32 %v6605_v31, %v6557_v1 }
 0x7fd   :  { %v6587_v16 = vpop.permute.xlu1 %6586  ;;  %v6541_v56 = vpop.permute.xlu0 %6540 }
 0x7fe   :  { %v6606_v27 = vmul.f32 %v6587_v16, %v6566_v17  ;;  %6887 = vrot.lane.b32.xlu0 %v6613_v28, %s9731_s10  ;;  %v6559_v57 = vmul.f32 %v13917_v2, %v6541_v56 }
 0x800   :  { %v6614_v23 = vadd.f32 %v6606_v27, %v6558_v33 }
 0x801   :  { %v6543_v26 = vpop.permute.xlu1 %6542  ;;  %v6589_v45 = vpop.permute.xlu0 %6588 }
 0x802   :  { %v6607_v34 = vmul.f32 %v6589_v45, %v6567_v19  ;;  %6972 = vrot.lane.b32.xlu1 %v6614_v23, %s9731_s10  ;;  %v6560_v59 = vmul.f32 %v13918_v8, %v6543_v26 }
 0x804   :  { %v6615_v36 = vadd.f32 %v6607_v34, %v6559_v57 }
 0x805   :  { %v6591_v60 = vpop.permute.xlu1 %6590  ;;  %v6545_v22 = vpop.permute.xlu0 %6544 }
 0x806   :  { %v6608_v53 = vmul.f32 %v6591_v60, %v6568_v25  ;;  %7057 = vrot.lane.b32.xlu0 %v6615_v36, %s9731_s10  ;;  %v6561_v3 = vmul.f32 %v13919_v5, %v6545_v22 }
 0x808   :  { %v6616_v41 = vadd.f32 %v6608_v53, %v6560_v59 }
 0x809   :  { %v6593_v0 = vpop.permute.xlu0 %6592 }
 0x80a   :  { %v6609_v62 = vmul.f32 %v6593_v0, %v6569_v38  ;;  %7142 = vrot.lane.b32.xlu1 %v6616_v41, %s9731_s10 }
 0x80c   :  { %v6617_v51 = vadd.f32 %v6609_v62, %v6561_v3 }
 0x80e   :  { %7227 = vrot.lane.b32.xlu0 %v6617_v51, %s9731_s10 }
 0x864   :  { %v6629_v63 = vpop.permute.xlu1 %6628 }
 0x865   :  { %8408 = vmatmul.mubr.msk.f32.vlgmr.msra.gmra.mrb[132].mxu1 %vm235_vm2, %v6629_v63 }
 0x866   :  { %8887 = vmatpush3.bf16.msra.mxu1 %v8886_v12  ;;  %8418 = vmatprep.mubr.msk.f32.mxu1 %vm9712_vm0, %v13907_v7 }
 0x867   :  { %8888 = vmatprep.subr.bf16.mxu1 %v9730_v11 }
 0x868   :  { %v6716_v18 = vpop.permute.xlu0 %6715 }
 0x86a   :  { %8890 = vmatpush3.bf16.msra.mxu1 %v8889_v10 }
 0x86b   :  { %8897 = vmatprep.subr.bf16.mxu1 %v9730_v11 }
 0x86c   :  { %v6802_v20 = vpop.permute.xlu1 %6801 }
 0x86d   :  { %8419 = vmatmul.mubr.msk.f32.vlgmr.msra.gmra.mrb[134].mxu1 %vm235_vm2, %v6716_v18  ;;  %8430 = vmatmul.mubr.msk.f32.vlgmr.msra.gmra.mrb[140].mxu0 %vm235_vm2, %v6802_v20 }
 0x86e   :  { %8899 = vmatpush3.bf16.msra.mxu1 %v8898_v24  ;;  %8905 = vmatpush3.bf16.msra.mxu0 %v12918_v55 }
 0x86f   :  { %8900 = vmatprep.subr.bf16.mxu1 %v9730_v11  ;;  %8906 = vmatprep.subr.bf16.mxu0 %v9730_v11 }
 0x870   :  { %8440 = vmatprep.mubr.msk.f32.mxu1 %vm9712_vm0, %v13907_v7  ;;  %8451 = vmatprep.mubr.msk.f32.mxu0 %vm9712_vm0, %v13907_v7  ;;  %v6888_v42 = vpop.permute.xlu0 %6887 }
 0x872   :  { %8902 = vmatpush3.bf16.msra.mxu1 %v8901_v44  ;;  %8908 = vmatpush3.bf16.msra.mxu0 %v12926_v37 }
 0x873   :  { %8909 = vmatprep.subr.bf16.mxu1 %v9730_v11  ;;  %8915 = vmatprep.subr.bf16.mxu0 %v9730_v11 }
 0x874   :  { %v6973_v55 = vpop.permute.xlu1 %6972 }
 0x875   :  { %8441 = vmatmul.mubr.msk.f32.vlgmr.msra.gmra.mrb[136].mxu1 %vm235_vm2, %v6888_v42  ;;  %8452 = vmatmul.mubr.msk.f32.vlgmr.msra.gmra.mrb[142].mxu0 %vm235_vm2, %v6973_v55 }
 0x876   :  { %8911 = vmatpush3.bf16.msra.mxu1 %v8886_v12  ;;  %8917 = vmatpush3.bf16.msra.mxu0 %v12943_v52 }
 0x877   :  { %8912 = vmatprep.subr.bf16.mxu1 %v9730_v11  ;;  %8918 = vmatprep.subr.bf16.mxu0 %v9730_v11 }
 0x878   :  { %8462 = vmatprep.mubr.msk.f32.mxu1 %vm9712_vm0, %v13907_v7  ;;  %8473 = vmatprep.mubr.msk.f32.mxu0 %vm9712_vm0, %v13907_v7  ;;  %v7058_v37 = vpop.permute.xlu0 %7057 }
 0x87a   :  { %8914 = vmatpush3.bf16.msra.mxu1 %v8889_v10  ;;  %8920 = vmatpush3.bf16.msra.mxu0 %v12953_v14  ;;  %v7365_v14 = vld [vmem:[%s13090_s7] ss:$0 sm:$0xff] }
 0x87b   :  { %8921 = vmatprep.subr.bf16.mxu1 %v9730_v11 }
 0x87c   :  { %v7143_v49 = vpop.permute.xlu1 %7142 }
 0x87d   :  { %8463 = vmatmul.mubr.msk.f32.vlgmr.msra.gmra.mrb[138].mxu1 %vm235_vm2, %v7058_v37  ;;  %8474 = vmatmul.mubr.msk.f32.vlgmr.msra.gmra.mrb[144].mxu0 %vm235_vm2, %v7143_v49 }
 0x87e   :  { %8923 = vmatpush3.bf16.msra.mxu1 %v8898_v24  ;;  %8484 = vmatprep.mubr.msk.f32.mxu1 %vm9712_vm0, %v13907_v7  ;;  %v7371_v7 = vld [vmem:[%s13090_s7 + $0x1] ss:$0 sm:$0xff] }
 0x87f   :  { %8924 = vmatprep.subr.bf16.mxu1 %v9730_v11  ;;  %v7377_v11 = vld [vmem:[%s13090_s7 + $0x2] ss:$0 sm:$0xff] }
 0x880   :  { %v7228_v52 = vpop.permute.xlu0 %7227 }
 0x882   :  { %8926 = vmatpush3.bf16.msra.mxu1 %v8901_v44 }
 0x885   :  { %8485 = vmatmul.mubr.msk.f32.vlgmr.msra.gmra.mrb[140].mxu1 %vm235_vm2, %v7228_v52 }
 0x938   :  { %v6698_v40 = vpop.f32.mrb[132].mxu1 }
 0x939   :  { %v6699_v48 = vadd.f32 %v7365_v14, %v6698_v40  ;;  %v8409_v13 = vpop.f32.mrb[133].mxu1 }
 0x93b   :  { %6703 = vst.msk [vmem:[%s13091_s8] sm:$0xff] %vm6702_vm5, %v6699_v48 }
 0x940   :  { %v6785_v58 = vpop.f32.mrb[134].mxu1  ;;  %v6871_v47 = vpop.f32.mrb[140].mxu0 }
 0x941   :  { %v6786_v6 = vadd.f32 %v7371_v7, %v6785_v58  ;;  %v8420_v21 = vpop.f32.mrb[135].mxu1  ;;  %v6872_v30 = vadd.f32 %v7377_v11, %v6871_v47  ;;  %v8431_v39 = vpop.f32.mrb[141].mxu0 }
 0x943   :  { %6789 = vst.msk [vmem:[%s13091_s8 + $0x8] sm:$0xff] %vm6702_vm5, %v6786_v6  ;;  %6875 = vst.msk [vmem:[%s13091_s8 + $0x10] sm:$0xff] %vm6702_vm5, %v6872_v30 }
 0x948   :  { %v6957_v46 = vpop.f32.mrb[136].mxu1  ;;  %v7042_v1 = vpop.f32.mrb[142].mxu0 }
 0x949   :  { %v6958_v31 = vadd.f32 %v7383_v9, %v6957_v46  ;;  %v8442_v28 = vpop.f32.mrb[137].mxu1  ;;  %v7043_v32 = vadd.f32 %v7365_v14, %v7042_v1  ;;  %v8453_v17 = vpop.f32.mrb[143].mxu0 }
 0x94b   :  { %6961 = vst.msk [vmem:[%s13091_s8 + $0x18] sm:$0xff] %vm6702_vm5, %v6958_v31  ;;  %7046 = vst.msk [vmem:[%s13091_s8 + $0x20] sm:$0xff] %vm6702_vm5, %v7043_v32 }
 0x950   :  { %v7127_v16 = vpop.f32.mrb[138].mxu1  ;;  %v7212_v56 = vpop.f32.mrb[144].mxu0 }
 0x951   :  { %v7128_v33 = vadd.f32 %v7371_v7, %v7127_v16  ;;  %v8464_v27 = vpop.f32.mrb[139].mxu1  ;;  %v7213_v23 = vadd.f32 %v7377_v11, %v7212_v56  ;;  %v8475_v2 = vpop.f32.mrb[145].mxu0 }
 0x953   :  { %7131 = vst.msk [vmem:[%s13091_s8 + $0x28] sm:$0xff] %vm6702_vm5, %v7128_v33  ;;  %7216 = vst.msk [vmem:[%s13091_s8 + $0x30] sm:$0xff] %vm6702_vm5, %v7213_v23 }
 0x958   :  { %v7297_v19 = vpop.f32.mrb[140].mxu1 }
 0x959   :  { %v7298_v26 = vadd.f32 %v7383_v9, %v7297_v19  ;;  %v8486_v45 = vpop.f32.mrb[141].mxu1 }
 0x95b   :  { %7301 = vst.msk [vmem:[%s13091_s8 + $0x38] sm:$0xff] %vm6702_vm5, %v7298_v26 }
 0x95c   :  { %7306 = vsyncpa [#allocation3], 1 }
 0x95d   :  { %7307 = vsyncpa [#allocation5], 1 }

</bundles_post_ra>
